<compile_context>
chip_gen: v7x
topology: tpu7x:2x2x1
jax: 0.10.0
libtpu: 0.0.40
codegen_flags: <defaults>
</compile_context>

<pallas_src>
import functools

import numpy as np
import jax
import jax.numpy as jnp
from jax.experimental import pallas as pl

jax.config.update("jax_default_matmul_precision", "highest")


# --------------------------------------------------------------------------
# Fused Pallas kernel: all layers + flatten + variational heads
# --------------------------------------------------------------------------
def _encoder_fused_kernel(*refs, n_layers, cheb_K, batch):
    """Single-invocation Encoder3DMesh forward, everything VMEM-resident.

    refs layout (inputs then output):
      x_ref                     (B, N0, F0)
      per layer i (4 refs):     A_norm (Ni, Ni), D (Mi, Ni), W (Ki, Fi, Fi+1), b (1, Fi+1)
      w_head_ref                (M_last, F_last, 2L)   # [W_mu | W_var], row-major reshape
      b_head_ref                (1, 2L)
      out_ref                   (B, 1, 2L)
    """
    x_ref = refs[0]
    layer_refs = refs[1:1 + 4 * n_layers]
    w_head_ref = refs[1 + 4 * n_layers]
    b_head_ref = refs[2 + 4 * n_layers]
    out_ref = refs[3 + 4 * n_layers]

    # Per-batch activations stay as VMEM-resident values; batch is unrolled (tiny B).
    xs = [x_ref[b] for b in range(batch)]

    for li in range(n_layers):
        a_ref, d_ref, w_ref, b_ref = layer_refs[4 * li: 4 * li + 4]
        a = a_ref[...]                    # (N, N) normalized adjacency (dense)
        d = d_ref[...]                    # (M, N) downsample matrix (dense)
        bias = b_ref[...]                 # (1, Fout), broadcast over nodes
        K = cheb_K[li]

        new_xs = []
        for b in range(batch):
            # ChebConv_Coma: out = sum_k T_k(A_norm) @ x @ W[k] + bias
            t0 = xs[b]                                                     # (N, Fin)
            out = jnp.dot(t0, w_ref[0], preferred_element_type=jnp.float32)
            if K > 1:
                t1 = jnp.dot(a, t0, preferred_element_type=jnp.float32)    # T_1 = A x
                out = out + jnp.dot(t1, w_ref[1], preferred_element_type=jnp.float32)
                for k in range(2, K):                                      # Chebyshev recurrence
                    t2 = 2.0 * jnp.dot(a, t1, preferred_element_type=jnp.float32) - t0
                    out = out + jnp.dot(t2, w_ref[k], preferred_element_type=jnp.float32)
                    t0, t1 = t1, t2
            out = out + bias
            # Pool: D @ out.  Kept dense so arbitrary binary/weighted downsample
            # matrices keep exact semantics (D is VMEM-resident and tiny).
            pooled = jnp.dot(d, out, preferred_element_type=jnp.float32)   # (M, Fout)
            new_xs.append(jnp.maximum(pooled, 0.0))                        # ReLU
        xs = new_xs

    # Fused latent heads: y = flatten_row_major(x_last) @ [W_mu | W_var] + [b_mu | b_var].
    # The row-major flatten is expressed as a sum over node rows, avoiding any
    # in-kernel (M_last, F_last) -> (1, M_last*F_last) relayout.
    m_last = w_head_ref.shape[0]
    bias_head = b_head_ref[...]                                            # (1, 2L)
    for b in range(batch):
        xb = xs[b]                                                         # (M_last, F_last)
        acc = jnp.dot(xb[0:1, :], w_head_ref[0], preferred_element_type=jnp.float32)
        for m in range(1, m_last):
            acc = acc + jnp.dot(xb[m:m + 1, :], w_head_ref[m],
                                preferred_element_type=jnp.float32)
        out_ref[b] = acc + bias_head                                       # (1, 2L)


# --------------------------------------------------------------------------
# Wrapper: one pallas_call for the whole forward pass
# --------------------------------------------------------------------------
def encoder3dmesh_forward(x, params):
    """Full Encoder3DMesh forward as a single fused Pallas call."""
    B = x.shape[0]
    layers = params["layers"]
    n_layers = len(layers)
    cheb_K = tuple(int(l["W"].shape[0]) for l in layers)
    M_last = layers[-1]["down"].shape[0]
    F_last = layers[-1]["W"].shape[-1]
    L = params["w_mu_t"].shape[1]

    layer_args = []
    for l in layers:
        layer_args += [l["A_norm"], l["down"], l["W"], l["b"]]

    # Concatenate mu/var head weights -> single fused head contraction; reshape
    # row-major to (M_last, F_last, 2L) at trace time (matches x.reshape(B, M*F)).
    w_head = jnp.concatenate([params["w_mu_t"], params["w_var_t"]], axis=1)
    w_head = w_head.reshape(M_last, F_last, 2 * L)
    b_head = jnp.concatenate([params["b_mu"], params["b_var"]], axis=1)

    kernel = functools.partial(
        _encoder_fused_kernel, n_layers=n_layers, cheb_K=cheb_K, batch=B)

    # Grid-less call: every operand is a single full-array VMEM block.
    # (For large B on v7x, add a leading "parallel" batch grid axis to use both TCs.)
    y = pl.pallas_call(
        kernel,
        out_shape=jax.ShapeDtypeStruct((B, 1, 2 * L), jnp.float32),
    )(x, *layer_args, w_head, b_head)

    y = y.reshape(B, 2 * L)
    return {"mu": y[:, :L], "log_var": y[:, L:]}


# --------------------------------------------------------------------------
# Pure-JAX reference (for correctness check)
# --------------------------------------------------------------------------
def _ref_layer(x, A, D, W, b):
    K = W.shape[0]
    t0 = x
    out = jnp.einsum("bnf,fo->bno", t0, W[0])
    if K > 1:
        t1 = jnp.einsum("nm,bmf->bnf", A, t0)
        out = out + jnp.einsum("bnf,fo->bno", t1, W[1])
        for k in range(2, K):
            t2 = 2.0 * jnp.einsum("nm,bmf->bnf", A, t1) - t0
            out = out + jnp.einsum("bnf,fo->bno", t2, W[k])
            t0, t1 = t1, t2
    out = out + b
    out = jnp.einsum("mn,bnf->bmf", D, out)
    return jnp.maximum(out, 0.0)


def _ref_forward(x, params):
    for layer in params["layers"]:
        x = _ref_layer(x, layer["A_norm"], layer["down"], layer["W"], layer["b"])
    x = x.reshape(x.shape[0], -1)
    mu = x @ params["w_mu_t"] + params["b_mu"]
    lv = x @ params["w_var_t"] + params["b_var"]
    return {"mu": mu, "log_var": lv}


# --------------------------------------------------------------------------
# Deterministic synthetic setup (mesh topology + parameters)
# --------------------------------------------------------------------------
def _build_ring_adjacency(n):
    A = np.zeros((n, n), np.float32)
    for i in range(n):
        for d in (1, 2):
            A[i, (i + d) % n] = 1.0
            A[(i + d) % n, i] = 1.0
    np.fill_diagonal(A, 0.0)                     # remove_self_loops
    return A


def _sym_norm(A):
    # ChebConv_Coma.norm: D^{-1/2} A D^{-1/2}, edge_weight = 1, inf -> 0
    deg = A.sum(axis=1)
    dinv = np.where(deg > 0, deg ** -0.5, 0.0)
    return (dinv[:, None] * A * dinv[None, :]).astype(np.float32)


def _build_downsample(n_out, n_in):
    D = np.zeros((n_out, n_in), np.float32)      # binary downsample matrix
    factor = n_in // n_out
    for i in range(n_out):
        D[i, i * factor] = 1.0
    return D


def build_params(key, num_features, filters_enc, cheb_K, n_nodes, latent_dim):
    filters = [num_features] + list(filters_enc)
    n_layers = len(filters_enc)
    layers = []
    k_w, k_b, k_mu_w, k_mu_b, k_var_w, k_var_b = jax.random.split(key, 6)
    w_keys = jax.random.split(k_w, n_layers)
    b_keys = jax.random.split(k_b, n_layers)
    down_sizes = []
    for i in range(n_layers):
        N = n_nodes[i]
        M = n_nodes[i + 1] if i + 1 < len(n_nodes) else n_nodes[i] // 2
        down_sizes.append(M)
        A_norm = jnp.asarray(_sym_norm(_build_ring_adjacency(N)))
        down = jnp.asarray(_build_downsample(M, N))
        # ChebConv_Coma.reset_parameters: weight, bias ~ N(0, 0.1)
        W = 0.1 * jax.random.normal(w_keys[i], (cheb_K[i], filters[i], filters[i + 1]), jnp.float32)
        b = 0.1 * jax.random.normal(b_keys[i], (1, filters[i + 1]), jnp.float32)
        layers.append({"A_norm": A_norm, "down": down, "W": W, "b": b})

    n_feat_before_z = down_sizes[-1] * filters[-1]
    # enc_lin_mu.weight ~ N(0, 0.001), enc_lin_var.weight ~ N(0, 0.0001).
    w_mu = 0.001 * jax.random.normal(k_mu_w, (latent_dim, n_feat_before_z), jnp.float32)
    b_mu = 0.01 * jax.random.normal(k_mu_b, (1, latent_dim), jnp.float32)
    w_var = 0.0001 * jax.random.normal(k_var_w, (latent_dim, n_feat_before_z), jnp.float32)
    b_var = 0.01 * jax.random.normal(k_var_b, (1, latent_dim), jnp.float32)
    return {
        "layers": layers,
        "w_mu_t": w_mu.T, "b_mu": b_mu,          # kernel takes (F, L) layout
        "w_var_t": w_var.T, "b_var": b_var,
    }


# --------------------------------------------------------------------------
# Main
# --------------------------------------------------------------------------
if __name__ == "__main__":
    # Small synthetic config consistent with the module's __init__:
    #   num_features=3 (xyz coords), num_conv_filters_enc=[16, 32],
    #   cheb_polynomial_order=[6, 6], n_nodes=[32, 16], downsample -> [16, 8],
    #   is_variational=True, latent_dim=8
    B = 2
    num_features = 3
    filters_enc = [16, 32]
    cheb_K = [6, 6]
    n_nodes = [32, 16]
    latent_dim = 8

    key = jax.random.PRNGKey(0)
    k_params, k_x = jax.random.split(key)
    params = build_params(k_params, num_features, filters_enc, cheb_K, n_nodes, latent_dim)

    x = jax.random.normal(k_x, (B, n_nodes[0], num_features), jnp.float32)

    fwd = jax.jit(encoder3dmesh_forward)
    out = fwd(x, params)
    mu = jax.block_until_ready(out["mu"])
    log_var = jax.block_until_ready(out["log_var"])

    # Correctness check against a pure-JAX reference (tight f32 tolerance).
    ref = _ref_forward(x, params)
    np.testing.assert_allclose(np.asarray(mu), np.asarray(ref["mu"]), rtol=1e-5, atol=1e-5)
    np.testing.assert_allclose(np.asarray(log_var), np.asarray(ref["log_var"]), rtol=1e-5, atol=1e-5)

    assert mu.shape == (B, latent_dim) and log_var.shape == (B, latent_dim)
    print("KERNEL_OK")
</pallas_src>

<mosaic_0001>
module attributes {stable_mosaic.version = 11 : i64} {
  func.func @_encoder_fused_kernel(%arg0: memref<2x32x3xf32, #tpu.memory_space<vmem>>, %arg1: memref<32x32xf32, #tpu.memory_space<vmem>>, %arg2: memref<16x32xf32, #tpu.memory_space<vmem>>, %arg3: memref<6x3x16xf32, #tpu.memory_space<vmem>>, %arg4: memref<1x16xf32, #tpu.memory_space<vmem>>, %arg5: memref<16x16xf32, #tpu.memory_space<vmem>>, %arg6: memref<8x16xf32, #tpu.memory_space<vmem>>, %arg7: memref<6x16x32xf32, #tpu.memory_space<vmem>>, %arg8: memref<1x32xf32, #tpu.memory_space<vmem>>, %arg9: memref<8x32x16xf32, #tpu.memory_space<vmem>>, %arg10: memref<1x16xf32, #tpu.memory_space<vmem>>, %arg11: memref<2x1x16xf32, #tpu.memory_space<vmem>>) attributes {dimension_semantics = [], scalar_prefetch = 0 : i64, scratch_operands = 0 : i64, tpu.core_type = #tpu.core_type<tc>} {
    %c0 = arith.constant 0 : index
    %c0_0 = arith.constant 0 : index
    %c0_1 = arith.constant 0 : index
    %0 = vector.load %arg0[%c0, %c0_0, %c0_1] : memref<2x32x3xf32, #tpu.memory_space<vmem>>, vector<1x32x3xf32>
    %1 = vector.shape_cast %0 : vector<1x32x3xf32> to vector<32x3xf32>
    %c1 = arith.constant 1 : index
    %c0_2 = arith.constant 0 : index
    %c0_3 = arith.constant 0 : index
    %2 = vector.load %arg0[%c1, %c0_2, %c0_3] : memref<2x32x3xf32, #tpu.memory_space<vmem>>, vector<1x32x3xf32>
    %3 = vector.shape_cast %2 : vector<1x32x3xf32> to vector<32x3xf32>
    %c0_4 = arith.constant 0 : index
    %c0_5 = arith.constant 0 : index
    %4 = vector.load %arg1[%c0_4, %c0_5] : memref<32x32xf32, #tpu.memory_space<vmem>>, vector<32x32xf32>
    %c0_6 = arith.constant 0 : index
    %c0_7 = arith.constant 0 : index
    %5 = vector.load %arg2[%c0_6, %c0_7] : memref<16x32xf32, #tpu.memory_space<vmem>>, vector<16x32xf32>
    %c0_8 = arith.constant 0 : index
    %c0_9 = arith.constant 0 : index
    %6 = vector.load %arg4[%c0_8, %c0_9] : memref<1x16xf32, #tpu.memory_space<vmem>>, vector<1x16xf32>
    %c0_10 = arith.constant 0 : index
    %c0_11 = arith.constant 0 : index
    %c0_12 = arith.constant 0 : index
    %7 = vector.load %arg3[%c0_10, %c0_11, %c0_12] : memref<6x3x16xf32, #tpu.memory_space<vmem>>, vector<1x3x16xf32>
    %8 = vector.shape_cast %7 : vector<1x3x16xf32> to vector<3x16xf32>
    %cst = arith.constant dense<0.000000e+00> : vector<32x16xf32>
    %9 = tpu.matmul %1, %8, %cst {dimension_numbers = #tpu.dot_dimension_numbers<[1], [0], [0], [1], [0, 0, 1, 1], [], []>, precision = #tpu.contract_precision<fp32>} : vector<32x3xf32>, vector<3x16xf32>, vector<32x16xf32> -> vector<32x16xf32>
    %cst_13 = arith.constant dense<0.000000e+00> : vector<32x3xf32>
    %10 = tpu.matmul %4, %1, %cst_13 {dimension_numbers = #tpu.dot_dimension_numbers<[1], [0], [0], [1], [0, 0, 1, 1], [], []>, precision = #tpu.contract_precision<fp32>} : vector<32x32xf32>, vector<32x3xf32>, vector<32x3xf32> -> vector<32x3xf32>
    %c1_14 = arith.constant 1 : index
    %c0_15 = arith.constant 0 : index
    %c0_16 = arith.constant 0 : index
    %11 = vector.load %arg3[%c1_14, %c0_15, %c0_16] : memref<6x3x16xf32, #tpu.memory_space<vmem>>, vector<1x3x16xf32>
    %12 = vector.shape_cast %11 : vector<1x3x16xf32> to vector<3x16xf32>
    %cst_17 = arith.constant dense<0.000000e+00> : vector<32x16xf32>
    %13 = tpu.matmul %10, %12, %cst_17 {dimension_numbers = #tpu.dot_dimension_numbers<[1], [0], [0], [1], [0, 0, 1, 1], [], []>, precision = #tpu.contract_precision<fp32>} : vector<32x3xf32>, vector<3x16xf32>, vector<32x16xf32> -> vector<32x16xf32>
    %14 = arith.addf %9, %13 : vector<32x16xf32>
    %cst_18 = arith.constant dense<0.000000e+00> : vector<32x3xf32>
    %15 = tpu.matmul %4, %10, %cst_18 {dimension_numbers = #tpu.dot_dimension_numbers<[1], [0], [0], [1], [0, 0, 1, 1], [], []>, precision = #tpu.contract_precision<fp32>} : vector<32x32xf32>, vector<32x3xf32>, vector<32x3xf32> -> vector<32x3xf32>
    %cst_19 = arith.constant 2.000000e+00 : f32
    %16 = vector.broadcast %cst_19 : f32 to vector<32x3xf32>
    %17 = arith.mulf %16, %15 : vector<32x3xf32>
    %18 = arith.subf %17, %1 : vector<32x3xf32>
    %c2 = arith.constant 2 : index
    %c0_20 = arith.constant 0 : index
    %c0_21 = arith.constant 0 : index
    %19 = vector.load %arg3[%c2, %c0_20, %c0_21] : memref<6x3x16xf32, #tpu.memory_space<vmem>>, vector<1x3x16xf32>
    %20 = vector.shape_cast %19 : vector<1x3x16xf32> to vector<3x16xf32>
    %cst_22 = arith.constant dense<0.000000e+00> : vector<32x16xf32>
    %21 = tpu.matmul %18, %20, %cst_22 {dimension_numbers = #tpu.dot_dimension_numbers<[1], [0], [0], [1], [0, 0, 1, 1], [], []>, precision = #tpu.contract_precision<fp32>} : vector<32x3xf32>, vector<3x16xf32>, vector<32x16xf32> -> vector<32x16xf32>
    %22 = arith.addf %14, %21 : vector<32x16xf32>
    %cst_23 = arith.constant dense<0.000000e+00> : vector<32x3xf32>
    %23 = tpu.matmul %4, %18, %cst_23 {dimension_numbers = #tpu.dot_dimension_numbers<[1], [0], [0], [1], [0, 0, 1, 1], [], []>, precision = #tpu.contract_precision<fp32>} : vector<32x32xf32>, vector<32x3xf32>, vector<32x3xf32> -> vector<32x3xf32>
    %cst_24 = arith.constant 2.000000e+00 : f32
    %24 = vector.broadcast %cst_24 : f32 to vector<32x3xf32>
    %25 = arith.mulf %24, %23 : vector<32x3xf32>
    %26 = arith.subf %25, %10 : vector<32x3xf32>
    %c3 = arith.constant 3 : index
    %c0_25 = arith.constant 0 : index
    %c0_26 = arith.constant 0 : index
    %27 = vector.load %arg3[%c3, %c0_25, %c0_26] : memref<6x3x16xf32, #tpu.memory_space<vmem>>, vector<1x3x16xf32>
    %28 = vector.shape_cast %27 : vector<1x3x16xf32> to vector<3x16xf32>
    %cst_27 = arith.constant dense<0.000000e+00> : vector<32x16xf32>
    %29 = tpu.matmul %26, %28, %cst_27 {dimension_numbers = #tpu.dot_dimension_numbers<[1], [0], [0], [1], [0, 0, 1, 1], [], []>, precision = #tpu.contract_precision<fp32>} : vector<32x3xf32>, vector<3x16xf32>, vector<32x16xf32> -> vector<32x16xf32>
    %30 = arith.addf %22, %29 : vector<32x16xf32>
    %cst_28 = arith.constant dense<0.000000e+00> : vector<32x3xf32>
    %31 = tpu.matmul %4, %26, %cst_28 {dimension_numbers = #tpu.dot_dimension_numbers<[1], [0], [0], [1], [0, 0, 1, 1], [], []>, precision = #tpu.contract_precision<fp32>} : vector<32x32xf32>, vector<32x3xf32>, vector<32x3xf32> -> vector<32x3xf32>
    %cst_29 = arith.constant 2.000000e+00 : f32
    %32 = vector.broadcast %cst_29 : f32 to vector<32x3xf32>
    %33 = arith.mulf %32, %31 : vector<32x3xf32>
    %34 = arith.subf %33, %18 : vector<32x3xf32>
    %c4 = arith.constant 4 : index
    %c0_30 = arith.constant 0 : index
    %c0_31 = arith.constant 0 : index
    %35 = vector.load %arg3[%c4, %c0_30, %c0_31] : memref<6x3x16xf32, #tpu.memory_space<vmem>>, vector<1x3x16xf32>
    %36 = vector.shape_cast %35 : vector<1x3x16xf32> to vector<3x16xf32>
    %cst_32 = arith.constant dense<0.000000e+00> : vector<32x16xf32>
    %37 = tpu.matmul %34, %36, %cst_32 {dimension_numbers = #tpu.dot_dimension_numbers<[1], [0], [0], [1], [0, 0, 1, 1], [], []>, precision = #tpu.contract_precision<fp32>} : vector<32x3xf32>, vector<3x16xf32>, vector<32x16xf32> -> vector<32x16xf32>
    %38 = arith.addf %30, %37 : vector<32x16xf32>
    %cst_33 = arith.constant dense<0.000000e+00> : vector<32x3xf32>
    %39 = tpu.matmul %4, %34, %cst_33 {dimension_numbers = #tpu.dot_dimension_numbers<[1], [0], [0], [1], [0, 0, 1, 1], [], []>, precision = #tpu.contract_precision<fp32>} : vector<32x32xf32>, vector<32x3xf32>, vector<32x3xf32> -> vector<32x3xf32>
    %cst_34 = arith.constant 2.000000e+00 : f32
    %40 = vector.broadcast %cst_34 : f32 to vector<32x3xf32>
    %41 = arith.mulf %40, %39 : vector<32x3xf32>
    %42 = arith.subf %41, %26 : vector<32x3xf32>
    %c5 = arith.constant 5 : index
    %c0_35 = arith.constant 0 : index
    %c0_36 = arith.constant 0 : index
    %43 = vector.load %arg3[%c5, %c0_35, %c0_36] : memref<6x3x16xf32, #tpu.memory_space<vmem>>, vector<1x3x16xf32>
    %44 = vector.shape_cast %43 : vector<1x3x16xf32> to vector<3x16xf32>
    %cst_37 = arith.constant dense<0.000000e+00> : vector<32x16xf32>
    %45 = tpu.matmul %42, %44, %cst_37 {dimension_numbers = #tpu.dot_dimension_numbers<[1], [0], [0], [1], [0, 0, 1, 1], [], []>, precision = #tpu.contract_precision<fp32>} : vector<32x3xf32>, vector<3x16xf32>, vector<32x16xf32> -> vector<32x16xf32>
    %46 = arith.addf %38, %45 : vector<32x16xf32>
    %47 = vector.broadcast %6 : vector<1x16xf32> to vector<32x16xf32>
    %48 = arith.addf %46, %47 : vector<32x16xf32>
    %cst_38 = arith.constant dense<0.000000e+00> : vector<16x16xf32>
    %49 = tpu.matmul %5, %48, %cst_38 {dimension_numbers = #tpu.dot_dimension_numbers<[1], [0], [0], [1], [0, 0, 1, 1], [], []>, precision = #tpu.contract_precision<fp32>} : vector<16x32xf32>, vector<32x16xf32>, vector<16x16xf32> -> vector<16x16xf32>
    %cst_39 = arith.constant 0.000000e+00 : f32
    %50 = vector.broadcast %cst_39 : f32 to vector<16x16xf32>
    %51 = arith.maximumf %49, %50 : vector<16x16xf32>
    %c0_40 = arith.constant 0 : index
    %c0_41 = arith.constant 0 : index
    %c0_42 = arith.constant 0 : index
    %52 = vector.load %arg3[%c0_40, %c0_41, %c0_42] : memref<6x3x16xf32, #tpu.memory_space<vmem>>, vector<1x3x16xf32>
    %53 = vector.shape_cast %52 : vector<1x3x16xf32> to vector<3x16xf32>
    %cst_43 = arith.constant dense<0.000000e+00> : vector<32x16xf32>
    %54 = tpu.matmul %3, %53, %cst_43 {dimension_numbers = #tpu.dot_dimension_numbers<[1], [0], [0], [1], [0, 0, 1, 1], [], []>, precision = #tpu.contract_precision<fp32>} : vector<32x3xf32>, vector<3x16xf32>, vector<32x16xf32> -> vector<32x16xf32>
    %cst_44 = arith.constant dense<0.000000e+00> : vector<32x3xf32>
    %55 = tpu.matmul %4, %3, %cst_44 {dimension_numbers = #tpu.dot_dimension_numbers<[1], [0], [0], [1], [0, 0, 1, 1], [], []>, precision = #tpu.contract_precision<fp32>} : vector<32x32xf32>, vector<32x3xf32>, vector<32x3xf32> -> vector<32x3xf32>
    %c1_45 = arith.constant 1 : index
    %c0_46 = arith.constant 0 : index
    %c0_47 = arith.constant 0 : index
    %56 = vector.load %arg3[%c1_45, %c0_46, %c0_47] : memref<6x3x16xf32, #tpu.memory_space<vmem>>, vector<1x3x16xf32>
    %57 = vector.shape_cast %56 : vector<1x3x16xf32> to vector<3x16xf32>
    %cst_48 = arith.constant dense<0.000000e+00> : vector<32x16xf32>
    %58 = tpu.matmul %55, %57, %cst_48 {dimension_numbers = #tpu.dot_dimension_numbers<[1], [0], [0], [1], [0, 0, 1, 1], [], []>, precision = #tpu.contract_precision<fp32>} : vector<32x3xf32>, vector<3x16xf32>, vector<32x16xf32> -> vector<32x16xf32>
    %59 = arith.addf %54, %58 : vector<32x16xf32>
    %cst_49 = arith.constant dense<0.000000e+00> : vector<32x3xf32>
    %60 = tpu.matmul %4, %55, %cst_49 {dimension_numbers = #tpu.dot_dimension_numbers<[1], [0], [0], [1], [0, 0, 1, 1], [], []>, precision = #tpu.contract_precision<fp32>} : vector<32x32xf32>, vector<32x3xf32>, vector<32x3xf32> -> vector<32x3xf32>
    %cst_50 = arith.constant 2.000000e+00 : f32
    %61 = vector.broadcast %cst_50 : f32 to vector<32x3xf32>
    %62 = arith.mulf %61, %60 : vector<32x3xf32>
    %63 = arith.subf %62, %3 : vector<32x3xf32>
    %c2_51 = arith.constant 2 : index
    %c0_52 = arith.constant 0 : index
    %c0_53 = arith.constant 0 : index
    %64 = vector.load %arg3[%c2_51, %c0_52, %c0_53] : memref<6x3x16xf32, #tpu.memory_space<vmem>>, vector<1x3x16xf32>
    %65 = vector.shape_cast %64 : vector<1x3x16xf32> to vector<3x16xf32>
    %cst_54 = arith.constant dense<0.000000e+00> : vector<32x16xf32>
    %66 = tpu.matmul %63, %65, %cst_54 {dimension_numbers = #tpu.dot_dimension_numbers<[1], [0], [0], [1], [0, 0, 1, 1], [], []>, precision = #tpu.contract_precision<fp32>} : vector<32x3xf32>, vector<3x16xf32>, vector<32x16xf32> -> vector<32x16xf32>
    %67 = arith.addf %59, %66 : vector<32x16xf32>
    %cst_55 = arith.constant dense<0.000000e+00> : vector<32x3xf32>
    %68 = tpu.matmul %4, %63, %cst_55 {dimension_numbers = #tpu.dot_dimension_numbers<[1], [0], [0], [1], [0, 0, 1, 1], [], []>, precision = #tpu.contract_precision<fp32>} : vector<32x32xf32>, vector<32x3xf32>, vector<32x3xf32> -> vector<32x3xf32>
    %cst_56 = arith.constant 2.000000e+00 : f32
    %69 = vector.broadcast %cst_56 : f32 to vector<32x3xf32>
    %70 = arith.mulf %69, %68 : vector<32x3xf32>
    %71 = arith.subf %70, %55 : vector<32x3xf32>
    %c3_57 = arith.constant 3 : index
    %c0_58 = arith.constant 0 : index
    %c0_59 = arith.constant 0 : index
    %72 = vector.load %arg3[%c3_57, %c0_58, %c0_59] : memref<6x3x16xf32, #tpu.memory_space<vmem>>, vector<1x3x16xf32>
    %73 = vector.shape_cast %72 : vector<1x3x16xf32> to vector<3x16xf32>
    %cst_60 = arith.constant dense<0.000000e+00> : vector<32x16xf32>
    %74 = tpu.matmul %71, %73, %cst_60 {dimension_numbers = #tpu.dot_dimension_numbers<[1], [0], [0], [1], [0, 0, 1, 1], [], []>, precision = #tpu.contract_precision<fp32>} : vector<32x3xf32>, vector<3x16xf32>, vector<32x16xf32> -> vector<32x16xf32>
    %75 = arith.addf %67, %74 : vector<32x16xf32>
    %cst_61 = arith.constant dense<0.000000e+00> : vector<32x3xf32>
    %76 = tpu.matmul %4, %71, %cst_61 {dimension_numbers = #tpu.dot_dimension_numbers<[1], [0], [0], [1], [0, 0, 1, 1], [], []>, precision = #tpu.contract_precision<fp32>} : vector<32x32xf32>, vector<32x3xf32>, vector<32x3xf32> -> vector<32x3xf32>
    %cst_62 = arith.constant 2.000000e+00 : f32
    %77 = vector.broadcast %cst_62 : f32 to vector<32x3xf32>
    %78 = arith.mulf %77, %76 : vector<32x3xf32>
    %79 = arith.subf %78, %63 : vector<32x3xf32>
    %c4_63 = arith.constant 4 : index
    %c0_64 = arith.constant 0 : index
    %c0_65 = arith.constant 0 : index
    %80 = vector.load %arg3[%c4_63, %c0_64, %c0_65] : memref<6x3x16xf32, #tpu.memory_space<vmem>>, vector<1x3x16xf32>
    %81 = vector.shape_cast %80 : vector<1x3x16xf32> to vector<3x16xf32>
    %cst_66 = arith.constant dense<0.000000e+00> : vector<32x16xf32>
    %82 = tpu.matmul %79, %81, %cst_66 {dimension_numbers = #tpu.dot_dimension_numbers<[1], [0], [0], [1], [0, 0, 1, 1], [], []>, precision = #tpu.contract_precision<fp32>} : vector<32x3xf32>, vector<3x16xf32>, vector<32x16xf32> -> vector<32x16xf32>
    %83 = arith.addf %75, %82 : vector<32x16xf32>
    %cst_67 = arith.constant dense<0.000000e+00> : vector<32x3xf32>
    %84 = tpu.matmul %4, %79, %cst_67 {dimension_numbers = #tpu.dot_dimension_numbers<[1], [0], [0], [1], [0, 0, 1, 1], [], []>, precision = #tpu.contract_precision<fp32>} : vector<32x32xf32>, vector<32x3xf32>, vector<32x3xf32> -> vector<32x3xf32>
    %cst_68 = arith.constant 2.000000e+00 : f32
    %85 = vector.broadcast %cst_68 : f32 to vector<32x3xf32>
    %86 = arith.mulf %85, %84 : vector<32x3xf32>
    %87 = arith.subf %86, %71 : vector<32x3xf32>
    %c5_69 = arith.constant 5 : index
    %c0_70 = arith.constant 0 : index
    %c0_71 = arith.constant 0 : index
    %88 = vector.load %arg3[%c5_69, %c0_70, %c0_71] : memref<6x3x16xf32, #tpu.memory_space<vmem>>, vector<1x3x16xf32>
    %89 = vector.shape_cast %88 : vector<1x3x16xf32> to vector<3x16xf32>
    %cst_72 = arith.constant dense<0.000000e+00> : vector<32x16xf32>
    %90 = tpu.matmul %87, %89, %cst_72 {dimension_numbers = #tpu.dot_dimension_numbers<[1], [0], [0], [1], [0, 0, 1, 1], [], []>, precision = #tpu.contract_precision<fp32>} : vector<32x3xf32>, vector<3x16xf32>, vector<32x16xf32> -> vector<32x16xf32>
    %91 = arith.addf %83, %90 : vector<32x16xf32>
    %92 = vector.broadcast %6 : vector<1x16xf32> to vector<32x16xf32>
    %93 = arith.addf %91, %92 : vector<32x16xf32>
    %cst_73 = arith.constant dense<0.000000e+00> : vector<16x16xf32>
    %94 = tpu.matmul %5, %93, %cst_73 {dimension_numbers = #tpu.dot_dimension_numbers<[1], [0], [0], [1], [0, 0, 1, 1], [], []>, precision = #tpu.contract_precision<fp32>} : vector<16x32xf32>, vector<32x16xf32>, vector<16x16xf32> -> vector<16x16xf32>
    %cst_74 = arith.constant 0.000000e+00 : f32
    %95 = vector.broadcast %cst_74 : f32 to vector<16x16xf32>
    %96 = arith.maximumf %94, %95 : vector<16x16xf32>
    %c0_75 = arith.constant 0 : index
    %c0_76 = arith.constant 0 : index
    %97 = vector.load %arg5[%c0_75, %c0_76] : memref<16x16xf32, #tpu.memory_space<vmem>>, vector<16x16xf32>
    %c0_77 = arith.constant 0 : index
    %c0_78 = arith.constant 0 : index
    %98 = vector.load %arg6[%c0_77, %c0_78] : memref<8x16xf32, #tpu.memory_space<vmem>>, vector<8x16xf32>
    %c0_79 = arith.constant 0 : index
    %c0_80 = arith.constant 0 : index
    %99 = vector.load %arg8[%c0_79, %c0_80] : memref<1x32xf32, #tpu.memory_space<vmem>>, vector<1x32xf32>
    %c0_81 = arith.constant 0 : index
    %c0_82 = arith.constant 0 : index
    %c0_83 = arith.constant 0 : index
    %100 = vector.load %arg7[%c0_81, %c0_82, %c0_83] : memref<6x16x32xf32, #tpu.memory_space<vmem>>, vector<1x16x32xf32>
    %101 = vector.shape_cast %100 : vector<1x16x32xf32> to vector<16x32xf32>
    %cst_84 = arith.constant dense<0.000000e+00> : vector<16x32xf32>
    %102 = tpu.matmul %51, %101, %cst_84 {dimension_numbers = #tpu.dot_dimension_numbers<[1], [0], [0], [1], [0, 0, 1, 1], [], []>, precision = #tpu.contract_precision<fp32>} : vector<16x16xf32>, vector<16x32xf32>, vector<16x32xf32> -> vector<16x32xf32>
    %cst_85 = arith.constant dense<0.000000e+00> : vector<16x16xf32>
    %103 = tpu.matmul %97, %51, %cst_85 {dimension_numbers = #tpu.dot_dimension_numbers<[1], [0], [0], [1], [0, 0, 1, 1], [], []>, precision = #tpu.contract_precision<fp32>} : vector<16x16xf32>, vector<16x16xf32>, vector<16x16xf32> -> vector<16x16xf32>
    %c1_86 = arith.constant 1 : index
    %c0_87 = arith.constant 0 : index
    %c0_88 = arith.constant 0 : index
    %104 = vector.load %arg7[%c1_86, %c0_87, %c0_88] : memref<6x16x32xf32, #tpu.memory_space<vmem>>, vector<1x16x32xf32>
    %105 = vector.shape_cast %104 : vector<1x16x32xf32> to vector<16x32xf32>
    %cst_89 = arith.constant dense<0.000000e+00> : vector<16x32xf32>
    %106 = tpu.matmul %103, %105, %cst_89 {dimension_numbers = #tpu.dot_dimension_numbers<[1], [0], [0], [1], [0, 0, 1, 1], [], []>, precision = #tpu.contract_precision<fp32>} : vector<16x16xf32>, vector<16x32xf32>, vector<16x32xf32> -> vector<16x32xf32>
    %107 = arith.addf %102, %106 : vector<16x32xf32>
    %cst_90 = arith.constant dense<0.000000e+00> : vector<16x16xf32>
    %108 = tpu.matmul %97, %103, %cst_90 {dimension_numbers = #tpu.dot_dimension_numbers<[1], [0], [0], [1], [0, 0, 1, 1], [], []>, precision = #tpu.contract_precision<fp32>} : vector<16x16xf32>, vector<16x16xf32>, vector<16x16xf32> -> vector<16x16xf32>
    %cst_91 = arith.constant 2.000000e+00 : f32
    %109 = vector.broadcast %cst_91 : f32 to vector<16x16xf32>
    %110 = arith.mulf %109, %108 : vector<16x16xf32>
    %111 = arith.subf %110, %51 : vector<16x16xf32>
    %c2_92 = arith.constant 2 : index
    %c0_93 = arith.constant 0 : index
    %c0_94 = arith.constant 0 : index
    %112 = vector.load %arg7[%c2_92, %c0_93, %c0_94] : memref<6x16x32xf32, #tpu.memory_space<vmem>>, vector<1x16x32xf32>
    %113 = vector.shape_cast %112 : vector<1x16x32xf32> to vector<16x32xf32>
    %cst_95 = arith.constant dense<0.000000e+00> : vector<16x32xf32>
    %114 = tpu.matmul %111, %113, %cst_95 {dimension_numbers = #tpu.dot_dimension_numbers<[1], [0], [0], [1], [0, 0, 1, 1], [], []>, precision = #tpu.contract_precision<fp32>} : vector<16x16xf32>, vector<16x32xf32>, vector<16x32xf32> -> vector<16x32xf32>
    %115 = arith.addf %107, %114 : vector<16x32xf32>
    %cst_96 = arith.constant dense<0.000000e+00> : vector<16x16xf32>
    %116 = tpu.matmul %97, %111, %cst_96 {dimension_numbers = #tpu.dot_dimension_numbers<[1], [0], [0], [1], [0, 0, 1, 1], [], []>, precision = #tpu.contract_precision<fp32>} : vector<16x16xf32>, vector<16x16xf32>, vector<16x16xf32> -> vector<16x16xf32>
    %cst_97 = arith.constant 2.000000e+00 : f32
    %117 = vector.broadcast %cst_97 : f32 to vector<16x16xf32>
    %118 = arith.mulf %117, %116 : vector<16x16xf32>
    %119 = arith.subf %118, %103 : vector<16x16xf32>
    %c3_98 = arith.constant 3 : index
    %c0_99 = arith.constant 0 : index
    %c0_100 = arith.constant 0 : index
    %120 = vector.load %arg7[%c3_98, %c0_99, %c0_100] : memref<6x16x32xf32, #tpu.memory_space<vmem>>, vector<1x16x32xf32>
    %121 = vector.shape_cast %120 : vector<1x16x32xf32> to vector<16x32xf32>
    %cst_101 = arith.constant dense<0.000000e+00> : vector<16x32xf32>
    %122 = tpu.matmul %119, %121, %cst_101 {dimension_numbers = #tpu.dot_dimension_numbers<[1], [0], [0], [1], [0, 0, 1, 1], [], []>, precision = #tpu.contract_precision<fp32>} : vector<16x16xf32>, vector<16x32xf32>, vector<16x32xf32> -> vector<16x32xf32>
    %123 = arith.addf %115, %122 : vector<16x32xf32>
    %cst_102 = arith.constant dense<0.000000e+00> : vector<16x16xf32>
    %124 = tpu.matmul %97, %119, %cst_102 {dimension_numbers = #tpu.dot_dimension_numbers<[1], [0], [0], [1], [0, 0, 1, 1], [], []>, precision = #tpu.contract_precision<fp32>} : vector<16x16xf32>, vector<16x16xf32>, vector<16x16xf32> -> vector<16x16xf32>
    %cst_103 = arith.constant 2.000000e+00 : f32
    %125 = vector.broadcast %cst_103 : f32 to vector<16x16xf32>
    %126 = arith.mulf %125, %124 : vector<16x16xf32>
    %127 = arith.subf %126, %111 : vector<16x16xf32>
    %c4_104 = arith.constant 4 : index
    %c0_105 = arith.constant 0 : index
    %c0_106 = arith.constant 0 : index
    %128 = vector.load %arg7[%c4_104, %c0_105, %c0_106] : memref<6x16x32xf32, #tpu.memory_space<vmem>>, vector<1x16x32xf32>
    %129 = vector.shape_cast %128 : vector<1x16x32xf32> to vector<16x32xf32>
    %cst_107 = arith.constant dense<0.000000e+00> : vector<16x32xf32>
    %130 = tpu.matmul %127, %129, %cst_107 {dimension_numbers = #tpu.dot_dimension_numbers<[1], [0], [0], [1], [0, 0, 1, 1], [], []>, precision = #tpu.contract_precision<fp32>} : vector<16x16xf32>, vector<16x32xf32>, vector<16x32xf32> -> vector<16x32xf32>
    %131 = arith.addf %123, %130 : vector<16x32xf32>
    %cst_108 = arith.constant dense<0.000000e+00> : vector<16x16xf32>
    %132 = tpu.matmul %97, %127, %cst_108 {dimension_numbers = #tpu.dot_dimension_numbers<[1], [0], [0], [1], [0, 0, 1, 1], [], []>, precision = #tpu.contract_precision<fp32>} : vector<16x16xf32>, vector<16x16xf32>, vector<16x16xf32> -> vector<16x16xf32>
    %cst_109 = arith.constant 2.000000e+00 : f32
    %133 = vector.broadcast %cst_109 : f32 to vector<16x16xf32>
    %134 = arith.mulf %133, %132 : vector<16x16xf32>
    %135 = arith.subf %134, %119 : vector<16x16xf32>
    %c5_110 = arith.constant 5 : index
    %c0_111 = arith.constant 0 : index
    %c0_112 = arith.constant 0 : index
    %136 = vector.load %arg7[%c5_110, %c0_111, %c0_112] : memref<6x16x32xf32, #tpu.memory_space<vmem>>, vector<1x16x32xf32>
    %137 = vector.shape_cast %136 : vector<1x16x32xf32> to vector<16x32xf32>
    %cst_113 = arith.constant dense<0.000000e+00> : vector<16x32xf32>
    %138 = tpu.matmul %135, %137, %cst_113 {dimension_numbers = #tpu.dot_dimension_numbers<[1], [0], [0], [1], [0, 0, 1, 1], [], []>, precision = #tpu.contract_precision<fp32>} : vector<16x16xf32>, vector<16x32xf32>, vector<16x32xf32> -> vector<16x32xf32>
    %139 = arith.addf %131, %138 : vector<16x32xf32>
    %140 = vector.broadcast %99 : vector<1x32xf32> to vector<16x32xf32>
    %141 = arith.addf %139, %140 : vector<16x32xf32>
    %cst_114 = arith.constant dense<0.000000e+00> : vector<8x32xf32>
    %142 = tpu.matmul %98, %141, %cst_114 {dimension_numbers = #tpu.dot_dimension_numbers<[1], [0], [0], [1], [0, 0, 1, 1], [], []>, precision = #tpu.contract_precision<fp32>} : vector<8x16xf32>, vector<16x32xf32>, vector<8x32xf32> -> vector<8x32xf32>
    %cst_115 = arith.constant 0.000000e+00 : f32
    %143 = vector.broadcast %cst_115 : f32 to vector<8x32xf32>
    %144 = arith.maximumf %142, %143 : vector<8x32xf32>
    %c0_116 = arith.constant 0 : index
    %c0_117 = arith.constant 0 : index
    %c0_118 = arith.constant 0 : index
    %145 = vector.load %arg7[%c0_116, %c0_117, %c0_118] : memref<6x16x32xf32, #tpu.memory_space<vmem>>, vector<1x16x32xf32>
    %146 = vector.shape_cast %145 : vector<1x16x32xf32> to vector<16x32xf32>
    %cst_119 = arith.constant dense<0.000000e+00> : vector<16x32xf32>
    %147 = tpu.matmul %96, %146, %cst_119 {dimension_numbers = #tpu.dot_dimension_numbers<[1], [0], [0], [1], [0, 0, 1, 1], [], []>, precision = #tpu.contract_precision<fp32>} : vector<16x16xf32>, vector<16x32xf32>, vector<16x32xf32> -> vector<16x32xf32>
    %cst_120 = arith.constant dense<0.000000e+00> : vector<16x16xf32>
    %148 = tpu.matmul %97, %96, %cst_120 {dimension_numbers = #tpu.dot_dimension_numbers<[1], [0], [0], [1], [0, 0, 1, 1], [], []>, precision = #tpu.contract_precision<fp32>} : vector<16x16xf32>, vector<16x16xf32>, vector<16x16xf32> -> vector<16x16xf32>
    %c1_121 = arith.constant 1 : index
    %c0_122 = arith.constant 0 : index
    %c0_123 = arith.constant 0 : index
    %149 = vector.load %arg7[%c1_121, %c0_122, %c0_123] : memref<6x16x32xf32, #tpu.memory_space<vmem>>, vector<1x16x32xf32>
    %150 = vector.shape_cast %149 : vector<1x16x32xf32> to vector<16x32xf32>
    %cst_124 = arith.constant dense<0.000000e+00> : vector<16x32xf32>
    %151 = tpu.matmul %148, %150, %cst_124 {dimension_numbers = #tpu.dot_dimension_numbers<[1], [0], [0], [1], [0, 0, 1, 1], [], []>, precision = #tpu.contract_precision<fp32>} : vector<16x16xf32>, vector<16x32xf32>, vector<16x32xf32> -> vector<16x32xf32>
    %152 = arith.addf %147, %151 : vector<16x32xf32>
    %cst_125 = arith.constant dense<0.000000e+00> : vector<16x16xf32>
    %153 = tpu.matmul %97, %148, %cst_125 {dimension_numbers = #tpu.dot_dimension_numbers<[1], [0], [0], [1], [0, 0, 1, 1], [], []>, precision = #tpu.contract_precision<fp32>} : vector<16x16xf32>, vector<16x16xf32>, vector<16x16xf32> -> vector<16x16xf32>
    %cst_126 = arith.constant 2.000000e+00 : f32
    %154 = vector.broadcast %cst_126 : f32 to vector<16x16xf32>
    %155 = arith.mulf %154, %153 : vector<16x16xf32>
    %156 = arith.subf %155, %96 : vector<16x16xf32>
    %c2_127 = arith.constant 2 : index
    %c0_128 = arith.constant 0 : index
    %c0_129 = arith.constant 0 : index
    %157 = vector.load %arg7[%c2_127, %c0_128, %c0_129] : memref<6x16x32xf32, #tpu.memory_space<vmem>>, vector<1x16x32xf32>
    %158 = vector.shape_cast %157 : vector<1x16x32xf32> to vector<16x32xf32>
    %cst_130 = arith.constant dense<0.000000e+00> : vector<16x32xf32>
    %159 = tpu.matmul %156, %158, %cst_130 {dimension_numbers = #tpu.dot_dimension_numbers<[1], [0], [0], [1], [0, 0, 1, 1], [], []>, precision = #tpu.contract_precision<fp32>} : vector<16x16xf32>, vector<16x32xf32>, vector<16x32xf32> -> vector<16x32xf32>
    %160 = arith.addf %152, %159 : vector<16x32xf32>
    %cst_131 = arith.constant dense<0.000000e+00> : vector<16x16xf32>
    %161 = tpu.matmul %97, %156, %cst_131 {dimension_numbers = #tpu.dot_dimension_numbers<[1], [0], [0], [1], [0, 0, 1, 1], [], []>, precision = #tpu.contract_precision<fp32>} : vector<16x16xf32>, vector<16x16xf32>, vector<16x16xf32> -> vector<16x16xf32>
    %cst_132 = arith.constant 2.000000e+00 : f32
    %162 = vector.broadcast %cst_132 : f32 to vector<16x16xf32>
    %163 = arith.mulf %162, %161 : vector<16x16xf32>
    %164 = arith.subf %163, %148 : vector<16x16xf32>
    %c3_133 = arith.constant 3 : index
    %c0_134 = arith.constant 0 : index
    %c0_135 = arith.constant 0 : index
    %165 = vector.load %arg7[%c3_133, %c0_134, %c0_135] : memref<6x16x32xf32, #tpu.memory_space<vmem>>, vector<1x16x32xf32>
    %166 = vector.shape_cast %165 : vector<1x16x32xf32> to vector<16x32xf32>
    %cst_136 = arith.constant dense<0.000000e+00> : vector<16x32xf32>
    %167 = tpu.matmul %164, %166, %cst_136 {dimension_numbers = #tpu.dot_dimension_numbers<[1], [0], [0], [1], [0, 0, 1, 1], [], []>, precision = #tpu.contract_precision<fp32>} : vector<16x16xf32>, vector<16x32xf32>, vector<16x32xf32> -> vector<16x32xf32>
    %168 = arith.addf %160, %167 : vector<16x32xf32>
    %cst_137 = arith.constant dense<0.000000e+00> : vector<16x16xf32>
    %169 = tpu.matmul %97, %164, %cst_137 {dimension_numbers = #tpu.dot_dimension_numbers<[1], [0], [0], [1], [0, 0, 1, 1], [], []>, precision = #tpu.contract_precision<fp32>} : vector<16x16xf32>, vector<16x16xf32>, vector<16x16xf32> -> vector<16x16xf32>
    %cst_138 = arith.constant 2.000000e+00 : f32
    %170 = vector.broadcast %cst_138 : f32 to vector<16x16xf32>
    %171 = arith.mulf %170, %169 : vector<16x16xf32>
    %172 = arith.subf %171, %156 : vector<16x16xf32>
    %c4_139 = arith.constant 4 : index
    %c0_140 = arith.constant 0 : index
    %c0_141 = arith.constant 0 : index
    %173 = vector.load %arg7[%c4_139, %c0_140, %c0_141] : memref<6x16x32xf32, #tpu.memory_space<vmem>>, vector<1x16x32xf32>
    %174 = vector.shape_cast %173 : vector<1x16x32xf32> to vector<16x32xf32>
    %cst_142 = arith.constant dense<0.000000e+00> : vector<16x32xf32>
    %175 = tpu.matmul %172, %174, %cst_142 {dimension_numbers = #tpu.dot_dimension_numbers<[1], [0], [0], [1], [0, 0, 1, 1], [], []>, precision = #tpu.contract_precision<fp32>} : vector<16x16xf32>, vector<16x32xf32>, vector<16x32xf32> -> vector<16x32xf32>
    %176 = arith.addf %168, %175 : vector<16x32xf32>
    %cst_143 = arith.constant dense<0.000000e+00> : vector<16x16xf32>
    %177 = tpu.matmul %97, %172, %cst_143 {dimension_numbers = #tpu.dot_dimension_numbers<[1], [0], [0], [1], [0, 0, 1, 1], [], []>, precision = #tpu.contract_precision<fp32>} : vector<16x16xf32>, vector<16x16xf32>, vector<16x16xf32> -> vector<16x16xf32>
    %cst_144 = arith.constant 2.000000e+00 : f32
    %178 = vector.broadcast %cst_144 : f32 to vector<16x16xf32>
    %179 = arith.mulf %178, %177 : vector<16x16xf32>
    %180 = arith.subf %179, %164 : vector<16x16xf32>
    %c5_145 = arith.constant 5 : index
    %c0_146 = arith.constant 0 : index
    %c0_147 = arith.constant 0 : index
    %181 = vector.load %arg7[%c5_145, %c0_146, %c0_147] : memref<6x16x32xf32, #tpu.memory_space<vmem>>, vector<1x16x32xf32>
    %182 = vector.shape_cast %181 : vector<1x16x32xf32> to vector<16x32xf32>
    %cst_148 = arith.constant dense<0.000000e+00> : vector<16x32xf32>
    %183 = tpu.matmul %180, %182, %cst_148 {dimension_numbers = #tpu.dot_dimension_numbers<[1], [0], [0], [1], [0, 0, 1, 1], [], []>, precision = #tpu.contract_precision<fp32>} : vector<16x16xf32>, vector<16x32xf32>, vector<16x32xf32> -> vector<16x32xf32>
    %184 = arith.addf %176, %183 : vector<16x32xf32>
    %185 = vector.broadcast %99 : vector<1x32xf32> to vector<16x32xf32>
    %186 = arith.addf %184, %185 : vector<16x32xf32>
    %cst_149 = arith.constant dense<0.000000e+00> : vector<8x32xf32>
    %187 = tpu.matmul %98, %186, %cst_149 {dimension_numbers = #tpu.dot_dimension_numbers<[1], [0], [0], [1], [0, 0, 1, 1], [], []>, precision = #tpu.contract_precision<fp32>} : vector<8x16xf32>, vector<16x32xf32>, vector<8x32xf32> -> vector<8x32xf32>
    %cst_150 = arith.constant 0.000000e+00 : f32
    %188 = vector.broadcast %cst_150 : f32 to vector<8x32xf32>
    %189 = arith.maximumf %187, %188 : vector<8x32xf32>
    %c0_151 = arith.constant 0 : index
    %c0_152 = arith.constant 0 : index
    %190 = vector.load %arg10[%c0_151, %c0_152] : memref<1x16xf32, #tpu.memory_space<vmem>>, vector<1x16xf32>
    %191 = vector.extract_strided_slice %144 {offsets = [0, 0], sizes = [1, 32], strides = [1, 1]} : vector<8x32xf32> to vector<1x32xf32>
    %c0_153 = arith.constant 0 : index
    %c0_154 = arith.constant 0 : index
    %c0_155 = arith.constant 0 : index
    %192 = vector.load %arg9[%c0_153, %c0_154, %c0_155] : memref<8x32x16xf32, #tpu.memory_space<vmem>>, vector<1x32x16xf32>
    %193 = vector.shape_cast %192 : vector<1x32x16xf32> to vector<32x16xf32>
    %cst_156 = arith.constant dense<0.000000e+00> : vector<1x16xf32>
    %194 = tpu.matmul %191, %193, %cst_156 {dimension_numbers = #tpu.dot_dimension_numbers<[1], [0], [0], [1], [0, 0, 1, 1], [], []>, precision = #tpu.contract_precision<fp32>} : vector<1x32xf32>, vector<32x16xf32>, vector<1x16xf32> -> vector<1x16xf32>
    %195 = vector.extract_strided_slice %144 {offsets = [1, 0], sizes = [1, 32], strides = [1, 1]} : vector<8x32xf32> to vector<1x32xf32>
    %c1_157 = arith.constant 1 : index
    %c0_158 = arith.constant 0 : index
    %c0_159 = arith.constant 0 : index
    %196 = vector.load %arg9[%c1_157, %c0_158, %c0_159] : memref<8x32x16xf32, #tpu.memory_space<vmem>>, vector<1x32x16xf32>
    %197 = vector.shape_cast %196 : vector<1x32x16xf32> to vector<32x16xf32>
    %cst_160 = arith.constant dense<0.000000e+00> : vector<1x16xf32>
    %198 = tpu.matmul %195, %197, %cst_160 {dimension_numbers = #tpu.dot_dimension_numbers<[1], [0], [0], [1], [0, 0, 1, 1], [], []>, precision = #tpu.contract_precision<fp32>} : vector<1x32xf32>, vector<32x16xf32>, vector<1x16xf32> -> vector<1x16xf32>
    %199 = arith.addf %194, %198 : vector<1x16xf32>
    %200 = vector.extract_strided_slice %144 {offsets = [2, 0], sizes = [1, 32], strides = [1, 1]} : vector<8x32xf32> to vector<1x32xf32>
    %c2_161 = arith.constant 2 : index
    %c0_162 = arith.constant 0 : index
    %c0_163 = arith.constant 0 : index
    %201 = vector.load %arg9[%c2_161, %c0_162, %c0_163] : memref<8x32x16xf32, #tpu.memory_space<vmem>>, vector<1x32x16xf32>
    %202 = vector.shape_cast %201 : vector<1x32x16xf32> to vector<32x16xf32>
    %cst_164 = arith.constant dense<0.000000e+00> : vector<1x16xf32>
    %203 = tpu.matmul %200, %202, %cst_164 {dimension_numbers = #tpu.dot_dimension_numbers<[1], [0], [0], [1], [0, 0, 1, 1], [], []>, precision = #tpu.contract_precision<fp32>} : vector<1x32xf32>, vector<32x16xf32>, vector<1x16xf32> -> vector<1x16xf32>
    %204 = arith.addf %199, %203 : vector<1x16xf32>
    %205 = vector.extract_strided_slice %144 {offsets = [3, 0], sizes = [1, 32], strides = [1, 1]} : vector<8x32xf32> to vector<1x32xf32>
    %c3_165 = arith.constant 3 : index
    %c0_166 = arith.constant 0 : index
    %c0_167 = arith.constant 0 : index
    %206 = vector.load %arg9[%c3_165, %c0_166, %c0_167] : memref<8x32x16xf32, #tpu.memory_space<vmem>>, vector<1x32x16xf32>
    %207 = vector.shape_cast %206 : vector<1x32x16xf32> to vector<32x16xf32>
    %cst_168 = arith.constant dense<0.000000e+00> : vector<1x16xf32>
    %208 = tpu.matmul %205, %207, %cst_168 {dimension_numbers = #tpu.dot_dimension_numbers<[1], [0], [0], [1], [0, 0, 1, 1], [], []>, precision = #tpu.contract_precision<fp32>} : vector<1x32xf32>, vector<32x16xf32>, vector<1x16xf32> -> vector<1x16xf32>
    %209 = arith.addf %204, %208 : vector<1x16xf32>
    %210 = vector.extract_strided_slice %144 {offsets = [4, 0], sizes = [1, 32], strides = [1, 1]} : vector<8x32xf32> to vector<1x32xf32>
    %c4_169 = arith.constant 4 : index
    %c0_170 = arith.constant 0 : index
    %c0_171 = arith.constant 0 : index
    %211 = vector.load %arg9[%c4_169, %c0_170, %c0_171] : memref<8x32x16xf32, #tpu.memory_space<vmem>>, vector<1x32x16xf32>
    %212 = vector.shape_cast %211 : vector<1x32x16xf32> to vector<32x16xf32>
    %cst_172 = arith.constant dense<0.000000e+00> : vector<1x16xf32>
    %213 = tpu.matmul %210, %212, %cst_172 {dimension_numbers = #tpu.dot_dimension_numbers<[1], [0], [0], [1], [0, 0, 1, 1], [], []>, precision = #tpu.contract_precision<fp32>} : vector<1x32xf32>, vector<32x16xf32>, vector<1x16xf32> -> vector<1x16xf32>
    %214 = arith.addf %209, %213 : vector<1x16xf32>
    %215 = vector.extract_strided_slice %144 {offsets = [5, 0], sizes = [1, 32], strides = [1, 1]} : vector<8x32xf32> to vector<1x32xf32>
    %c5_173 = arith.constant 5 : index
    %c0_174 = arith.constant 0 : index
    %c0_175 = arith.constant 0 : index
    %216 = vector.load %arg9[%c5_173, %c0_174, %c0_175] : memref<8x32x16xf32, #tpu.memory_space<vmem>>, vector<1x32x16xf32>
    %217 = vector.shape_cast %216 : vector<1x32x16xf32> to vector<32x16xf32>
    %cst_176 = arith.constant dense<0.000000e+00> : vector<1x16xf32>
    %218 = tpu.matmul %215, %217, %cst_176 {dimension_numbers = #tpu.dot_dimension_numbers<[1], [0], [0], [1], [0, 0, 1, 1], [], []>, precision = #tpu.contract_precision<fp32>} : vector<1x32xf32>, vector<32x16xf32>, vector<1x16xf32> -> vector<1x16xf32>
    %219 = arith.addf %214, %218 : vector<1x16xf32>
    %220 = vector.extract_strided_slice %144 {offsets = [6, 0], sizes = [1, 32], strides = [1, 1]} : vector<8x32xf32> to vector<1x32xf32>
    %c6 = arith.constant 6 : index
    %c0_177 = arith.constant 0 : index
    %c0_178 = arith.constant 0 : index
    %221 = vector.load %arg9[%c6, %c0_177, %c0_178] : memref<8x32x16xf32, #tpu.memory_space<vmem>>, vector<1x32x16xf32>
    %222 = vector.shape_cast %221 : vector<1x32x16xf32> to vector<32x16xf32>
    %cst_179 = arith.constant dense<0.000000e+00> : vector<1x16xf32>
    %223 = tpu.matmul %220, %222, %cst_179 {dimension_numbers = #tpu.dot_dimension_numbers<[1], [0], [0], [1], [0, 0, 1, 1], [], []>, precision = #tpu.contract_precision<fp32>} : vector<1x32xf32>, vector<32x16xf32>, vector<1x16xf32> -> vector<1x16xf32>
    %224 = arith.addf %219, %223 : vector<1x16xf32>
    %225 = vector.extract_strided_slice %144 {offsets = [7, 0], sizes = [1, 32], strides = [1, 1]} : vector<8x32xf32> to vector<1x32xf32>
    %c7 = arith.constant 7 : index
    %c0_180 = arith.constant 0 : index
    %c0_181 = arith.constant 0 : index
    %226 = vector.load %arg9[%c7, %c0_180, %c0_181] : memref<8x32x16xf32, #tpu.memory_space<vmem>>, vector<1x32x16xf32>
    %227 = vector.shape_cast %226 : vector<1x32x16xf32> to vector<32x16xf32>
    %cst_182 = arith.constant dense<0.000000e+00> : vector<1x16xf32>
    %228 = tpu.matmul %225, %227, %cst_182 {dimension_numbers = #tpu.dot_dimension_numbers<[1], [0], [0], [1], [0, 0, 1, 1], [], []>, precision = #tpu.contract_precision<fp32>} : vector<1x32xf32>, vector<32x16xf32>, vector<1x16xf32> -> vector<1x16xf32>
    %229 = arith.addf %224, %228 : vector<1x16xf32>
    %230 = arith.addf %229, %190 : vector<1x16xf32>
    %c0_183 = arith.constant 0 : index
    %c0_184 = arith.constant 0 : index
    %c0_185 = arith.constant 0 : index
    %231 = vector.load %arg11[%c0_183, %c0_184, %c0_185] : memref<2x1x16xf32, #tpu.memory_space<vmem>>, vector<1x1x16xf32>
    %232 = vector.shape_cast %231 : vector<1x1x16xf32> to vector<1x16xf32>
    %233 = vector.shape_cast %230 : vector<1x16xf32> to vector<1x1x16xf32>
    tpu.vector_store %arg11[%c0_183, %c0_184, %c0_185], %233 {strides = array<i32>} : memref<2x1x16xf32, #tpu.memory_space<vmem>>, vector<1x1x16xf32>,
    %234 = vector.extract_strided_slice %189 {offsets = [0, 0], sizes = [1, 32], strides = [1, 1]} : vector<8x32xf32> to vector<1x32xf32>
    %c0_186 = arith.constant 0 : index
    %c0_187 = arith.constant 0 : index
    %c0_188 = arith.constant 0 : index
    %235 = vector.load %arg9[%c0_186, %c0_187, %c0_188] : memref<8x32x16xf32, #tpu.memory_space<vmem>>, vector<1x32x16xf32>
    %236 = vector.shape_cast %235 : vector<1x32x16xf32> to vector<32x16xf32>
    %cst_189 = arith.constant dense<0.000000e+00> : vector<1x16xf32>
    %237 = tpu.matmul %234, %236, %cst_189 {dimension_numbers = #tpu.dot_dimension_numbers<[1], [0], [0], [1], [0, 0, 1, 1], [], []>, precision = #tpu.contract_precision<fp32>} : vector<1x32xf32>, vector<32x16xf32>, vector<1x16xf32> -> vector<1x16xf32>
    %238 = vector.extract_strided_slice %189 {offsets = [1, 0], sizes = [1, 32], strides = [1, 1]} : vector<8x32xf32> to vector<1x32xf32>
    %c1_190 = arith.constant 1 : index
    %c0_191 = arith.constant 0 : index
    %c0_192 = arith.constant 0 : index
    %239 = vector.load %arg9[%c1_190, %c0_191, %c0_192] : memref<8x32x16xf32, #tpu.memory_space<vmem>>, vector<1x32x16xf32>
    %240 = vector.shape_cast %239 : vector<1x32x16xf32> to vector<32x16xf32>
    %cst_193 = arith.constant dense<0.000000e+00> : vector<1x16xf32>
    %241 = tpu.matmul %238, %240, %cst_193 {dimension_numbers = #tpu.dot_dimension_numbers<[1], [0], [0], [1], [0, 0, 1, 1], [], []>, precision = #tpu.contract_precision<fp32>} : vector<1x32xf32>, vector<32x16xf32>, vector<1x16xf32> -> vector<1x16xf32>
    %242 = arith.addf %237, %241 : vector<1x16xf32>
    %243 = vector.extract_strided_slice %189 {offsets = [2, 0], sizes = [1, 32], strides = [1, 1]} : vector<8x32xf32> to vector<1x32xf32>
    %c2_194 = arith.constant 2 : index
    %c0_195 = arith.constant 0 : index
    %c0_196 = arith.constant 0 : index
    %244 = vector.load %arg9[%c2_194, %c0_195, %c0_196] : memref<8x32x16xf32, #tpu.memory_space<vmem>>, vector<1x32x16xf32>
    %245 = vector.shape_cast %244 : vector<1x32x16xf32> to vector<32x16xf32>
    %cst_197 = arith.constant dense<0.000000e+00> : vector<1x16xf32>
    %246 = tpu.matmul %243, %245, %cst_197 {dimension_numbers = #tpu.dot_dimension_numbers<[1], [0], [0], [1], [0, 0, 1, 1], [], []>, precision = #tpu.contract_precision<fp32>} : vector<1x32xf32>, vector<32x16xf32>, vector<1x16xf32> -> vector<1x16xf32>
    %247 = arith.addf %242, %246 : vector<1x16xf32>
    %248 = vector.extract_strided_slice %189 {offsets = [3, 0], sizes = [1, 32], strides = [1, 1]} : vector<8x32xf32> to vector<1x32xf32>
    %c3_198 = arith.constant 3 : index
    %c0_199 = arith.constant 0 : index
    %c0_200 = arith.constant 0 : index
    %249 = vector.load %arg9[%c3_198, %c0_199, %c0_200] : memref<8x32x16xf32, #tpu.memory_space<vmem>>, vector<1x32x16xf32>
    %250 = vector.shape_cast %249 : vector<1x32x16xf32> to vector<32x16xf32>
    %cst_201 = arith.constant dense<0.000000e+00> : vector<1x16xf32>
    %251 = tpu.matmul %248, %250, %cst_201 {dimension_numbers = #tpu.dot_dimension_numbers<[1], [0], [0], [1], [0, 0, 1, 1], [], []>, precision = #tpu.contract_precision<fp32>} : vector<1x32xf32>, vector<32x16xf32>, vector<1x16xf32> -> vector<1x16xf32>
    %252 = arith.addf %247, %251 : vector<1x16xf32>
    %253 = vector.extract_strided_slice %189 {offsets = [4, 0], sizes = [1, 32], strides = [1, 1]} : vector<8x32xf32> to vector<1x32xf32>
    %c4_202 = arith.constant 4 : index
    %c0_203 = arith.constant 0 : index
    %c0_204 = arith.constant 0 : index
    %254 = vector.load %arg9[%c4_202, %c0_203, %c0_204] : memref<8x32x16xf32, #tpu.memory_space<vmem>>, vector<1x32x16xf32>
    %255 = vector.shape_cast %254 : vector<1x32x16xf32> to vector<32x16xf32>
    %cst_205 = arith.constant dense<0.000000e+00> : vector<1x16xf32>
    %256 = tpu.matmul %253, %255, %cst_205 {dimension_numbers = #tpu.dot_dimension_numbers<[1], [0], [0], [1], [0, 0, 1, 1], [], []>, precision = #tpu.contract_precision<fp32>} : vector<1x32xf32>, vector<32x16xf32>, vector<1x16xf32> -> vector<1x16xf32>
    %257 = arith.addf %252, %256 : vector<1x16xf32>
    %258 = vector.extract_strided_slice %189 {offsets = [5, 0], sizes = [1, 32], strides = [1, 1]} : vector<8x32xf32> to vector<1x32xf32>
    %c5_206 = arith.constant 5 : index
    %c0_207 = arith.constant 0 : index
    %c0_208 = arith.constant 0 : index
    %259 = vector.load %arg9[%c5_206, %c0_207, %c0_208] : memref<8x32x16xf32, #tpu.memory_space<vmem>>, vector<1x32x16xf32>
    %260 = vector.shape_cast %259 : vector<1x32x16xf32> to vector<32x16xf32>
    %cst_209 = arith.constant dense<0.000000e+00> : vector<1x16xf32>
    %261 = tpu.matmul %258, %260, %cst_209 {dimension_numbers = #tpu.dot_dimension_numbers<[1], [0], [0], [1], [0, 0, 1, 1], [], []>, precision = #tpu.contract_precision<fp32>} : vector<1x32xf32>, vector<32x16xf32>, vector<1x16xf32> -> vector<1x16xf32>
    %262 = arith.addf %257, %261 : vector<1x16xf32>
    %263 = vector.extract_strided_slice %189 {offsets = [6, 0], sizes = [1, 32], strides = [1, 1]} : vector<8x32xf32> to vector<1x32xf32>
    %c6_210 = arith.constant 6 : index
    %c0_211 = arith.constant 0 : index
    %c0_212 = arith.constant 0 : index
    %264 = vector.load %arg9[%c6_210, %c0_211, %c0_212] : memref<8x32x16xf32, #tpu.memory_space<vmem>>, vector<1x32x16xf32>
    %265 = vector.shape_cast %264 : vector<1x32x16xf32> to vector<32x16xf32>
    %cst_213 = arith.constant dense<0.000000e+00> : vector<1x16xf32>
    %266 = tpu.matmul %263, %265, %cst_213 {dimension_numbers = #tpu.dot_dimension_numbers<[1], [0], [0], [1], [0, 0, 1, 1], [], []>, precision = #tpu.contract_precision<fp32>} : vector<1x32xf32>, vector<32x16xf32>, vector<1x16xf32> -> vector<1x16xf32>
    %267 = arith.addf %262, %266 : vector<1x16xf32>
    %268 = vector.extract_strided_slice %189 {offsets = [7, 0], sizes = [1, 32], strides = [1, 1]} : vector<8x32xf32> to vector<1x32xf32>
    %c7_214 = arith.constant 7 : index
    %c0_215 = arith.constant 0 : index
    %c0_216 = arith.constant 0 : index
    %269 = vector.load %arg9[%c7_214, %c0_215, %c0_216] : memref<8x32x16xf32, #tpu.memory_space<vmem>>, vector<1x32x16xf32>
    %270 = vector.shape_cast %269 : vector<1x32x16xf32> to vector<32x16xf32>
    %cst_217 = arith.constant dense<0.000000e+00> : vector<1x16xf32>
    %271 = tpu.matmul %268, %270, %cst_217 {dimension_numbers = #tpu.dot_dimension_numbers<[1], [0], [0], [1], [0, 0, 1, 1], [], []>, precision = #tpu.contract_precision<fp32>} : vector<1x32xf32>, vector<32x16xf32>, vector<1x16xf32> -> vector<1x16xf32>
    %272 = arith.addf %267, %271 : vector<1x16xf32>
    %273 = arith.addf %272, %190 : vector<1x16xf32>
    %c1_218 = arith.constant 1 : index
    %c0_219 = arith.constant 0 : index
    %c0_220 = arith.constant 0 : index
    %274 = vector.load %arg11[%c1_218, %c0_219, %c0_220] : memref<2x1x16xf32, #tpu.memory_space<vmem>>, vector<1x1x16xf32>
    %275 = vector.shape_cast %274 : vector<1x1x16xf32> to vector<1x16xf32>
    %276 = vector.shape_cast %273 : vector<1x16xf32> to vector<1x1x16xf32>
    tpu.vector_store %arg11[%c1_218, %c0_219, %c0_220], %276 {strides = array<i32>} : memref<2x1x16xf32, #tpu.memory_space<vmem>>, vector<1x1x16xf32>,
    return
  }
}

</mosaic_0001>

<bundles_post_ra>
// kernel: encoder3dmesh_forward.1
= control target key start
LH: loop header
LB: loop body
LE: loop exit
PB: predicated region body
PF: predicated region fallthrough
CT: control target
= control target key end

     0   :  { %vm55_vm0 = vcmask 261120   ;;  %vm697_vm1 = vcmask 1042432   ;;  %vm684_vm2 = vcmask 23552   ;;  %vm14464_vm3 = vcmask 130048   ;;  %s46971_s0 = inlined_call_operand.vmem [shape: f32[2,32,3], index: 0, kind: input, shape index: {}]   ;;  %s46972_s1 = inlined_call_operand.vmem [shape: f32[32,32], index: 1, kind: input, shape index: {}]   ;;  %s46973_s3 = inlined_call_operand.vmem [shape: f32[6,3,16], index: 3, kind: input, shape index: {}]   ;;  %s46974_s2 = inlined_call_operand.vmem [shape: f32[16,32], index: 2, kind: input, shape index: {}]   ;;  %s46975_s4 = inlined_call_operand.vmem [shape: f32[1,16], index: 4, kind: input, shape index: {}]   ;;  %s46976_s5 = inlined_call_operand.vmem [shape: f32[16,16], index: 5, kind: input, shape index: {}]   ;;  %s46977_s7 = inlined_call_operand.vmem [shape: f32[6,16,32], index: 7, kind: input, shape index: {}]   ;;  %s46978_s6 = inlined_call_operand.vmem [shape: f32[8,16], index: 6, kind: input, shape index: {}]   ;;  %s46979_s8 = inlined_call_operand.vmem [shape: f32[1,32], index: 8, kind: input, shape index: {}]   ;;  %s46980_s9 = inlined_call_operand.vmem [shape: f32[8,32,16], index: 9, kind: input, shape index: {}]   ;;  %s46981_s10 = inlined_call_operand.vmem [shape: f32[1,16], index: 10, kind: input, shape index: {}]   ;;  %s46982_s11 = inlined_call_operand.vmem [shape: f32[2,1,16], index: 11, kind: output, shape index: {}]  }
   0x1   :  { %v42678_v0 = vld [vmem:[%s46971_s0] sm:$0xff]  ;;  %v42683_v1 = vld [vmem:[%s46971_s0 + $0x8] sm:$0xff]  ;;  %v42688_v2 = vld [vmem:[%s46971_s0 + $0x10] sm:$0xff]  ;;  %vm42613_vm4 = vmmov 0   ;;  %vm30534_vm5 = vcmask 122880  }
   0x2   :  { %v69_v3 = vand.u32 4294901760, %v42678_v0  ;;  %v72_v4 = vand.u32 4294901760, %v42683_v1  ;;  %v42695_v5 = vld [vmem:[%s46971_s0 + $0x18] sm:$0xff]  ;;  %v75_v6 = vand.u32 4294901760, %v42688_v2  ;;  %v47_v7 = vld [vmem:[%s46972_s1] sm:$0xff]  ;;  %v48_v8 = vld [vmem:[%s46972_s1 + $0x8] sm:$0xff] }
   0x3   :  { %v78_v9 = vand.u32 4294901760, %v42695_v5  ;;  %v57_v10 = vsel %vm55_vm0, %v47_v7, 0  ;;  %v60_v11 = vsel %vm55_vm0, %v48_v8, 0  ;;  %v49_v12 = vld [vmem:[%s46972_s1 + $0x10] sm:$0xff]  ;;  %v50_v13 = vld [vmem:[%s46972_s1 + $0x18] sm:$0xff] }
   0x4   :  { %v42713_v14 = vpack.c.bf16 %v72_v4, %v69_v3  ;;  %v42715_v15 = vand.u32 4294901760, %v57_v10  ;;  %v42717_v16 = vand.u32 4294901760, %v60_v11  ;;  %v42720_v17 = vsub.f32 %v42678_v0, %v69_v3  ;;  %v34489_v60 = vld [vmem:[%s46973_s3 + $0x4] sm:$0x7] }
   0x5   :  { %v42722_v18 = vpack.c.bf16 %v78_v9, %v75_v6  ;;  %v42725_v19 = vsub.f32 %v42683_v1, %v72_v4  ;;  %v63_v20 = vsel %vm55_vm0, %v49_v12, 0  ;;  %v66_v21 = vsel %vm55_vm0, %v50_v13, 0 }
   0x6   :  { %40132 = vmatprep.subr.bf16.mxu0 %v42713_v14  ;;  %v42731_v22 = vsub.f32 %v57_v10, %v42715_v15  ;;  %v42734_v23 = vsub.f32 %v60_v11, %v42717_v16  ;;  %v180_v24 = vand.u32 4294901760, %v42720_v17  ;;  %v42737_v25 = vand.u32 4294901760, %v63_v20 }
   0x7   :  { %40134 = vmatpush3.bf16.msra.mxu0 %v42713_v14  ;;  %v187_v26 = vand.u32 4294901760, %v42725_v19  ;;  %v42741_v27 = vand.u32 4294901760, %v66_v21  ;;  %v193_v28 = vsub.f32 %v42688_v2, %v75_v6  ;;  %v200_v29 = vsub.f32 %v42695_v5, %v78_v9 }
   0x8   :  { %40136 = vmatprep.subr.bf16.mxu0 %v42722_v18  ;;  %v42747_v30 = vand.u32 4294901760, %v42731_v22  ;;  %v42750_v31 = vand.u32 4294901760, %v42734_v23  ;;  %v181_v32 = vsub.f32 %v42720_v17, %v180_v24  ;;  %v42754_v33 = vsub.f32 %v63_v20, %v42737_v25 }
   0x9   :  { %v188_v34 = vsub.f32 %v42725_v19, %v187_v26  ;;  %v42758_v35 = vsub.f32 %v66_v21, %v42741_v27  ;;  %v194_v36 = vand.u32 4294901760, %v193_v28  ;;  %v201_v37 = vand.u32 4294901760, %v200_v29 }
   0xa   :  { %v140_v38 = vsub.f32 %v42731_v22, %v42747_v30  ;;  %v150_v39 = vsub.f32 %v42734_v23, %v42750_v31  ;;  %v182_v40 = vand.u32 4294901760, %v181_v32  ;;  %v42765_v41 = vand.u32 4294901760, %v42754_v33 }
   0xb   :  { %40138 = vmatpush3.bf16.msra.mxu0 %v42722_v18  ;;  %v189_v42 = vand.u32 4294901760, %v188_v34  ;;  %v42769_v43 = vand.u32 4294901760, %v42758_v35  ;;  %v195_v44 = vsub.f32 %v193_v28, %v194_v36  ;;  %v202_v45 = vsub.f32 %v200_v29, %v201_v37 }
   0xc   :  { %v42771_v46 = vand.u32 4294901760, %v140_v38  ;;  %v42773_v47 = vand.u32 4294901760, %v150_v39  ;;  %v160_v48 = vsub.f32 %v42754_v33, %v42765_v41  ;;  %v40147_v56 = vpack.c.bf16 %v42725_v19, %v42720_v17 }
   0xd   :  { %v40139_v49 = vpack.c.bf16 %v189_v42, %v182_v40  ;;  %v170_v50 = vsub.f32 %v42758_v35, %v42769_v43  ;;  %v196_v51 = vand.u32 4294901760, %v195_v44  ;;  %v203_v52 = vand.u32 4294901760, %v202_v45 }
   0xe   :  { %36527 = vmatprep.mubr.f32.mxu0 %v42771_v46  ;;  %v42780_v53 = vand.u32 4294901760, %v160_v48  ;;  %v40151_v57 = vpack.c.bf16 %v200_v29, %v193_v28  ;;  %v40163_v58 = vpack.c.bf16 %v187_v26, %v180_v24  ;;  %v40167_v59 = vpack.c.bf16 %v201_v37, %v194_v36 }
   0xf   :  { %36528 = vmatmul.mubr.f32.vlgmr.msra.gmra.mrb[0].mxu0 %v42773_v47  ;;  %40140 = vmatprep.subr.bf16.mxu0 %v40139_v49  ;;  %v42783_v54 = vand.u32 4294901760, %v170_v50  ;;  %v40143_v55 = vpack.c.bf16 %v203_v52, %v196_v51  ;;  %v699_v61 = vsel %vm697_vm1, %v34489_v60, 0 }
  0x10   :  { %40142 = vmatpush3.bf16.msra.mxu0 %v40139_v49  ;;  %36530 = vmatprep.mubr.f32.mxu0 %v42780_v53  ;;  %v42822_v62 = vand.u32 4294901760, %v699_v61 }
  0x11   :  { %40144 = vmatprep.subr.bf16.mxu0 %v40143_v55 }
  0x12   :  { %36603 = vmatprep.subr.mxu1 %v42822_v62  ;;  %v42827_v63 = vsub.f32 %v699_v61, %v42822_v62 }
  0x13   :  { %36531 = vmatmul.mubr.f32.gmra.mrb[2].mxu0 %v42783_v54  ;;  %36604 = vmatpush3.msra.mxu1 %v42822_v62 }
  0x14   :  { %40146 = vmatpush3.bf16.msra.mxu0 %v40143_v55  ;;  %36541 = vmatprep.mubr.f32.mxu0 %v42715_v15  ;;  %v42830_v3 = vand.u32 4294901760, %v42827_v63 }
  0x15   :  { %40148 = vmatprep.subr.bf16.mxu0 %v40147_v56 }
  0x16   :  { %47138 = vst [vmem:[#allocation2_spill] sm:$0xff] %v42830_v3  ;;  %v811_v4 = vsub.f32 %v42827_v63, %v42830_v3 }
  0x17   :  { %36542 = vmatmul.mubr.f32.vlgmr.msra.gmra.mrb[0].mxu0 %v42717_v16 }
  0x18   :  { %40150 = vmatpush3.bf16.msra.mxu0 %v40147_v56  ;;  %36544 = vmatprep.mubr.f32.mxu0 %v42737_v25  ;;  %v42834_v6 = vand.u32 4294901760, %v811_v4 }
  0x19   :  { %40152 = vmatprep.subr.bf16.mxu0 %v40151_v57 }
  0x1a   :  { %36611 = vmatprep.subr.mxu1 %v42834_v6 }
  0x1b   :  { %36545 = vmatmul.mubr.f32.gmra.mrb[2].mxu0 %v42741_v27 }
  0x1c   :  { %40154 = vmatpush3.bf16.msra.mxu0 %v40151_v57  ;;  %36555 = vmatprep.mubr.f32.mxu0 %v42731_v22 }
  0x1d   :  { %40156 = vmatprep.subr.bf16.mxu0 %v42713_v14 }
  0x1f   :  { %36556 = vmatmul.mubr.f32.vlgmr.msra.gmra.mrb[0].mxu0 %v42734_v23 }
  0x20   :  { %40158 = vmatpush3.bf16.msra.mxu0 %v42713_v14  ;;  %36558 = vmatprep.mubr.f32.mxu0 %v42754_v33 }
  0x21   :  { %40160 = vmatprep.subr.bf16.mxu0 %v42722_v18 }
  0x23   :  { %36559 = vmatmul.mubr.f32.gmra.mrb[2].mxu0 %v42758_v35 }
  0x24   :  { %40162 = vmatpush3.bf16.msra.mxu0 %v42722_v18  ;;  %36569 = vmatprep.mubr.f32.mxu0 %v42747_v30 }
  0x25   :  { %40164 = vmatprep.subr.bf16.mxu0 %v40163_v58 }
  0x27   :  { %36570 = vmatmul.mubr.f32.vlgmr.msra.gmra.mrb[0].mxu0 %v42750_v31 }
  0x28   :  { %40166 = vmatpush3.bf16.msra.mxu0 %v40163_v58  ;;  %36572 = vmatprep.mubr.f32.mxu0 %v42765_v41 }
  0x29   :  { %40168 = vmatprep.subr.bf16.mxu0 %v40167_v59 }
  0x2b   :  { %36573 = vmatmul.mubr.f32.gmra.mrb[2].mxu0 %v42769_v43 }
  0x2c   :  { %40170 = vmatpush3.bf16.msra.mxu0 %v40167_v59  ;;  %36583 = vmatprep.mubr.f32.mxu0 %v42715_v15 }
  0x2d   :  { %40172 = vmatprep.subr.bf16.mxu0 %v42713_v14 }
  0x2f   :  { %36584 = vmatmul.mubr.f32.vlgmr.msra.gmra.mrb[0].mxu0 %v42717_v16 }
  0x30   :  { %40174 = vmatpush3.bf16.msra.mxu0 %v42713_v14  ;;  %36586 = vmatprep.mubr.f32.mxu0 %v42737_v25 }
  0x31   :  { %40176 = vmatprep.subr.bf16.mxu0 %v42722_v18 }
  0x33   :  { %36587 = vmatmul.mubr.f32.gmra.mrb[2].mxu0 %v42741_v27 }
  0x34   :  { %40178 = vmatpush3.bf16.msra.mxu0 %v42722_v18  ;;  %36597 = vmatprep.mubr.f32.mxu0 %v42715_v15 }
  0x37   :  { %36598 = vmatmul.mubr.f32.vlgmr.msra.gmra.mrb[0].mxu0 %v42717_v16 }
  0x38   :  { %36600 = vmatprep.mubr.f32.mxu0 %v42737_v25 }
  0x3b   :  { %36601 = vmatmul.mubr.f32.gmra.mrb[2].mxu0 %v42741_v27 }
  0x3c   :  { %36707 = vmatprep.mubr.f32.mxu0 %v42771_v46 }
 0x10a   :  { %v42837_v7 = vpop.f32.mrb[0].mxu0 }
 0x10b   :  { %v689_v8 = vsel %vm684_vm2, %v42837_v7, 0  ;;  %v1870_v9 = vand.u32 4294901760, %v42837_v7  ;;  %v42842_v10 = vpop.f32.mrb[1].mxu0 }
 0x10c   :  { %v42844_v11 = vand.u32 4294901760, %v689_v8  ;;  %v686_v12 = vsel %vm684_vm2, %v42842_v10, 0  ;;  %v1867_v13 = vand.u32 4294901760, %v42842_v10 }
 0x10d   :  { %v1984_v14 = vsub.f32 %v42837_v7, %v1870_v9  ;;  %v42850_v17 = vand.u32 4294901760, %v686_v12 }
 0x10e   :  { %v42853_v18 = vsub.f32 %v689_v8, %v42844_v11  ;;  %v42855_v19 = vpack.c.bf16 %v1870_v9, %v1867_v13  ;;  %v1977_v20 = vsub.f32 %v42842_v10, %v1867_v13  ;;  %v42858_v21 = vpop.f32.mrb[2].mxu0 }
 0x10f   :  { %v695_v24 = vsel %vm684_vm2, %v42858_v21, 0  ;;  %v1876_v26 = vand.u32 4294901760, %v42858_v21  ;;  %v42863_v28 = vpop.f32.mrb[3].mxu0  ;;  %v42866_v29 = vsub.f32 %v686_v12, %v42850_v17  ;;  %v1985_v32 = vand.u32 4294901760, %v1984_v14 }
 0x110   :  { %v42868_v34 = vand.u32 4294901760, %v695_v24  ;;  %v692_v36 = vsel %vm684_vm2, %v42863_v28, 0  ;;  %v1873_v37 = vand.u32 4294901760, %v42863_v28  ;;  %40180 = vmatprep.subr.bf16.mxu0 %v42855_v19  ;;  %v46983_v38 = vand.u32 4294901760, %v42853_v18 }
 0x111   :  { %v1998_v39 = vsub.f32 %v42858_v21, %v1876_v26  ;;  %v42876_v40 = vand.u32 4294901760, %v692_v36  ;;  %40182 = vmatpush3.bf16.msra.mxu0 %v42855_v19  ;;  %v769_v42 = vand.u32 4294901760, %v42866_v29  ;;  %v1978_v44 = vand.u32 4294901760, %v1977_v20 }
 0x112   :  { %v42881_v45 = vsub.f32 %v695_v24, %v42868_v34  ;;  %v42883_v48 = vpack.c.bf16 %v1876_v26, %v1873_v37  ;;  %v1991_v49 = vsub.f32 %v42863_v28, %v1873_v37  ;;  %v780_v50 = vsub.f32 %v42853_v18, %v46983_v38 }
 0x113   :  { %v42890_v51 = vsub.f32 %v692_v36, %v42876_v40  ;;  %v770_v52 = vsub.f32 %v42866_v29, %v769_v42  ;;  %v1979_v55 = vsub.f32 %v1977_v20, %v1978_v44  ;;  %v1986_v56 = vsub.f32 %v1984_v14, %v1985_v32 }
 0x114   :  { %40184 = vmatprep.subr.bf16.mxu0 %v42883_v48  ;;  %v781_v57 = vand.u32 4294901760, %v780_v50  ;;  %v46984_v58 = vand.u32 4294901760, %v42881_v45  ;;  %v1992_v59 = vand.u32 4294901760, %v1991_v49  ;;  %v1999_v60 = vand.u32 4294901760, %v1998_v39 }
 0x115   :  { %40186 = vmatpush3.bf16.msra.mxu0 %v42883_v48  ;;  %v771_v61 = vand.u32 4294901760, %v770_v52  ;;  %v1980_v4 = vand.u32 4294901760, %v1979_v55  ;;  %v1987_v8 = vand.u32 4294901760, %v1986_v56  ;;  %v789_v9 = vand.u32 4294901760, %v42890_v51 }
 0x116   :  { %v800_v12 = vsub.f32 %v42881_v45, %v46984_v58  ;;  %v1993_v13 = vsub.f32 %v1991_v49, %v1992_v59  ;;  %v2000_v24 = vsub.f32 %v1998_v39, %v1999_v60  ;;  %v40195_v26 = vpack.c.bf16 %v1984_v14, %v1977_v20 }
 0x117   :  { %36605 = vmatprep.mubr.f32.mxu1 %v771_v61  ;;  %v40187_v36 = vpack.c.bf16 %v1987_v8, %v1980_v4  ;;  %v790_v37 = vsub.f32 %v42890_v51, %v789_v9  ;;  %v40199_v50 = vpack.c.bf16 %v1998_v39, %v1991_v49  ;;  %v40211_v38 = vpack.c.bf16 %v1985_v32, %v1978_v44  ;;  %v54_v32 = vld [vmem:[%s46973_s3] sm:$0x7] }
 0x118   :  { %36606 = vmatmul.mubr.f32.vlgmr.msra.gmra.mrb[0].mxu1 %v781_v57  ;;  %36708 = vmatmul.mubr.f32.vlgmr.msra.gmra.mrb[4].mxu0 %v42773_v47  ;;  %v1994_v52 = vand.u32 4294901760, %v1993_v13  ;;  %v2001_v55 = vand.u32 4294901760, %v2000_v24  ;;  %v42906_v56 = vpack.c.bf16 %v1999_v60, %v1992_v59  ;;  %v801_v14 = vand.u32 4294901760, %v800_v12 }
 0x119   :  { %40188 = vmatprep.subr.bf16.mxu0 %v40187_v36  ;;  %v791_v58 = vand.u32 4294901760, %v790_v37  ;;  %36710 = vmatprep.mubr.f32.mxu0 %v42780_v53  ;;  %v1289_v39 = vsel %vm697_vm1, %v54_v32, 0  ;;  %v1277_v44 = vsel %vm684_vm2, %v42678_v0, 0  ;;  %v47140_v57 = vand.u32 4294901760, %v42853_v18 }
 0x11a   :  { %40190 = vmatpush3.bf16.msra.mxu0 %v40187_v36  ;;  %v40191_v20 = vpack.c.bf16 %v2001_v55, %v1994_v52  ;;  %36612 = vmatpush3.msra.mxu1 %v42834_v6  ;;  %v42945_v49 = vand.u32 4294901760, %v1289_v39  ;;  %v1286_v61 = vsel %vm684_vm2, %v42695_v5, 0 }
 0x11b   :  { %36608 = vmatprep.mubr.f32.mxu1 %v791_v58  ;;  %36619 = vmatprep.subr.mxu1 %v42827_v63  ;;  %v1283_v58 = vsel %vm684_vm2, %v42688_v2, 0  ;;  %v42986_v8 = vand.u32 4294901760, %v1286_v61 }
 0x11c   :  { %36609 = vmatmul.mubr.f32.gmra.mrb[2].mxu1 %v801_v14  ;;  %36711 = vmatmul.mubr.f32.gmra.mrb[6].mxu0 %v42783_v54  ;;  %47139 = vst [vmem:[#allocation3_spill] sm:$0xff] %v42945_v49  ;;  %v42974_v60 = vand.u32 4294901760, %v1283_v58 }
 0x11d   :  { %40192 = vmatprep.subr.bf16.mxu0 %v40191_v20  ;;  %36613 = vmatprep.mubr.f32.mxu1 %v42850_v17 }
 0x11e   :  { %40194 = vmatpush3.bf16.msra.mxu0 %v40191_v20  ;;  %36721 = vmatprep.mubr.f32.mxu0 %v42715_v15  ;;  %v1378_v12 = vsub.f32 %v1283_v58, %v42974_v60 }
 0x11f   :  { %40196 = vmatprep.subr.bf16.mxu0 %v40195_v26 }
 0x120   :  { %36614 = vmatmul.mubr.f32.vlgmr.msra.gmra.mrb[0].mxu1 %v42844_v11  ;;  %v1379_v36 = vand.u32 4294901760, %v1378_v12 }
 0x121   :  { %36722 = vmatmul.mubr.f32.vlgmr.msra.gmra.mrb[4].mxu0 %v42717_v16  ;;  %36616 = vmatprep.mubr.f32.mxu1 %v42876_v40 }
 0x122   :  { %40198 = vmatpush3.bf16.msra.mxu0 %v40195_v26  ;;  %36724 = vmatprep.mubr.f32.mxu0 %v42737_v25  ;;  %v1388_v26 = vsub.f32 %v1286_v61, %v42986_v8 }
 0x123   :  { %40200 = vmatprep.subr.bf16.mxu0 %v40199_v50  ;;  %36620 = vmatpush3.msra.mxu1 %v42827_v63 }
 0x124   :  { %36617 = vmatmul.mubr.f32.gmra.mrb[2].mxu1 %v42868_v34  ;;  %36627 = vmatprep.subr.mxu1 %v42822_v62  ;;  %v1389_v52 = vand.u32 4294901760, %v1388_v26 }
 0x125   :  { %36725 = vmatmul.mubr.f32.gmra.mrb[6].mxu0 %v42741_v27  ;;  %36621 = vmatprep.mubr.f32.mxu1 %v42866_v29  ;;  %v42952_v29 = vand.u32 4294901760, %v1277_v44 }
 0x126   :  { %40202 = vmatpush3.bf16.msra.mxu0 %v40199_v50  ;;  %36735 = vmatprep.mubr.f32.mxu0 %v42731_v22 }
 0x127   :  { %40204 = vmatprep.subr.bf16.mxu0 %v42855_v19 }
 0x128   :  { %36622 = vmatmul.mubr.f32.vlgmr.msra.gmra.mrb[0].mxu1 %v42853_v18  ;;  %v42962_v18 = vsub.f32 %v1289_v39, %v42945_v49 }
 0x129   :  { %36736 = vmatmul.mubr.f32.vlgmr.msra.gmra.mrb[4].mxu0 %v42734_v23  ;;  %36624 = vmatprep.mubr.f32.mxu1 %v42890_v51  ;;  %v47142_v51 = vand.u32 4294901760, %v42881_v45 }
 0x12a   :  { %40206 = vmatpush3.bf16.msra.mxu0 %v42855_v19  ;;  %36738 = vmatprep.mubr.f32.mxu0 %v42754_v33  ;;  %47141 = vst [vmem:[#allocation4_spill] sm:$0xff] %v42962_v18 }
 0x12b   :  { %40208 = vmatprep.subr.bf16.mxu0 %v42883_v48  ;;  %36628 = vmatpush3.msra.mxu1 %v42822_v62 }
 0x12c   :  { %36625 = vmatmul.mubr.f32.gmra.mrb[2].mxu1 %v42881_v45  ;;  %36635 = vmatprep.subr.mxu1 %v42830_v3  ;;  %v42982_v45 = vand.u32 4294901760, %v42962_v18 }
 0x12d   :  { %36739 = vmatmul.mubr.f32.gmra.mrb[6].mxu0 %v42758_v35  ;;  %36629 = vmatprep.mubr.f32.mxu1 %v769_v42  ;;  %v1280_v42 = vsel %vm684_vm2, %v42683_v1, 0 }
 0x12e   :  { %40210 = vmatpush3.bf16.msra.mxu0 %v42883_v48  ;;  %36749 = vmatprep.mubr.f32.mxu0 %v42747_v30  ;;  %v42967_v59 = vand.u32 4294901760, %v1280_v42  ;;  %47143 = vst [vmem:[#allocation5_spill] sm:$0xff] %v42982_v45  ;;  %v1401_v13 = vsub.f32 %v42962_v18, %v42982_v45 }
 0x12f   :  { %40212 = vmatprep.subr.bf16.mxu0 %v40211_v38 }
 0x130   :  { %36630 = vmatmul.mubr.f32.vlgmr.msra.gmra.mrb[0].mxu1 %v47140_v57  ;;  %v1368_v4 = vsub.f32 %v1280_v42, %v42967_v59  ;;  %v43006_v37 = vand.u32 4294901760, %v1401_v13 }
 0x131   :  { %36750 = vmatmul.mubr.f32.vlgmr.msra.gmra.mrb[4].mxu0 %v42750_v31  ;;  %36632 = vmatprep.mubr.f32.mxu1 %v789_v9 }
 0x132   :  { %40214 = vmatpush3.bf16.msra.mxu0 %v40211_v38  ;;  %36752 = vmatprep.mubr.f32.mxu0 %v42765_v41  ;;  %v42972_v38 = vsub.f32 %v1277_v44, %v42952_v29  ;;  %v1369_v24 = vand.u32 4294901760, %v1368_v4  ;;  %47144 = vst [vmem:[#allocation6_spill] sm:$0xff] %v43006_v37 }
 0x133   :  { %40216 = vmatprep.subr.bf16.mxu0 %v42906_v56  ;;  %36636 = vmatpush3.msra.mxu1 %v42830_v3 }
 0x134   :  { %36633 = vmatmul.mubr.f32.gmra.mrb[2].mxu1 %v47142_v51  ;;  %36643 = vmatprep.subr.mxu1 %v42822_v62  ;;  %v1359_v9 = vand.u32 4294901760, %v42972_v38  ;;  %v1370_v50 = vsub.f32 %v1368_v4, %v1369_v24 }
 0x135   :  { %36753 = vmatmul.mubr.f32.gmra.mrb[6].mxu0 %v42769_v43  ;;  %36637 = vmatprep.mubr.f32.mxu1 %v42850_v17 }
 0x136   :  { %40218 = vmatpush3.bf16.msra.mxu0 %v42906_v56  ;;  %36763 = vmatprep.mubr.f32.mxu0 %v42715_v15  ;;  %v1380_v56 = vsub.f32 %v1378_v12, %v1379_v36 }
 0x137   :  { %40220 = vmatprep.subr.bf16.mxu0 %v42855_v19 }
 0x138   :  { %36638 = vmatmul.mubr.f32.vlgmr.msra.gmra.mrb[0].mxu1 %v42844_v11 }
 0x139   :  { %36764 = vmatmul.mubr.f32.vlgmr.msra.gmra.mrb[4].mxu0 %v42717_v16  ;;  %36640 = vmatprep.mubr.f32.mxu1 %v42876_v40 }
 0x13a   :  { %40222 = vmatpush3.bf16.msra.mxu0 %v42855_v19  ;;  %36766 = vmatprep.mubr.f32.mxu0 %v42737_v25  ;;  %v1360_v19 = vsub.f32 %v42972_v38, %v1359_v9 }
 0x13b   :  { %40224 = vmatprep.subr.bf16.mxu0 %v42883_v48  ;;  %36644 = vmatpush3.msra.mxu1 %v42822_v62 }
 0x13c   :  { %36641 = vmatmul.mubr.f32.gmra.mrb[2].mxu1 %v42868_v34  ;;  %36651 = vmatprep.subr.mxu1 %v42945_v49  ;;  %v1361_v55 = vand.u32 4294901760, %v1360_v19 }
 0x13d   :  { %36767 = vmatmul.mubr.f32.gmra.mrb[6].mxu0 %v42741_v27  ;;  %36645 = vmatprep.mubr.f32.mxu1 %v42850_v17  ;;  %v1371_v17 = vand.u32 4294901760, %v1370_v50 }
 0x13e   :  { %40226 = vmatpush3.bf16.msra.mxu0 %v42883_v48  ;;  %36777 = vmatprep.mubr.f32.mxu0 %v42715_v15  ;;  %v1390_v48 = vsub.f32 %v1388_v26, %v1389_v52 }
 0x140   :  { %36646 = vmatmul.mubr.f32.vlgmr.msra.gmra.mrb[0].mxu1 %v42844_v11  ;;  %v1381_v11 = vand.u32 4294901760, %v1380_v56 }
 0x141   :  { %36778 = vmatmul.mubr.f32.vlgmr.msra.gmra.mrb[4].mxu0 %v42717_v16  ;;  %36648 = vmatprep.mubr.f32.mxu1 %v42876_v40  ;;  %v1391_v40 = vand.u32 4294901760, %v1390_v48 }
 0x142   :  { %36780 = vmatprep.mubr.f32.mxu0 %v42737_v25  ;;  %36652 = vmatpush3.msra.mxu1 %v42945_v49 }
 0x143   :  { %36659 = vmatprep.subr.mxu1 %v43006_v37 }
 0x144   :  { %36649 = vmatmul.mubr.f32.gmra.mrb[2].mxu1 %v42868_v34  ;;  %v34490_v34 = vld [vmem:[%s46973_s3 + $0x8] sm:$0x7] }
 0x145   :  { %36781 = vmatmul.mubr.f32.gmra.mrb[6].mxu0 %v42741_v27  ;;  %36653 = vmatprep.mubr.f32.mxu1 %v1361_v55  ;;  %v2503_v14 = vsel %vm697_vm1, %v34490_v34, 0 }
 0x146   :  { %36839 = vmatprep.mubr.f32.mxu0 %v42771_v46  ;;  %v43043_v20 = vand.u32 4294901760, %v2503_v14 }
 0x148   :  { %36654 = vmatmul.mubr.f32.vlgmr.msra.gmra.mrb[0].mxu1 %v1371_v17  ;;  %47145 = vst [vmem:[#allocation7_spill] sm:$0xff] %v43043_v20  ;;  %v43048_v32 = vsub.f32 %v2503_v14, %v43043_v20 }
 0x149   :  { %36656 = vmatprep.mubr.f32.mxu1 %v1381_v11  ;;  %36660 = vmatpush3.msra.mxu1 %v43006_v37 }
 0x14a   :  { %36667 = vmatprep.subr.mxu1 %v42962_v18  ;;  %47146 = vst [vmem:[#allocation8_spill] sm:$0xff] %v43048_v32  ;;  %v43051_v39 = vand.u32 4294901760, %v43048_v32 }
 0x14c   :  { %36657 = vmatmul.mubr.f32.gmra.mrb[2].mxu1 %v1391_v40  ;;  %47147 = vst [vmem:[#allocation9_spill] sm:$0xff] %v43051_v39  ;;  %v2615_v44 = vsub.f32 %v43048_v32, %v43051_v39 }
 0x14d   :  { %36661 = vmatprep.mubr.f32.mxu1 %v42952_v29 }
 0x14e   :  { %v43055_v57 = vand.u32 4294901760, %v2615_v44 }
 0x150   :  { %36662 = vmatmul.mubr.f32.vlgmr.msra.gmra.mrb[0].mxu1 %v42967_v59  ;;  %47148 = vst [vmem:[#allocation10_spill] sm:$0xff] %v43055_v57 }
 0x151   :  { %36664 = vmatprep.mubr.f32.mxu1 %v42974_v60  ;;  %36668 = vmatpush3.msra.mxu1 %v42962_v18 }
 0x152   :  { %36675 = vmatprep.subr.mxu1 %v42945_v49 }
 0x154   :  { %36665 = vmatmul.mubr.f32.gmra.mrb[2].mxu1 %v42986_v8 }
 0x155   :  { %36669 = vmatprep.mubr.f32.mxu1 %v42972_v38 }
 0x158   :  { %36670 = vmatmul.mubr.f32.vlgmr.msra.gmra.mrb[0].mxu1 %v1368_v4 }
 0x159   :  { %36672 = vmatprep.mubr.f32.mxu1 %v1378_v12  ;;  %36676 = vmatpush3.msra.mxu1 %v42945_v49 }
 0x15a   :  { %36683 = vmatprep.subr.mxu1 %v42982_v45 }
 0x15c   :  { %36673 = vmatmul.mubr.f32.gmra.mrb[2].mxu1 %v1388_v26 }
 0x15d   :  { %36677 = vmatprep.mubr.f32.mxu1 %v1359_v9 }
 0x160   :  { %36678 = vmatmul.mubr.f32.vlgmr.msra.gmra.mrb[0].mxu1 %v1369_v24 }
 0x161   :  { %36680 = vmatprep.mubr.f32.mxu1 %v1379_v36  ;;  %36684 = vmatpush3.msra.mxu1 %v42982_v45 }
 0x162   :  { %36691 = vmatprep.subr.mxu1 %v42945_v49 }
 0x164   :  { %36681 = vmatmul.mubr.f32.gmra.mrb[2].mxu1 %v1389_v52 }
 0x165   :  { %36685 = vmatprep.mubr.f32.mxu1 %v42952_v29 }
 0x168   :  { %36686 = vmatmul.mubr.f32.vlgmr.msra.gmra.mrb[0].mxu1 %v42967_v59 }
 0x169   :  { %36688 = vmatprep.mubr.f32.mxu1 %v42974_v60  ;;  %36692 = vmatpush3.msra.mxu1 %v42945_v49 }
 0x16a   :  { %36783 = vmatprep.subr.mxu1 %v43043_v20 }
 0x16c   :  { %36689 = vmatmul.mubr.f32.gmra.mrb[2].mxu1 %v42986_v8 }
 0x16d   :  { %36693 = vmatprep.mubr.f32.mxu1 %v42952_v29 }
 0x170   :  { %36694 = vmatmul.mubr.f32.vlgmr.msra.gmra.mrb[0].mxu1 %v42967_v59 }
 0x171   :  { %36696 = vmatprep.mubr.f32.mxu1 %v42974_v60  ;;  %36784 = vmatpush3.msra.mxu1 %v43043_v20 }
 0x172   :  { %36791 = vmatprep.subr.mxu1 %v43055_v57 }
 0x174   :  { %36697 = vmatmul.mubr.f32.gmra.mrb[2].mxu1 %v42986_v8 }
 0x214   :  { %v36779_v29 = vpop.f32.mrb[4].mxu0 }
 0x215   :  { %v2481_v42 = vmul.f32 2.0, %v36779_v29  ;;  %v2458_v58 = vpop.f32.mrb[5].mxu0 }
 0x216   :  { %v2480_v51 = vmul.f32 2.0, %v2458_v58 }
 0x217   :  { %v43059_v59 = vsub.f32 %v2481_v42, %v42683_v1 }
 0x218   :  { %v43062_v38 = vsub.f32 %v2480_v51, %v42678_v0  ;;  %v36782_v60 = vpop.f32.mrb[6].mxu0 }
 0x219   :  { %v2494_v61 = vsel %vm684_vm2, %v43059_v59, 0  ;;  %v3088_v4 = vand.u32 4294901760, %v43059_v59  ;;  %v2483_v8 = vmul.f32 2.0, %v36782_v60  ;;  %v2470_v9 = vpop.f32.mrb[7].mxu0 }
 0x21a   :  { %v43067_v12 = vand.u32 4294901760, %v2494_v61  ;;  %v3085_v13 = vand.u32 4294901760, %v43062_v38  ;;  %v2482_v24 = vmul.f32 2.0, %v2470_v9  ;;  %v2491_v1 = vsel %vm684_vm2, %v43062_v38, 0 }
 0x21b   :  { %v43073_v26 = vsub.f32 %v43059_v59, %v3088_v4  ;;  %v43076_v0 = vsub.f32 %v2483_v8, %v42695_v5  ;;  %v43078_v19 = vand.u32 4294901760, %v2491_v1 }
 0x21c   :  { %v43081_v36 = vsub.f32 %v2494_v61, %v43067_v12  ;;  %v43083_v50 = vpack.c.bf16 %v3088_v4, %v3085_v13  ;;  %v43086_v52 = vsub.f32 %v43062_v38, %v3085_v13  ;;  %v43089_v55 = vsub.f32 %v2482_v24, %v42688_v2 }
 0x21d   :  { %v3094_v56 = vand.u32 4294901760, %v43076_v0  ;;  %v43093_v17 = vsub.f32 %v2491_v1, %v43078_v19  ;;  %v46987_v5 = vand.u32 4294901760, %v43073_v26  ;;  %v2500_v48 = vsel %vm684_vm2, %v43076_v0, 0 }
 0x21e   :  { %v3091_v11 = vand.u32 4294901760, %v43089_v55  ;;  %40228 = vmatprep.subr.bf16.mxu0 %v43083_v50  ;;  %v46985_v40 = vand.u32 4294901760, %v43081_v36  ;;  %v46988_v34 = vand.u32 4294901760, %v43086_v52  ;;  %v2497_v2 = vsel %vm684_vm2, %v43089_v55, 0 }
 0x21f   :  { %v43105_v14 = vsub.f32 %v43076_v0, %v3094_v56  ;;  %40230 = vmatpush3.bf16.msra.mxu0 %v43083_v50  ;;  %v46986_v44 = vand.u32 4294901760, %v43093_v17  ;;  %v3204_v29 = vsub.f32 %v43073_v26, %v46987_v5  ;;  %v43112_v42 = vand.u32 4294901760, %v2497_v2 }
 0x220   :  { %v43114_v58 = vpack.c.bf16 %v3094_v56, %v3091_v11  ;;  %v43117_v51 = vsub.f32 %v43089_v55, %v3091_v11  ;;  %v2584_v60 = vsub.f32 %v43081_v36, %v46985_v40  ;;  %v3197_v61 = vsub.f32 %v43086_v52, %v46988_v34 }
 0x221   :  { %v2574_v4 = vsub.f32 %v43093_v17, %v46986_v44  ;;  %v3205_v8 = vand.u32 4294901760, %v3204_v29  ;;  %v43129_v9 = vsub.f32 %v2497_v2, %v43112_v42  ;;  %v43131_v13 = vand.u32 4294901760, %v2500_v48 }
 0x222   :  { %40232 = vmatprep.subr.bf16.mxu0 %v43114_v58  ;;  %v3198_v24 = vand.u32 4294901760, %v3197_v61  ;;  %v3210_v1 = vand.u32 4294901760, %v43117_v51  ;;  %v46989_v56 = vand.u32 4294901760, %v43105_v14  ;;  %v2585_v29 = vand.u32 4294901760, %v2584_v60 }
 0x223   :  { %40234 = vmatpush3.bf16.msra.mxu0 %v43114_v58  ;;  %v2575_v11 = vand.u32 4294901760, %v2574_v4  ;;  %v2593_v40 = vand.u32 4294901760, %v43129_v9  ;;  %v43139_v44 = vsub.f32 %v2500_v48, %v43131_v13 }
 0x224   :  { %v40235_v2 = vpack.c.bf16 %v3205_v8, %v3198_v24  ;;  %v3211_v5 = vsub.f32 %v43117_v51, %v3210_v1  ;;  %v3218_v61 = vsub.f32 %v43105_v14, %v46989_v56 }
 0x225   :  { %36785 = vmatprep.mubr.f32.mxu1 %v2575_v11  ;;  %v2594_v4 = vsub.f32 %v43129_v9, %v2593_v40  ;;  %v2603_v34 = vand.u32 4294901760, %v43139_v44 }
 0x226   :  { %36786 = vmatmul.mubr.f32.vlgmr.msra.gmra.mrb[0].mxu1 %v2585_v29  ;;  %36840 = vmatmul.mubr.f32.vlgmr.msra.gmra.mrb[8].mxu0 %v42773_v47  ;;  %v3212_v48 = vand.u32 4294901760, %v3211_v5  ;;  %v3219_v60 = vand.u32 4294901760, %v3218_v61  ;;  %v40243_v5 = vpack.c.bf16 %v43073_v26, %v43086_v52  ;;  %v40247_v29 = vpack.c.bf16 %v43105_v14, %v43117_v51 }
 0x227   :  { %40236 = vmatprep.subr.bf16.mxu0 %v40235_v2  ;;  %v2595_v8 = vand.u32 4294901760, %v2594_v4  ;;  %36842 = vmatprep.mubr.f32.mxu0 %v42780_v53  ;;  %v2604_v24 = vsub.f32 %v43139_v44, %v2603_v34  ;;  %v47151_v4 = vand.u32 4294901760, %v43093_v17 }
 0x228   :  { %40238 = vmatpush3.bf16.msra.mxu0 %v40235_v2  ;;  %v40239_v56 = vpack.c.bf16 %v3219_v60, %v3212_v48  ;;  %36792 = vmatpush3.msra.mxu1 %v43055_v57  ;;  %v47150_v2 = vand.u32 4294901760, %v43073_v26  ;;  %v47152_v48 = vand.u32 4294901760, %v43081_v36  ;;  %v47153_v26 = vand.u32 4294901760, %v43105_v14 }
 0x229   :  { %36788 = vmatprep.mubr.f32.mxu1 %v2595_v8  ;;  %v2605_v11 = vand.u32 4294901760, %v2604_v24  ;;  %36799 = vmatprep.subr.mxu1 %v43048_v32 }
 0x22a   :  { %36843 = vmatmul.mubr.f32.gmra.mrb[10].mxu0 %v42783_v54  ;;  %40240 = vmatprep.subr.bf16.mxu0 %v40239_v56 }
 0x22b   :  { %36789 = vmatmul.mubr.f32.gmra.mrb[2].mxu1 %v2605_v11  ;;  %36853 = vmatprep.mubr.f32.mxu0 %v42715_v15 }
 0x22c   :  { %36793 = vmatprep.mubr.f32.mxu1 %v43078_v19  ;;  %40242 = vmatpush3.bf16.msra.mxu0 %v40239_v56  ;;  %v47149_v56 = vand.u32 4294901760, %v43086_v52  ;;  %v40263_v52 = vpack.c.bf16 %v47153_v26, %v3210_v1 }
 0x22d   :  { %40244 = vmatprep.subr.bf16.mxu0 %v40243_v5 }
 0x22e   :  { %v40259_v61 = vpack.c.bf16 %v47150_v2, %v47149_v56 }
 0x22f   :  { %36794 = vmatmul.mubr.f32.vlgmr.msra.gmra.mrb[0].mxu1 %v43067_v12  ;;  %36854 = vmatmul.mubr.f32.vlgmr.msra.gmra.mrb[8].mxu0 %v42717_v16 }
 0x230   :  { %36796 = vmatprep.mubr.f32.mxu1 %v43112_v42  ;;  %40246 = vmatpush3.bf16.msra.mxu0 %v40243_v5 }
 0x231   :  { %40248 = vmatprep.subr.bf16.mxu0 %v40247_v29  ;;  %36856 = vmatprep.mubr.f32.mxu0 %v42737_v25 }
 0x232   :  { %36800 = vmatpush3.msra.mxu1 %v43048_v32 }
 0x233   :  { %36797 = vmatmul.mubr.f32.gmra.mrb[2].mxu1 %v43131_v13  ;;  %36857 = vmatmul.mubr.f32.gmra.mrb[10].mxu0 %v42741_v27 }
 0x234   :  { %36801 = vmatprep.mubr.f32.mxu1 %v43093_v17  ;;  %40250 = vmatpush3.bf16.msra.mxu0 %v40247_v29 }
 0x235   :  { %40252 = vmatprep.subr.bf16.mxu0 %v43083_v50  ;;  %36867 = vmatprep.mubr.f32.mxu0 %v42731_v22 }
 0x236   :  { %36807 = vmatprep.subr.mxu1 %v43043_v20 }
 0x237   :  { %36802 = vmatmul.mubr.f32.vlgmr.msra.gmra.mrb[0].mxu1 %v43081_v36  ;;  %36868 = vmatmul.mubr.f32.vlgmr.msra.gmra.mrb[8].mxu0 %v42734_v23 }
 0x238   :  { %36804 = vmatprep.mubr.f32.mxu1 %v43129_v9  ;;  %40254 = vmatpush3.bf16.msra.mxu0 %v43083_v50 }
 0x239   :  { %40256 = vmatprep.subr.bf16.mxu0 %v43114_v58  ;;  %36870 = vmatprep.mubr.f32.mxu0 %v42754_v33 }
 0x23a   :  { %36808 = vmatpush3.msra.mxu1 %v43043_v20 }
 0x23b   :  { %36805 = vmatmul.mubr.f32.gmra.mrb[2].mxu1 %v43139_v44  ;;  %36871 = vmatmul.mubr.f32.gmra.mrb[10].mxu0 %v42758_v35 }
 0x23c   :  { %36809 = vmatprep.mubr.f32.mxu1 %v47151_v4  ;;  %40258 = vmatpush3.bf16.msra.mxu0 %v43114_v58 }
 0x23d   :  { %40260 = vmatprep.subr.bf16.mxu0 %v40259_v61  ;;  %36881 = vmatprep.mubr.f32.mxu0 %v42747_v30 }
 0x23e   :  { %36815 = vmatprep.subr.mxu1 %v43051_v39 }
 0x23f   :  { %36810 = vmatmul.mubr.f32.vlgmr.msra.gmra.mrb[0].mxu1 %v47152_v48  ;;  %36882 = vmatmul.mubr.f32.vlgmr.msra.gmra.mrb[8].mxu0 %v42750_v31 }
 0x240   :  { %36812 = vmatprep.mubr.f32.mxu1 %v2593_v40  ;;  %40262 = vmatpush3.bf16.msra.mxu0 %v40259_v61 }
 0x241   :  { %40264 = vmatprep.subr.bf16.mxu0 %v40263_v52  ;;  %36884 = vmatprep.mubr.f32.mxu0 %v42765_v41 }
 0x242   :  { %36816 = vmatpush3.msra.mxu1 %v43051_v39 }
 0x243   :  { %36813 = vmatmul.mubr.f32.gmra.mrb[2].mxu1 %v2603_v34  ;;  %36885 = vmatmul.mubr.f32.gmra.mrb[10].mxu0 %v42769_v43 }
 0x244   :  { %36817 = vmatprep.mubr.f32.mxu1 %v43078_v19  ;;  %40266 = vmatpush3.bf16.msra.mxu0 %v40263_v52 }
 0x245   :  { %40268 = vmatprep.subr.bf16.mxu0 %v43083_v50  ;;  %36895 = vmatprep.mubr.f32.mxu0 %v42715_v15 }
 0x246   :  { %36823 = vmatprep.subr.mxu1 %v43043_v20 }
 0x247   :  { %36818 = vmatmul.mubr.f32.vlgmr.msra.gmra.mrb[0].mxu1 %v43067_v12  ;;  %36896 = vmatmul.mubr.f32.vlgmr.msra.gmra.mrb[8].mxu0 %v42717_v16 }
 0x248   :  { %36820 = vmatprep.mubr.f32.mxu1 %v43112_v42  ;;  %40270 = vmatpush3.bf16.msra.mxu0 %v43083_v50 }
 0x249   :  { %40272 = vmatprep.subr.bf16.mxu0 %v43114_v58  ;;  %36898 = vmatprep.mubr.f32.mxu0 %v42737_v25 }
 0x24a   :  { %36824 = vmatpush3.msra.mxu1 %v43043_v20 }
 0x24b   :  { %36821 = vmatmul.mubr.f32.gmra.mrb[2].mxu1 %v43131_v13  ;;  %36899 = vmatmul.mubr.f32.gmra.mrb[10].mxu0 %v42741_v27 }
 0x24c   :  { %36825 = vmatprep.mubr.f32.mxu1 %v43078_v19  ;;  %40274 = vmatpush3.bf16.msra.mxu0 %v43114_v58  ;;  %v34491_v19 = vld [vmem:[%s46973_s3 + $0xc] sm:$0x7] }
 0x24d   :  { %36909 = vmatprep.mubr.f32.mxu0 %v42715_v15  ;;  %v3721_v36 = vsel %vm697_vm1, %v34491_v19, 0 }
 0x24e   :  { %v43231_v50 = vand.u32 4294901760, %v3721_v36 }
 0x24f   :  { %36826 = vmatmul.mubr.f32.vlgmr.msra.gmra.mrb[0].mxu1 %v43067_v12  ;;  %36910 = vmatmul.mubr.f32.vlgmr.msra.gmra.mrb[8].mxu0 %v42717_v16 }
 0x250   :  { %36828 = vmatprep.mubr.f32.mxu1 %v43112_v42  ;;  %36912 = vmatprep.mubr.f32.mxu0 %v42737_v25  ;;  %47154 = vst [vmem:[#allocation11_spill] sm:$0xff] %v43231_v50  ;;  %v43236_v12 = vsub.f32 %v3721_v36, %v43231_v50 }
 0x251   :  { %36915 = vmatprep.subr.mxu1 %v43231_v50 }
 0x252   :  { %36916 = vmatpush3.msra.mxu1 %v43231_v50  ;;  %47155 = vst [vmem:[#allocation12_spill] sm:$0xff] %v43236_v12  ;;  %v43239_v17 = vand.u32 4294901760, %v43236_v12 }
 0x253   :  { %36829 = vmatmul.mubr.f32.gmra.mrb[2].mxu1 %v43131_v13  ;;  %36913 = vmatmul.mubr.f32.gmra.mrb[10].mxu0 %v42741_v27 }
 0x254   :  { %36971 = vmatprep.mubr.f32.mxu0 %v42771_v46  ;;  %47156 = vst [vmem:[#allocation13_spill] sm:$0xff] %v43239_v17  ;;  %v3833_v40 = vsub.f32 %v43236_v12, %v43239_v17 }
 0x256   :  { %v43243_v34 = vand.u32 4294901760, %v3833_v40 }
 0x258   :  { %47157 = vst [vmem:[#allocation14_spill] sm:$0xff] %v43243_v34  ;;  %36923 = vmatprep.subr.mxu1 %v43243_v34 }
 0x322   :  { %v36911_v14 = vpop.f32.mrb[8].mxu0 }
 0x323   :  { %v3699_v44 = vmul.f32 2.0, %v36911_v14  ;;  %v3676_v42 = vpop.f32.mrb[9].mxu0 }
 0x324   :  { %v3698_v58 = vmul.f32 2.0, %v3676_v42 }
 0x325   :  { %v43247_v51 = vsub.f32 %v3699_v44, %v42837_v7 }
 0x326   :  { %v43250_v9 = vsub.f32 %v3698_v58, %v42842_v10  ;;  %v36914_v13 = vpop.f32.mrb[10].mxu0 }
 0x327   :  { %v3712_v1 = vsel %vm684_vm2, %v43247_v51, 0  ;;  %v4306_v60 = vand.u32 4294901760, %v43247_v51  ;;  %v3701_v8 = vmul.f32 2.0, %v36914_v13  ;;  %v3688_v24 = vpop.f32.mrb[11].mxu0 }
 0x328   :  { %v43255_v11 = vand.u32 4294901760, %v3712_v1  ;;  %v4303_v5 = vand.u32 4294901760, %v43250_v9  ;;  %v3700_v29 = vmul.f32 2.0, %v3688_v24  ;;  %v3709_v7 = vsel %vm684_vm2, %v43250_v9, 0 }
 0x329   :  { %v43261_v56 = vsub.f32 %v43247_v51, %v4306_v60  ;;  %v43264_v10 = vsub.f32 %v3701_v8, %v42858_v21  ;;  %v43266_v2 = vand.u32 4294901760, %v3709_v7 }
 0x32a   :  { %v43269_v61 = vsub.f32 %v3712_v1, %v43255_v11  ;;  %v43271_v4 = vpack.c.bf16 %v4306_v60, %v4303_v5  ;;  %v43274_v48 = vsub.f32 %v43250_v9, %v4303_v5  ;;  %v43277_v26 = vsub.f32 %v3700_v29, %v42863_v28 }
 0x32b   :  { %v4312_v52 = vand.u32 4294901760, %v43264_v10  ;;  %v43281_v19 = vsub.f32 %v3709_v7, %v43266_v2  ;;  %v46990_v21 = vand.u32 4294901760, %v43261_v56  ;;  %v3718_v36 = vsel %vm684_vm2, %v43264_v10, 0 }
 0x32c   :  { %v4309_v40 = vand.u32 4294901760, %v43277_v26  ;;  %40276 = vmatprep.subr.bf16.mxu0 %v43271_v4  ;;  %v46993_v14 = vand.u32 4294901760, %v43269_v61  ;;  %v46994_v44 = vand.u32 4294901760, %v43274_v48  ;;  %v3715_v28 = vsel %vm684_vm2, %v43277_v26, 0 }
 0x32d   :  { %v43293_v42 = vsub.f32 %v43264_v10, %v4312_v52  ;;  %40278 = vmatpush3.bf16.msra.mxu0 %v43271_v4  ;;  %v46997_v58 = vand.u32 4294901760, %v43281_v19  ;;  %v4422_v13 = vsub.f32 %v43261_v56, %v46990_v21  ;;  %v43300_v1 = vand.u32 4294901760, %v3715_v28 }
 0x32e   :  { %v43302_v60 = vpack.c.bf16 %v4312_v52, %v4309_v40  ;;  %v43305_v8 = vsub.f32 %v43277_v26, %v4309_v40  ;;  %v3802_v24 = vsub.f32 %v43269_v61, %v46993_v14  ;;  %v4415_v5 = vsub.f32 %v43274_v48, %v46994_v44 }
 0x32f   :  { %v3792_v29 = vsub.f32 %v43281_v19, %v46997_v58  ;;  %v4423_v7 = vand.u32 4294901760, %v4422_v13  ;;  %v43317_v21 = vsub.f32 %v3715_v28, %v43300_v1  ;;  %v43319_v52 = vand.u32 4294901760, %v3718_v36 }
 0x330   :  { %40280 = vmatprep.subr.bf16.mxu0 %v43302_v60  ;;  %v4416_v40 = vand.u32 4294901760, %v4415_v5  ;;  %v4428_v39 = vand.u32 4294901760, %v43305_v8  ;;  %v47002_v14 = vand.u32 4294901760, %v43293_v42  ;;  %v3803_v13 = vand.u32 4294901760, %v3802_v24 }
 0x331   :  { %40282 = vmatpush3.bf16.msra.mxu0 %v43302_v60  ;;  %v3793_v44 = vand.u32 4294901760, %v3792_v29  ;;  %v3811_v32 = vand.u32 4294901760, %v43317_v21  ;;  %v43327_v58 = vsub.f32 %v3718_v36, %v43319_v52 }
 0x332   :  { %v40283_v28 = vpack.c.bf16 %v4423_v7, %v4416_v40  ;;  %v4429_v57 = vsub.f32 %v43305_v8, %v4428_v39  ;;  %v4436_v5 = vsub.f32 %v43293_v42, %v47002_v14 }
 0x333   :  { %36917 = vmatprep.mubr.f32.mxu1 %v3793_v44  ;;  %v3812_v29 = vsub.f32 %v43317_v21, %v3811_v32  ;;  %v3821_v20 = vand.u32 4294901760, %v43327_v58 }
 0x334   :  { %36918 = vmatmul.mubr.f32.vlgmr.msra.gmra.mrb[0].mxu1 %v3803_v13  ;;  %36972 = vmatmul.mubr.f32.vlgmr.msra.gmra.mrb[12].mxu0 %v42773_v47  ;;  %v4430_v36 = vand.u32 4294901760, %v4429_v57  ;;  %v4437_v24 = vand.u32 4294901760, %v4436_v5  ;;  %v40291_v57 = vpack.c.bf16 %v43261_v56, %v43274_v48  ;;  %v40295_v13 = vpack.c.bf16 %v43293_v42, %v43305_v8 }
 0x335   :  { %40284 = vmatprep.subr.bf16.mxu0 %v40283_v28  ;;  %v3813_v7 = vand.u32 4294901760, %v3812_v29  ;;  %36974 = vmatprep.mubr.f32.mxu0 %v42780_v53  ;;  %v3822_v40 = vsub.f32 %v43327_v58, %v3821_v20  ;;  %v47160_v29 = vand.u32 4294901760, %v43281_v19 }
 0x336   :  { %40286 = vmatpush3.bf16.msra.mxu0 %v40283_v28  ;;  %v40287_v14 = vpack.c.bf16 %v4437_v24, %v4430_v36  ;;  %36924 = vmatpush3.msra.mxu1 %v43243_v34  ;;  %v47159_v28 = vand.u32 4294901760, %v43261_v56  ;;  %v47161_v36 = vand.u32 4294901760, %v43269_v61  ;;  %v47162_v56 = vand.u32 4294901760, %v43293_v42 }
 0x337   :  { %36920 = vmatprep.mubr.f32.mxu1 %v3813_v7  ;;  %v3823_v44 = vand.u32 4294901760, %v3822_v40  ;;  %36931 = vmatprep.subr.mxu1 %v43236_v12 }
 0x338   :  { %36975 = vmatmul.mubr.f32.gmra.mrb[14].mxu0 %v42783_v54  ;;  %40288 = vmatprep.subr.bf16.mxu0 %v40287_v14 }
 0x339   :  { %36921 = vmatmul.mubr.f32.gmra.mrb[2].mxu1 %v3823_v44  ;;  %36985 = vmatprep.mubr.f32.mxu0 %v42715_v15 }
 0x33a   :  { %36925 = vmatprep.mubr.f32.mxu1 %v43266_v2  ;;  %40290 = vmatpush3.bf16.msra.mxu0 %v40287_v14  ;;  %v47158_v14 = vand.u32 4294901760, %v43274_v48  ;;  %v40311_v48 = vpack.c.bf16 %v47162_v56, %v4428_v39 }
 0x33b   :  { %40292 = vmatprep.subr.bf16.mxu0 %v40291_v57 }
 0x33c   :  { %v40307_v5 = vpack.c.bf16 %v47159_v28, %v47158_v14 }
 0x33d   :  { %36926 = vmatmul.mubr.f32.vlgmr.msra.gmra.mrb[0].mxu1 %v43255_v11  ;;  %36986 = vmatmul.mubr.f32.vlgmr.msra.gmra.mrb[12].mxu0 %v42717_v16 }
 0x33e   :  { %36928 = vmatprep.mubr.f32.mxu1 %v43300_v1  ;;  %40294 = vmatpush3.bf16.msra.mxu0 %v40291_v57 }
 0x33f   :  { %40296 = vmatprep.subr.bf16.mxu0 %v40295_v13  ;;  %36988 = vmatprep.mubr.f32.mxu0 %v42737_v25 }
 0x340   :  { %36932 = vmatpush3.msra.mxu1 %v43236_v12 }
 0x341   :  { %36929 = vmatmul.mubr.f32.gmra.mrb[2].mxu1 %v43319_v52  ;;  %36989 = vmatmul.mubr.f32.gmra.mrb[14].mxu0 %v42741_v27 }
 0x342   :  { %36933 = vmatprep.mubr.f32.mxu1 %v43281_v19  ;;  %40298 = vmatpush3.bf16.msra.mxu0 %v40295_v13 }
 0x343   :  { %40300 = vmatprep.subr.bf16.mxu0 %v43271_v4  ;;  %36999 = vmatprep.mubr.f32.mxu0 %v42731_v22 }
 0x344   :  { %36939 = vmatprep.subr.mxu1 %v43231_v50 }
 0x345   :  { %36934 = vmatmul.mubr.f32.vlgmr.msra.gmra.mrb[0].mxu1 %v43269_v61  ;;  %37000 = vmatmul.mubr.f32.vlgmr.msra.gmra.mrb[12].mxu0 %v42734_v23 }
 0x346   :  { %36936 = vmatprep.mubr.f32.mxu1 %v43317_v21  ;;  %40302 = vmatpush3.bf16.msra.mxu0 %v43271_v4 }
 0x347   :  { %40304 = vmatprep.subr.bf16.mxu0 %v43302_v60  ;;  %37002 = vmatprep.mubr.f32.mxu0 %v42754_v33 }
 0x348   :  { %36940 = vmatpush3.msra.mxu1 %v43231_v50 }
 0x349   :  { %36937 = vmatmul.mubr.f32.gmra.mrb[2].mxu1 %v43327_v58  ;;  %37003 = vmatmul.mubr.f32.gmra.mrb[14].mxu0 %v42758_v35 }
 0x34a   :  { %36941 = vmatprep.mubr.f32.mxu1 %v47160_v29  ;;  %40306 = vmatpush3.bf16.msra.mxu0 %v43302_v60 }
 0x34b   :  { %40308 = vmatprep.subr.bf16.mxu0 %v40307_v5  ;;  %37013 = vmatprep.mubr.f32.mxu0 %v42747_v30 }
 0x34c   :  { %36947 = vmatprep.subr.mxu1 %v43239_v17 }
 0x34d   :  { %36942 = vmatmul.mubr.f32.vlgmr.msra.gmra.mrb[0].mxu1 %v47161_v36  ;;  %37014 = vmatmul.mubr.f32.vlgmr.msra.gmra.mrb[12].mxu0 %v42750_v31 }
 0x34e   :  { %36944 = vmatprep.mubr.f32.mxu1 %v3811_v32  ;;  %40310 = vmatpush3.bf16.msra.mxu0 %v40307_v5 }
 0x34f   :  { %40312 = vmatprep.subr.bf16.mxu0 %v40311_v48  ;;  %37016 = vmatprep.mubr.f32.mxu0 %v42765_v41 }
 0x350   :  { %36948 = vmatpush3.msra.mxu1 %v43239_v17 }
 0x351   :  { %36945 = vmatmul.mubr.f32.gmra.mrb[2].mxu1 %v3821_v20  ;;  %37017 = vmatmul.mubr.f32.gmra.mrb[14].mxu0 %v42769_v43  ;;  %v34492_v20 = vld [vmem:[%s46973_s3 + $0x10] sm:$0x7] }
 0x352   :  { %36949 = vmatprep.mubr.f32.mxu1 %v43266_v2  ;;  %40314 = vmatpush3.bf16.msra.mxu0 %v40311_v48  ;;  %v4939_v32 = vsel %vm697_vm1, %v34492_v20, 0 }
 0x353   :  { %40316 = vmatprep.subr.bf16.mxu0 %v43271_v4  ;;  %37027 = vmatprep.mubr.f32.mxu0 %v42715_v15  ;;  %v43419_v39 = vand.u32 4294901760, %v4939_v32 }
 0x354   :  { %36955 = vmatprep.subr.mxu1 %v43231_v50 }
 0x355   :  { %36950 = vmatmul.mubr.f32.vlgmr.msra.gmra.mrb[0].mxu1 %v43255_v11  ;;  %37028 = vmatmul.mubr.f32.vlgmr.msra.gmra.mrb[12].mxu0 %v42717_v16 }
 0x356   :  { %36952 = vmatprep.mubr.f32.mxu1 %v43300_v1  ;;  %40318 = vmatpush3.bf16.msra.mxu0 %v43271_v4 }
 0x357   :  { %40320 = vmatprep.subr.bf16.mxu0 %v43302_v60  ;;  %37030 = vmatprep.mubr.f32.mxu0 %v42737_v25 }
 0x358   :  { %36956 = vmatpush3.msra.mxu1 %v43231_v50 }
 0x359   :  { %36953 = vmatmul.mubr.f32.gmra.mrb[2].mxu1 %v43319_v52  ;;  %37031 = vmatmul.mubr.f32.gmra.mrb[14].mxu0 %v42741_v27 }
 0x35a   :  { %36957 = vmatprep.mubr.f32.mxu1 %v43266_v2  ;;  %40322 = vmatpush3.bf16.msra.mxu0 %v43302_v60 }
 0x35b   :  { %37041 = vmatprep.mubr.f32.mxu0 %v42715_v15  ;;  %37047 = vmatprep.subr.mxu1 %v43419_v39 }
 0x35d   :  { %36958 = vmatmul.mubr.f32.vlgmr.msra.gmra.mrb[0].mxu1 %v43255_v11  ;;  %37042 = vmatmul.mubr.f32.vlgmr.msra.gmra.mrb[12].mxu0 %v42717_v16  ;;  %v43424_v11 = vsub.f32 %v4939_v32, %v43419_v39 }
 0x35e   :  { %36960 = vmatprep.mubr.f32.mxu1 %v43300_v1  ;;  %37044 = vmatprep.mubr.f32.mxu0 %v42737_v25 }
 0x35f   :  { %37048 = vmatpush3.msra.mxu1 %v43419_v39  ;;  %47163 = vst [vmem:[#allocation15_spill] sm:$0xff] %v43424_v11  ;;  %v43427_v2 = vand.u32 4294901760, %v43424_v11 }
 0x361   :  { %36961 = vmatmul.mubr.f32.gmra.mrb[2].mxu1 %v43319_v52  ;;  %37045 = vmatmul.mubr.f32.gmra.mrb[14].mxu0 %v42741_v27  ;;  %47164 = vst [vmem:[#allocation16_spill] sm:$0xff] %v43427_v2  ;;  %v5051_v61 = vsub.f32 %v43424_v11, %v43427_v2 }
 0x362   :  { %37103 = vmatprep.mubr.f32.mxu0 %v42771_v46 }
 0x363   :  { %v43431_v4 = vand.u32 4294901760, %v5051_v61 }
 0x365   :  { %47165 = vst [vmem:[#allocation17_spill] sm:$0xff] %v43431_v4  ;;  %37055 = vmatprep.subr.mxu1 %v43431_v4 }
 0x430   :  { %v37043_v19 = vpop.f32.mrb[12].mxu0 }
 0x431   :  { %v4917_v21 = vmul.f32 2.0, %v37043_v19  ;;  %v4894_v42 = vpop.f32.mrb[13].mxu0 }
 0x432   :  { %v4916_v58 = vmul.f32 2.0, %v4894_v42 }
 0x433   :  { %v4921_v1 = vsub.f32 %v4917_v21, %v43059_v59 }
 0x434   :  { %v4920_v60 = vsub.f32 %v4916_v58, %v43062_v38  ;;  %v37046_v8 = vpop.f32.mrb[14].mxu0 }
 0x435   :  { %v4930_v52 = vsel %vm684_vm2, %v4921_v1, 0  ;;  %v5524_v24 = vand.u32 4294901760, %v4921_v1  ;;  %v4919_v7 = vmul.f32 2.0, %v37046_v8  ;;  %v4906_v40 = vpop.f32.mrb[15].mxu0 }
 0x436   :  { %v43437_v44 = vand.u32 4294901760, %v4930_v52  ;;  %v4927_v57 = vsel %vm684_vm2, %v4920_v60, 0  ;;  %v5521_v13 = vand.u32 4294901760, %v4920_v60  ;;  %v4918_v14 = vmul.f32 2.0, %v4906_v40 }
 0x437   :  { %v5638_v28 = vsub.f32 %v4921_v1, %v5524_v24  ;;  %v43440_v5 = vand.u32 4294901760, %v4927_v57  ;;  %v4923_v29 = vsub.f32 %v4919_v7, %v43076_v0 }
 0x438   :  { %v43444_v59 = vsub.f32 %v4930_v52, %v43437_v44  ;;  %v43446_v38 = vpack.c.bf16 %v5524_v24, %v5521_v13  ;;  %v5631_v36 = vsub.f32 %v4920_v60, %v5521_v13  ;;  %v4922_v56 = vsub.f32 %v4918_v14, %v43089_v55 }
 0x439   :  { %v43450_v48 = vsub.f32 %v4927_v57, %v43440_v5  ;;  %v4936_v20 = vsel %vm684_vm2, %v4923_v29, 0  ;;  %v5530_v32 = vand.u32 4294901760, %v4923_v29  ;;  %v5639_v61 = vand.u32 4294901760, %v5638_v28 }
 0x43a   :  { %v47003_v19 = vand.u32 4294901760, %v43444_v59  ;;  %v43454_v21 = vand.u32 4294901760, %v4936_v20  ;;  %v4933_v0 = vsel %vm684_vm2, %v4922_v56, 0  ;;  %v5527_v42 = vand.u32 4294901760, %v4922_v56  ;;  %40324 = vmatprep.subr.bf16.mxu0 %v43446_v38 }
 0x43b   :  { %v5652_v58 = vsub.f32 %v4923_v29, %v5530_v32  ;;  %v43458_v1 = vand.u32 4294901760, %v4933_v0  ;;  %40326 = vmatpush3.bf16.msra.mxu0 %v43446_v38  ;;  %v47006_v55 = vand.u32 4294901760, %v43450_v48  ;;  %v5632_v60 = vand.u32 4294901760, %v5631_v36 }
 0x43c   :  { %v43463_v8 = vsub.f32 %v4936_v20, %v43454_v21  ;;  %v43465_v52 = vpack.c.bf16 %v5530_v32, %v5527_v42  ;;  %v5645_v24 = vsub.f32 %v4922_v56, %v5527_v42  ;;  %v5020_v7 = vsub.f32 %v43444_v59, %v47003_v19 }
 0x43d   :  { %v43471_v40 = vsub.f32 %v4933_v0, %v43458_v1  ;;  %v5010_v57 = vsub.f32 %v43450_v48, %v47006_v55  ;;  %v5633_v13 = vsub.f32 %v5631_v36, %v5632_v60  ;;  %v5640_v14 = vsub.f32 %v5638_v28, %v5639_v61 }
 0x43e   :  { %40328 = vmatprep.subr.bf16.mxu0 %v43465_v52  ;;  %v5021_v29 = vand.u32 4294901760, %v5020_v7  ;;  %v47021_v20 = vand.u32 4294901760, %v43463_v8  ;;  %v5646_v32 = vand.u32 4294901760, %v5645_v24  ;;  %v5653_v56 = vand.u32 4294901760, %v5652_v58 }
 0x43f   :  { %40330 = vmatpush3.bf16.msra.mxu0 %v43465_v52  ;;  %v5011_v42 = vand.u32 4294901760, %v5010_v57  ;;  %v5634_v19 = vand.u32 4294901760, %v5633_v13  ;;  %v5641_v17 = vand.u32 4294901760, %v5640_v14  ;;  %v5029_v0 = vand.u32 4294901760, %v43471_v40 }
 0x440   :  { %v5040_v55 = vsub.f32 %v43463_v8, %v47021_v20  ;;  %v5647_v12 = vsub.f32 %v5645_v24, %v5646_v32  ;;  %v5654_v34 = vsub.f32 %v5652_v58, %v5653_v56  ;;  %v40339_v50 = vpack.c.bf16 %v5638_v28, %v5631_v36 }
 0x441   :  { %37049 = vmatprep.mubr.f32.mxu1 %v5011_v42  ;;  %v40331_v7 = vpack.c.bf16 %v5641_v17, %v5634_v19  ;;  %v5030_v45 = vsub.f32 %v43471_v40, %v5029_v0  ;;  %v40343_v18 = vpack.c.bf16 %v5652_v58, %v5645_v24  ;;  %v40355_v37 = vpack.c.bf16 %v5639_v61, %v5632_v60 }
 0x442   :  { %37050 = vmatmul.mubr.f32.vlgmr.msra.gmra.mrb[0].mxu1 %v5021_v29  ;;  %37104 = vmatmul.mubr.f32.vlgmr.msra.gmra.mrb[16].mxu0 %v42773_v47  ;;  %v5648_v57 = vand.u32 4294901760, %v5647_v12  ;;  %v5655_v13 = vand.u32 4294901760, %v5654_v34  ;;  %v40359_v14 = vpack.c.bf16 %v5653_v56, %v5646_v32  ;;  %v5041_v20 = vand.u32 4294901760, %v5040_v55 }
 0x443   :  { %40332 = vmatprep.subr.bf16.mxu0 %v40331_v7  ;;  %v5031_v49 = vand.u32 4294901760, %v5030_v45  ;;  %37106 = vmatprep.mubr.f32.mxu0 %v42780_v53  ;;  %v34493_v45 = vld [vmem:[%s46973_s3 + $0x14] sm:$0x7] }
 0x444   :  { %40334 = vmatpush3.bf16.msra.mxu0 %v40331_v7  ;;  %v40335_v3 = vpack.c.bf16 %v5655_v13, %v5648_v57  ;;  %37056 = vmatpush3.msra.mxu1 %v43431_v4 }
 0x445   :  { %37052 = vmatprep.mubr.f32.mxu1 %v5031_v49  ;;  %37063 = vmatprep.subr.mxu1 %v43424_v11  ;;  %v47167_v49 = vand.u32 4294901760, %v43444_v59 }
 0x446   :  { %37053 = vmatmul.mubr.f32.gmra.mrb[2].mxu1 %v5041_v20  ;;  %37107 = vmatmul.mubr.f32.gmra.mrb[18].mxu0 %v42783_v54 }
 0x447   :  { %40336 = vmatprep.subr.bf16.mxu0 %v40335_v3  ;;  %37057 = vmatprep.mubr.f32.mxu1 %v43440_v5 }
 0x448   :  { %40338 = vmatpush3.bf16.msra.mxu0 %v40335_v3  ;;  %37117 = vmatprep.mubr.f32.mxu0 %v42715_v15  ;;  %v47166_v3 = vand.u32 4294901760, %v43450_v48 }
 0x449   :  { %40340 = vmatprep.subr.bf16.mxu0 %v40339_v50 }
 0x44a   :  { %37058 = vmatmul.mubr.f32.vlgmr.msra.gmra.mrb[0].mxu1 %v43437_v44 }
 0x44b   :  { %37118 = vmatmul.mubr.f32.vlgmr.msra.gmra.mrb[16].mxu0 %v42717_v16  ;;  %37060 = vmatprep.mubr.f32.mxu1 %v43458_v1 }
 0x44c   :  { %40342 = vmatpush3.bf16.msra.mxu0 %v40339_v50  ;;  %37120 = vmatprep.mubr.f32.mxu0 %v42737_v25 }
 0x44d   :  { %40344 = vmatprep.subr.bf16.mxu0 %v40343_v18  ;;  %37064 = vmatpush3.msra.mxu1 %v43424_v11 }
 0x44e   :  { %37061 = vmatmul.mubr.f32.gmra.mrb[2].mxu1 %v43454_v21  ;;  %37071 = vmatprep.subr.mxu1 %v43419_v39 }
 0x44f   :  { %37121 = vmatmul.mubr.f32.gmra.mrb[18].mxu0 %v42741_v27  ;;  %37065 = vmatprep.mubr.f32.mxu1 %v43450_v48 }
 0x450   :  { %40346 = vmatpush3.bf16.msra.mxu0 %v40343_v18  ;;  %37131 = vmatprep.mubr.f32.mxu0 %v42731_v22  ;;  %v47168_v18 = vand.u32 4294901760, %v43463_v8 }
 0x451   :  { %40348 = vmatprep.subr.bf16.mxu0 %v43446_v38 }
 0x452   :  { %37066 = vmatmul.mubr.f32.vlgmr.msra.gmra.mrb[0].mxu1 %v43444_v59 }
 0x453   :  { %37132 = vmatmul.mubr.f32.vlgmr.msra.gmra.mrb[16].mxu0 %v42734_v23  ;;  %37068 = vmatprep.mubr.f32.mxu1 %v43471_v40 }
 0x454   :  { %40350 = vmatpush3.bf16.msra.mxu0 %v43446_v38  ;;  %37134 = vmatprep.mubr.f32.mxu0 %v42754_v33 }
 0x455   :  { %40352 = vmatprep.subr.bf16.mxu0 %v43465_v52  ;;  %37072 = vmatpush3.msra.mxu1 %v43419_v39 }
 0x456   :  { %37069 = vmatmul.mubr.f32.gmra.mrb[2].mxu1 %v43463_v8  ;;  %37079 = vmatprep.subr.mxu1 %v43427_v2 }
 0x457   :  { %37135 = vmatmul.mubr.f32.gmra.mrb[18].mxu0 %v42758_v35  ;;  %37073 = vmatprep.mubr.f32.mxu1 %v47166_v3 }
 0x458   :  { %40354 = vmatpush3.bf16.msra.mxu0 %v43465_v52  ;;  %37145 = vmatprep.mubr.f32.mxu0 %v42747_v30 }
 0x459   :  { %40356 = vmatprep.subr.bf16.mxu0 %v40355_v37 }
 0x45a   :  { %37074 = vmatmul.mubr.f32.vlgmr.msra.gmra.mrb[0].mxu1 %v47167_v49 }
 0x45b   :  { %37146 = vmatmul.mubr.f32.vlgmr.msra.gmra.mrb[16].mxu0 %v42750_v31  ;;  %37076 = vmatprep.mubr.f32.mxu1 %v5029_v0 }
 0x45c   :  { %40358 = vmatpush3.bf16.msra.mxu0 %v40355_v37  ;;  %37148 = vmatprep.mubr.f32.mxu0 %v42765_v41  ;;  %v6157_v37 = vsel %vm697_vm1, %v34493_v45, 0 }
 0x45d   :  { %40360 = vmatprep.subr.bf16.mxu0 %v40359_v14  ;;  %37080 = vmatpush3.msra.mxu1 %v43427_v2  ;;  %v43550_v50 = vand.u32 4294901760, %v6157_v37 }
 0x45e   :  { %37077 = vmatmul.mubr.f32.gmra.mrb[2].mxu1 %v47168_v18  ;;  %37087 = vmatprep.subr.mxu1 %v43419_v39 }
 0x45f   :  { %37149 = vmatmul.mubr.f32.gmra.mrb[18].mxu0 %v42769_v43  ;;  %37081 = vmatprep.mubr.f32.mxu1 %v43440_v5  ;;  %47169 = vst [vmem:[#allocation18_spill] sm:$0xff] %v43550_v50  ;;  %v43555_v12 = vsub.f32 %v6157_v37, %v43550_v50 }
 0x460   :  { %40362 = vmatpush3.bf16.msra.mxu0 %v40359_v14  ;;  %37159 = vmatprep.mubr.f32.mxu0 %v42715_v15 }
 0x461   :  { %40364 = vmatprep.subr.bf16.mxu0 %v43446_v38  ;;  %47170 = vst [vmem:[#allocation19_spill] sm:$0xff] %v43555_v12  ;;  %v43558_v17 = vand.u32 4294901760, %v43555_v12 }
 0x462   :  { %37082 = vmatmul.mubr.f32.vlgmr.msra.gmra.mrb[0].mxu1 %v43437_v44 }
 0x463   :  { %37160 = vmatmul.mubr.f32.vlgmr.msra.gmra.mrb[16].mxu0 %v42717_v16  ;;  %37084 = vmatprep.mubr.f32.mxu1 %v43458_v1  ;;  %47171 = vst [vmem:[#allocation20_spill] sm:$0xff] %v43558_v17  ;;  %v6269_v34 = vsub.f32 %v43555_v12, %v43558_v17 }
 0x464   :  { %40366 = vmatpush3.bf16.msra.mxu0 %v43446_v38  ;;  %37162 = vmatprep.mubr.f32.mxu0 %v42737_v25 }
 0x465   :  { %40368 = vmatprep.subr.bf16.mxu0 %v43465_v52  ;;  %37088 = vmatpush3.msra.mxu1 %v43419_v39 }
 0x466   :  { %37085 = vmatmul.mubr.f32.gmra.mrb[2].mxu1 %v43454_v21  ;;  %37179 = vmatprep.subr.mxu1 %v43550_v50 }
 0x467   :  { %37163 = vmatmul.mubr.f32.gmra.mrb[18].mxu0 %v42741_v27  ;;  %37089 = vmatprep.mubr.f32.mxu1 %v43440_v5 }
 0x468   :  { %40370 = vmatpush3.bf16.msra.mxu0 %v43465_v52  ;;  %37173 = vmatprep.mubr.f32.mxu0 %v42715_v15 }
 0x46a   :  { %37090 = vmatmul.mubr.f32.vlgmr.msra.gmra.mrb[0].mxu1 %v43437_v44  ;;  %v43562_v44 = vand.u32 4294901760, %v6269_v34  ;;  %v43598_v34 = vld [vmem:[%s46971_s0 + $0x20] sm:$0xff] }
 0x46b   :  { %37174 = vmatmul.mubr.f32.vlgmr.msra.gmra.mrb[16].mxu0 %v42717_v16  ;;  %37092 = vmatprep.mubr.f32.mxu1 %v43458_v1 }
 0x46c   :  { %37176 = vmatprep.mubr.f32.mxu0 %v42737_v25  ;;  %37180 = vmatpush3.msra.mxu1 %v43550_v50  ;;  %47172 = vst [vmem:[#allocation21_spill] sm:$0xff] %v43562_v44 }
 0x46d   :  { %37187 = vmatprep.subr.mxu1 %v43562_v44 }
 0x46e   :  { %37093 = vmatmul.mubr.f32.gmra.mrb[2].mxu1 %v43454_v21 }
 0x46f   :  { %37177 = vmatmul.mubr.f32.gmra.mrb[18].mxu0 %v42741_v27 }
 0x53e   :  { %v37175_v28 = vpop.f32.mrb[16].mxu0 }
 0x53f   :  { %v6135_v5 = vmul.f32 2.0, %v37175_v28  ;;  %v6112_v59 = vpop.f32.mrb[17].mxu0  ;;  %v43603_v28 = vld [vmem:[%s46971_s0 + $0x28] sm:$0xff] }
 0x540   :  { %v6134_v38 = vmul.f32 2.0, %v6112_v59  ;;  %v7288_v59 = vand.u32 4294901760, %v43603_v28 }
 0x541   :  { %v6139_v36 = vsub.f32 %v6135_v5, %v43247_v51  ;;  %v7285_v5 = vand.u32 4294901760, %v43598_v34 }
 0x542   :  { %v6138_v48 = vsub.f32 %v6134_v38, %v43250_v9  ;;  %v37178_v61 = vpop.f32.mrb[18].mxu0  ;;  %v43610_v38 = vld [vmem:[%s46971_s0 + $0x30] sm:$0xff] }
 0x543   :  { %v6148_v19 = vsel %vm684_vm2, %v6139_v36, 0  ;;  %v6137_v21 = vmul.f32 2.0, %v37178_v61  ;;  %v6124_v58 = vpop.f32.mrb[19].mxu0  ;;  %v43615_v36 = vld [vmem:[%s46971_s0 + $0x38] sm:$0xff] }
 0x544   :  { %v43568_v1 = vand.u32 4294901760, %v6148_v19  ;;  %v6145_v55 = vsel %vm684_vm2, %v6138_v48, 0  ;;  %v6136_v60 = vmul.f32 2.0, %v6124_v58  ;;  %v7291_v48 = vand.u32 4294901760, %v43610_v38 }
 0x545   :  { %v43571_v8 = vand.u32 4294901760, %v6145_v55  ;;  %v6141_v52 = vsub.f32 %v6137_v21, %v43264_v10  ;;  %v7294_v61 = vand.u32 4294901760, %v43615_v36  ;;  %v7402_v21 = vsub.f32 %v43603_v28, %v7288_v59 }
 0x546   :  { %v6236_v24 = vsub.f32 %v6148_v19, %v43568_v1  ;;  %v6140_v51 = vsub.f32 %v6136_v60, %v43277_v26  ;;  %v7395_v19 = vsub.f32 %v43598_v34, %v7285_v5  ;;  %v43624_v58 = vpack.c.bf16 %v7288_v59, %v7285_v5 }
 0x547   :  { %v6226_v9 = vsub.f32 %v6145_v55, %v43571_v8  ;;  %v6154_v40 = vsel %vm684_vm2, %v6141_v52, 0  ;;  %v7403_v60 = vand.u32 4294901760, %v7402_v21  ;;  %v7409_v52 = vsub.f32 %v43610_v38, %v7291_v48 }
 0x548   :  { %v6237_v29 = vand.u32 4294901760, %v6236_v24  ;;  %v43578_v20 = vand.u32 4294901760, %v6154_v40  ;;  %v6151_v32 = vsel %vm684_vm2, %v6140_v51, 0  ;;  %v7396_v55 = vand.u32 4294901760, %v7395_v19 }
 0x549   :  { %v43581_v56 = vand.u32 4294901760, %v6151_v32  ;;  %v6227_v42 = vand.u32 4294901760, %v6226_v9 }
 0x54a   :  { %v6238_v0 = vsub.f32 %v6236_v24, %v6237_v29  ;;  %v6256_v7 = vsub.f32 %v6154_v40, %v43578_v20  ;;  %v7397_v51 = vsub.f32 %v7395_v19, %v7396_v55  ;;  %v7410_v40 = vand.u32 4294901760, %v7409_v52 }
 0x54b   :  { %v6246_v10 = vsub.f32 %v6151_v32, %v43581_v56  ;;  %v6228_v57 = vsub.f32 %v6226_v9, %v6227_v42  ;;  %v40423_v32 = vpack.c.bf16 %v7294_v61, %v7291_v48  ;;  %v52_v48 = vld [vmem:[%s46974_s2 + $0x8] sm:$0xff] }
 0x54c   :  { %v6257_v13 = vand.u32 4294901760, %v6256_v7  ;;  %v6239_v3 = vand.u32 4294901760, %v6238_v0 }
 0x54d   :  { %v6229_v26 = vand.u32 4294901760, %v6228_v57  ;;  %v6247_v14 = vand.u32 4294901760, %v6246_v10 }
 0x54e   :  { %v6258_v49 = vsub.f32 %v6256_v7, %v6257_v13 }
 0x54f   :  { %37181 = vmatprep.mubr.f32.mxu1 %v6229_v26  ;;  %v6248_v18 = vsub.f32 %v6246_v10, %v6247_v14 }
 0x550   :  { %37182 = vmatmul.mubr.f32.vlgmr.msra.gmra.mrb[0].mxu1 %v6239_v3  ;;  %v6259_v37 = vand.u32 4294901760, %v6258_v49  ;;  %v51_v3 = vld [vmem:[%s46974_s2] sm:$0xff] }
 0x551   :  { %v6249_v45 = vand.u32 4294901760, %v6248_v18  ;;  %37188 = vmatpush3.msra.mxu1 %v43562_v44  ;;  %v6749_v49 = vsel %vm55_vm0, %v51_v3, 0 }
 0x552   :  { %37195 = vmatprep.subr.mxu1 %v43555_v12  ;;  %v43671_v18 = vand.u32 4294901760, %v6749_v49 }
 0x553   :  { %37184 = vmatprep.mubr.f32.mxu1 %v6249_v45 }
 0x554   :  { %37185 = vmatmul.mubr.f32.gmra.mrb[2].mxu1 %v6259_v37  ;;  %47173 = vst [vmem:[#allocation22_spill] sm:$0xff] %v43671_v18  ;;  %v43674_v45 = vsub.f32 %v6749_v49, %v43671_v18 }
 0x555   :  { %37189 = vmatprep.mubr.f32.mxu1 %v43571_v8 }
 0x556   :  { %47174 = vst [vmem:[#allocation23_spill] sm:$0xff] %v43674_v45  ;;  %v43677_v37 = vand.u32 4294901760, %v43674_v45 }
 0x558   :  { %37190 = vmatmul.mubr.f32.vlgmr.msra.gmra.mrb[0].mxu1 %v43568_v1  ;;  %47175 = vst [vmem:[#allocation24_spill] sm:$0xff] %v43677_v37  ;;  %v6826_v5 = vsub.f32 %v43674_v45, %v43677_v37 }
 0x559   :  { %37192 = vmatprep.mubr.f32.mxu1 %v43581_v56  ;;  %37196 = vmatpush3.msra.mxu1 %v43555_v12 }
 0x55a   :  { %37203 = vmatprep.subr.mxu1 %v43550_v50  ;;  %v43681_v59 = vand.u32 4294901760, %v6826_v5 }
 0x55c   :  { %37193 = vmatmul.mubr.f32.gmra.mrb[2].mxu1 %v43578_v20  ;;  %47176 = vst [vmem:[#allocation25_spill] sm:$0xff] %v43681_v59  ;;  %37235 = vmatprep.mubr.f32.mxu0 %v43681_v59 }
 0x55d   :  { %37197 = vmatprep.mubr.f32.mxu1 %v6226_v9  ;;  %v7404_v9 = vsub.f32 %v7402_v21, %v7403_v60 }
 0x55f   :  { %v7405_v0 = vand.u32 4294901760, %v7404_v9 }
 0x560   :  { %37198 = vmatmul.mubr.f32.vlgmr.msra.gmra.mrb[0].mxu1 %v6236_v24  ;;  %v7416_v24 = vsub.f32 %v43615_v36, %v7294_v61  ;;  %v6752_v61 = vsel %vm55_vm0, %v52_v48, 0 }
 0x561   :  { %37200 = vmatprep.mubr.f32.mxu1 %v6246_v10  ;;  %37204 = vmatpush3.msra.mxu1 %v43550_v50 }
 0x562   :  { %37211 = vmatprep.subr.mxu1 %v43558_v17 }
 0x564   :  { %37201 = vmatmul.mubr.f32.gmra.mrb[2].mxu1 %v6256_v7  ;;  %v7411_v7 = vsub.f32 %v7409_v52, %v7410_v40 }
 0x565   :  { %37205 = vmatprep.mubr.f32.mxu1 %v6227_v42  ;;  %v7398_v42 = vand.u32 4294901760, %v7397_v51 }
 0x567   :  { %v40427_v57 = vpack.c.bf16 %v7405_v0, %v7398_v42 }
 0x568   :  { %37206 = vmatmul.mubr.f32.vlgmr.msra.gmra.mrb[0].mxu1 %v6237_v29  ;;  %v7417_v29 = vand.u32 4294901760, %v7416_v24 }
 0x569   :  { %37208 = vmatprep.mubr.f32.mxu1 %v6247_v14  ;;  %37212 = vmatpush3.msra.mxu1 %v43558_v17 }
 0x56a   :  { %37219 = vmatprep.subr.mxu1 %v43550_v50  ;;  %v7418_v10 = vsub.f32 %v7416_v24, %v7417_v29  ;;  %v40455_v14 = vpack.c.bf16 %v7417_v29, %v7410_v40 }
 0x56c   :  { %37209 = vmatmul.mubr.f32.gmra.mrb[2].mxu1 %v6257_v13  ;;  %v7412_v13 = vand.u32 4294901760, %v7411_v7  ;;  %v7419_v26 = vand.u32 4294901760, %v7418_v10 }
 0x56d   :  { %37213 = vmatprep.mubr.f32.mxu1 %v43571_v8 }
 0x570   :  { %37214 = vmatmul.mubr.f32.vlgmr.msra.gmra.mrb[0].mxu1 %v43568_v1 }
 0x571   :  { %37216 = vmatprep.mubr.f32.mxu1 %v43581_v56  ;;  %37220 = vmatpush3.msra.mxu1 %v43550_v50 }
 0x572   :  { %40420 = vmatprep.subr.bf16.mxu1 %v43624_v58 }
 0x574   :  { %37217 = vmatmul.mubr.f32.gmra.mrb[2].mxu1 %v43578_v20 }
 0x575   :  { %37221 = vmatprep.mubr.f32.mxu1 %v43571_v8  ;;  %v40431_v8 = vpack.c.bf16 %v7419_v26, %v7412_v13 }
 0x578   :  { %37222 = vmatmul.mubr.f32.vlgmr.msra.gmra.mrb[0].mxu1 %v43568_v1  ;;  %v40435_v1 = vpack.c.bf16 %v7402_v21, %v7395_v19  ;;  %v43688_v19 = vand.u32 4294901760, %v6752_v61  ;;  %v34494_v21 = vld [vmem:[%s46975_s4] ss:$0 sm:$0xff] }
 0x579   :  { %37224 = vmatprep.mubr.f32.mxu1 %v43581_v56  ;;  %40422 = vmatpush3.bf16.msra.mxu1 %v43624_v58  ;;  %v40439_v56 = vpack.c.bf16 %v7416_v24, %v7409_v52 }
 0x57a   :  { %40424 = vmatprep.subr.bf16.mxu1 %v40423_v32  ;;  %47177 = vst [vmem:[#allocation26_spill] sm:$0xff] %v43688_v19 }
 0x57c   :  { %37225 = vmatmul.mubr.f32.gmra.mrb[2].mxu1 %v43578_v20  ;;  %v40451_v20 = vpack.c.bf16 %v7403_v60, %v7396_v55  ;;  %v43694_v55 = vsub.f32 %v6752_v61, %v43688_v19 }
 0x57d   :  { %40426 = vmatpush3.bf16.msra.mxu1 %v40423_v32  ;;  %37301 = vmatprep.mubr.f32.mxu1 %v42771_v46 }
 0x57e   :  { %40428 = vmatprep.subr.bf16.mxu1 %v40427_v57  ;;  %47178 = vst [vmem:[#allocation27_spill] sm:$0xff] %v43694_v55  ;;  %v43697_v29 = vand.u32 4294901760, %v43694_v55 }
 0x580   :  { %37302 = vmatmul.mubr.f32.vlgmr.msra.gmra.mrb[4].mxu1 %v42773_v47  ;;  %47179 = vst [vmem:[#allocation28_spill] sm:$0xff] %v43697_v29 }
 0x581   :  { %40430 = vmatpush3.bf16.msra.mxu1 %v40427_v57  ;;  %37304 = vmatprep.mubr.f32.mxu1 %v42780_v53 }
 0x582   :  { %40432 = vmatprep.subr.bf16.mxu1 %v40431_v8 }
 0x584   :  { %37305 = vmatmul.mubr.f32.gmra.mrb[6].mxu1 %v42783_v54 }
 0x585   :  { %40434 = vmatpush3.bf16.msra.mxu1 %v40431_v8  ;;  %37315 = vmatprep.mubr.f32.mxu1 %v42715_v15 }
 0x586   :  { %40436 = vmatprep.subr.bf16.mxu1 %v40435_v1 }
 0x588   :  { %37316 = vmatmul.mubr.f32.vlgmr.msra.gmra.mrb[4].mxu1 %v42717_v16 }
 0x589   :  { %40438 = vmatpush3.bf16.msra.mxu1 %v40435_v1  ;;  %37318 = vmatprep.mubr.f32.mxu1 %v42737_v25 }
 0x58a   :  { %40440 = vmatprep.subr.bf16.mxu1 %v40439_v56 }
 0x58c   :  { %37319 = vmatmul.mubr.f32.gmra.mrb[6].mxu1 %v42741_v27 }
 0x58d   :  { %40442 = vmatpush3.bf16.msra.mxu1 %v40439_v56  ;;  %37329 = vmatprep.mubr.f32.mxu1 %v42731_v22  ;;  %v6836_v56 = vsub.f32 %v43694_v55, %v43697_v29 }
 0x58e   :  { %40444 = vmatprep.subr.bf16.mxu1 %v43624_v58 }
 0x590   :  { %37330 = vmatmul.mubr.f32.vlgmr.msra.gmra.mrb[4].mxu1 %v42734_v23 }
 0x591   :  { %40446 = vmatpush3.bf16.msra.mxu1 %v43624_v58  ;;  %37332 = vmatprep.mubr.f32.mxu1 %v42754_v33 }
 0x592   :  { %40448 = vmatprep.subr.bf16.mxu1 %v40423_v32 }
 0x594   :  { %37333 = vmatmul.mubr.f32.gmra.mrb[6].mxu1 %v42758_v35 }
 0x595   :  { %40450 = vmatpush3.bf16.msra.mxu1 %v40423_v32  ;;  %37343 = vmatprep.mubr.f32.mxu1 %v42747_v30 }
 0x596   :  { %40452 = vmatprep.subr.bf16.mxu1 %v40451_v20 }
 0x598   :  { %37344 = vmatmul.mubr.f32.vlgmr.msra.gmra.mrb[4].mxu1 %v42750_v31 }
 0x599   :  { %40454 = vmatpush3.bf16.msra.mxu1 %v40451_v20  ;;  %37346 = vmatprep.mubr.f32.mxu1 %v42765_v41 }
 0x59a   :  { %40456 = vmatprep.subr.bf16.mxu1 %v40455_v14 }
 0x59c   :  { %37347 = vmatmul.mubr.f32.gmra.mrb[6].mxu1 %v42769_v43 }
 0x59d   :  { %40458 = vmatpush3.bf16.msra.mxu1 %v40455_v14  ;;  %37357 = vmatprep.mubr.f32.mxu1 %v42715_v15 }
 0x59e   :  { %40460 = vmatprep.subr.bf16.mxu1 %v43624_v58 }
 0x5a0   :  { %37358 = vmatmul.mubr.f32.vlgmr.msra.gmra.mrb[4].mxu1 %v42717_v16 }
 0x5a1   :  { %40462 = vmatpush3.bf16.msra.mxu1 %v43624_v58  ;;  %37360 = vmatprep.mubr.f32.mxu1 %v42737_v25 }
 0x5a2   :  { %40464 = vmatprep.subr.bf16.mxu1 %v40423_v32 }
 0x5a4   :  { %37361 = vmatmul.mubr.f32.gmra.mrb[6].mxu1 %v42741_v27 }
 0x5a5   :  { %40466 = vmatpush3.bf16.msra.mxu1 %v40423_v32  ;;  %37371 = vmatprep.mubr.f32.mxu1 %v42715_v15 }
 0x5a8   :  { %37372 = vmatmul.mubr.f32.vlgmr.msra.gmra.mrb[4].mxu1 %v42717_v16 }
 0x5a9   :  { %37374 = vmatprep.mubr.f32.mxu1 %v42737_v25 }
 0x5ac   :  { %37375 = vmatmul.mubr.f32.gmra.mrb[6].mxu1 %v42741_v27 }
 0x5ad   :  { %37481 = vmatprep.mubr.f32.mxu1 %v42771_v46 }
 0x64b   :  { %v37223_v58 = vpop.f32.mrb[0].mxu1 }
 0x64c   :  { %v6745_v60 = vadd.f32 %v37223_v58, %v34494_v21  ;;  %v6712_v52 = vpop.f32.mrb[1].mxu1 }
 0x64d   :  { %v6744_v24 = vadd.f32 %v34494_v21, %v6712_v52 }
 0x64e   :  { %v6758_v51 = vand.u32 4294901760, %v6745_v60 }
 0x64f   :  { %v6755_v9 = vand.u32 4294901760, %v6744_v24  ;;  %v37226_v40 = vpop.f32.mrb[2].mxu1 }
 0x650   :  { %v6852_v32 = vsub.f32 %v6745_v60, %v6758_v51  ;;  %v6747_v42 = vadd.f32 %v37226_v40, %v34494_v21  ;;  %v6724_v0 = vpop.f32.mrb[3].mxu1 }
 0x651   :  { %v40371_v7 = vpack.c.bf16 %v6758_v51, %v6755_v9  ;;  %v6845_v10 = vsub.f32 %v6744_v24, %v6755_v9  ;;  %v6746_v57 = vadd.f32 %v34494_v21, %v6724_v0  ;;  %v43704_v24 = vand.u32 4294901760, %v6836_v56 }
 0x652   :  { %v6853_v13 = vand.u32 4294901760, %v6852_v32  ;;  %v6764_v26 = vand.u32 4294901760, %v6747_v42 }
 0x653   :  { %v6846_v8 = vand.u32 4294901760, %v6845_v10  ;;  %v6761_v1 = vand.u32 4294901760, %v6746_v57  ;;  %40372 = vmatprep.subr.bf16.mxu0 %v40371_v7  ;;  %v40387_v20 = vpack.c.bf16 %v6852_v32, %v6845_v10  ;;  %47180 = vst [vmem:[#allocation29_spill] sm:$0xff] %v43704_v24 }
 0x654   :  { %v6866_v14 = vsub.f32 %v6747_v42, %v6764_v26  ;;  %40374 = vmatpush3.bf16.msra.mxu0 %v40371_v7  ;;  %v6854_v3 = vsub.f32 %v6852_v32, %v6853_v13 }
 0x655   :  { %v43701_v49 = vpack.c.bf16 %v6764_v26, %v6761_v1  ;;  %v6859_v5 = vsub.f32 %v6746_v57, %v6761_v1  ;;  %v6847_v48 = vsub.f32 %v6845_v10, %v6846_v8  ;;  %v40403_v61 = vpack.c.bf16 %v6853_v13, %v6846_v8 }
 0x656   :  { %v6867_v58 = vand.u32 4294901760, %v6866_v14  ;;  %v6855_v60 = vand.u32 4294901760, %v6854_v3 }
 0x657   :  { %v6860_v21 = vand.u32 4294901760, %v6859_v5  ;;  %40376 = vmatprep.subr.bf16.mxu0 %v43701_v49  ;;  %v6848_v52 = vand.u32 4294901760, %v6847_v48  ;;  %v40391_v51 = vpack.c.bf16 %v6866_v14, %v6859_v5 }
 0x658   :  { %40378 = vmatpush3.bf16.msra.mxu0 %v43701_v49  ;;  %v6868_v9 = vsub.f32 %v6866_v14, %v6867_v58 }
 0x659   :  { %v40379_v40 = vpack.c.bf16 %v6855_v60, %v6848_v52  ;;  %v6861_v42 = vsub.f32 %v6859_v5, %v6860_v21  ;;  %v40407_v32 = vpack.c.bf16 %v6867_v58, %v6860_v21 }
 0x65a   :  { %v6869_v0 = vand.u32 4294901760, %v6868_v9 }
 0x65b   :  { %40380 = vmatprep.subr.bf16.mxu0 %v40379_v40  ;;  %37236 = vmatmul.mubr.f32.vlgmr.msra.gmra.mrb[20].mxu0 %v43704_v24  ;;  %v6862_v10 = vand.u32 4294901760, %v6861_v42 }
 0x65c   :  { %40382 = vmatpush3.bf16.msra.mxu0 %v40379_v40  ;;  %37246 = vmatprep.mubr.f32.mxu0 %v43671_v18 }
 0x65d   :  { %v40383_v57 = vpack.c.bf16 %v6869_v0, %v6862_v10 }
 0x65f   :  { %40384 = vmatprep.subr.bf16.mxu0 %v40383_v57 }
 0x660   :  { %40386 = vmatpush3.bf16.msra.mxu0 %v40383_v57 }
 0x661   :  { %40388 = vmatprep.subr.bf16.mxu0 %v40387_v20 }
 0x663   :  { %37247 = vmatmul.mubr.f32.vlgmr.msra.gmra.mrb[20].mxu0 %v43688_v19 }
 0x664   :  { %40390 = vmatpush3.bf16.msra.mxu0 %v40387_v20  ;;  %37257 = vmatprep.mubr.f32.mxu0 %v43674_v45 }
 0x665   :  { %40392 = vmatprep.subr.bf16.mxu0 %v40391_v51 }
 0x668   :  { %40394 = vmatpush3.bf16.msra.mxu0 %v40391_v51 }
 0x669   :  { %40396 = vmatprep.subr.bf16.mxu0 %v40371_v7 }
 0x66b   :  { %37258 = vmatmul.mubr.f32.vlgmr.msra.gmra.mrb[20].mxu0 %v43694_v55 }
 0x66c   :  { %40398 = vmatpush3.bf16.msra.mxu0 %v40371_v7  ;;  %37268 = vmatprep.mubr.f32.mxu0 %v43677_v37 }
 0x66d   :  { %40400 = vmatprep.subr.bf16.mxu0 %v43701_v49 }
 0x670   :  { %40402 = vmatpush3.bf16.msra.mxu0 %v43701_v49 }
 0x671   :  { %40404 = vmatprep.subr.bf16.mxu0 %v40403_v61 }
 0x673   :  { %37269 = vmatmul.mubr.f32.vlgmr.msra.gmra.mrb[20].mxu0 %v43697_v29 }
 0x674   :  { %40406 = vmatpush3.bf16.msra.mxu0 %v40403_v61  ;;  %37279 = vmatprep.mubr.f32.mxu0 %v43671_v18 }
 0x675   :  { %40408 = vmatprep.subr.bf16.mxu0 %v40407_v32 }
 0x678   :  { %40410 = vmatpush3.bf16.msra.mxu0 %v40407_v32 }
 0x679   :  { %40412 = vmatprep.subr.bf16.mxu0 %v40371_v7 }
 0x67b   :  { %v43717_v13 = vpop.f32.mrb[4].mxu1  ;;  %37280 = vmatmul.mubr.f32.vlgmr.msra.gmra.mrb[20].mxu0 %v43688_v19 }
 0x67c   :  { %v7902_v26 = vsel %vm684_vm2, %v43717_v13, 0  ;;  %v9076_v8 = vand.u32 4294901760, %v43717_v13  ;;  %40414 = vmatpush3.bf16.msra.mxu0 %v40371_v7  ;;  %v43723_v1 = vpop.f32.mrb[5].mxu1  ;;  %37290 = vmatprep.mubr.f32.mxu0 %v43671_v18 }
 0x67d   :  { %v43726_v56 = vand.u32 4294901760, %v7902_v26  ;;  %v7899_v20 = vsel %vm684_vm2, %v43723_v1, 0  ;;  %v9073_v14 = vand.u32 4294901760, %v43723_v1  ;;  %40416 = vmatprep.subr.bf16.mxu0 %v43701_v49 }
 0x67e   :  { %v9190_v3 = vsub.f32 %v43717_v13, %v9076_v8  ;;  %v43733_v5 = vand.u32 4294901760, %v7899_v20 }
 0x67f   :  { %v43736_v48 = vsub.f32 %v7902_v26, %v43726_v56  ;;  %v43738_v7 = vpack.c.bf16 %v9076_v8, %v9073_v14  ;;  %v9183_v61 = vsub.f32 %v43723_v1, %v9073_v14  ;;  %v43741_v58 = vpop.f32.mrb[6].mxu1 }
 0x680   :  { %v43744_v60 = vsub.f32 %v7899_v20, %v43733_v5  ;;  %v7908_v21 = vsel %vm684_vm2, %v43741_v58, 0  ;;  %v9082_v52 = vand.u32 4294901760, %v43741_v58  ;;  %40418 = vmatpush3.bf16.msra.mxu0 %v43701_v49  ;;  %v43750_v51 = vpop.f32.mrb[7].mxu1  ;;  %v9191_v9 = vand.u32 4294901760, %v9190_v3 }
 0x681   :  { %v43752_v40 = vand.u32 4294901760, %v7908_v21  ;;  %v7905_v42 = vsel %vm684_vm2, %v43750_v51, 0  ;;  %v9079_v32 = vand.u32 4294901760, %v43750_v51  ;;  %40468 = vmatprep.subr.bf16.mxu1 %v43738_v7  ;;  %37377 = vmatprep.subr.mxu0 %v42822_v62  ;;  %v47032_v0 = vand.u32 4294901760, %v43736_v48 }
 0x682   :  { %v9204_v10 = vsub.f32 %v43741_v58, %v9082_v52  ;;  %v43761_v57 = vand.u32 4294901760, %v7905_v42  ;;  %40470 = vmatpush3.bf16.msra.mxu1 %v43738_v7  ;;  %v47036_v49 = vand.u32 4294901760, %v43744_v60  ;;  %v9184_v26 = vand.u32 4294901760, %v9183_v61 }
 0x683   :  { %v43766_v8 = vsub.f32 %v7908_v21, %v43752_v40  ;;  %v43768_v20 = vpack.c.bf16 %v9082_v52, %v9079_v32  ;;  %v9197_v14 = vsub.f32 %v43750_v51, %v9079_v32  ;;  %37291 = vmatmul.mubr.f32.vlgmr.msra.gmra.mrb[20].mxu0 %v43688_v19  ;;  %v7989_v29 = vsub.f32 %v43736_v48, %v47032_v0 }
 0x684   :  { %v43776_v37 = vsub.f32 %v7905_v42, %v43761_v57  ;;  %37378 = vmatpush3.msra.mxu0 %v42822_v62  ;;  %v7979_v21 = vsub.f32 %v43744_v60, %v47036_v49  ;;  %v9185_v55 = vsub.f32 %v9183_v61, %v9184_v26  ;;  %v9192_v52 = vsub.f32 %v9190_v3, %v9191_v9 }
 0x685   :  { %40472 = vmatprep.subr.bf16.mxu1 %v43768_v20  ;;  %v7990_v32 = vand.u32 4294901760, %v7989_v29  ;;  %v47050_v45 = vand.u32 4294901760, %v43766_v8  ;;  %v9198_v19 = vand.u32 4294901760, %v9197_v14  ;;  %v9205_v18 = vand.u32 4294901760, %v9204_v10  ;;  %37385 = vmatprep.subr.mxu0 %v42834_v6 }
 0x686   :  { %40474 = vmatpush3.bf16.msra.mxu1 %v43768_v20  ;;  %v7980_v42 = vand.u32 4294901760, %v7979_v21  ;;  %v9186_v0 = vand.u32 4294901760, %v9185_v55  ;;  %v9193_v24 = vand.u32 4294901760, %v9192_v52  ;;  %v7998_v17 = vand.u32 4294901760, %v43776_v37 }
 0x687   :  { %v8009_v49 = vsub.f32 %v43766_v8, %v47050_v45  ;;  %v9199_v12 = vsub.f32 %v9197_v14, %v9198_v19  ;;  %v9206_v59 = vsub.f32 %v9204_v10, %v9205_v18  ;;  %v40483_v29 = vpack.c.bf16 %v9190_v3, %v9183_v61  ;;  %v47185_v61 = vld [vmem:[#allocation3_spill] sm:$0xff] }
 0x688   :  { %37379 = vmatprep.mubr.f32.mxu0 %v7980_v42  ;;  %v40475_v44 = vpack.c.bf16 %v9193_v24, %v9186_v0  ;;  %v7999_v50 = vsub.f32 %v43776_v37, %v7998_v17  ;;  %v40487_v2 = vpack.c.bf16 %v9204_v10, %v9197_v14  ;;  %v40499_v11 = vpack.c.bf16 %v9191_v9, %v9184_v26  ;;  %v47187_v14 = vld [vmem:[#allocation4_spill] sm:$0xff]  ;;  %v47190_v42 = vld [vmem:[#allocation10_spill] sm:$0xff] }
 0x689   :  { %37380 = vmatmul.mubr.f32.vlgmr.msra.gmra.mrb[22].mxu0 %v7990_v32  ;;  %37482 = vmatmul.mubr.f32.vlgmr.msra.gmra.mrb[8].mxu1 %v42773_v47  ;;  %v9200_v55 = vand.u32 4294901760, %v9199_v12  ;;  %v9207_v21 = vand.u32 4294901760, %v9206_v59  ;;  %v43792_v52 = vpack.c.bf16 %v9205_v18, %v9198_v19  ;;  %v8010_v45 = vand.u32 4294901760, %v8009_v49  ;;  %v47189_v32 = vld [vmem:[#allocation7_spill] sm:$0xff] }
 0x68a   :  { %40476 = vmatprep.subr.bf16.mxu1 %v40475_v44  ;;  %v8000_v4 = vand.u32 4294901760, %v7999_v50  ;;  %37484 = vmatprep.mubr.f32.mxu1 %v42780_v53  ;;  %v8489_v12 = vsel %vm684_vm2, %v43603_v28, 0  ;;  %v47184_v18 = vand.u32 4294901760, %v43766_v8 }
 0x68b   :  { %40478 = vmatpush3.bf16.msra.mxu1 %v40475_v44  ;;  %v40479_v3 = vpack.c.bf16 %v9207_v21, %v9200_v55  ;;  %37386 = vmatpush3.msra.mxu0 %v42834_v6  ;;  %v47182_v6 = vand.u32 4294901760, %v43744_v60  ;;  %v8492_v44 = vsel %vm684_vm2, %v43610_v38, 0 }
 0x68c   :  { %37382 = vmatprep.mubr.f32.mxu0 %v8000_v4  ;;  %37393 = vmatprep.subr.mxu0 %v42827_v63  ;;  %v47183_v4 = vand.u32 4294901760, %v43736_v48 }
 0x68d   :  { %37383 = vmatmul.mubr.f32.gmra.mrb[24].mxu0 %v8010_v45  ;;  %37485 = vmatmul.mubr.f32.gmra.mrb[10].mxu1 %v42783_v54  ;;  %v43847_v45 = vand.u32 4294901760, %v8492_v44 }
 0x68e   :  { %40480 = vmatprep.subr.bf16.mxu1 %v40479_v3  ;;  %37387 = vmatprep.mubr.f32.mxu0 %v43733_v5 }
 0x68f   :  { %40482 = vmatpush3.bf16.msra.mxu1 %v40479_v3  ;;  %37495 = vmatprep.mubr.f32.mxu1 %v42715_v15 }
 0x690   :  { %40484 = vmatprep.subr.bf16.mxu1 %v40483_v29 }
 0x691   :  { %37388 = vmatmul.mubr.f32.vlgmr.msra.gmra.mrb[22].mxu0 %v43726_v56 }
 0x692   :  { %37496 = vmatmul.mubr.f32.vlgmr.msra.gmra.mrb[8].mxu1 %v42717_v16  ;;  %37390 = vmatprep.mubr.f32.mxu0 %v43761_v57 }
 0x693   :  { %40486 = vmatpush3.bf16.msra.mxu1 %v40483_v29  ;;  %37498 = vmatprep.mubr.f32.mxu1 %v42737_v25 }
 0x694   :  { %40488 = vmatprep.subr.bf16.mxu1 %v40487_v2  ;;  %37394 = vmatpush3.msra.mxu0 %v42827_v63  ;;  %v47181_v63 = vld [vmem:[#allocation2_spill] sm:$0xff] }
 0x695   :  { %37391 = vmatmul.mubr.f32.gmra.mrb[24].mxu0 %v43752_v40  ;;  %37401 = vmatprep.subr.mxu0 %v42822_v62 }
 0x696   :  { %37499 = vmatmul.mubr.f32.gmra.mrb[10].mxu1 %v42741_v27  ;;  %37395 = vmatprep.mubr.f32.mxu0 %v43744_v60 }
 0x697   :  { %40490 = vmatpush3.bf16.msra.mxu1 %v40487_v2  ;;  %37509 = vmatprep.mubr.f32.mxu1 %v42731_v22  ;;  %v8486_v2 = vsel %vm684_vm2, %v43598_v34, 0 }
 0x698   :  { %40492 = vmatprep.subr.bf16.mxu1 %v43738_v7  ;;  %v43830_v50 = vand.u32 4294901760, %v8486_v2 }
 0x699   :  { %37396 = vmatmul.mubr.f32.vlgmr.msra.gmra.mrb[22].mxu0 %v43736_v48  ;;  %v8584_v48 = vsub.f32 %v8492_v44, %v43847_v45 }
 0x69a   :  { %37510 = vmatmul.mubr.f32.vlgmr.msra.gmra.mrb[8].mxu1 %v42734_v23  ;;  %37398 = vmatprep.mubr.f32.mxu0 %v43776_v37  ;;  %v8495_v37 = vsel %vm684_vm2, %v43615_v36, 0 }
 0x69b   :  { %40494 = vmatpush3.bf16.msra.mxu1 %v43738_v7  ;;  %37512 = vmatprep.mubr.f32.mxu1 %v42754_v33  ;;  %v43856_v19 = vand.u32 4294901760, %v8495_v37  ;;  %v8585_v10 = vand.u32 4294901760, %v8584_v48 }
 0x69c   :  { %40496 = vmatprep.subr.bf16.mxu1 %v43768_v20  ;;  %37402 = vmatpush3.msra.mxu0 %v42822_v62 }
 0x69d   :  { %37399 = vmatmul.mubr.f32.gmra.mrb[24].mxu0 %v43766_v8  ;;  %37409 = vmatprep.subr.mxu0 %v47181_v63  ;;  %v8594_v9 = vsub.f32 %v8495_v37, %v43856_v19  ;;  %v8586_v26 = vsub.f32 %v8584_v48, %v8585_v10 }
 0x69e   :  { %37513 = vmatmul.mubr.f32.gmra.mrb[10].mxu1 %v42758_v35  ;;  %37403 = vmatprep.mubr.f32.mxu0 %v47182_v6 }
 0x69f   :  { %40498 = vmatpush3.bf16.msra.mxu1 %v43768_v20  ;;  %37523 = vmatprep.mubr.f32.mxu1 %v42747_v30 }
 0x6a0   :  { %40500 = vmatprep.subr.bf16.mxu1 %v40499_v11 }
 0x6a1   :  { %37404 = vmatmul.mubr.f32.vlgmr.msra.gmra.mrb[22].mxu0 %v47183_v4 }
 0x6a2   :  { %37524 = vmatmul.mubr.f32.vlgmr.msra.gmra.mrb[8].mxu1 %v42750_v31  ;;  %37406 = vmatprep.mubr.f32.mxu0 %v7998_v17  ;;  %v43842_v17 = vand.u32 4294901760, %v8489_v12 }
 0x6a3   :  { %40502 = vmatpush3.bf16.msra.mxu1 %v40499_v11  ;;  %37526 = vmatprep.mubr.f32.mxu1 %v42765_v41  ;;  %v8564_v11 = vsub.f32 %v8486_v2, %v43830_v50 }
 0x6a4   :  { %40504 = vmatprep.subr.bf16.mxu1 %v43792_v52  ;;  %37410 = vmatpush3.msra.mxu0 %v47181_v63  ;;  %v8574_v59 = vsub.f32 %v8489_v12, %v43842_v17 }
 0x6a5   :  { %37407 = vmatmul.mubr.f32.gmra.mrb[24].mxu0 %v47184_v18  ;;  %37417 = vmatprep.subr.mxu0 %v42822_v62  ;;  %v8565_v24 = vand.u32 4294901760, %v8564_v11 }
 0x6a6   :  { %37527 = vmatmul.mubr.f32.gmra.mrb[10].mxu1 %v42769_v43  ;;  %37411 = vmatprep.mubr.f32.mxu0 %v43733_v5  ;;  %v8575_v60 = vand.u32 4294901760, %v8574_v59 }
 0x6a7   :  { %40506 = vmatpush3.bf16.msra.mxu1 %v43792_v52  ;;  %37537 = vmatprep.mubr.f32.mxu1 %v42715_v15  ;;  %v8566_v0 = vsub.f32 %v8564_v11, %v8565_v24 }
 0x6a8   :  { %40508 = vmatprep.subr.bf16.mxu1 %v43738_v7 }
 0x6a9   :  { %37412 = vmatmul.mubr.f32.vlgmr.msra.gmra.mrb[22].mxu0 %v43726_v56  ;;  %v8567_v49 = vand.u32 4294901760, %v8566_v0 }
 0x6aa   :  { %37538 = vmatmul.mubr.f32.vlgmr.msra.gmra.mrb[8].mxu1 %v42717_v16  ;;  %37414 = vmatprep.mubr.f32.mxu0 %v43761_v57 }
 0x6ab   :  { %40510 = vmatpush3.bf16.msra.mxu1 %v43738_v7  ;;  %37540 = vmatprep.mubr.f32.mxu1 %v42737_v25  ;;  %v8595_v7 = vand.u32 4294901760, %v8594_v9 }
 0x6ac   :  { %40512 = vmatprep.subr.bf16.mxu1 %v43768_v20  ;;  %37418 = vmatpush3.msra.mxu0 %v42822_v62  ;;  %v8576_v62 = vsub.f32 %v8574_v59, %v8575_v60 }
 0x6ad   :  { %37415 = vmatmul.mubr.f32.gmra.mrb[24].mxu0 %v43752_v40  ;;  %37425 = vmatprep.subr.mxu0 %v47185_v61 }
 0x6ae   :  { %37541 = vmatmul.mubr.f32.gmra.mrb[10].mxu1 %v42741_v27  ;;  %37419 = vmatprep.mubr.f32.mxu0 %v43733_v5  ;;  %v47186_v5 = vld [vmem:[#allocation6_spill] sm:$0xff]  ;;  %v8577_v8 = vand.u32 4294901760, %v8576_v62 }
 0x6af   :  { %40514 = vmatpush3.bf16.msra.mxu1 %v43768_v20  ;;  %37551 = vmatprep.mubr.f32.mxu1 %v42715_v15  ;;  %v8596_v20 = vsub.f32 %v8594_v9, %v8595_v7 }
 0x6b1   :  { %37420 = vmatmul.mubr.f32.vlgmr.msra.gmra.mrb[22].mxu0 %v43726_v56  ;;  %v8587_v56 = vand.u32 4294901760, %v8586_v26 }
 0x6b2   :  { %37552 = vmatmul.mubr.f32.vlgmr.msra.gmra.mrb[8].mxu1 %v42717_v16  ;;  %37422 = vmatprep.mubr.f32.mxu0 %v43761_v57  ;;  %v8597_v57 = vand.u32 4294901760, %v8596_v20 }
 0x6b3   :  { %37554 = vmatprep.mubr.f32.mxu1 %v42737_v25  ;;  %37426 = vmatpush3.msra.mxu0 %v47185_v61 }
 0x6b4   :  { %37433 = vmatprep.subr.mxu0 %v47186_v5 }
 0x6b5   :  { %37423 = vmatmul.mubr.f32.gmra.mrb[24].mxu0 %v43752_v40  ;;  %v47188_v40 = vld [vmem:[#allocation5_spill] sm:$0xff] }
 0x6b6   :  { %37555 = vmatmul.mubr.f32.gmra.mrb[10].mxu1 %v42741_v27  ;;  %37427 = vmatprep.mubr.f32.mxu0 %v8567_v49 }
 0x6b7   :  { %37613 = vmatprep.mubr.f32.mxu1 %v42771_v46 }
 0x6b9   :  { %37428 = vmatmul.mubr.f32.vlgmr.msra.gmra.mrb[22].mxu0 %v8577_v8 }
 0x6ba   :  { %37430 = vmatprep.mubr.f32.mxu0 %v8587_v56  ;;  %37434 = vmatpush3.msra.mxu0 %v47186_v5 }
 0x6bb   :  { %37441 = vmatprep.subr.mxu0 %v47187_v14 }
 0x6bd   :  { %37431 = vmatmul.mubr.f32.gmra.mrb[24].mxu0 %v8597_v57 }
 0x6be   :  { %37435 = vmatprep.mubr.f32.mxu0 %v43830_v50 }
 0x6c1   :  { %37436 = vmatmul.mubr.f32.vlgmr.msra.gmra.mrb[22].mxu0 %v43842_v17 }
 0x6c2   :  { %37438 = vmatprep.mubr.f32.mxu0 %v43847_v45  ;;  %37442 = vmatpush3.msra.mxu0 %v47187_v14 }
 0x6c3   :  { %37449 = vmatprep.subr.mxu0 %v47185_v61 }
 0x6c5   :  { %37439 = vmatmul.mubr.f32.gmra.mrb[24].mxu0 %v43856_v19 }
 0x6c6   :  { %37443 = vmatprep.mubr.f32.mxu0 %v8564_v11 }
 0x6c9   :  { %37444 = vmatmul.mubr.f32.vlgmr.msra.gmra.mrb[22].mxu0 %v8574_v59 }
 0x6ca   :  { %37446 = vmatprep.mubr.f32.mxu0 %v8584_v48  ;;  %37450 = vmatpush3.msra.mxu0 %v47185_v61 }
 0x6cb   :  { %37457 = vmatprep.subr.mxu0 %v47188_v40 }
 0x6cd   :  { %37447 = vmatmul.mubr.f32.gmra.mrb[24].mxu0 %v8594_v9 }
 0x6ce   :  { %37451 = vmatprep.mubr.f32.mxu0 %v8565_v24 }
 0x6d1   :  { %37452 = vmatmul.mubr.f32.vlgmr.msra.gmra.mrb[22].mxu0 %v8575_v60 }
 0x6d2   :  { %37454 = vmatprep.mubr.f32.mxu0 %v8585_v10  ;;  %37458 = vmatpush3.msra.mxu0 %v47188_v40 }
 0x6d3   :  { %37465 = vmatprep.subr.mxu0 %v47185_v61 }
 0x6d5   :  { %37455 = vmatmul.mubr.f32.gmra.mrb[24].mxu0 %v8595_v7 }
 0x6d6   :  { %37459 = vmatprep.mubr.f32.mxu0 %v43830_v50 }
 0x6d9   :  { %37460 = vmatmul.mubr.f32.vlgmr.msra.gmra.mrb[22].mxu0 %v43842_v17 }
 0x6da   :  { %37462 = vmatprep.mubr.f32.mxu0 %v43847_v45  ;;  %37466 = vmatpush3.msra.mxu0 %v47185_v61 }
 0x6db   :  { %37557 = vmatprep.subr.mxu0 %v47189_v32 }
 0x6dd   :  { %37463 = vmatmul.mubr.f32.gmra.mrb[24].mxu0 %v43856_v19 }
 0x6de   :  { %37467 = vmatprep.mubr.f32.mxu0 %v43830_v50 }
 0x6e1   :  { %37468 = vmatmul.mubr.f32.vlgmr.msra.gmra.mrb[22].mxu0 %v43842_v17 }
 0x6e2   :  { %37470 = vmatprep.mubr.f32.mxu0 %v43847_v45  ;;  %37558 = vmatpush3.msra.mxu0 %v47189_v32 }
 0x6e3   :  { %37565 = vmatprep.subr.mxu0 %v47190_v42 }
 0x6e5   :  { %37471 = vmatmul.mubr.f32.gmra.mrb[24].mxu0 %v43856_v19 }
 0x785   :  { %v37553_v29 = vpop.f32.mrb[8].mxu1 }
 0x786   :  { %v9687_v55 = vmul.f32 2.0, %v37553_v29  ;;  %v9664_v21 = vpop.f32.mrb[9].mxu1 }
 0x787   :  { %v9686_v52 = vmul.f32 2.0, %v9664_v21 }
 0x788   :  { %v43906_v3 = vsub.f32 %v9687_v55, %v43603_v28 }
 0x789   :  { %v43909_v63 = vsub.f32 %v9686_v52, %v43598_v34  ;;  %v37556_v6 = vpop.f32.mrb[10].mxu1 }
 0x78a   :  { %v9698_v2 = vsel %vm684_vm2, %v43906_v3, 0  ;;  %v10289_v4 = vand.u32 4294901760, %v43906_v3  ;;  %v9689_v50 = vmul.f32 2.0, %v37556_v6  ;;  %v9676_v12 = vpop.f32.mrb[11].mxu1 }
 0x78b   :  { %v43914_v44 = vand.u32 4294901760, %v9698_v2  ;;  %v10286_v18 = vand.u32 4294901760, %v43909_v63  ;;  %v9688_v17 = vmul.f32 2.0, %v9676_v12  ;;  %v9695_v28 = vsel %vm684_vm2, %v43909_v63, 0 }
 0x78c   :  { %v43920_v11 = vsub.f32 %v43906_v3, %v10289_v4  ;;  %v43923_v34 = vsub.f32 %v9689_v50, %v43615_v36  ;;  %v43925_v45 = vand.u32 4294901760, %v9695_v28 }
 0x78d   :  { %v43928_v37 = vsub.f32 %v9698_v2, %v43914_v44  ;;  %v43930_v59 = vpack.c.bf16 %v10289_v4, %v10286_v18  ;;  %v43933_v19 = vsub.f32 %v43909_v63, %v10286_v18  ;;  %v43936_v24 = vsub.f32 %v9688_v17, %v43610_v38 }
 0x78e   :  { %v10295_v48 = vand.u32 4294901760, %v43923_v34  ;;  %v43940_v61 = vsub.f32 %v9695_v28, %v43925_v45  ;;  %v10404_v36 = vand.u32 4294901760, %v43920_v11  ;;  %v9704_v60 = vsel %vm684_vm2, %v43923_v34, 0 }
 0x78f   :  { %v10292_v9 = vand.u32 4294901760, %v43936_v24  ;;  %40516 = vmatprep.subr.bf16.mxu1 %v43930_v59  ;;  %v9784_v0 = vand.u32 4294901760, %v43928_v37  ;;  %v10397_v10 = vand.u32 4294901760, %v43933_v19  ;;  %v9701_v38 = vsel %vm684_vm2, %v43936_v24, 0 }
 0x790   :  { %v43952_v62 = vsub.f32 %v43923_v34, %v10295_v48  ;;  %40518 = vmatpush3.bf16.msra.mxu1 %v43930_v59  ;;  %v9774_v7 = vand.u32 4294901760, %v43940_v61  ;;  %v10405_v49 = vsub.f32 %v43920_v11, %v10404_v36  ;;  %v43959_v26 = vand.u32 4294901760, %v9701_v38 }
 0x791   :  { %v43961_v5 = vpack.c.bf16 %v10295_v48, %v10292_v9  ;;  %v43964_v8 = vsub.f32 %v43936_v24, %v10292_v9  ;;  %v9785_v20 = vsub.f32 %v43928_v37, %v9784_v0  ;;  %v10398_v56 = vsub.f32 %v43933_v19, %v10397_v10 }
 0x792   :  { %v9775_v57 = vsub.f32 %v43940_v61, %v9774_v7  ;;  %v10406_v14 = vand.u32 4294901760, %v10405_v49  ;;  %v43976_v40 = vsub.f32 %v9701_v38, %v43959_v26  ;;  %v43978_v29 = vand.u32 4294901760, %v9704_v60 }
 0x793   :  { %40520 = vmatprep.subr.bf16.mxu1 %v43961_v5  ;;  %v10399_v55 = vand.u32 4294901760, %v10398_v56  ;;  %v10411_v21 = vand.u32 4294901760, %v43964_v8  ;;  %v10418_v52 = vand.u32 4294901760, %v43952_v62  ;;  %v9786_v50 = vand.u32 4294901760, %v9785_v20 }
 0x794   :  { %40522 = vmatpush3.bf16.msra.mxu1 %v43961_v5  ;;  %v9776_v6 = vand.u32 4294901760, %v9775_v57  ;;  %v9794_v2 = vand.u32 4294901760, %v43976_v40  ;;  %v43986_v4 = vsub.f32 %v9704_v60, %v43978_v29  ;;  %v47191_v57 = vld [vmem:[#allocation8_spill] sm:$0xff] }
 0x795   :  { %v40523_v12 = vpack.c.bf16 %v10406_v14, %v10399_v55  ;;  %v10412_v18 = vsub.f32 %v43964_v8, %v10411_v21  ;;  %v10419_v17 = vsub.f32 %v43952_v62, %v10418_v52  ;;  %v40531_v14 = vpack.c.bf16 %v43920_v11, %v43933_v19 }
 0x796   :  { %37559 = vmatprep.mubr.f32.mxu0 %v9776_v6  ;;  %v9795_v28 = vsub.f32 %v43976_v40, %v9794_v2  ;;  %v9804_v48 = vand.u32 4294901760, %v43986_v4  ;;  %v40547_v55 = vpack.c.bf16 %v10404_v36, %v10397_v10  ;;  %v47192_v6 = vld [vmem:[#allocation9_spill] sm:$0xff]  ;;  %v40551_v11 = vpack.c.bf16 %v10418_v52, %v10411_v21 }
 0x797   :  { %37560 = vmatmul.mubr.f32.vlgmr.msra.gmra.mrb[22].mxu0 %v9786_v50  ;;  %37614 = vmatmul.mubr.f32.vlgmr.msra.gmra.mrb[12].mxu1 %v42773_v47  ;;  %v10413_v60 = vand.u32 4294901760, %v10412_v18  ;;  %v10420_v9 = vand.u32 4294901760, %v10419_v17 }
 0x798   :  { %40524 = vmatprep.subr.bf16.mxu1 %v40523_v12  ;;  %v9796_v38 = vand.u32 4294901760, %v9795_v28  ;;  %37616 = vmatprep.mubr.f32.mxu1 %v42780_v53  ;;  %v9805_v49 = vsub.f32 %v43986_v4, %v9804_v48 }
 0x799   :  { %40526 = vmatpush3.bf16.msra.mxu1 %v40523_v12  ;;  %v40527_v20 = vpack.c.bf16 %v10420_v9, %v10413_v60  ;;  %37566 = vmatpush3.msra.mxu0 %v47190_v42  ;;  %v40535_v42 = vpack.c.bf16 %v43952_v62, %v43964_v8 }
 0x79a   :  { %37562 = vmatprep.mubr.f32.mxu0 %v9796_v38  ;;  %v9806_v56 = vand.u32 4294901760, %v9805_v49  ;;  %37573 = vmatprep.subr.mxu0 %v47191_v57 }
 0x79b   :  { %37617 = vmatmul.mubr.f32.gmra.mrb[14].mxu1 %v42783_v54  ;;  %40528 = vmatprep.subr.bf16.mxu1 %v40527_v20 }
 0x79c   :  { %37563 = vmatmul.mubr.f32.gmra.mrb[24].mxu0 %v9806_v56  ;;  %37627 = vmatprep.mubr.f32.mxu1 %v42715_v15 }
 0x79d   :  { %37567 = vmatprep.mubr.f32.mxu0 %v43925_v45  ;;  %40530 = vmatpush3.bf16.msra.mxu1 %v40527_v20 }
 0x79e   :  { %40532 = vmatprep.subr.bf16.mxu1 %v40531_v14 }
 0x7a0   :  { %37568 = vmatmul.mubr.f32.vlgmr.msra.gmra.mrb[22].mxu0 %v43914_v44  ;;  %37628 = vmatmul.mubr.f32.vlgmr.msra.gmra.mrb[12].mxu1 %v42717_v16 }
 0x7a1   :  { %37570 = vmatprep.mubr.f32.mxu0 %v43959_v26  ;;  %40534 = vmatpush3.bf16.msra.mxu1 %v40531_v14 }
 0x7a2   :  { %40536 = vmatprep.subr.bf16.mxu1 %v40535_v42  ;;  %37630 = vmatprep.mubr.f32.mxu1 %v42737_v25 }
 0x7a3   :  { %37574 = vmatpush3.msra.mxu0 %v47191_v57 }
 0x7a4   :  { %37571 = vmatmul.mubr.f32.gmra.mrb[24].mxu0 %v43978_v29  ;;  %37631 = vmatmul.mubr.f32.gmra.mrb[14].mxu1 %v42741_v27 }
 0x7a5   :  { %37575 = vmatprep.mubr.f32.mxu0 %v43940_v61  ;;  %40538 = vmatpush3.bf16.msra.mxu1 %v40535_v42 }
 0x7a6   :  { %40540 = vmatprep.subr.bf16.mxu1 %v43930_v59  ;;  %37641 = vmatprep.mubr.f32.mxu1 %v42731_v22 }
 0x7a7   :  { %37581 = vmatprep.subr.mxu0 %v47189_v32 }
 0x7a8   :  { %37576 = vmatmul.mubr.f32.vlgmr.msra.gmra.mrb[22].mxu0 %v43928_v37  ;;  %37642 = vmatmul.mubr.f32.vlgmr.msra.gmra.mrb[12].mxu1 %v42734_v23  ;;  %v47193_v37 = vld [vmem:[#allocation11_spill] sm:$0xff] }
 0x7a9   :  { %37578 = vmatprep.mubr.f32.mxu0 %v43976_v40  ;;  %40542 = vmatpush3.bf16.msra.mxu1 %v43930_v59 }
 0x7aa   :  { %40544 = vmatprep.subr.bf16.mxu1 %v43961_v5  ;;  %37644 = vmatprep.mubr.f32.mxu1 %v42754_v33 }
 0x7ab   :  { %37582 = vmatpush3.msra.mxu0 %v47189_v32 }
 0x7ac   :  { %37579 = vmatmul.mubr.f32.gmra.mrb[24].mxu0 %v43986_v4  ;;  %37645 = vmatmul.mubr.f32.gmra.mrb[14].mxu1 %v42758_v35 }
 0x7ad   :  { %37583 = vmatprep.mubr.f32.mxu0 %v9774_v7  ;;  %40546 = vmatpush3.bf16.msra.mxu1 %v43961_v5 }
 0x7ae   :  { %40548 = vmatprep.subr.bf16.mxu1 %v40547_v55  ;;  %37655 = vmatprep.mubr.f32.mxu1 %v42747_v30 }
 0x7af   :  { %37589 = vmatprep.subr.mxu0 %v47192_v6 }
 0x7b0   :  { %37584 = vmatmul.mubr.f32.vlgmr.msra.gmra.mrb[22].mxu0 %v9784_v0  ;;  %37656 = vmatmul.mubr.f32.vlgmr.msra.gmra.mrb[12].mxu1 %v42750_v31 }
 0x7b1   :  { %37586 = vmatprep.mubr.f32.mxu0 %v9794_v2  ;;  %40550 = vmatpush3.bf16.msra.mxu1 %v40547_v55 }
 0x7b2   :  { %40552 = vmatprep.subr.bf16.mxu1 %v40551_v11  ;;  %37658 = vmatprep.mubr.f32.mxu1 %v42765_v41 }
 0x7b3   :  { %37590 = vmatpush3.msra.mxu0 %v47192_v6 }
 0x7b4   :  { %37587 = vmatmul.mubr.f32.gmra.mrb[24].mxu0 %v9804_v48  ;;  %37659 = vmatmul.mubr.f32.gmra.mrb[14].mxu1 %v42769_v43 }
 0x7b5   :  { %37591 = vmatprep.mubr.f32.mxu0 %v43925_v45  ;;  %40554 = vmatpush3.bf16.msra.mxu1 %v40551_v11 }
 0x7b6   :  { %40556 = vmatprep.subr.bf16.mxu1 %v43930_v59  ;;  %37669 = vmatprep.mubr.f32.mxu1 %v42715_v15 }
 0x7b7   :  { %37597 = vmatprep.subr.mxu0 %v47189_v32 }
 0x7b8   :  { %37592 = vmatmul.mubr.f32.vlgmr.msra.gmra.mrb[22].mxu0 %v43914_v44  ;;  %37670 = vmatmul.mubr.f32.vlgmr.msra.gmra.mrb[12].mxu1 %v42717_v16 }
 0x7b9   :  { %37594 = vmatprep.mubr.f32.mxu0 %v43959_v26  ;;  %40558 = vmatpush3.bf16.msra.mxu1 %v43930_v59 }
 0x7ba   :  { %40560 = vmatprep.subr.bf16.mxu1 %v43961_v5  ;;  %37672 = vmatprep.mubr.f32.mxu1 %v42737_v25 }
 0x7bb   :  { %37598 = vmatpush3.msra.mxu0 %v47189_v32  ;;  %v47194_v32 = vld [vmem:[#allocation14_spill] sm:$0xff] }
 0x7bc   :  { %37595 = vmatmul.mubr.f32.gmra.mrb[24].mxu0 %v43978_v29  ;;  %37673 = vmatmul.mubr.f32.gmra.mrb[14].mxu1 %v42741_v27 }
 0x7bd   :  { %37599 = vmatprep.mubr.f32.mxu0 %v43925_v45  ;;  %40562 = vmatpush3.bf16.msra.mxu1 %v43961_v5 }
 0x7be   :  { %37683 = vmatprep.mubr.f32.mxu1 %v42715_v15  ;;  %37689 = vmatprep.subr.mxu0 %v47193_v37 }
 0x7c0   :  { %37600 = vmatmul.mubr.f32.vlgmr.msra.gmra.mrb[22].mxu0 %v43914_v44  ;;  %37684 = vmatmul.mubr.f32.vlgmr.msra.gmra.mrb[12].mxu1 %v42717_v16 }
 0x7c1   :  { %37602 = vmatprep.mubr.f32.mxu0 %v43959_v26  ;;  %37686 = vmatprep.mubr.f32.mxu1 %v42737_v25 }
 0x7c2   :  { %37690 = vmatpush3.msra.mxu0 %v47193_v37 }
 0x7c3   :  { %37697 = vmatprep.subr.mxu0 %v47194_v32 }
 0x7c4   :  { %37603 = vmatmul.mubr.f32.gmra.mrb[24].mxu0 %v43978_v29  ;;  %37687 = vmatmul.mubr.f32.gmra.mrb[14].mxu1 %v42741_v27 }
 0x7c5   :  { %37745 = vmatprep.mubr.f32.mxu1 %v42771_v46 }
 0x893   :  { %v37685_v45 = vpop.f32.mrb[12].mxu1 }
 0x894   :  { %v10900_v59 = vmul.f32 2.0, %v37685_v45  ;;  %v10877_v19 = vpop.f32.mrb[13].mxu1 }
 0x895   :  { %v10899_v44 = vmul.f32 2.0, %v10877_v19 }
 0x896   :  { %v44078_v61 = vsub.f32 %v10900_v59, %v43717_v13 }
 0x897   :  { %v44081_v36 = vsub.f32 %v10899_v44, %v43723_v1  ;;  %v37688_v0 = vpop.f32.mrb[14].mxu1 }
 0x898   :  { %v10911_v10 = vsel %vm684_vm2, %v44078_v61, 0  ;;  %v11502_v62 = vand.u32 4294901760, %v44078_v61  ;;  %v10902_v7 = vmul.f32 2.0, %v37688_v0  ;;  %v10889_v26 = vpop.f32.mrb[15].mxu1 }
 0x899   :  { %v44086_v5 = vand.u32 4294901760, %v10911_v10  ;;  %v11499_v8 = vand.u32 4294901760, %v44081_v36  ;;  %v10901_v40 = vmul.f32 2.0, %v10889_v26  ;;  %v10908_v13 = vsel %vm684_vm2, %v44081_v36, 0 }
 0x89a   :  { %v44092_v29 = vsub.f32 %v44078_v61, %v11502_v62  ;;  %v44095_v1 = vsub.f32 %v10902_v7, %v43741_v58  ;;  %v44097_v21 = vand.u32 4294901760, %v10908_v13 }
 0x89b   :  { %v44100_v52 = vsub.f32 %v10911_v10, %v44086_v5  ;;  %v44102_v2 = vpack.c.bf16 %v11502_v62, %v11499_v8  ;;  %v44105_v4 = vsub.f32 %v44081_v36, %v11499_v8  ;;  %v44108_v50 = vsub.f32 %v10901_v40, %v43750_v51 }
 0x89c   :  { %v11508_v12 = vand.u32 4294901760, %v44095_v1  ;;  %v44112_v18 = vsub.f32 %v10908_v13, %v44097_v21  ;;  %v11617_v58 = vand.u32 4294901760, %v44092_v29  ;;  %v10917_v17 = vsel %vm684_vm2, %v44095_v1, 0 }
 0x89d   :  { %v11505_v28 = vand.u32 4294901760, %v44108_v50  ;;  %40564 = vmatprep.subr.bf16.mxu1 %v44102_v2  ;;  %v10997_v48 = vand.u32 4294901760, %v44100_v52  ;;  %v11610_v60 = vand.u32 4294901760, %v44105_v4  ;;  %v10914_v51 = vsel %vm684_vm2, %v44108_v50, 0 }
 0x89e   :  { %v44124_v9 = vsub.f32 %v44095_v1, %v11508_v12  ;;  %40566 = vmatpush3.bf16.msra.mxu1 %v44102_v2  ;;  %v10987_v38 = vand.u32 4294901760, %v44112_v18  ;;  %v11618_v49 = vsub.f32 %v44092_v29, %v11617_v58  ;;  %v44131_v20 = vand.u32 4294901760, %v10914_v51 }
 0x89f   :  { %v44133_v56 = vpack.c.bf16 %v11508_v12, %v11505_v28  ;;  %v44136_v57 = vsub.f32 %v44108_v50, %v11505_v28  ;;  %v10998_v14 = vsub.f32 %v44100_v52, %v10997_v48  ;;  %v11611_v42 = vsub.f32 %v44105_v4, %v11610_v60 }
 0x8a0   :  { %v10988_v55 = vsub.f32 %v44112_v18, %v10987_v38  ;;  %v11619_v6 = vand.u32 4294901760, %v11618_v49  ;;  %v44148_v11 = vsub.f32 %v10914_v51, %v44131_v20  ;;  %v44150_v45 = vand.u32 4294901760, %v10917_v17 }
 0x8a1   :  { %40568 = vmatprep.subr.bf16.mxu1 %v44133_v56  ;;  %v11612_v59 = vand.u32 4294901760, %v11611_v42  ;;  %v11624_v19 = vand.u32 4294901760, %v44136_v57  ;;  %v11631_v44 = vand.u32 4294901760, %v44124_v9  ;;  %v10999_v7 = vand.u32 4294901760, %v10998_v14 }
 0x8a2   :  { %40570 = vmatpush3.bf16.msra.mxu1 %v44133_v56  ;;  %v10989_v0 = vand.u32 4294901760, %v10988_v55  ;;  %v11007_v10 = vand.u32 4294901760, %v44148_v11  ;;  %v44158_v62 = vsub.f32 %v10917_v17, %v44150_v45  ;;  %v47195_v55 = vld [vmem:[#allocation12_spill] sm:$0xff] }
 0x8a3   :  { %v40571_v26 = vpack.c.bf16 %v11619_v6, %v11612_v59  ;;  %v11625_v8 = vsub.f32 %v44136_v57, %v11624_v19  ;;  %v11632_v40 = vsub.f32 %v44124_v9, %v11631_v44  ;;  %v40579_v6 = vpack.c.bf16 %v44092_v29, %v44105_v4 }
 0x8a4   :  { %37691 = vmatprep.mubr.f32.mxu0 %v10989_v0  ;;  %v11008_v13 = vsub.f32 %v44148_v11, %v11007_v10  ;;  %v11017_v12 = vand.u32 4294901760, %v44158_v62  ;;  %v40595_v59 = vpack.c.bf16 %v11617_v58, %v11610_v60  ;;  %v47196_v0 = vld [vmem:[#allocation13_spill] sm:$0xff]  ;;  %v40599_v29 = vpack.c.bf16 %v11631_v44, %v11624_v19 }
 0x8a5   :  { %37692 = vmatmul.mubr.f32.vlgmr.msra.gmra.mrb[22].mxu0 %v10999_v7  ;;  %37746 = vmatmul.mubr.f32.vlgmr.msra.gmra.mrb[16].mxu1 %v42773_v47  ;;  %v11626_v17 = vand.u32 4294901760, %v11625_v8  ;;  %v11633_v28 = vand.u32 4294901760, %v11632_v40 }
 0x8a6   :  { %40572 = vmatprep.subr.bf16.mxu1 %v40571_v26  ;;  %v11009_v51 = vand.u32 4294901760, %v11008_v13  ;;  %37748 = vmatprep.mubr.f32.mxu1 %v42780_v53  ;;  %v11018_v49 = vsub.f32 %v44158_v62, %v11017_v12 }
 0x8a7   :  { %40574 = vmatpush3.bf16.msra.mxu1 %v40571_v26  ;;  %v40575_v14 = vpack.c.bf16 %v11633_v28, %v11626_v17  ;;  %37698 = vmatpush3.msra.mxu0 %v47194_v32  ;;  %v40583_v32 = vpack.c.bf16 %v44124_v9, %v44136_v57 }
 0x8a8   :  { %37694 = vmatprep.mubr.f32.mxu0 %v11009_v51  ;;  %v11019_v42 = vand.u32 4294901760, %v11018_v49  ;;  %37705 = vmatprep.subr.mxu0 %v47195_v55 }
 0x8a9   :  { %37749 = vmatmul.mubr.f32.gmra.mrb[18].mxu1 %v42783_v54  ;;  %40576 = vmatprep.subr.bf16.mxu1 %v40575_v14 }
 0x8aa   :  { %37695 = vmatmul.mubr.f32.gmra.mrb[24].mxu0 %v11019_v42  ;;  %37759 = vmatprep.mubr.f32.mxu1 %v42715_v15 }
 0x8ab   :  { %37699 = vmatprep.mubr.f32.mxu0 %v44097_v21  ;;  %40578 = vmatpush3.bf16.msra.mxu1 %v40575_v14 }
 0x8ac   :  { %40580 = vmatprep.subr.bf16.mxu1 %v40579_v6 }
 0x8ae   :  { %37700 = vmatmul.mubr.f32.vlgmr.msra.gmra.mrb[22].mxu0 %v44086_v5  ;;  %37760 = vmatmul.mubr.f32.vlgmr.msra.gmra.mrb[16].mxu1 %v42717_v16 }
 0x8af   :  { %37702 = vmatprep.mubr.f32.mxu0 %v44131_v20  ;;  %40582 = vmatpush3.bf16.msra.mxu1 %v40579_v6 }
 0x8b0   :  { %40584 = vmatprep.subr.bf16.mxu1 %v40583_v32  ;;  %37762 = vmatprep.mubr.f32.mxu1 %v42737_v25 }
 0x8b1   :  { %37706 = vmatpush3.msra.mxu0 %v47195_v55 }
 0x8b2   :  { %37703 = vmatmul.mubr.f32.gmra.mrb[24].mxu0 %v44150_v45  ;;  %37763 = vmatmul.mubr.f32.gmra.mrb[18].mxu1 %v42741_v27 }
 0x8b3   :  { %37707 = vmatprep.mubr.f32.mxu0 %v44112_v18  ;;  %40586 = vmatpush3.bf16.msra.mxu1 %v40583_v32 }
 0x8b4   :  { %40588 = vmatprep.subr.bf16.mxu1 %v44102_v2  ;;  %37773 = vmatprep.mubr.f32.mxu1 %v42731_v22 }
 0x8b5   :  { %37713 = vmatprep.subr.mxu0 %v47193_v37 }
 0x8b6   :  { %37708 = vmatmul.mubr.f32.vlgmr.msra.gmra.mrb[22].mxu0 %v44100_v52  ;;  %37774 = vmatmul.mubr.f32.vlgmr.msra.gmra.mrb[16].mxu1 %v42734_v23 }
 0x8b7   :  { %37710 = vmatprep.mubr.f32.mxu0 %v44148_v11  ;;  %40590 = vmatpush3.bf16.msra.mxu1 %v44102_v2 }
 0x8b8   :  { %40592 = vmatprep.subr.bf16.mxu1 %v44133_v56  ;;  %37776 = vmatprep.mubr.f32.mxu1 %v42754_v33 }
 0x8b9   :  { %37714 = vmatpush3.msra.mxu0 %v47193_v37 }
 0x8ba   :  { %37711 = vmatmul.mubr.f32.gmra.mrb[24].mxu0 %v44158_v62  ;;  %37777 = vmatmul.mubr.f32.gmra.mrb[18].mxu1 %v42758_v35 }
 0x8bb   :  { %37715 = vmatprep.mubr.f32.mxu0 %v10987_v38  ;;  %40594 = vmatpush3.bf16.msra.mxu1 %v44133_v56 }
 0x8bc   :  { %40596 = vmatprep.subr.bf16.mxu1 %v40595_v59  ;;  %37787 = vmatprep.mubr.f32.mxu1 %v42747_v30 }
 0x8bd   :  { %37721 = vmatprep.subr.mxu0 %v47196_v0 }
 0x8be   :  { %37716 = vmatmul.mubr.f32.vlgmr.msra.gmra.mrb[22].mxu0 %v10997_v48  ;;  %37788 = vmatmul.mubr.f32.vlgmr.msra.gmra.mrb[16].mxu1 %v42750_v31 }
 0x8bf   :  { %37718 = vmatprep.mubr.f32.mxu0 %v11007_v10  ;;  %40598 = vmatpush3.bf16.msra.mxu1 %v40595_v59 }
 0x8c0   :  { %40600 = vmatprep.subr.bf16.mxu1 %v40599_v29  ;;  %37790 = vmatprep.mubr.f32.mxu1 %v42765_v41 }
 0x8c1   :  { %37722 = vmatpush3.msra.mxu0 %v47196_v0 }
 0x8c2   :  { %37719 = vmatmul.mubr.f32.gmra.mrb[24].mxu0 %v11017_v12  ;;  %37791 = vmatmul.mubr.f32.gmra.mrb[18].mxu1 %v42769_v43 }
 0x8c3   :  { %37723 = vmatprep.mubr.f32.mxu0 %v44097_v21  ;;  %40602 = vmatpush3.bf16.msra.mxu1 %v40599_v29 }
 0x8c4   :  { %40604 = vmatprep.subr.bf16.mxu1 %v44102_v2  ;;  %37801 = vmatprep.mubr.f32.mxu1 %v42715_v15 }
 0x8c5   :  { %37729 = vmatprep.subr.mxu0 %v47193_v37 }
 0x8c6   :  { %37724 = vmatmul.mubr.f32.vlgmr.msra.gmra.mrb[22].mxu0 %v44086_v5  ;;  %37802 = vmatmul.mubr.f32.vlgmr.msra.gmra.mrb[16].mxu1 %v42717_v16 }
 0x8c7   :  { %37726 = vmatprep.mubr.f32.mxu0 %v44131_v20  ;;  %40606 = vmatpush3.bf16.msra.mxu1 %v44102_v2 }
 0x8c8   :  { %40608 = vmatprep.subr.bf16.mxu1 %v44133_v56  ;;  %37804 = vmatprep.mubr.f32.mxu1 %v42737_v25 }
 0x8c9   :  { %37730 = vmatpush3.msra.mxu0 %v47193_v37  ;;  %v47197_v37 = vld [vmem:[#allocation17_spill] sm:$0xff] }
 0x8ca   :  { %37727 = vmatmul.mubr.f32.gmra.mrb[24].mxu0 %v44150_v45  ;;  %37805 = vmatmul.mubr.f32.gmra.mrb[18].mxu1 %v42741_v27 }
 0x8cb   :  { %37731 = vmatprep.mubr.f32.mxu0 %v44097_v21  ;;  %40610 = vmatpush3.bf16.msra.mxu1 %v44133_v56  ;;  %v44249_v21 = vpop.f32.mrb[20].mxu0 }
 0x8cc   :  { %37815 = vmatprep.mubr.f32.mxu1 %v42715_v15  ;;  %37821 = vmatprep.subr.mxu0 %v43419_v39  ;;  %v44251_v52 = vpop.f32.mrb[21].mxu0 }
 0x8ce   :  { %37732 = vmatmul.mubr.f32.vlgmr.msra.gmra.mrb[22].mxu0 %v44086_v5  ;;  %37816 = vmatmul.mubr.f32.vlgmr.msra.gmra.mrb[16].mxu1 %v42717_v16 }
 0x8cf   :  { %37734 = vmatprep.mubr.f32.mxu0 %v44131_v20  ;;  %37818 = vmatprep.mubr.f32.mxu1 %v42737_v25 }
 0x8d0   :  { %37822 = vmatpush3.msra.mxu0 %v43419_v39 }
 0x8d1   :  { %37829 = vmatprep.subr.mxu0 %v47197_v37 }
 0x8d2   :  { %37735 = vmatmul.mubr.f32.gmra.mrb[24].mxu0 %v44150_v45  ;;  %37819 = vmatmul.mubr.f32.gmra.mrb[18].mxu1 %v42741_v27 }
 0x8d3   :  { %37877 = vmatprep.mubr.f32.mxu1 %v42771_v46 }
 0x9a1   :  { %v37817_v5 = vpop.f32.mrb[16].mxu1 }
 0x9a2   :  { %v12113_v2 = vmul.f32 2.0, %v37817_v5  ;;  %v12090_v4 = vpop.f32.mrb[17].mxu1 }
 0x9a3   :  { %v12112_v18 = vmul.f32 2.0, %v12090_v4 }
 0x9a4   :  { %v12117_v58 = vsub.f32 %v12113_v2, %v43906_v3 }
 0x9a5   :  { %v12116_v48 = vsub.f32 %v12112_v18, %v43909_v63  ;;  %v37820_v60 = vpop.f32.mrb[18].mxu1 }
 0x9a6   :  { %v12124_v9 = vsel %vm684_vm2, %v12117_v58, 0  ;;  %v12715_v38 = vand.u32 4294901760, %v12117_v58  ;;  %v12115_v20 = vmul.f32 2.0, %v37820_v60  ;;  %v12102_v56 = vpop.f32.mrb[19].mxu1 }
 0x9a7   :  { %v44256_v57 = vand.u32 4294901760, %v12124_v9  ;;  %v12121_v46 = vsel %vm684_vm2, %v12116_v48, 0  ;;  %v12712_v11 = vand.u32 4294901760, %v12116_v48  ;;  %v12114_v45 = vmul.f32 2.0, %v12102_v56 }
 0x9a8   :  { %v12829_v19 = vsub.f32 %v12117_v58, %v12715_v38  ;;  %v44259_v44 = vand.u32 4294901760, %v12121_v46  ;;  %v12119_v10 = vsub.f32 %v12115_v20, %v43923_v34 }
 0x9a9   :  { %v44263_v3 = vsub.f32 %v12124_v9, %v44256_v57  ;;  %v44265_v63 = vpack.c.bf16 %v12715_v38, %v12712_v11  ;;  %v12822_v62 = vsub.f32 %v12116_v48, %v12712_v11  ;;  %v12118_v7 = vsub.f32 %v12114_v45, %v43936_v24 }
 0x9aa   :  { %v44269_v26 = vsub.f32 %v12121_v46, %v44259_v44  ;;  %v12130_v8 = vsel %vm684_vm2, %v12119_v10, 0  ;;  %v12721_v40 = vand.u32 4294901760, %v12119_v10  ;;  %v12830_v13 = vand.u32 4294901760, %v12829_v19 }
 0x9ab   :  { %v12210_v12 = vand.u32 4294901760, %v44263_v3  ;;  %v44273_v17 = vand.u32 4294901760, %v12130_v8  ;;  %v12127_v34 = vsel %vm684_vm2, %v12118_v7, 0  ;;  %v12718_v28 = vand.u32 4294901760, %v12118_v7  ;;  %40612 = vmatprep.subr.bf16.mxu1 %v44265_v63 }
 0x9ac   :  { %v12843_v51 = vsub.f32 %v12119_v10, %v12721_v40  ;;  %v44277_v49 = vand.u32 4294901760, %v12127_v34  ;;  %40614 = vmatpush3.bf16.msra.mxu1 %v44265_v63  ;;  %v12200_v24 = vand.u32 4294901760, %v44269_v26  ;;  %v12823_v14 = vand.u32 4294901760, %v12822_v62 }
 0x9ad   :  { %v44282_v42 = vsub.f32 %v12130_v8, %v44273_v17  ;;  %v44284_v55 = vpack.c.bf16 %v12721_v40, %v12718_v28  ;;  %v12836_v6 = vsub.f32 %v12118_v7, %v12718_v28  ;;  %v12211_v32 = vsub.f32 %v44263_v3, %v12210_v12 }
 0x9ae   :  { %v44290_v59 = vsub.f32 %v12127_v34, %v44277_v49  ;;  %v12201_v0 = vsub.f32 %v44269_v26, %v12200_v24  ;;  %v12824_v29 = vsub.f32 %v12822_v62, %v12823_v14  ;;  %v12831_v5 = vsub.f32 %v12829_v19, %v12830_v13 }
 0x9af   :  { %40616 = vmatprep.subr.bf16.mxu1 %v44284_v55  ;;  %v12212_v2 = vand.u32 4294901760, %v12211_v32  ;;  %v12230_v4 = vand.u32 4294901760, %v44282_v42  ;;  %v12837_v18 = vand.u32 4294901760, %v12836_v6  ;;  %v12844_v58 = vand.u32 4294901760, %v12843_v51 }
 0x9b0   :  { %40618 = vmatpush3.bf16.msra.mxu1 %v44284_v55  ;;  %v12202_v48 = vand.u32 4294901760, %v12201_v0  ;;  %v12825_v60 = vand.u32 4294901760, %v12824_v29  ;;  %v12832_v9 = vand.u32 4294901760, %v12831_v5  ;;  %v12220_v38 = vand.u32 4294901760, %v44290_v59 }
 0x9b1   :  { %v12231_v20 = vsub.f32 %v44282_v42, %v12230_v4  ;;  %v12838_v56 = vsub.f32 %v12836_v6, %v12837_v18  ;;  %v12845_v46 = vsub.f32 %v12843_v51, %v12844_v58  ;;  %v40627_v11 = vpack.c.bf16 %v12829_v19, %v12822_v62  ;;  %v47198_v19 = vld [vmem:[#allocation15_spill] sm:$0xff] }
 0x9b2   :  { %37823 = vmatprep.mubr.f32.mxu0 %v12202_v48  ;;  %v40619_v45 = vpack.c.bf16 %v12832_v9, %v12825_v60  ;;  %v12221_v10 = vsub.f32 %v44290_v59, %v12220_v38  ;;  %v40631_v7 = vpack.c.bf16 %v12843_v51, %v12836_v6  ;;  %v40643_v8 = vpack.c.bf16 %v12830_v13, %v12823_v14  ;;  %v42610_v48 = vld [vmem:[%s46975_s4] ss:$0 sm:$0xff] }
 0x9b3   :  { %37824 = vmatmul.mubr.f32.vlgmr.msra.gmra.mrb[22].mxu0 %v12212_v2  ;;  %37878 = vmatmul.mubr.f32.vlgmr.msra.gmra.mrb[20].mxu1 %v42773_v47  ;;  %v12839_v40 = vand.u32 4294901760, %v12838_v56  ;;  %v12846_v34 = vand.u32 4294901760, %v12845_v46  ;;  %v40647_v28 = vpack.c.bf16 %v12844_v58, %v12837_v18  ;;  %v12232_v0 = vand.u32 4294901760, %v12231_v20  ;;  %v47199_v47 = vld [vmem:[#allocation16_spill] sm:$0xff] }
 0x9b4   :  { %40620 = vmatprep.subr.bf16.mxu1 %v40619_v45  ;;  %v12222_v32 = vand.u32 4294901760, %v12221_v10  ;;  %37880 = vmatprep.mubr.f32.mxu1 %v42780_v53  ;;  %v47204_v18 = vld [vmem:[#allocation20_spill] sm:$0xff] }
 0x9b5   :  { %40622 = vmatpush3.bf16.msra.mxu1 %v40619_v45  ;;  %v40623_v29 = vpack.c.bf16 %v12846_v34, %v12839_v40  ;;  %37830 = vmatpush3.msra.mxu0 %v47197_v37 }
 0x9b6   :  { %37826 = vmatprep.mubr.f32.mxu0 %v12222_v32  ;;  %37837 = vmatprep.subr.mxu0 %v47198_v19 }
 0x9b7   :  { %37827 = vmatmul.mubr.f32.gmra.mrb[24].mxu0 %v12232_v0  ;;  %37881 = vmatmul.mubr.f32.gmra.mrb[22].mxu1 %v42783_v54 }
 0x9b8   :  { %40624 = vmatprep.subr.bf16.mxu1 %v40623_v29  ;;  %37831 = vmatprep.mubr.f32.mxu0 %v44259_v44 }
 0x9b9   :  { %40626 = vmatpush3.bf16.msra.mxu1 %v40623_v29  ;;  %37891 = vmatprep.mubr.f32.mxu1 %v42715_v15 }
 0x9ba   :  { %40628 = vmatprep.subr.bf16.mxu1 %v40627_v11 }
 0x9bb   :  { %37832 = vmatmul.mubr.f32.vlgmr.msra.gmra.mrb[22].mxu0 %v44256_v57 }
 0x9bc   :  { %37892 = vmatmul.mubr.f32.vlgmr.msra.gmra.mrb[20].mxu1 %v42717_v16  ;;  %37834 = vmatprep.mubr.f32.mxu0 %v44277_v49 }
 0x9bd   :  { %40630 = vmatpush3.bf16.msra.mxu1 %v40627_v11  ;;  %37894 = vmatprep.mubr.f32.mxu1 %v42737_v25 }
 0x9be   :  { %40632 = vmatprep.subr.bf16.mxu1 %v40631_v7  ;;  %37838 = vmatpush3.msra.mxu0 %v47198_v19 }
 0x9bf   :  { %37835 = vmatmul.mubr.f32.gmra.mrb[24].mxu0 %v44273_v17  ;;  %37845 = vmatprep.subr.mxu0 %v43419_v39 }
 0x9c0   :  { %37895 = vmatmul.mubr.f32.gmra.mrb[22].mxu1 %v42741_v27  ;;  %37839 = vmatprep.mubr.f32.mxu0 %v44269_v26 }
 0x9c1   :  { %40634 = vmatpush3.bf16.msra.mxu1 %v40631_v7  ;;  %37905 = vmatprep.mubr.f32.mxu1 %v42731_v22  ;;  %v47200_v22 = vld [vmem:[#allocation18_spill] sm:$0xff] }
 0x9c2   :  { %40636 = vmatprep.subr.bf16.mxu1 %v44265_v63 }
 0x9c3   :  { %37840 = vmatmul.mubr.f32.vlgmr.msra.gmra.mrb[22].mxu0 %v44263_v3 }
 0x9c4   :  { %37906 = vmatmul.mubr.f32.vlgmr.msra.gmra.mrb[20].mxu1 %v42734_v23  ;;  %37842 = vmatprep.mubr.f32.mxu0 %v44290_v59  ;;  %v47201_v23 = vld [vmem:[#allocation21_spill] sm:$0xff] }
 0x9c5   :  { %40638 = vmatpush3.bf16.msra.mxu1 %v44265_v63  ;;  %37908 = vmatprep.mubr.f32.mxu1 %v42754_v33 }
 0x9c6   :  { %40640 = vmatprep.subr.bf16.mxu1 %v44284_v55  ;;  %37846 = vmatpush3.msra.mxu0 %v43419_v39 }
 0x9c7   :  { %37843 = vmatmul.mubr.f32.gmra.mrb[24].mxu0 %v44282_v42  ;;  %37853 = vmatprep.subr.mxu0 %v47199_v47 }
 0x9c8   :  { %37909 = vmatmul.mubr.f32.gmra.mrb[22].mxu1 %v42758_v35  ;;  %37847 = vmatprep.mubr.f32.mxu0 %v12200_v24 }
 0x9c9   :  { %40642 = vmatpush3.bf16.msra.mxu1 %v44284_v55  ;;  %37919 = vmatprep.mubr.f32.mxu1 %v42747_v30  ;;  %v47202_v30 = vld [vmem:[#allocation25_spill] sm:$0xff] }
 0x9ca   :  { %40644 = vmatprep.subr.bf16.mxu1 %v40643_v8 }
 0x9cb   :  { %37848 = vmatmul.mubr.f32.vlgmr.msra.gmra.mrb[22].mxu0 %v12210_v12 }
 0x9cc   :  { %37920 = vmatmul.mubr.f32.vlgmr.msra.gmra.mrb[20].mxu1 %v42750_v31  ;;  %37850 = vmatprep.mubr.f32.mxu0 %v12220_v38 }
 0x9cd   :  { %40646 = vmatpush3.bf16.msra.mxu1 %v40643_v8  ;;  %37922 = vmatprep.mubr.f32.mxu1 %v42765_v41 }
 0x9ce   :  { %40648 = vmatprep.subr.bf16.mxu1 %v40647_v28  ;;  %37854 = vmatpush3.msra.mxu0 %v47199_v47 }
 0x9cf   :  { %37851 = vmatmul.mubr.f32.gmra.mrb[24].mxu0 %v12230_v4  ;;  %37861 = vmatprep.subr.mxu0 %v43419_v39  ;;  %v47203_v4 = vld [vmem:[#allocation19_spill] sm:$0xff] }
 0x9d0   :  { %37923 = vmatmul.mubr.f32.gmra.mrb[22].mxu1 %v42769_v43  ;;  %37855 = vmatprep.mubr.f32.mxu0 %v44259_v44 }
 0x9d1   :  { %40650 = vmatpush3.bf16.msra.mxu1 %v40647_v28  ;;  %37933 = vmatprep.mubr.f32.mxu1 %v42715_v15 }
 0x9d2   :  { %40652 = vmatprep.subr.bf16.mxu1 %v44265_v63 }
 0x9d3   :  { %37856 = vmatmul.mubr.f32.vlgmr.msra.gmra.mrb[22].mxu0 %v44256_v57 }
 0x9d4   :  { %37934 = vmatmul.mubr.f32.vlgmr.msra.gmra.mrb[20].mxu1 %v42717_v16  ;;  %37858 = vmatprep.mubr.f32.mxu0 %v44277_v49 }
 0x9d5   :  { %40654 = vmatpush3.bf16.msra.mxu1 %v44265_v63  ;;  %37936 = vmatprep.mubr.f32.mxu1 %v42737_v25 }
 0x9d6   :  { %40656 = vmatprep.subr.bf16.mxu1 %v44284_v55  ;;  %37862 = vmatpush3.msra.mxu0 %v43419_v39 }
 0x9d7   :  { %37859 = vmatmul.mubr.f32.gmra.mrb[24].mxu0 %v44273_v17  ;;  %37953 = vmatprep.subr.mxu0 %v47200_v22 }
 0x9d8   :  { %37937 = vmatmul.mubr.f32.gmra.mrb[22].mxu1 %v42741_v27  ;;  %37863 = vmatprep.mubr.f32.mxu0 %v44259_v44 }
 0x9d9   :  { %40658 = vmatpush3.bf16.msra.mxu1 %v44284_v55  ;;  %37947 = vmatprep.mubr.f32.mxu1 %v42715_v15 }
 0x9db   :  { %37864 = vmatmul.mubr.f32.vlgmr.msra.gmra.mrb[22].mxu0 %v44256_v57 }
 0x9dc   :  { %37948 = vmatmul.mubr.f32.vlgmr.msra.gmra.mrb[20].mxu1 %v42717_v16  ;;  %37866 = vmatprep.mubr.f32.mxu0 %v44277_v49 }
 0x9dd   :  { %37950 = vmatprep.mubr.f32.mxu1 %v42737_v25  ;;  %37954 = vmatpush3.msra.mxu0 %v47200_v22 }
 0x9de   :  { %37961 = vmatprep.subr.mxu0 %v47201_v23 }
 0x9df   :  { %37867 = vmatmul.mubr.f32.gmra.mrb[24].mxu0 %v44273_v17 }
 0x9e0   :  { %37951 = vmatmul.mubr.f32.gmra.mrb[22].mxu1 %v42741_v27 }
 0x9e1   :  { %38009 = vmatprep.mubr.f32.mxu1 %v47202_v30 }
 0xaaf   :  { %v37949_v31 = vpop.f32.mrb[20].mxu1 }
 0xab0   :  { %v13326_v15 = vmul.f32 2.0, %v37949_v31  ;;  %v13303_v33 = vpop.f32.mrb[21].mxu1 }
 0xab1   :  { %v13325_v35 = vmul.f32 2.0, %v13303_v33 }
 0xab2   :  { %v13330_v16 = vsub.f32 %v13326_v15, %v44078_v61 }
 0xab3   :  { %v13329_v41 = vsub.f32 %v13325_v35, %v44081_v36  ;;  %v37952_v43 = vpop.f32.mrb[22].mxu1 }
 0xab4   :  { %v13337_v25 = vsel %vm684_vm2, %v13330_v16, 0  ;;  %v13328_v53 = vmul.f32 2.0, %v37952_v43  ;;  %v13315_v54 = vpop.f32.mrb[23].mxu1 }
 0xab5   :  { %v13421_v39 = vand.u32 4294901760, %v13337_v25  ;;  %v13334_v37 = vsel %vm684_vm2, %v13329_v41, 0  ;;  %v13327_v57 = vmul.f32 2.0, %v13315_v54 }
 0xab6   :  { %v13411_v27 = vand.u32 4294901760, %v13334_v37  ;;  %v13332_v44 = vsub.f32 %v13328_v53, %v44095_v1 }
 0xab7   :  { %v13422_v3 = vsub.f32 %v13337_v25, %v13421_v39  ;;  %v13331_v63 = vsub.f32 %v13327_v57, %v44108_v50 }
 0xab8   :  { %v13412_v62 = vsub.f32 %v13334_v37, %v13411_v27  ;;  %v13343_v61 = vsel %vm684_vm2, %v13332_v44, 0  ;;  %v47205_v37 = vld [vmem:[#allocation29_spill] sm:$0xff] }
 0xab9   :  { %v13423_v26 = vand.u32 4294901760, %v13422_v3  ;;  %v13441_v36 = vand.u32 4294901760, %v13343_v61  ;;  %v13340_v13 = vsel %vm684_vm2, %v13331_v63, 0  ;;  %v47208_v63 = vld [vmem:[#allocation23_spill] sm:$0xff] }
 0xaba   :  { %v13431_v12 = vand.u32 4294901760, %v13340_v13  ;;  %v13413_v17 = vand.u32 4294901760, %v13412_v62 }
 0xabb   :  { %v13424_v51 = vsub.f32 %v13422_v3, %v13423_v26  ;;  %v13442_v49 = vsub.f32 %v13343_v61, %v13441_v36  ;;  %v44406_v61 = vmax.f32 %v44249_v21, 0.0 }
 0xabc   :  { %v13432_v24 = vsub.f32 %v13340_v13, %v13431_v12  ;;  %v13414_v14 = vsub.f32 %v13412_v62, %v13413_v17  ;;  %v47210_v13 = vld [vmem:[#allocation24_spill] sm:$0xff] }
 0xabd   :  { %v13443_v42 = vand.u32 4294901760, %v13442_v49  ;;  %v13425_v1 = vand.u32 4294901760, %v13424_v51  ;;  %v14475_v21 = vand.u32 4294901760, %v44406_v61 }
 0xabe   :  { %v13415_v55 = vand.u32 4294901760, %v13414_v14  ;;  %v13433_v6 = vand.u32 4294901760, %v13432_v24 }
 0xabf   :  { %v13444_v59 = vsub.f32 %v13442_v49, %v13443_v42 }
 0xac0   :  { %37955 = vmatprep.mubr.f32.mxu0 %v13415_v55  ;;  %v13434_v50 = vsub.f32 %v13432_v24, %v13433_v6 }
 0xac1   :  { %37956 = vmatmul.mubr.f32.vlgmr.msra.gmra.mrb[22].mxu0 %v13425_v1  ;;  %v13445_v2 = vand.u32 4294901760, %v13444_v59 }
 0xac2   :  { %v13435_v5 = vand.u32 4294901760, %v13434_v50  ;;  %37962 = vmatpush3.msra.mxu0 %v47201_v23 }
 0xac3   :  { %37969 = vmatprep.subr.mxu0 %v47203_v4 }
 0xac4   :  { %37958 = vmatprep.mubr.f32.mxu0 %v13435_v5 }
 0xac5   :  { %37959 = vmatmul.mubr.f32.gmra.mrb[24].mxu0 %v13445_v2 }
 0xac6   :  { %37963 = vmatprep.mubr.f32.mxu0 %v13411_v27 }
 0xac9   :  { %37964 = vmatmul.mubr.f32.vlgmr.msra.gmra.mrb[22].mxu0 %v13421_v39 }
 0xaca   :  { %37966 = vmatprep.mubr.f32.mxu0 %v13431_v12  ;;  %37970 = vmatpush3.msra.mxu0 %v47203_v4 }
 0xacb   :  { %37977 = vmatprep.subr.mxu0 %v47200_v22 }
 0xacd   :  { %37967 = vmatmul.mubr.f32.gmra.mrb[24].mxu0 %v13441_v36 }
 0xace   :  { %37971 = vmatprep.mubr.f32.mxu0 %v13412_v62  ;;  %v14458_v62 = vld [vmem:[%s46976_s5] sm:$0xff] }
 0xad1   :  { %37972 = vmatmul.mubr.f32.vlgmr.msra.gmra.mrb[22].mxu0 %v13422_v3  ;;  %v47207_v3 = vld [vmem:[#allocation26_spill] sm:$0xff] }
 0xad2   :  { %37974 = vmatprep.mubr.f32.mxu0 %v13432_v24  ;;  %37978 = vmatpush3.msra.mxu0 %v47200_v22  ;;  %v14567_v24 = vsub.f32 %v44406_v61, %v14475_v21 }
 0xad3   :  { %37985 = vmatprep.subr.mxu0 %v47204_v18 }
 0xad4   :  { %v14568_v59 = vand.u32 4294901760, %v14567_v24 }
 0xad5   :  { %37975 = vmatmul.mubr.f32.gmra.mrb[24].mxu0 %v13442_v49 }
 0xad6   :  { %37979 = vmatprep.mubr.f32.mxu0 %v13413_v17  ;;  %v14459_v17 = vld [vmem:[%s46976_s5 + $0x8] sm:$0xff]  ;;  %v14569_v4 = vsub.f32 %v14567_v24, %v14568_v59 }
 0xad7   :  { %v14469_v49 = vsel %vm14464_vm3, %v14459_v17, 0 }
 0xad8   :  { %v44428_v55 = vand.u32 4294901760, %v14469_v49 }
 0xad9   :  { %37980 = vmatmul.mubr.f32.vlgmr.msra.gmra.mrb[22].mxu0 %v13423_v26  ;;  %v44409_v26 = vmax.f32 %v44251_v52, 0.0 }
 0xada   :  { %37982 = vmatprep.mubr.f32.mxu0 %v13433_v6  ;;  %37986 = vmatpush3.msra.mxu0 %v47204_v18  ;;  %v44435_v50 = vsub.f32 %v14469_v49, %v44428_v55 }
 0xadb   :  { %37993 = vmatprep.subr.mxu0 %v47200_v22  ;;  %v14472_v52 = vand.u32 4294901760, %v44409_v26 }
 0xadc   :  { %v44443_v18 = vand.u32 4294901760, %v44435_v50 }
 0xadd   :  { %37983 = vmatmul.mubr.f32.gmra.mrb[24].mxu0 %v13443_v42  ;;  %v14560_v14 = vsub.f32 %v44409_v26, %v14472_v52  ;;  %v47211_v42 = vld [vmem:[#allocation28_spill] sm:$0xff] }
 0xade   :  { %37987 = vmatprep.mubr.f32.mxu0 %v13411_v27 }
 0xadf   :  { %v14561_v1 = vand.u32 4294901760, %v14560_v14 }
 0xae1   :  { %37988 = vmatmul.mubr.f32.vlgmr.msra.gmra.mrb[22].mxu0 %v13421_v39  ;;  %v14562_v2 = vsub.f32 %v14560_v14, %v14561_v1 }
 0xae2   :  { %37990 = vmatprep.mubr.f32.mxu0 %v13431_v12  ;;  %37994 = vmatpush3.msra.mxu0 %v47200_v22 }
 0xae5   :  { %37991 = vmatmul.mubr.f32.gmra.mrb[24].mxu0 %v13441_v36 }
 0xae6   :  { %37995 = vmatprep.mubr.f32.mxu0 %v13411_v27  ;;  %v47206_v27 = vld [vmem:[#allocation22_spill] sm:$0xff] }
 0xae9   :  { %37996 = vmatmul.mubr.f32.vlgmr.msra.gmra.mrb[22].mxu0 %v13421_v39 }
 0xaea   :  { %37998 = vmatprep.mubr.f32.mxu0 %v13431_v12  ;;  %v14466_v12 = vsel %vm14464_vm3, %v14458_v62, 0 }
 0xaeb   :  { %v44422_v51 = vand.u32 4294901760, %v14466_v12 }
 0xaed   :  { %37999 = vmatmul.mubr.f32.gmra.mrb[24].mxu0 %v13441_v36  ;;  %v47209_v36 = vld [vmem:[#allocation27_spill] sm:$0xff]  ;;  %v44432_v6 = vsub.f32 %v14466_v12, %v44422_v51 }
 0xaef   :  { %v44438_v5 = vand.u32 4294901760, %v44432_v6 }
 0xbbc   :  { %v37997_v58 = vpop.f32.mrb[22].mxu0 }
 0xbbd   :  { %v13925_v60 = vadd.f32 %v42610_v48, %v37997_v58  ;;  %v13898_v9 = vpop.f32.mrb[23].mxu0  ;;  %v14541_v58 = vsub.f32 %v44432_v6, %v44438_v5 }
 0xbbe   :  { %v13924_v38 = vadd.f32 %v42610_v48, %v13898_v9  ;;  %v14570_v9 = vand.u32 4294901760, %v14569_v4 }
 0xbbf   :  { %v13932_v20 = vand.u32 4294901760, %v13925_v60 }
 0xbc0   :  { %v13929_v56 = vand.u32 4294901760, %v13924_v38  ;;  %v38000_v46 = vpop.f32.mrb[24].mxu0 }
 0xbc1   :  { %v14026_v11 = vsub.f32 %v13925_v60, %v13932_v20  ;;  %v13927_v45 = vadd.f32 %v42610_v48, %v38000_v46  ;;  %v13910_v10 = vpop.f32.mrb[25].mxu0  ;;  %v14563_v60 = vand.u32 4294901760, %v14562_v2 }
 0xbc2   :  { %v44389_v7 = vpack.c.bf16 %v13932_v20, %v13929_v56  ;;  %v14019_v8 = vsub.f32 %v13924_v38, %v13929_v56  ;;  %v13926_v40 = vadd.f32 %v42610_v48, %v13910_v10  ;;  %v40707_v48 = vpack.c.bf16 %v14475_v21, %v14472_v52  ;;  %v34495_v10 = vld [vmem:[%s46977_s7 + $0x10] sm:$0xff] }
 0xbc3   :  { %v14027_v34 = vand.u32 4294901760, %v14026_v11  ;;  %v13938_v28 = vand.u32 4294901760, %v13927_v45  ;;  %v14551_v38 = vsub.f32 %v44435_v50, %v44443_v18  ;;  %v44453_v20 = vand.u32 4294901760, %v14541_v58  ;;  %v14462_v58 = vld [vmem:[%s46977_s7] sm:$0xff] }
 0xbc4   :  { %v14020_v32 = vand.u32 4294901760, %v14019_v8  ;;  %v13935_v0 = vand.u32 4294901760, %v13926_v40  ;;  %40660 = vmatprep.subr.bf16.mxu1 %v44389_v7  ;;  %v40675_v29 = vpack.c.bf16 %v14026_v11, %v14019_v8  ;;  %v40711_v56 = vpack.c.bf16 %v14570_v9, %v14563_v60 }
 0xbc5   :  { %v14040_v19 = vsub.f32 %v13927_v45, %v13938_v28  ;;  %40662 = vmatpush3.bf16.msra.mxu1 %v44389_v7  ;;  %v14028_v47 = vsub.f32 %v14026_v11, %v14027_v34  ;;  %v44456_v46 = vand.u32 4294901760, %v14551_v38  ;;  %v40715_v11 = vpack.c.bf16 %v14567_v24, %v14560_v14 }
 0xbc6   :  { %v44393_v22 = vpack.c.bf16 %v13938_v28, %v13935_v0  ;;  %v14033_v23 = vsub.f32 %v13926_v40, %v13935_v0  ;;  %v14021_v30 = vsub.f32 %v14019_v8, %v14020_v32  ;;  %v40691_v31 = vpack.c.bf16 %v14027_v34, %v14020_v32 }
 0xbc7   :  { %v14041_v15 = vand.u32 4294901760, %v14040_v19  ;;  %v14029_v33 = vand.u32 4294901760, %v14028_v47  ;;  %v40723_v45 = vpack.c.bf16 %v14568_v59, %v14561_v1  ;;  %v14983_v8 = vand.u32 4294901760, %v34495_v10 }
 0xbc8   :  { %v14034_v35 = vand.u32 4294901760, %v14033_v23  ;;  %40664 = vmatprep.subr.bf16.mxu1 %v44393_v22  ;;  %v14022_v16 = vand.u32 4294901760, %v14021_v30  ;;  %v40679_v41 = vpack.c.bf16 %v14040_v19, %v14033_v23  ;;  %v15491_v60 = vand.u32 4294901760, %v14462_v58 }
 0xbc9   :  { %40666 = vmatpush3.bf16.msra.mxu1 %v44393_v22  ;;  %v14042_v43 = vsub.f32 %v14040_v19, %v14041_v15  ;;  %v15071_v34 = vsub.f32 %v34495_v10, %v14983_v8  ;;  %v15485_v38 = vsel %vm14464_vm3, %v44409_v26, 0 }
 0xbca   :  { %v40667_v25 = vpack.c.bf16 %v14029_v33, %v14022_v16  ;;  %v14035_v53 = vsub.f32 %v14033_v23, %v14034_v35  ;;  %v40695_v54 = vpack.c.bf16 %v14041_v15, %v14034_v35 }
 0xbcb   :  { %v14043_v39 = vand.u32 4294901760, %v14042_v43  ;;  %v15072_v32 = vand.u32 4294901760, %v15071_v34 }
 0xbcc   :  { %38010 = vmatmul.mubr.f32.vlgmr.msra.gmra.mrb[24].mxu1 %v47205_v37  ;;  %40668 = vmatprep.subr.bf16.mxu1 %v40667_v25  ;;  %v14036_v57 = vand.u32 4294901760, %v14035_v53 }
 0xbcd   :  { %40670 = vmatpush3.bf16.msra.mxu1 %v40667_v25  ;;  %38020 = vmatprep.mubr.f32.mxu1 %v47206_v27 }
 0xbce   :  { %v40671_v44 = vpack.c.bf16 %v14043_v39, %v14036_v57 }
 0xbd0   :  { %40672 = vmatprep.subr.bf16.mxu1 %v40671_v44 }
 0xbd1   :  { %40674 = vmatpush3.bf16.msra.mxu1 %v40671_v44 }
 0xbd2   :  { %40676 = vmatprep.subr.bf16.mxu1 %v40675_v29 }
 0xbd4   :  { %38021 = vmatmul.mubr.f32.vlgmr.msra.gmra.mrb[24].mxu1 %v47207_v3 }
 0xbd5   :  { %40678 = vmatpush3.bf16.msra.mxu1 %v40675_v29  ;;  %38031 = vmatprep.mubr.f32.mxu1 %v47208_v63  ;;  %v15073_v29 = vsub.f32 %v15071_v34, %v15072_v32 }
 0xbd6   :  { %40680 = vmatprep.subr.bf16.mxu1 %v40679_v41 }
 0xbd7   :  { %v15074_v47 = vand.u32 4294901760, %v15073_v29 }
 0xbd9   :  { %40682 = vmatpush3.bf16.msra.mxu1 %v40679_v41 }
 0xbda   :  { %40684 = vmatprep.subr.bf16.mxu1 %v44389_v7 }
 0xbdc   :  { %38032 = vmatmul.mubr.f32.vlgmr.msra.gmra.mrb[24].mxu1 %v47209_v36 }
 0xbdd   :  { %40686 = vmatpush3.bf16.msra.mxu1 %v44389_v7  ;;  %38042 = vmatprep.mubr.f32.mxu1 %v47210_v13 }
 0xbde   :  { %40688 = vmatprep.subr.bf16.mxu1 %v44393_v22 }
 0xbe1   :  { %40690 = vmatpush3.bf16.msra.mxu1 %v44393_v22 }
 0xbe2   :  { %40692 = vmatprep.subr.bf16.mxu1 %v40691_v31 }
 0xbe4   :  { %38043 = vmatmul.mubr.f32.vlgmr.msra.gmra.mrb[24].mxu1 %v47211_v42 }
 0xbe5   :  { %40694 = vmatpush3.bf16.msra.mxu1 %v40691_v31  ;;  %38053 = vmatprep.mubr.f32.mxu1 %v47206_v27 }
 0xbe6   :  { %40696 = vmatprep.subr.bf16.mxu1 %v40695_v54 }
 0xbe9   :  { %40698 = vmatpush3.bf16.msra.mxu1 %v40695_v54 }
 0xbea   :  { %40700 = vmatprep.subr.bf16.mxu1 %v44389_v7 }
 0xbec   :  { %38054 = vmatmul.mubr.f32.vlgmr.msra.gmra.mrb[24].mxu1 %v47207_v3 }
 0xbed   :  { %40702 = vmatpush3.bf16.msra.mxu1 %v44389_v7  ;;  %38064 = vmatprep.mubr.f32.mxu1 %v47206_v27  ;;  %v34496_v7 = vld [vmem:[%s46977_s7 + $0x18] sm:$0xff] }
 0xbee   :  { %40704 = vmatprep.subr.bf16.mxu1 %v44393_v22  ;;  %v14986_v40 = vand.u32 4294901760, %v34496_v7 }
 0xbf0   :  { %v15078_v28 = vsub.f32 %v34496_v7, %v14986_v40  ;;  %v44476_v23 = vpack.c.bf16 %v14986_v40, %v14983_v8  ;;  %v15488_v8 = vsel %vm14464_vm3, %v44406_v61, 0 }
 0xbf1   :  { %40706 = vmatpush3.bf16.msra.mxu1 %v44393_v22 }
 0xbf2   :  { %40708 = vmatprep.subr.bf16.mxu1 %v40707_v48  ;;  %v15079_v0 = vand.u32 4294901760, %v15078_v28  ;;  %v44483_v31 = vpack.c.bf16 %v15078_v28, %v15071_v34  ;;  %v15567_v34 = vand.u32 4294901760, %v15488_v8 }
 0xbf4   :  { %38065 = vmatmul.mubr.f32.vlgmr.msra.gmra.mrb[24].mxu1 %v47207_v3  ;;  %v15080_v19 = vsub.f32 %v15078_v28, %v15079_v0  ;;  %v44487_v15 = vpack.c.bf16 %v15079_v0, %v15072_v32 }
 0xbf5   :  { %40710 = vmatpush3.bf16.msra.mxu1 %v40707_v48  ;;  %38071 = vmatprep.mubr.f32.mxu1 %v44453_v20 }
 0xbf6   :  { %40712 = vmatprep.subr.bf16.mxu1 %v40711_v56  ;;  %v15081_v22 = vand.u32 4294901760, %v15080_v19  ;;  %v15568_v19 = vsub.f32 %v15488_v8, %v15567_v34 }
 0xbf8   :  { %38072 = vmatmul.mubr.f32.vlgmr.msra.gmra.mrb[26].mxu1 %v44456_v46  ;;  %v44478_v30 = vpack.c.bf16 %v15081_v22, %v15074_v47 }
 0xbf9   :  { %40714 = vmatpush3.bf16.msra.mxu1 %v40711_v56  ;;  %38078 = vmatprep.mubr.f32.mxu1 %v44422_v51  ;;  %v15579_v56 = vsub.f32 %v14462_v58, %v15491_v60 }
 0xbfa   :  { %40716 = vmatprep.subr.bf16.mxu1 %v40715_v11  ;;  %40736 = vmatprep.subr.bf16.mxu0 %v44478_v30 }
 0xbfb   :  { %40738 = vmatpush3.bf16.msra.mxu0 %v44478_v30  ;;  %v15580_v10 = vand.u32 4294901760, %v15579_v56 }
 0xbfc   :  { %40740 = vmatprep.subr.bf16.mxu0 %v44483_v31 }
 0xbfd   :  { %v15581_v32 = vsub.f32 %v15579_v56, %v15580_v10 }
 0xbff   :  { %v15582_v47 = vand.u32 4294901760, %v15581_v32 }
 0xc00   :  { %38079 = vmatmul.mubr.f32.vlgmr.msra.gmra.mrb[26].mxu1 %v44428_v55 }
 0xc01   :  { %40718 = vmatpush3.bf16.msra.mxu1 %v40715_v11  ;;  %38085 = vmatprep.mubr.f32.mxu1 %v44432_v6 }
 0xc02   :  { %40720 = vmatprep.subr.bf16.mxu1 %v40707_v48 }
 0xc08   :  { %38086 = vmatmul.mubr.f32.vlgmr.msra.gmra.mrb[26].mxu1 %v44435_v50 }
 0xc09   :  { %40722 = vmatpush3.bf16.msra.mxu1 %v40707_v48  ;;  %38092 = vmatprep.mubr.f32.mxu1 %v44438_v5 }
 0xc0a   :  { %40724 = vmatprep.subr.bf16.mxu1 %v40723_v45 }
 0xc10   :  { %38093 = vmatmul.mubr.f32.vlgmr.msra.gmra.mrb[26].mxu1 %v44443_v18 }
 0xc11   :  { %40726 = vmatpush3.bf16.msra.mxu1 %v40723_v45  ;;  %38099 = vmatprep.mubr.f32.mxu1 %v44422_v51  ;;  %v44534_v45 = vand.u32 4294901760, %v15485_v38 }
 0xc12   :  { %40728 = vmatprep.subr.bf16.mxu1 %v40707_v48 }
 0xc13   :  { %v15558_v40 = vsub.f32 %v15485_v38, %v44534_v45 }
 0xc15   :  { %v15559_v29 = vand.u32 4294901760, %v15558_v40 }
 0xc18   :  { %38100 = vmatmul.mubr.f32.vlgmr.msra.gmra.mrb[26].mxu1 %v44428_v55 }
 0xc19   :  { %40730 = vmatpush3.bf16.msra.mxu1 %v40707_v48  ;;  %38106 = vmatprep.mubr.f32.mxu1 %v44422_v51  ;;  %v14463_v48 = vld [vmem:[%s46977_s7 + $0x8] sm:$0xff] }
 0xc1a   :  { %40732 = vmatprep.subr.bf16.mxu1 %v44476_v23  ;;  %v15494_v9 = vand.u32 4294901760, %v14463_v48 }
 0xc1c   :  { %v15586_v11 = vsub.f32 %v14463_v48, %v15494_v9  ;;  %v44545_v28 = vpack.c.bf16 %v15494_v9, %v15491_v60 }
 0xc1e   :  { %v15587_v7 = vand.u32 4294901760, %v15586_v11 }
 0xc20   :  { %38107 = vmatmul.mubr.f32.vlgmr.msra.gmra.mrb[26].mxu1 %v44428_v55  ;;  %v15588_v0 = vsub.f32 %v15586_v11, %v15587_v7 }
 0xc21   :  { %40734 = vmatpush3.bf16.msra.mxu1 %v44476_v23 }
 0xc22   :  { %v15589_v22 = vand.u32 4294901760, %v15588_v0 }
 0xcc7   :  { %v44489_v33 = vpop.f32.mrb[24].mxu1 }
 0xcc8   :  { %v44491_v35 = vpop.f32.mrb[25].mxu1 }
 0xcf3   :  { %v44493_v16 = vpop.f32.mrb[26].mxu1 }
 0xcf4   :  { %v14980_v41 = vsel %vm14464_vm3, %v44493_v16, 0  ;;  %v15996_v43 = vand.u32 4294901760, %v44493_v16  ;;  %v44498_v25 = vpop.f32.mrb[27].mxu1 }
 0xcf5   :  { %v44500_v53 = vand.u32 4294901760, %v14980_v41  ;;  %v14977_v54 = vsel %vm14464_vm3, %v44498_v25, 0  ;;  %v15993_v39 = vand.u32 4294901760, %v44498_v25 }
 0xcf6   :  { %v16088_v37 = vsub.f32 %v44493_v16, %v15996_v43  ;;  %v44506_v57 = vand.u32 4294901760, %v14977_v54 }
 0xcf7   :  { %v15060_v27 = vsub.f32 %v14980_v41, %v44500_v53  ;;  %v44509_v44 = vpack.c.bf16 %v15996_v43, %v15993_v39  ;;  %v16081_v3 = vsub.f32 %v44498_v25, %v15993_v39  ;;  %v15560_v41 = vsub.f32 %v15558_v40, %v15559_v29 }
 0xcf8   :  { %38120 = vmatprep.mubr.f32.mxu0 %v44506_v57  ;;  %v15050_v63 = vsub.f32 %v14977_v54, %v44506_v57  ;;  %v16089_v62 = vand.u32 4294901760, %v16088_v37  ;;  %v15569_v43 = vand.u32 4294901760, %v15568_v19  ;;  %v44555_v54 = vpack.c.bf16 %v15589_v22, %v15582_v47 }
 0xcf9   :  { %38121 = vmatmul.mubr.f32.vlgmr.msra.gmra.mrb[26].mxu0 %v44500_v53  ;;  %40780 = vmatprep.subr.bf16.mxu1 %v44509_v44  ;;  %v15061_v36 = vand.u32 4294901760, %v15060_v27  ;;  %v16082_v13 = vand.u32 4294901760, %v16081_v3  ;;  %v40787_v12 = vpack.c.bf16 %v16088_v37, %v16081_v3  ;;  %v15561_v39 = vand.u32 4294901760, %v15560_v41 }
 0xcfa   :  { %38127 = vmatprep.mubr.f32.mxu0 %v15050_v63  ;;  %40742 = vmatpush3.bf16.msra.mxu0 %v44483_v31  ;;  %v15051_v17 = vand.u32 4294901760, %v15050_v63  ;;  %v16090_v21 = vsub.f32 %v16088_v37, %v16089_v62  ;;  %v15570_v37 = vsub.f32 %v15568_v19, %v15569_v43 }
 0xcfb   :  { %v15062_v52 = vsub.f32 %v15060_v27, %v15061_v36  ;;  %v16083_v49 = vsub.f32 %v16081_v3, %v16082_v13  ;;  %40744 = vmatprep.subr.bf16.mxu0 %v44476_v23  ;;  %v44518_v24 = vpack.c.bf16 %v16089_v62, %v16082_v13  ;;  %v34498_v3 = vld [vmem:[%s46977_s7 + $0x28] sm:$0xff] }
 0xcfc   :  { %v15052_v14 = vsub.f32 %v15050_v63, %v15051_v17  ;;  %v16091_v42 = vand.u32 4294901760, %v16090_v21  ;;  %v16511_v62 = vand.u32 4294901760, %v34498_v3 }
 0xcfd   :  { %v16084_v1 = vand.u32 4294901760, %v16083_v49  ;;  %v15063_v2 = vand.u32 4294901760, %v15062_v52 }
 0xcfe   :  { %v15053_v59 = vand.u32 4294901760, %v15052_v14 }
 0xcff   :  { %v40783_v4 = vpack.c.bf16 %v16091_v42, %v16084_v1 }
 0xd00   :  { %38113 = vmatprep.mubr.f32.mxu1 %v15053_v59 }
 0xd01   :  { %38114 = vmatmul.mubr.f32.vlgmr.msra.gmra.mrb[28].mxu1 %v15063_v2  ;;  %38128 = vmatmul.mubr.f32.vlgmr.msra.gmra.mrb[26].mxu0 %v15060_v27  ;;  %v44564_v27 = vpack.c.bf16 %v15586_v11, %v15579_v56 }
 0xd02   :  { %40782 = vmatpush3.bf16.msra.mxu1 %v44509_v44  ;;  %38134 = vmatprep.mubr.f32.mxu0 %v15051_v17 }
 0xd03   :  { %40784 = vmatprep.subr.bf16.mxu1 %v40783_v4  ;;  %38197 = vmatprep.mubr.f32.mxu1 %v44453_v20 }
 0xd04   :  { %40746 = vmatpush3.bf16.msra.mxu0 %v44476_v23 }
 0xd05   :  { %38198 = vmatmul.mubr.f32.vlgmr.msra.gmra.mrb[30].mxu1 %v44456_v46  ;;  %40748 = vmatprep.subr.bf16.mxu0 %v44487_v15 }
 0xd06   :  { %40786 = vmatpush3.bf16.msra.mxu1 %v40783_v4  ;;  %38204 = vmatprep.mubr.f32.mxu1 %v44422_v51 }
 0xd07   :  { %40788 = vmatprep.subr.bf16.mxu1 %v40787_v12 }
 0xd09   :  { %38135 = vmatmul.mubr.f32.vlgmr.msra.gmra.mrb[26].mxu0 %v15061_v36 }
 0xd0a   :  { %38141 = vmatprep.mubr.f32.mxu0 %v44506_v57  ;;  %40750 = vmatpush3.bf16.msra.mxu0 %v44487_v15 }
 0xd0b   :  { %40752 = vmatprep.subr.bf16.mxu0 %v44476_v23 }
 0xd0d   :  { %38205 = vmatmul.mubr.f32.vlgmr.msra.gmra.mrb[30].mxu1 %v44428_v55 }
 0xd0e   :  { %40790 = vmatpush3.bf16.msra.mxu1 %v40787_v12  ;;  %38211 = vmatprep.mubr.f32.mxu1 %v44432_v6  ;;  %v16603_v12 = vsub.f32 %v34498_v3, %v16511_v62 }
 0xd0f   :  { %40792 = vmatprep.subr.bf16.mxu1 %v44509_v44 }
 0xd10   :  { %v16604_v21 = vand.u32 4294901760, %v16603_v12 }
 0xd11   :  { %38142 = vmatmul.mubr.f32.vlgmr.msra.gmra.mrb[26].mxu0 %v44500_v53 }
 0xd12   :  { %38148 = vmatprep.mubr.f32.mxu0 %v44506_v57  ;;  %40754 = vmatpush3.bf16.msra.mxu0 %v44476_v23  ;;  %v15571_v57 = vand.u32 4294901760, %v15570_v37  ;;  %v16605_v49 = vsub.f32 %v16603_v12, %v16604_v21 }
 0xd13   :  { %40756 = vmatprep.subr.bf16.mxu0 %v44545_v28 }
 0xd14   :  { %v16606_v14 = vand.u32 4294901760, %v16605_v49 }
 0xd15   :  { %38212 = vmatmul.mubr.f32.vlgmr.msra.gmra.mrb[30].mxu1 %v44435_v50 }
 0xd16   :  { %40794 = vmatpush3.bf16.msra.mxu1 %v44509_v44  ;;  %38218 = vmatprep.mubr.f32.mxu1 %v44438_v5 }
 0xd17   :  { %40796 = vmatprep.subr.bf16.mxu1 %v44518_v24 }
 0xd19   :  { %38149 = vmatmul.mubr.f32.vlgmr.msra.gmra.mrb[26].mxu0 %v44500_v53  ;;  %v44576_v53 = vpack.c.bf16 %v15587_v7, %v15580_v10 }
 0xd1a   :  { %38155 = vmatprep.mubr.f32.mxu0 %v15561_v39  ;;  %40758 = vmatpush3.bf16.msra.mxu0 %v44545_v28 }
 0xd1b   :  { %40760 = vmatprep.subr.bf16.mxu0 %v44555_v54 }
 0xd1d   :  { %38219 = vmatmul.mubr.f32.vlgmr.msra.gmra.mrb[30].mxu1 %v44443_v18 }
 0xd1e   :  { %40798 = vmatpush3.bf16.msra.mxu1 %v44518_v24  ;;  %38225 = vmatprep.mubr.f32.mxu1 %v44422_v51 }
 0xd1f   :  { %40800 = vmatprep.subr.bf16.mxu1 %v44509_v44 }
 0xd21   :  { %38156 = vmatmul.mubr.f32.vlgmr.msra.gmra.mrb[26].mxu0 %v15571_v57 }
 0xd22   :  { %38162 = vmatprep.mubr.f32.mxu0 %v44534_v45  ;;  %40762 = vmatpush3.bf16.msra.mxu0 %v44555_v54 }
 0xd23   :  { %40764 = vmatprep.subr.bf16.mxu0 %v44564_v27 }
 0xd25   :  { %38226 = vmatmul.mubr.f32.vlgmr.msra.gmra.mrb[30].mxu1 %v44428_v55 }
 0xd26   :  { %40802 = vmatpush3.bf16.msra.mxu1 %v44509_v44  ;;  %38232 = vmatprep.mubr.f32.mxu1 %v44422_v51  ;;  %v34497_v44 = vld [vmem:[%s46977_s7 + $0x20] sm:$0xff] }
 0xd27   :  { %v16508_v63 = vand.u32 4294901760, %v34497_v44 }
 0xd29   :  { %38163 = vmatmul.mubr.f32.vlgmr.msra.gmra.mrb[26].mxu0 %v15567_v34  ;;  %v44591_v36 = vpack.c.bf16 %v16511_v62, %v16508_v63  ;;  %v16596_v13 = vsub.f32 %v34497_v44, %v16508_v63 }
 0xd2a   :  { %38169 = vmatprep.mubr.f32.mxu0 %v15558_v40  ;;  %40766 = vmatpush3.bf16.msra.mxu0 %v44564_v27 }
 0xd2b   :  { %40768 = vmatprep.subr.bf16.mxu0 %v44545_v28  ;;  %v16597_v17 = vand.u32 4294901760, %v16596_v13  ;;  %v44598_v1 = vpack.c.bf16 %v16603_v12, %v16596_v13 }
 0xd2d   :  { %38233 = vmatmul.mubr.f32.vlgmr.msra.gmra.mrb[30].mxu1 %v44428_v55  ;;  %v16598_v52 = vsub.f32 %v16596_v13, %v16597_v17  ;;  %v44600_v59 = vpack.c.bf16 %v16604_v21, %v16597_v17  ;;  %v34499_v17 = vld [vmem:[%s46977_s7 + $0x30] sm:$0xff]  ;;  %v34500_v21 = vld [vmem:[%s46977_s7 + $0x38] sm:$0xff] }
 0xd2e   :  { %38281 = vmatprep.mubr.f32.mxu1 %v44453_v20  ;;  %v17530_v49 = vand.u32 4294901760, %v34500_v21 }
 0xd2f   :  { %v16599_v24 = vand.u32 4294901760, %v16598_v52  ;;  %v17527_v52 = vand.u32 4294901760, %v34499_v17 }
 0xd31   :  { %38170 = vmatmul.mubr.f32.vlgmr.msra.gmra.mrb[26].mxu0 %v15568_v19  ;;  %v44595_v42 = vpack.c.bf16 %v16606_v14, %v16599_v24  ;;  %v44653_v24 = vpack.c.bf16 %v17530_v49, %v17527_v52  ;;  %v17615_v14 = vsub.f32 %v34499_v17, %v17527_v52 }
 0xd32   :  { %38176 = vmatprep.mubr.f32.mxu0 %v15559_v29  ;;  %40770 = vmatpush3.bf16.msra.mxu0 %v44545_v28 }
 0xd33   :  { %40772 = vmatprep.subr.bf16.mxu0 %v44576_v53 }
 0xd39   :  { %38177 = vmatmul.mubr.f32.vlgmr.msra.gmra.mrb[26].mxu0 %v15569_v43 }
 0xd3a   :  { %38183 = vmatprep.mubr.f32.mxu0 %v44534_v45  ;;  %40774 = vmatpush3.bf16.msra.mxu0 %v44576_v53 }
 0xd3b   :  { %40776 = vmatprep.subr.bf16.mxu0 %v44545_v28 }
 0xd41   :  { %38184 = vmatmul.mubr.f32.vlgmr.msra.gmra.mrb[26].mxu0 %v15567_v34 }
 0xd42   :  { %38190 = vmatprep.mubr.f32.mxu0 %v44534_v45  ;;  %40778 = vmatpush3.bf16.msra.mxu0 %v44545_v28 }
 0xd43   :  { %40804 = vmatprep.subr.bf16.mxu0 %v44591_v36 }
 0xd49   :  { %38191 = vmatmul.mubr.f32.vlgmr.msra.gmra.mrb[26].mxu0 %v15567_v34 }
 0xd4a   :  { %40806 = vmatpush3.bf16.msra.mxu0 %v44591_v36 }
 0xd4b   :  { %40808 = vmatprep.subr.bf16.mxu0 %v44595_v42 }
 0xdd4   :  { %v44602_v2 = vpop.f32.mrb[28].mxu1 }
 0xdd5   :  { %v44604_v4 = vpop.f32.mrb[29].mxu1 }
 0xe00   :  { %v38234_v58 = vpop.f32.mrb[30].mxu1 }
 0xe01   :  { %v16495_v48 = vmul.f32 2.0, %v38234_v58  ;;  %v16484_v60 = vpop.f32.mrb[31].mxu1  ;;  %v17622_v58 = vsub.f32 %v34500_v21, %v17530_v49 }
 0xe02   :  { %v16494_v9 = vmul.f32 2.0, %v16484_v60 }
 0xe03   :  { %v44607_v38 = vsub.f32 %v16495_v48, %v44406_v61  ;;  %v17616_v48 = vand.u32 4294901760, %v17615_v14  ;;  %v17623_v60 = vand.u32 4294901760, %v17622_v58 }
 0xe04   :  { %v44610_v56 = vsub.f32 %v16494_v9, %v44409_v26 }
 0xe05   :  { %v16505_v11 = vsel %vm14464_vm3, %v44607_v38, 0  ;;  %v17015_v45 = vand.u32 4294901760, %v44607_v38  ;;  %v17617_v9 = vsub.f32 %v17615_v14, %v17616_v48 }
 0xe06   :  { %v44615_v10 = vand.u32 4294901760, %v16505_v11  ;;  %v17012_v7 = vand.u32 4294901760, %v44610_v56  ;;  %v16502_v8 = vsel %vm14464_vm3, %v44610_v56, 0 }
 0xe07   :  { %v17107_v40 = vsub.f32 %v44607_v38, %v17015_v45  ;;  %v16574_v34 = vand.u32 4294901760, %v16502_v8 }
 0xe08   :  { %v16585_v61 = vsub.f32 %v16505_v11, %v44615_v10  ;;  %v40827_v32 = vpack.c.bf16 %v17015_v45, %v17012_v7  ;;  %v17100_v26 = vsub.f32 %v44610_v56, %v17012_v7  ;;  %v17624_v11 = vsub.f32 %v17622_v58, %v17623_v60 }
 0xe09   :  { %v16575_v0 = vsub.f32 %v16502_v8, %v16574_v34  ;;  %v17108_v29 = vand.u32 4294901760, %v17107_v40  ;;  %v17618_v45 = vand.u32 4294901760, %v17617_v9  ;;  %v44660_v8 = vpack.c.bf16 %v17622_v58, %v17615_v14 }
 0xe0a   :  { %40828 = vmatprep.subr.bf16.mxu1 %v40827_v32  ;;  %v16586_v19 = vand.u32 4294901760, %v16585_v61  ;;  %v17101_v47 = vand.u32 4294901760, %v17100_v26  ;;  %v40835_v13 = vpack.c.bf16 %v17107_v40, %v17100_v26 }
 0xe0b   :  { %40830 = vmatpush3.bf16.msra.mxu1 %v40827_v32  ;;  %v16576_v22 = vand.u32 4294901760, %v16575_v0  ;;  %v17109_v41 = vsub.f32 %v17107_v40, %v17108_v29  ;;  %v44662_v40 = vpack.c.bf16 %v17623_v60, %v17616_v48 }
 0xe0c   :  { %v16587_v43 = vsub.f32 %v16585_v61, %v16586_v19  ;;  %v17102_v39 = vsub.f32 %v17100_v26, %v17101_v47  ;;  %v40843_v12 = vpack.c.bf16 %v17108_v29, %v17101_v47 }
 0xe0d   :  { %v16577_v37 = vsub.f32 %v16575_v0, %v16576_v22  ;;  %v17110_v57 = vand.u32 4294901760, %v17109_v41 }
 0xe0e   :  { %38282 = vmatmul.mubr.f32.vlgmr.msra.gmra.mrb[32].mxu1 %v44456_v46  ;;  %v17103_v44 = vand.u32 4294901760, %v17102_v39  ;;  %v16588_v63 = vand.u32 4294901760, %v16587_v43 }
 0xe0f   :  { %v16578_v3 = vand.u32 4294901760, %v16577_v37  ;;  %38288 = vmatprep.mubr.f32.mxu1 %v44422_v51 }
 0xe10   :  { %v40831_v62 = vpack.c.bf16 %v17110_v57, %v17103_v44 }
 0xe11   :  { %38239 = vmatprep.mubr.f32.mxu0 %v16578_v3 }
 0xe12   :  { %38240 = vmatmul.mubr.f32.vlgmr.msra.gmra.mrb[26].mxu0 %v16588_v63  ;;  %40832 = vmatprep.subr.bf16.mxu1 %v40831_v62 }
 0xe13   :  { %38246 = vmatprep.mubr.f32.mxu0 %v16574_v34  ;;  %40834 = vmatpush3.bf16.msra.mxu1 %v40831_v62 }
 0xe14   :  { %40836 = vmatprep.subr.bf16.mxu1 %v40835_v13  ;;  %40810 = vmatpush3.bf16.msra.mxu0 %v44595_v42 }
 0xe15   :  { %40812 = vmatprep.subr.bf16.mxu0 %v44598_v1 }
 0xe16   :  { %38289 = vmatmul.mubr.f32.vlgmr.msra.gmra.mrb[32].mxu1 %v44428_v55 }
 0xe17   :  { %40838 = vmatpush3.bf16.msra.mxu1 %v40835_v13  ;;  %38295 = vmatprep.mubr.f32.mxu1 %v44432_v6 }
 0xe18   :  { %40840 = vmatprep.subr.bf16.mxu1 %v40827_v32 }
 0xe1a   :  { %38247 = vmatmul.mubr.f32.vlgmr.msra.gmra.mrb[26].mxu0 %v44615_v10 }
 0xe1b   :  { %38253 = vmatprep.mubr.f32.mxu0 %v16575_v0  ;;  %40814 = vmatpush3.bf16.msra.mxu0 %v44598_v1 }
 0xe1c   :  { %40816 = vmatprep.subr.bf16.mxu0 %v44591_v36 }
 0xe1e   :  { %38296 = vmatmul.mubr.f32.vlgmr.msra.gmra.mrb[32].mxu1 %v44435_v50 }
 0xe1f   :  { %40842 = vmatpush3.bf16.msra.mxu1 %v40827_v32  ;;  %38302 = vmatprep.mubr.f32.mxu1 %v44438_v5 }
 0xe20   :  { %40844 = vmatprep.subr.bf16.mxu1 %v40843_v12 }
 0xe22   :  { %38254 = vmatmul.mubr.f32.vlgmr.msra.gmra.mrb[26].mxu0 %v16585_v61 }
 0xe23   :  { %38260 = vmatprep.mubr.f32.mxu0 %v16576_v22  ;;  %40818 = vmatpush3.bf16.msra.mxu0 %v44591_v36 }
 0xe24   :  { %40820 = vmatprep.subr.bf16.mxu0 %v44600_v59 }
 0xe26   :  { %38303 = vmatmul.mubr.f32.vlgmr.msra.gmra.mrb[32].mxu1 %v44443_v18 }
 0xe27   :  { %40846 = vmatpush3.bf16.msra.mxu1 %v40843_v12  ;;  %38309 = vmatprep.mubr.f32.mxu1 %v44422_v51 }
 0xe28   :  { %40848 = vmatprep.subr.bf16.mxu1 %v40827_v32 }
 0xe2a   :  { %38261 = vmatmul.mubr.f32.vlgmr.msra.gmra.mrb[26].mxu0 %v16586_v19 }
 0xe2b   :  { %38267 = vmatprep.mubr.f32.mxu0 %v16574_v34  ;;  %40822 = vmatpush3.bf16.msra.mxu0 %v44600_v59 }
 0xe2c   :  { %40824 = vmatprep.subr.bf16.mxu0 %v44591_v36 }
 0xe2e   :  { %38310 = vmatmul.mubr.f32.vlgmr.msra.gmra.mrb[32].mxu1 %v44428_v55 }
 0xe2f   :  { %40850 = vmatpush3.bf16.msra.mxu1 %v40827_v32  ;;  %38316 = vmatprep.mubr.f32.mxu1 %v44422_v51 }
 0xe32   :  { %38268 = vmatmul.mubr.f32.vlgmr.msra.gmra.mrb[26].mxu0 %v44615_v10 }
 0xe33   :  { %38274 = vmatprep.mubr.f32.mxu0 %v16574_v34  ;;  %40826 = vmatpush3.bf16.msra.mxu0 %v44591_v36 }
 0xe34   :  { %40852 = vmatprep.subr.bf16.mxu0 %v44653_v24 }
 0xe36   :  { %38317 = vmatmul.mubr.f32.vlgmr.msra.gmra.mrb[32].mxu1 %v44428_v55 }
 0xe37   :  { %38365 = vmatprep.mubr.f32.mxu1 %v44453_v20 }
 0xe3a   :  { %38275 = vmatmul.mubr.f32.vlgmr.msra.gmra.mrb[26].mxu0 %v44615_v10  ;;  %v17625_v10 = vand.u32 4294901760, %v17624_v11 }
 0xe3b   :  { %40854 = vmatpush3.bf16.msra.mxu0 %v44653_v24 }
 0xe3c   :  { %v44657_v7 = vpack.c.bf16 %v17625_v10, %v17618_v45  ;;  %v34501_v45 = vld [vmem:[%s46977_s7 + $0x40] sm:$0xff]  ;;  %v34502_v10 = vld [vmem:[%s46977_s7 + $0x48] sm:$0xff] }
 0xe3e   :  { %40856 = vmatprep.subr.bf16.mxu0 %v44657_v7 }
 0xf09   :  { %v38318_v34 = vpop.f32.mrb[32].mxu1 }
 0xf0a   :  { %v17514_v61 = vmul.f32 2.0, %v38318_v34  ;;  %v17503_v32 = vpop.f32.mrb[33].mxu1  ;;  %v18546_v34 = vand.u32 4294901760, %v34501_v45 }
 0xf0b   :  { %v17513_v26 = vmul.f32 2.0, %v17503_v32 }
 0xf0c   :  { %v44665_v0 = vsub.f32 %v17514_v61, %v44493_v16  ;;  %v18549_v61 = vand.u32 4294901760, %v34502_v10 }
 0xf0d   :  { %v44668_v29 = vsub.f32 %v17513_v26, %v44498_v25  ;;  %v18634_v26 = vsub.f32 %v34501_v45, %v18546_v34 }
 0xf0e   :  { %v17524_v19 = vsel %vm14464_vm3, %v44665_v0, 0  ;;  %v18034_v47 = vand.u32 4294901760, %v44665_v0  ;;  %v44711_v32 = vpack.c.bf16 %v18549_v61, %v18546_v34 }
 0xf0f   :  { %v44673_v22 = vand.u32 4294901760, %v17524_v19  ;;  %v18031_v41 = vand.u32 4294901760, %v44668_v29  ;;  %v17521_v43 = vsel %vm14464_vm3, %v44668_v29, 0 }
 0xf10   :  { %v18126_v39 = vsub.f32 %v44665_v0, %v18034_v47  ;;  %v17593_v37 = vand.u32 4294901760, %v17521_v43 }
 0xf11   :  { %v17604_v16 = vsub.f32 %v17524_v19, %v44673_v22  ;;  %v40875_v57 = vpack.c.bf16 %v18034_v47, %v18031_v41  ;;  %v18119_v25 = vsub.f32 %v44668_v29, %v18031_v41  ;;  %v18641_v19 = vsub.f32 %v34502_v10, %v18549_v61 }
 0xf12   :  { %v17594_v44 = vsub.f32 %v17521_v43, %v17593_v37  ;;  %v18127_v3 = vand.u32 4294901760, %v18126_v39  ;;  %v18635_v47 = vand.u32 4294901760, %v18634_v26 }
 0xf13   :  { %40876 = vmatprep.subr.bf16.mxu1 %v40875_v57  ;;  %v17605_v63 = vand.u32 4294901760, %v17604_v16  ;;  %v18120_v62 = vand.u32 4294901760, %v18119_v25  ;;  %v40883_v9 = vpack.c.bf16 %v18126_v39, %v18119_v25 }
 0xf14   :  { %40878 = vmatpush3.bf16.msra.mxu1 %v40875_v57  ;;  %v17595_v13 = vand.u32 4294901760, %v17594_v44  ;;  %v18128_v12 = vsub.f32 %v18126_v39, %v18127_v3  ;;  %v18636_v41 = vsub.f32 %v18634_v26, %v18635_v47 }
 0xf15   :  { %v17606_v17 = vsub.f32 %v17604_v16, %v17605_v63  ;;  %v18121_v21 = vsub.f32 %v18119_v25, %v18120_v62  ;;  %v40891_v11 = vpack.c.bf16 %v18127_v3, %v18120_v62 }
 0xf16   :  { %v17596_v52 = vsub.f32 %v17594_v44, %v17595_v13  ;;  %v18129_v49 = vand.u32 4294901760, %v18128_v12  ;;  %v18637_v39 = vand.u32 4294901760, %v18636_v41 }
 0xf17   :  { %38366 = vmatmul.mubr.f32.vlgmr.msra.gmra.mrb[34].mxu1 %v44456_v46  ;;  %v18122_v14 = vand.u32 4294901760, %v18121_v21  ;;  %v17607_v48 = vand.u32 4294901760, %v17606_v17 }
 0xf18   :  { %v17597_v58 = vand.u32 4294901760, %v17596_v52  ;;  %38372 = vmatprep.mubr.f32.mxu1 %v44422_v51 }
 0xf19   :  { %v40879_v60 = vpack.c.bf16 %v18129_v49, %v18122_v14 }
 0xf1a   :  { %38323 = vmatprep.mubr.f32.mxu0 %v17597_v58 }
 0xf1b   :  { %38324 = vmatmul.mubr.f32.vlgmr.msra.gmra.mrb[26].mxu0 %v17607_v48  ;;  %40880 = vmatprep.subr.bf16.mxu1 %v40879_v60 }
 0xf1c   :  { %38330 = vmatprep.mubr.f32.mxu0 %v17593_v37  ;;  %40882 = vmatpush3.bf16.msra.mxu1 %v40879_v60 }
 0xf1d   :  { %40884 = vmatprep.subr.bf16.mxu1 %v40883_v9  ;;  %40858 = vmatpush3.bf16.msra.mxu0 %v44657_v7 }
 0xf1e   :  { %40860 = vmatprep.subr.bf16.mxu0 %v44660_v8 }
 0xf1f   :  { %38373 = vmatmul.mubr.f32.vlgmr.msra.gmra.mrb[34].mxu1 %v44428_v55 }
 0xf20   :  { %40886 = vmatpush3.bf16.msra.mxu1 %v40883_v9  ;;  %38379 = vmatprep.mubr.f32.mxu1 %v44432_v6 }
 0xf21   :  { %40888 = vmatprep.subr.bf16.mxu1 %v40875_v57 }
 0xf23   :  { %38331 = vmatmul.mubr.f32.vlgmr.msra.gmra.mrb[26].mxu0 %v44673_v22 }
 0xf24   :  { %38337 = vmatprep.mubr.f32.mxu0 %v17594_v44  ;;  %40862 = vmatpush3.bf16.msra.mxu0 %v44660_v8 }
 0xf25   :  { %40864 = vmatprep.subr.bf16.mxu0 %v44653_v24 }
 0xf27   :  { %38380 = vmatmul.mubr.f32.vlgmr.msra.gmra.mrb[34].mxu1 %v44435_v50 }
 0xf28   :  { %40890 = vmatpush3.bf16.msra.mxu1 %v40875_v57  ;;  %38386 = vmatprep.mubr.f32.mxu1 %v44438_v5 }
 0xf29   :  { %40892 = vmatprep.subr.bf16.mxu1 %v40891_v11 }
 0xf2b   :  { %38338 = vmatmul.mubr.f32.vlgmr.msra.gmra.mrb[26].mxu0 %v17604_v16 }
 0xf2c   :  { %38344 = vmatprep.mubr.f32.mxu0 %v17595_v13  ;;  %40866 = vmatpush3.bf16.msra.mxu0 %v44653_v24 }
 0xf2d   :  { %40868 = vmatprep.subr.bf16.mxu0 %v44662_v40 }
 0xf2f   :  { %38387 = vmatmul.mubr.f32.vlgmr.msra.gmra.mrb[34].mxu1 %v44443_v18 }
 0xf30   :  { %40894 = vmatpush3.bf16.msra.mxu1 %v40891_v11  ;;  %38393 = vmatprep.mubr.f32.mxu1 %v44422_v51 }
 0xf31   :  { %40896 = vmatprep.subr.bf16.mxu1 %v40875_v57 }
 0xf33   :  { %38345 = vmatmul.mubr.f32.vlgmr.msra.gmra.mrb[26].mxu0 %v17605_v63 }
 0xf34   :  { %38351 = vmatprep.mubr.f32.mxu0 %v17593_v37  ;;  %40870 = vmatpush3.bf16.msra.mxu0 %v44662_v40 }
 0xf35   :  { %40872 = vmatprep.subr.bf16.mxu0 %v44653_v24 }
 0xf37   :  { %38394 = vmatmul.mubr.f32.vlgmr.msra.gmra.mrb[34].mxu1 %v44428_v55 }
 0xf38   :  { %40898 = vmatpush3.bf16.msra.mxu1 %v40875_v57  ;;  %38400 = vmatprep.mubr.f32.mxu1 %v44422_v51  ;;  %v44718_v57 = vpack.c.bf16 %v18641_v19, %v18634_v26 }
 0xf3b   :  { %38352 = vmatmul.mubr.f32.vlgmr.msra.gmra.mrb[26].mxu0 %v44673_v22 }
 0xf3c   :  { %38358 = vmatprep.mubr.f32.mxu0 %v17593_v37  ;;  %40874 = vmatpush3.bf16.msra.mxu0 %v44653_v24 }
 0xf3d   :  { %40900 = vmatprep.subr.bf16.mxu0 %v44711_v32 }
 0xf3f   :  { %38401 = vmatmul.mubr.f32.vlgmr.msra.gmra.mrb[34].mxu1 %v44428_v55 }
 0xf40   :  { %38449 = vmatprep.mubr.f32.mxu1 %v44453_v20 }
 0xf43   :  { %38359 = vmatmul.mubr.f32.vlgmr.msra.gmra.mrb[26].mxu0 %v44673_v22  ;;  %v18642_v22 = vand.u32 4294901760, %v18641_v19 }
 0xf44   :  { %40902 = vmatpush3.bf16.msra.mxu0 %v44711_v32 }
 0xf45   :  { %v18643_v43 = vsub.f32 %v18641_v19, %v18642_v22  ;;  %v44720_v25 = vpack.c.bf16 %v18642_v22, %v18635_v47 }
 0xf47   :  { %v18644_v37 = vand.u32 4294901760, %v18643_v43 }
 0xf49   :  { %v44715_v16 = vpack.c.bf16 %v18644_v37, %v18637_v39 }
 0xf4b   :  { %40904 = vmatprep.subr.bf16.mxu0 %v44715_v16 }
0x1012   :  { %v38402_v44 = vpop.f32.mrb[34].mxu1 }
0x1013   :  { %v18533_v3 = vmul.f32 2.0, %v38402_v44  ;;  %v18522_v63 = vpop.f32.mrb[35].mxu1 }
0x1014   :  { %v18532_v62 = vmul.f32 2.0, %v18522_v63  ;;  %v34503_v63 = vld [vmem:[%s46977_s7 + $0x50] sm:$0xff] }
0x1015   :  { %v18535_v13 = vsub.f32 %v18533_v3, %v44607_v38 }
0x1016   :  { %v18534_v12 = vsub.f32 %v18532_v62, %v44610_v56  ;;  %v34504_v62 = vld [vmem:[%s46977_s7 + $0x58] sm:$0xff] }
0x1017   :  { %v18543_v17 = vsel %vm14464_vm3, %v18535_v13, 0  ;;  %v19053_v21 = vand.u32 4294901760, %v18535_v13 }
0x1018   :  { %v44725_v52 = vand.u32 4294901760, %v18543_v17  ;;  %v18540_v49 = vsel %vm14464_vm3, %v18534_v12, 0  ;;  %v19050_v14 = vand.u32 4294901760, %v18534_v12 }
0x1019   :  { %v19145_v58 = vsub.f32 %v18535_v13, %v19053_v21  ;;  %v18612_v48 = vand.u32 4294901760, %v18540_v49  ;;  %v19565_v13 = vand.u32 4294901760, %v34503_v63 }
0x101a   :  { %v18623_v60 = vsub.f32 %v18543_v17, %v44725_v52  ;;  %v40923_v9 = vpack.c.bf16 %v19053_v21, %v19050_v14  ;;  %v19138_v11 = vsub.f32 %v18534_v12, %v19050_v14  ;;  %v19568_v12 = vand.u32 4294901760, %v34504_v62 }
0x101b   :  { %v18613_v45 = vsub.f32 %v18540_v49, %v18612_v48  ;;  %v19146_v10 = vand.u32 4294901760, %v19145_v58  ;;  %v19653_v21 = vsub.f32 %v34503_v63, %v19565_v13 }
0x101c   :  { %40924 = vmatprep.subr.bf16.mxu1 %v40923_v9  ;;  %v18624_v38 = vand.u32 4294901760, %v18623_v60  ;;  %v19139_v34 = vand.u32 4294901760, %v19138_v11  ;;  %v40931_v56 = vpack.c.bf16 %v19145_v58, %v19138_v11  ;;  %v44758_v17 = vpack.c.bf16 %v19568_v12, %v19565_v13 }
0x101d   :  { %40926 = vmatpush3.bf16.msra.mxu1 %v40923_v9  ;;  %v18614_v61 = vand.u32 4294901760, %v18613_v45  ;;  %v19147_v26 = vsub.f32 %v19145_v58, %v19146_v10  ;;  %v19660_v49 = vsub.f32 %v34504_v62, %v19568_v12  ;;  %v19654_v14 = vand.u32 4294901760, %v19653_v21 }
0x101e   :  { %v18625_v19 = vsub.f32 %v18623_v60, %v18624_v38  ;;  %v19140_v47 = vsub.f32 %v19138_v11, %v19139_v34  ;;  %v40939_v22 = vpack.c.bf16 %v19146_v10, %v19139_v34 }
0x101f   :  { %v18615_v41 = vsub.f32 %v18613_v45, %v18614_v61  ;;  %v19148_v43 = vand.u32 4294901760, %v19147_v26  ;;  %v19655_v58 = vsub.f32 %v19653_v21, %v19654_v14 }
0x1020   :  { %38450 = vmatmul.mubr.f32.vlgmr.msra.gmra.mrb[36].mxu1 %v44456_v46  ;;  %v19141_v39 = vand.u32 4294901760, %v19140_v47  ;;  %v18626_v44 = vand.u32 4294901760, %v18625_v19 }
0x1021   :  { %v18616_v37 = vand.u32 4294901760, %v18615_v41  ;;  %38456 = vmatprep.mubr.f32.mxu1 %v44422_v51 }
0x1022   :  { %v40927_v3 = vpack.c.bf16 %v19148_v43, %v19141_v39 }
0x1023   :  { %38407 = vmatprep.mubr.f32.mxu0 %v18616_v37 }
0x1024   :  { %38408 = vmatmul.mubr.f32.vlgmr.msra.gmra.mrb[26].mxu0 %v18626_v44  ;;  %40928 = vmatprep.subr.bf16.mxu1 %v40927_v3 }
0x1025   :  { %38414 = vmatprep.mubr.f32.mxu0 %v18612_v48  ;;  %40930 = vmatpush3.bf16.msra.mxu1 %v40927_v3 }
0x1026   :  { %40932 = vmatprep.subr.bf16.mxu1 %v40931_v56  ;;  %40906 = vmatpush3.bf16.msra.mxu0 %v44715_v16 }
0x1027   :  { %40908 = vmatprep.subr.bf16.mxu0 %v44718_v57 }
0x1028   :  { %38457 = vmatmul.mubr.f32.vlgmr.msra.gmra.mrb[36].mxu1 %v44428_v55 }
0x1029   :  { %40934 = vmatpush3.bf16.msra.mxu1 %v40931_v56  ;;  %38463 = vmatprep.mubr.f32.mxu1 %v44432_v6 }
0x102a   :  { %40936 = vmatprep.subr.bf16.mxu1 %v40923_v9 }
0x102c   :  { %38415 = vmatmul.mubr.f32.vlgmr.msra.gmra.mrb[26].mxu0 %v44725_v52 }
0x102d   :  { %38421 = vmatprep.mubr.f32.mxu0 %v18613_v45  ;;  %40910 = vmatpush3.bf16.msra.mxu0 %v44718_v57  ;;  %v44765_v45 = vpack.c.bf16 %v19660_v49, %v19653_v21  ;;  %v14460_v21 = vld [vmem:[%s46978_s6] sm:$0xff] }
0x102e   :  { %40912 = vmatprep.subr.bf16.mxu0 %v44711_v32 }
0x1030   :  { %38464 = vmatmul.mubr.f32.vlgmr.msra.gmra.mrb[36].mxu1 %v44435_v50 }
0x1031   :  { %40938 = vmatpush3.bf16.msra.mxu1 %v40923_v9  ;;  %38470 = vmatprep.mubr.f32.mxu1 %v44438_v5 }
0x1032   :  { %40940 = vmatprep.subr.bf16.mxu1 %v40939_v22 }
0x1034   :  { %38422 = vmatmul.mubr.f32.vlgmr.msra.gmra.mrb[26].mxu0 %v18623_v60  ;;  %v19656_v60 = vand.u32 4294901760, %v19655_v58  ;;  %v34505_v58 = vld [vmem:[%s46979_s8] ss:$0 sm:$0xff] }
0x1035   :  { %38428 = vmatprep.mubr.f32.mxu0 %v18614_v61  ;;  %40914 = vmatpush3.bf16.msra.mxu0 %v44711_v32 }
0x1036   :  { %40916 = vmatprep.subr.bf16.mxu0 %v44720_v25 }
0x1038   :  { %38471 = vmatmul.mubr.f32.vlgmr.msra.gmra.mrb[36].mxu1 %v44443_v18 }
0x1039   :  { %40942 = vmatpush3.bf16.msra.mxu1 %v40939_v22  ;;  %38477 = vmatprep.mubr.f32.mxu1 %v44422_v51 }
0x103a   :  { %40944 = vmatprep.subr.bf16.mxu1 %v40923_v9 }
0x103c   :  { %38429 = vmatmul.mubr.f32.vlgmr.msra.gmra.mrb[26].mxu0 %v18624_v38 }
0x103d   :  { %38435 = vmatprep.mubr.f32.mxu0 %v18612_v48  ;;  %40918 = vmatpush3.bf16.msra.mxu0 %v44720_v25 }
0x103e   :  { %40920 = vmatprep.subr.bf16.mxu0 %v44711_v32 }
0x1040   :  { %38478 = vmatmul.mubr.f32.vlgmr.msra.gmra.mrb[36].mxu1 %v44428_v55 }
0x1041   :  { %40946 = vmatpush3.bf16.msra.mxu1 %v40923_v9  ;;  %38484 = vmatprep.mubr.f32.mxu1 %v44422_v51 }
0x1044   :  { %38436 = vmatmul.mubr.f32.vlgmr.msra.gmra.mrb[26].mxu0 %v44725_v52 }
0x1045   :  { %38442 = vmatprep.mubr.f32.mxu0 %v18612_v48  ;;  %40922 = vmatpush3.bf16.msra.mxu0 %v44711_v32 }
0x1046   :  { %40948 = vmatprep.subr.bf16.mxu0 %v44758_v17 }
0x1048   :  { %38485 = vmatmul.mubr.f32.vlgmr.msra.gmra.mrb[36].mxu1 %v44428_v55 }
0x104c   :  { %38443 = vmatmul.mubr.f32.vlgmr.msra.gmra.mrb[26].mxu0 %v44725_v52  ;;  %v19661_v52 = vand.u32 4294901760, %v19660_v49 }
0x104d   :  { %40950 = vmatpush3.bf16.msra.mxu0 %v44758_v17 }
0x104e   :  { %v19662_v48 = vsub.f32 %v19660_v49, %v19661_v52  ;;  %v44767_v10 = vpack.c.bf16 %v19661_v52, %v19654_v14  ;;  %v20077_v49 = vsel %vm14464_vm3, %v14460_v21, 0  ;;  %v44819_v21 = vmax.f32 %v44489_v33, 0.0 }
0x104f   :  { %v44792_v14 = vand.u32 4294901760, %v20077_v49 }
0x1050   :  { %v19663_v9 = vand.u32 4294901760, %v19662_v48 }
0x1051   :  { %v44795_v52 = vsub.f32 %v20077_v49, %v44792_v14  ;;  %v44822_v49 = vmax.f32 %v44491_v35, 0.0 }
0x1052   :  { %v44762_v11 = vpack.c.bf16 %v19663_v9, %v19656_v60 }
0x1054   :  { %40952 = vmatprep.subr.bf16.mxu0 %v44762_v11 }
0x111b   :  { %v38486_v38 = vpop.f32.mrb[36].mxu1 }
0x111c   :  { %v19552_v34 = vmul.f32 2.0, %v38486_v38  ;;  %v19541_v56 = vpop.f32.mrb[37].mxu1  ;;  %v44802_v38 = vand.u32 4294901760, %v44795_v52 }
0x111d   :  { %v19551_v61 = vmul.f32 2.0, %v19541_v56 }
0x111e   :  { %v19554_v26 = vsub.f32 %v19552_v34, %v44665_v0  ;;  %v47086_v0 = vmov 0.0|0.0  }
0x111f   :  { %v19553_v19 = vsub.f32 %v19551_v61, %v44668_v29  ;;  %40971 = vmatprep.subr.bf16.mxu1 %v47086_v0  ;;  %v47051_v29 = vmov 0.0  }
0x1120   :  { %v19562_v47 = vsel %vm14464_vm3, %v19554_v26, 0  ;;  %38533 = vmatprep.mubr.msk.f32.mxu1 %vm42613_vm4, %v47051_v29 }
0x1121   :  { %v19641_v22 = vand.u32 4294901760, %v19562_v47  ;;  %v19559_v41 = vsel %vm14464_vm3, %v19553_v19, 0  ;;  %v20149_v19 = vsub.f32 %v44795_v52, %v44802_v38 }
0x1122   :  { %v19631_v43 = vand.u32 4294901760, %v19559_v41 }
0x1123   :  { %v19642_v39 = vsub.f32 %v19562_v47, %v19641_v22 }
0x1124   :  { %v19632_v37 = vsub.f32 %v19559_v41, %v19631_v43 }
0x1125   :  { %v19643_v44 = vand.u32 4294901760, %v19642_v39 }
0x1126   :  { %v19633_v3 = vand.u32 4294901760, %v19632_v37 }
0x1127   :  { %v19644_v63 = vsub.f32 %v19642_v39, %v19643_v44 }
0x1128   :  { %v19634_v62 = vsub.f32 %v19632_v37, %v19633_v3 }
0x1129   :  { %v19645_v12 = vand.u32 4294901760, %v19644_v63 }
0x112a   :  { %v19635_v13 = vand.u32 4294901760, %v19634_v62 }
0x112c   :  { %38491 = vmatprep.mubr.f32.mxu0 %v19635_v13 }
0x112d   :  { %38492 = vmatmul.mubr.f32.vlgmr.msra.gmra.mrb[26].mxu0 %v19645_v12 }
0x112e   :  { %38498 = vmatprep.mubr.f32.mxu0 %v19631_v43  ;;  %40954 = vmatpush3.bf16.msra.mxu0 %v44762_v11 }
0x112f   :  { %40956 = vmatprep.subr.bf16.mxu0 %v44765_v45 }
0x1135   :  { %38499 = vmatmul.mubr.f32.vlgmr.msra.gmra.mrb[26].mxu0 %v19641_v22 }
0x1136   :  { %38505 = vmatprep.mubr.f32.mxu0 %v19632_v37  ;;  %40958 = vmatpush3.bf16.msra.mxu0 %v44765_v45  ;;  %v44807_v37 = vand.u32 4294901760, %v20149_v19 }
0x1137   :  { %40960 = vmatprep.subr.bf16.mxu0 %v44758_v17 }
0x113d   :  { %38506 = vmatmul.mubr.f32.vlgmr.msra.gmra.mrb[26].mxu0 %v19642_v39 }
0x113e   :  { %38512 = vmatprep.mubr.f32.mxu0 %v19633_v3  ;;  %40962 = vmatpush3.bf16.msra.mxu0 %v44758_v17 }
0x113f   :  { %40964 = vmatprep.subr.bf16.mxu0 %v44767_v10 }
0x1145   :  { %38513 = vmatmul.mubr.f32.vlgmr.msra.gmra.mrb[26].mxu0 %v19643_v44 }
0x1146   :  { %38519 = vmatprep.mubr.f32.mxu0 %v19631_v43  ;;  %40966 = vmatpush3.bf16.msra.mxu0 %v44767_v10 }
0x1147   :  { %40968 = vmatprep.subr.bf16.mxu0 %v44758_v17 }
0x114d   :  { %38520 = vmatmul.mubr.f32.vlgmr.msra.gmra.mrb[26].mxu0 %v19641_v22 }
0x114e   :  { %38526 = vmatprep.mubr.f32.mxu0 %v19631_v43  ;;  %40970 = vmatpush3.bf16.msra.mxu0 %v44758_v17 }
0x114f   :  { %41014 = vmatprep.subr.bf16.mxu0 %v44476_v23 }
0x1155   :  { %38527 = vmatmul.mubr.f32.vlgmr.msra.gmra.mrb[26].mxu0 %v19641_v22 }
0x1156   :  { %41016 = vmatpush3.bf16.msra.mxu0 %v44476_v23 }
0x1157   :  { %41018 = vmatprep.subr.bf16.mxu0 %v44478_v30 }
0x1228   :  { %v38528_v48 = vpop.f32.mrb[26].mxu0 }
0x1229   :  { %v41847_v60 = vadd.f32 %v38528_v48, %v44602_v2  ;;  %v20056_v9 = vpop.f32.mrb[27].mxu0  ;;  %v20540_v48 = vand.u32 4294901760, %v44822_v49 }
0x122a   :  { %v41848_v34 = vadd.f32 %v20056_v9, %v44604_v4 }
0x122b   :  { %v20075_v56 = vadd.f32 %v41847_v60, %v34505_v58  ;;  %v20628_v33 = vsub.f32 %v44822_v49, %v20540_v48 }
0x122c   :  { %v20074_v61 = vadd.f32 %v41848_v34, %v34505_v58  ;;  %v20543_v58 = vand.u32 4294901760, %v44819_v21 }
0x122d   :  { %v20083_v26 = vand.u32 4294901760, %v20075_v56  ;;  %v20629_v35 = vand.u32 4294901760, %v20628_v33 }
0x122e   :  { %v20080_v47 = vand.u32 4294901760, %v20074_v61  ;;  %v20635_v60 = vsub.f32 %v44819_v21, %v20543_v58  ;;  %v40989_v34 = vpack.c.bf16 %v20543_v58, %v20540_v48 }
0x122f   :  { %v20165_v22 = vsub.f32 %v20075_v56, %v20083_v26  ;;  %v20630_v56 = vsub.f32 %v20628_v33, %v20629_v35 }
0x1230   :  { %v40972_v41 = vpack.c.bf16 %v20083_v26, %v20080_v47  ;;  %v20158_v43 = vsub.f32 %v20074_v61, %v20080_v47  ;;  %v20636_v9 = vand.u32 4294901760, %v20635_v60 }
0x1231   :  { %v20166_v39 = vand.u32 4294901760, %v20165_v22  ;;  %v20631_v26 = vand.u32 4294901760, %v20630_v56 }
0x1232   :  { %v20159_v2 = vand.u32 4294901760, %v20158_v43  ;;  %40973 = vmatpush3.bf16.msra.mxu1 %v40972_v41  ;;  %v40978_v44 = vpack.c.bf16 %v20165_v22, %v20158_v43  ;;  %v20637_v61 = vsub.f32 %v20635_v60, %v20636_v9 }
0x1233   :  { %v20167_v3 = vsub.f32 %v20165_v22, %v20166_v39  ;;  %40974 = vmatprep.subr.bf16.mxu1 %v47086_v0  ;;  %v40997_v22 = vpack.c.bf16 %v20635_v60, %v20628_v33 }
0x1234   :  { %v20160_v4 = vsub.f32 %v20158_v43, %v20159_v2  ;;  %v40984_v63 = vpack.c.bf16 %v20166_v39, %v20159_v2  ;;  %v20638_v19 = vand.u32 4294901760, %v20637_v61 }
0x1235   :  { %38534 = vmatmul.mubr.f32.vlgmr.msra.gmra.mrb[38].mxu1 %v44807_v37  ;;  %v20168_v62 = vand.u32 4294901760, %v20167_v3 }
0x1236   :  { %v20161_v13 = vand.u32 4294901760, %v20160_v4  ;;  %38540 = vmatprep.mubr.msk.f32.mxu1 %vm42613_vm4, %v47051_v29  ;;  %v40993_v47 = vpack.c.bf16 %v20638_v19, %v20631_v26 }
0x1238   :  { %v40975_v12 = vpack.c.bf16 %v20168_v62, %v20161_v13 }
0x123a   :  { %40976 = vmatpush3.bf16.msra.mxu1 %v40975_v12 }
0x123b   :  { %40977 = vmatprep.subr.bf16.mxu1 %v47086_v0 }
0x123d   :  { %38541 = vmatmul.mubr.f32.vlgmr.msra.gmra.mrb[38].mxu1 %v44792_v14 }
0x123e   :  { %40979 = vmatpush3.bf16.msra.mxu1 %v40978_v44  ;;  %38547 = vmatprep.mubr.msk.f32.mxu1 %vm42613_vm4, %v47051_v29 }
0x123f   :  { %40980 = vmatprep.subr.bf16.mxu1 %v47086_v0 }
0x1245   :  { %38548 = vmatmul.mubr.f32.vlgmr.msra.gmra.mrb[38].mxu1 %v44795_v52 }
0x1246   :  { %40982 = vmatpush3.bf16.msra.mxu1 %v40972_v41  ;;  %38554 = vmatprep.mubr.msk.f32.mxu1 %vm42613_vm4, %v47051_v29 }
0x1247   :  { %40983 = vmatprep.subr.bf16.mxu1 %v47086_v0 }
0x124d   :  { %38555 = vmatmul.mubr.f32.vlgmr.msra.gmra.mrb[38].mxu1 %v44802_v38 }
0x124e   :  { %40985 = vmatpush3.bf16.msra.mxu1 %v40984_v63  ;;  %38561 = vmatprep.mubr.msk.f32.mxu1 %vm42613_vm4, %v47051_v29 }
0x124f   :  { %40986 = vmatprep.subr.bf16.mxu1 %v47086_v0 }
0x1255   :  { %38562 = vmatmul.mubr.f32.vlgmr.msra.gmra.mrb[38].mxu1 %v44792_v14 }
0x1256   :  { %40988 = vmatpush3.bf16.msra.mxu1 %v40972_v41  ;;  %38568 = vmatprep.mubr.msk.f32.mxu1 %vm42613_vm4, %v47051_v29  ;;  %v41005_v41 = vpack.c.bf16 %v20636_v9, %v20629_v35 }
0x1257   :  { %40990 = vmatprep.subr.bf16.mxu1 %v40989_v34 }
0x125d   :  { %38569 = vmatmul.mubr.f32.vlgmr.msra.gmra.mrb[38].mxu1 %v44792_v14 }
0x125e   :  { %40992 = vmatpush3.bf16.msra.mxu1 %v40989_v34  ;;  %38575 = vmatprep.mubr.f32.mxu1 %v44453_v20 }
0x125f   :  { %40994 = vmatprep.subr.bf16.mxu1 %v40993_v47 }
0x1261   :  { %38576 = vmatmul.mubr.f32.vlgmr.msra.gmra.mrb[40].mxu1 %v44456_v46 }
0x1262   :  { %40996 = vmatpush3.bf16.msra.mxu1 %v40993_v47  ;;  %38582 = vmatprep.mubr.f32.mxu1 %v44422_v51 }
0x1263   :  { %40998 = vmatprep.subr.bf16.mxu1 %v40997_v22 }
0x1269   :  { %38583 = vmatmul.mubr.f32.vlgmr.msra.gmra.mrb[40].mxu1 %v44428_v55 }
0x126a   :  { %41000 = vmatpush3.bf16.msra.mxu1 %v40997_v22  ;;  %38589 = vmatprep.mubr.f32.mxu1 %v44432_v6 }
0x126b   :  { %41002 = vmatprep.subr.bf16.mxu1 %v40989_v34 }
0x1271   :  { %38590 = vmatmul.mubr.f32.vlgmr.msra.gmra.mrb[40].mxu1 %v44435_v50 }
0x1272   :  { %41004 = vmatpush3.bf16.msra.mxu1 %v40989_v34  ;;  %38596 = vmatprep.mubr.f32.mxu1 %v44438_v5 }
0x1273   :  { %41006 = vmatprep.subr.bf16.mxu1 %v41005_v41 }
0x1279   :  { %38597 = vmatmul.mubr.f32.vlgmr.msra.gmra.mrb[40].mxu1 %v44443_v18 }
0x127a   :  { %41008 = vmatpush3.bf16.msra.mxu1 %v41005_v41  ;;  %38603 = vmatprep.mubr.f32.mxu1 %v44422_v51 }
0x127b   :  { %41010 = vmatprep.subr.bf16.mxu1 %v40989_v34 }
0x1281   :  { %38604 = vmatmul.mubr.f32.vlgmr.msra.gmra.mrb[40].mxu1 %v44428_v55 }
0x1282   :  { %41012 = vmatpush3.bf16.msra.mxu1 %v40989_v34  ;;  %38610 = vmatprep.mubr.f32.mxu1 %v44422_v51 }
0x1289   :  { %38611 = vmatmul.mubr.f32.vlgmr.msra.gmra.mrb[40].mxu1 %v44428_v55 }
0x128a   :  { %38701 = vmatprep.mubr.f32.mxu1 %v44453_v20 }
0x1330   :  { %v44853_v43 = vpop.f32.mrb[38].mxu1 }
0x1331   :  { %v38570_v39 = vpop.f32.mrb[39].mxu1 }
0x135c   :  { %v44855_v2 = vpop.f32.mrb[40].mxu1 }
0x135d   :  { %v21045_v44 = vsel %vm14464_vm3, %v44855_v2, 0  ;;  %v22061_v3 = vand.u32 4294901760, %v44855_v2  ;;  %v44860_v4 = vpop.f32.mrb[41].mxu1 }
0x135e   :  { %v44862_v63 = vand.u32 4294901760, %v21045_v44  ;;  %v21042_v62 = vsel %vm14464_vm3, %v44860_v4, 0  ;;  %v22058_v13 = vand.u32 4294901760, %v44860_v4 }
0x135f   :  { %v22153_v12 = vsub.f32 %v44855_v2, %v22061_v3  ;;  %v44868_v58 = vand.u32 4294901760, %v21042_v62 }
0x1360   :  { %v21125_v48 = vsub.f32 %v21045_v44, %v44862_v63  ;;  %v41061_v60 = vpack.c.bf16 %v22061_v3, %v22058_v13  ;;  %v22146_v33 = vsub.f32 %v44860_v4, %v22058_v13 }
0x1361   :  { %v21115_v35 = vsub.f32 %v21042_v62, %v44868_v58  ;;  %v22154_v9 = vand.u32 4294901760, %v22153_v12 }
0x1362   :  { %41062 = vmatprep.subr.bf16.mxu1 %v41061_v60  ;;  %v21126_v34 = vand.u32 4294901760, %v21125_v48  ;;  %v22147_v56 = vand.u32 4294901760, %v22146_v33  ;;  %v41069_v61 = vpack.c.bf16 %v22153_v12, %v22146_v33 }
0x1363   :  { %41064 = vmatpush3.bf16.msra.mxu1 %v41061_v60  ;;  %v21116_v26 = vand.u32 4294901760, %v21115_v35  ;;  %v22155_v19 = vsub.f32 %v22153_v12, %v22154_v9 }
0x1364   :  { %v21127_v47 = vsub.f32 %v21125_v48, %v21126_v34  ;;  %v22148_v22 = vsub.f32 %v22146_v33, %v22147_v56  ;;  %v41077_v41 = vpack.c.bf16 %v22154_v9, %v22147_v56 }
0x1365   :  { %v21117_v39 = vsub.f32 %v21115_v35, %v21116_v26  ;;  %v22156_v29 = vand.u32 4294901760, %v22155_v19 }
0x1366   :  { %38702 = vmatmul.mubr.f32.vlgmr.msra.gmra.mrb[42].mxu1 %v44456_v46  ;;  %v22149_v44 = vand.u32 4294901760, %v22148_v22  ;;  %v21128_v62 = vand.u32 4294901760, %v21127_v47 }
0x1367   :  { %v21118_v3 = vand.u32 4294901760, %v21117_v39  ;;  %38708 = vmatprep.mubr.f32.mxu1 %v44422_v51 }
0x1368   :  { %v41065_v13 = vpack.c.bf16 %v22156_v29, %v22149_v44  ;;  %v21553_v29 = vsel %vm14464_vm3, %v44819_v21, 0 }
0x1369   :  { %38617 = vmatprep.mubr.f32.mxu0 %v21118_v3 }
0x136a   :  { %38618 = vmatmul.mubr.f32.vlgmr.msra.gmra.mrb[28].mxu0 %v21128_v62  ;;  %41066 = vmatprep.subr.bf16.mxu1 %v41065_v13 }
0x136b   :  { %38624 = vmatprep.mubr.f32.mxu0 %v44868_v58  ;;  %41068 = vmatpush3.bf16.msra.mxu1 %v41065_v13 }
0x136c   :  { %41070 = vmatprep.subr.bf16.mxu1 %v41069_v61  ;;  %41020 = vmatpush3.bf16.msra.mxu0 %v44478_v30  ;;  %v21550_v30 = vsel %vm14464_vm3, %v44822_v49, 0 }
0x136d   :  { %41022 = vmatprep.subr.bf16.mxu0 %v44483_v31 }
0x136e   :  { %38709 = vmatmul.mubr.f32.vlgmr.msra.gmra.mrb[42].mxu1 %v44428_v55 }
0x136f   :  { %41072 = vmatpush3.bf16.msra.mxu1 %v41069_v61  ;;  %38715 = vmatprep.mubr.f32.mxu1 %v44432_v6 }
0x1370   :  { %41074 = vmatprep.subr.bf16.mxu1 %v41061_v60 }
0x1372   :  { %38625 = vmatmul.mubr.f32.vlgmr.msra.gmra.mrb[28].mxu0 %v44862_v63 }
0x1373   :  { %38631 = vmatprep.mubr.f32.mxu0 %v21115_v35  ;;  %41024 = vmatpush3.bf16.msra.mxu0 %v44483_v31  ;;  %v21622_v31 = vand.u32 4294901760, %v21550_v30 }
0x1374   :  { %41026 = vmatprep.subr.bf16.mxu0 %v44476_v23 }
0x1375   :  { %v21623_v12 = vsub.f32 %v21550_v30, %v21622_v31 }
0x1376   :  { %38716 = vmatmul.mubr.f32.vlgmr.msra.gmra.mrb[42].mxu1 %v44435_v50 }
0x1377   :  { %41076 = vmatpush3.bf16.msra.mxu1 %v41061_v60  ;;  %38722 = vmatprep.mubr.f32.mxu1 %v44438_v5  ;;  %v21624_v33 = vand.u32 4294901760, %v21623_v12 }
0x1378   :  { %41078 = vmatprep.subr.bf16.mxu1 %v41077_v41 }
0x1379   :  { %v21625_v35 = vsub.f32 %v21623_v12, %v21624_v33 }
0x137a   :  { %38632 = vmatmul.mubr.f32.vlgmr.msra.gmra.mrb[28].mxu0 %v21125_v48  ;;  %v21632_v48 = vand.u32 4294901760, %v21553_v29 }
0x137b   :  { %38638 = vmatprep.mubr.f32.mxu0 %v21116_v26  ;;  %41028 = vmatpush3.bf16.msra.mxu0 %v44476_v23 }
0x137c   :  { %41030 = vmatprep.subr.bf16.mxu0 %v44487_v15 }
0x137e   :  { %38723 = vmatmul.mubr.f32.vlgmr.msra.gmra.mrb[42].mxu1 %v44443_v18 }
0x137f   :  { %41080 = vmatpush3.bf16.msra.mxu1 %v41077_v41  ;;  %38729 = vmatprep.mubr.f32.mxu1 %v44422_v51 }
0x1380   :  { %41082 = vmatprep.subr.bf16.mxu1 %v41061_v60 }
0x1382   :  { %38639 = vmatmul.mubr.f32.vlgmr.msra.gmra.mrb[28].mxu0 %v21126_v34 }
0x1383   :  { %38645 = vmatprep.mubr.f32.mxu0 %v44868_v58  ;;  %41032 = vmatpush3.bf16.msra.mxu0 %v44487_v15  ;;  %v21633_v15 = vsub.f32 %v21553_v29, %v21632_v48 }
0x1384   :  { %41034 = vmatprep.subr.bf16.mxu0 %v44476_v23 }
0x1385   :  { %v21634_v9 = vand.u32 4294901760, %v21633_v15 }
0x1386   :  { %38730 = vmatmul.mubr.f32.vlgmr.msra.gmra.mrb[42].mxu1 %v44428_v55 }
0x1387   :  { %41084 = vmatpush3.bf16.msra.mxu1 %v41061_v60  ;;  %38736 = vmatprep.mubr.f32.mxu1 %v44422_v51  ;;  %v21626_v60 = vand.u32 4294901760, %v21625_v35  ;;  %v21635_v34 = vsub.f32 %v21633_v15, %v21634_v9 }
0x138a   :  { %38646 = vmatmul.mubr.f32.vlgmr.msra.gmra.mrb[28].mxu0 %v44862_v63 }
0x138b   :  { %38652 = vmatprep.mubr.f32.mxu0 %v44868_v58  ;;  %41036 = vmatpush3.bf16.msra.mxu0 %v44476_v23  ;;  %v21636_v58 = vand.u32 4294901760, %v21635_v34 }
0x138c   :  { %41038 = vmatprep.subr.bf16.mxu0 %v44545_v28 }
0x138e   :  { %38737 = vmatmul.mubr.f32.vlgmr.msra.gmra.mrb[42].mxu1 %v44428_v55 }
0x138f   :  { %38785 = vmatprep.mubr.f32.mxu1 %v44453_v20 }
0x1392   :  { %38653 = vmatmul.mubr.f32.vlgmr.msra.gmra.mrb[28].mxu0 %v44862_v63 }
0x1393   :  { %38659 = vmatprep.mubr.f32.mxu0 %v21626_v60  ;;  %41040 = vmatpush3.bf16.msra.mxu0 %v44545_v28 }
0x1394   :  { %41042 = vmatprep.subr.bf16.mxu0 %v44555_v54 }
0x139a   :  { %38660 = vmatmul.mubr.f32.vlgmr.msra.gmra.mrb[28].mxu0 %v21636_v58 }
0x139b   :  { %38666 = vmatprep.mubr.f32.mxu0 %v21622_v31  ;;  %41044 = vmatpush3.bf16.msra.mxu0 %v44555_v54 }
0x139c   :  { %41046 = vmatprep.subr.bf16.mxu0 %v44564_v27 }
0x13a2   :  { %38667 = vmatmul.mubr.f32.vlgmr.msra.gmra.mrb[28].mxu0 %v21632_v48 }
0x13a3   :  { %38673 = vmatprep.mubr.f32.mxu0 %v21623_v12  ;;  %41048 = vmatpush3.bf16.msra.mxu0 %v44564_v27 }
0x13a4   :  { %41050 = vmatprep.subr.bf16.mxu0 %v44545_v28 }
0x13aa   :  { %38674 = vmatmul.mubr.f32.vlgmr.msra.gmra.mrb[28].mxu0 %v21633_v15 }
0x13ab   :  { %38680 = vmatprep.mubr.f32.mxu0 %v21624_v33  ;;  %41052 = vmatpush3.bf16.msra.mxu0 %v44545_v28 }
0x13ac   :  { %41054 = vmatprep.subr.bf16.mxu0 %v44576_v53 }
0x13b2   :  { %38681 = vmatmul.mubr.f32.vlgmr.msra.gmra.mrb[28].mxu0 %v21634_v9 }
0x13b3   :  { %38687 = vmatprep.mubr.f32.mxu0 %v21622_v31  ;;  %41056 = vmatpush3.bf16.msra.mxu0 %v44576_v53 }
0x13b4   :  { %41058 = vmatprep.subr.bf16.mxu0 %v44545_v28 }
0x13ba   :  { %38688 = vmatmul.mubr.f32.vlgmr.msra.gmra.mrb[28].mxu0 %v21632_v48 }
0x13bb   :  { %38694 = vmatprep.mubr.f32.mxu0 %v21622_v31  ;;  %41060 = vmatpush3.bf16.msra.mxu0 %v44545_v28 }
0x13bc   :  { %41086 = vmatprep.subr.bf16.mxu0 %v44591_v36 }
0x13c2   :  { %38695 = vmatmul.mubr.f32.vlgmr.msra.gmra.mrb[28].mxu0 %v21632_v48 }
0x13c3   :  { %41088 = vmatpush3.bf16.msra.mxu0 %v44591_v36 }
0x13c4   :  { %41090 = vmatprep.subr.bf16.mxu0 %v44595_v42 }
0x1461   :  { %v38738_v23 = vpop.f32.mrb[42].mxu1 }
0x1462   :  { %v22560_v54 = vmul.f32 2.0, %v38738_v23  ;;  %v22549_v27 = vpop.f32.mrb[43].mxu1 }
0x1463   :  { %v22559_v63 = vmul.f32 2.0, %v22549_v27 }
0x1464   :  { %v44920_v56 = vsub.f32 %v22560_v54, %v44819_v21 }
0x1465   :  { %v44923_v53 = vsub.f32 %v22559_v63, %v44822_v49 }
0x1466   :  { %v22567_v28 = vsel %vm14464_vm3, %v44920_v56, 0  ;;  %v23077_v61 = vand.u32 4294901760, %v44920_v56 }
0x1467   :  { %v44928_v26 = vand.u32 4294901760, %v22567_v28  ;;  %v23074_v19 = vand.u32 4294901760, %v44923_v53  ;;  %v22564_v47 = vsel %vm14464_vm3, %v44923_v53, 0 }
0x1468   :  { %v23169_v22 = vsub.f32 %v44920_v56, %v23077_v61  ;;  %v22636_v41 = vand.u32 4294901760, %v22564_v47 }
0x1469   :  { %v22647_v21 = vsub.f32 %v22567_v28, %v44928_v26  ;;  %v41109_v39 = vpack.c.bf16 %v23077_v61, %v23074_v19  ;;  %v23162_v49 = vsub.f32 %v44923_v53, %v23074_v19 }
0x146a   :  { %v22637_v44 = vsub.f32 %v22564_v47, %v22636_v41  ;;  %v23170_v3 = vand.u32 4294901760, %v23169_v22 }
0x146b   :  { %41110 = vmatprep.subr.bf16.mxu1 %v41109_v39  ;;  %v22648_v62 = vand.u32 4294901760, %v22647_v21  ;;  %v23163_v13 = vand.u32 4294901760, %v23162_v49  ;;  %v41117_v34 = vpack.c.bf16 %v23169_v22, %v23162_v49 }
0x146c   :  { %41112 = vmatpush3.bf16.msra.mxu1 %v41109_v39  ;;  %v22638_v30 = vand.u32 4294901760, %v22637_v44  ;;  %v23171_v31 = vsub.f32 %v23169_v22, %v23170_v3 }
0x146d   :  { %v22649_v29 = vsub.f32 %v22647_v21, %v22648_v62  ;;  %v23164_v12 = vsub.f32 %v23162_v49, %v23163_v13  ;;  %v41125_v58 = vpack.c.bf16 %v23170_v3, %v23163_v13 }
0x146e   :  { %v22639_v48 = vsub.f32 %v22637_v44, %v22638_v30  ;;  %v23172_v33 = vand.u32 4294901760, %v23171_v31 }
0x146f   :  { %38786 = vmatmul.mubr.f32.vlgmr.msra.gmra.mrb[44].mxu1 %v44456_v46  ;;  %v23165_v15 = vand.u32 4294901760, %v23164_v12  ;;  %v22650_v9 = vand.u32 4294901760, %v22649_v29 }
0x1470   :  { %v22640_v35 = vand.u32 4294901760, %v22639_v48  ;;  %38792 = vmatprep.mubr.f32.mxu1 %v44422_v51 }
0x1471   :  { %v41113_v60 = vpack.c.bf16 %v23172_v33, %v23165_v15 }
0x1472   :  { %38743 = vmatprep.mubr.f32.mxu0 %v22640_v35 }
0x1473   :  { %38744 = vmatmul.mubr.f32.vlgmr.msra.gmra.mrb[28].mxu0 %v22650_v9  ;;  %41114 = vmatprep.subr.bf16.mxu1 %v41113_v60 }
0x1474   :  { %38750 = vmatprep.mubr.f32.mxu0 %v22636_v41  ;;  %41116 = vmatpush3.bf16.msra.mxu1 %v41113_v60 }
0x1475   :  { %41118 = vmatprep.subr.bf16.mxu1 %v41117_v34  ;;  %41092 = vmatpush3.bf16.msra.mxu0 %v44595_v42 }
0x1476   :  { %41094 = vmatprep.subr.bf16.mxu0 %v44598_v1 }
0x1477   :  { %38793 = vmatmul.mubr.f32.vlgmr.msra.gmra.mrb[44].mxu1 %v44428_v55 }
0x1478   :  { %41120 = vmatpush3.bf16.msra.mxu1 %v41117_v34  ;;  %38799 = vmatprep.mubr.f32.mxu1 %v44432_v6 }
0x1479   :  { %41122 = vmatprep.subr.bf16.mxu1 %v41109_v39 }
0x147b   :  { %38751 = vmatmul.mubr.f32.vlgmr.msra.gmra.mrb[28].mxu0 %v44928_v26 }
0x147c   :  { %38757 = vmatprep.mubr.f32.mxu0 %v22637_v44  ;;  %41096 = vmatpush3.bf16.msra.mxu0 %v44598_v1 }
0x147d   :  { %41098 = vmatprep.subr.bf16.mxu0 %v44591_v36 }
0x147f   :  { %38800 = vmatmul.mubr.f32.vlgmr.msra.gmra.mrb[44].mxu1 %v44435_v50 }
0x1480   :  { %41124 = vmatpush3.bf16.msra.mxu1 %v41109_v39  ;;  %38806 = vmatprep.mubr.f32.mxu1 %v44438_v5 }
0x1481   :  { %41126 = vmatprep.subr.bf16.mxu1 %v41125_v58 }
0x1483   :  { %38758 = vmatmul.mubr.f32.vlgmr.msra.gmra.mrb[28].mxu0 %v22647_v21 }
0x1484   :  { %38764 = vmatprep.mubr.f32.mxu0 %v22638_v30  ;;  %41100 = vmatpush3.bf16.msra.mxu0 %v44591_v36 }
0x1485   :  { %41102 = vmatprep.subr.bf16.mxu0 %v44600_v59 }
0x1487   :  { %38807 = vmatmul.mubr.f32.vlgmr.msra.gmra.mrb[44].mxu1 %v44443_v18 }
0x1488   :  { %41128 = vmatpush3.bf16.msra.mxu1 %v41125_v58  ;;  %38813 = vmatprep.mubr.f32.mxu1 %v44422_v51 }
0x1489   :  { %41130 = vmatprep.subr.bf16.mxu1 %v41109_v39 }
0x148b   :  { %38765 = vmatmul.mubr.f32.vlgmr.msra.gmra.mrb[28].mxu0 %v22648_v62 }
0x148c   :  { %38771 = vmatprep.mubr.f32.mxu0 %v22636_v41  ;;  %41104 = vmatpush3.bf16.msra.mxu0 %v44600_v59 }
0x148d   :  { %41106 = vmatprep.subr.bf16.mxu0 %v44591_v36 }
0x148f   :  { %38814 = vmatmul.mubr.f32.vlgmr.msra.gmra.mrb[44].mxu1 %v44428_v55 }
0x1490   :  { %41132 = vmatpush3.bf16.msra.mxu1 %v41109_v39  ;;  %38820 = vmatprep.mubr.f32.mxu1 %v44422_v51 }
0x1493   :  { %38772 = vmatmul.mubr.f32.vlgmr.msra.gmra.mrb[28].mxu0 %v44928_v26 }
0x1494   :  { %38778 = vmatprep.mubr.f32.mxu0 %v22636_v41  ;;  %41108 = vmatpush3.bf16.msra.mxu0 %v44591_v36 }
0x1495   :  { %41134 = vmatprep.subr.bf16.mxu0 %v44653_v24 }
0x1497   :  { %38821 = vmatmul.mubr.f32.vlgmr.msra.gmra.mrb[44].mxu1 %v44428_v55 }
0x1498   :  { %38869 = vmatprep.mubr.f32.mxu1 %v44453_v20 }
0x149b   :  { %38779 = vmatmul.mubr.f32.vlgmr.msra.gmra.mrb[28].mxu0 %v44928_v26 }
0x149c   :  { %41136 = vmatpush3.bf16.msra.mxu0 %v44653_v24 }
0x149d   :  { %41138 = vmatprep.subr.bf16.mxu0 %v44657_v7 }
0x156a   :  { %v38822_v42 = vpop.f32.mrb[44].mxu1 }
0x156b   :  { %v23576_v1 = vmul.f32 2.0, %v38822_v42  ;;  %v23565_v59 = vpop.f32.mrb[45].mxu1 }
0x156c   :  { %v23575_v23 = vmul.f32 2.0, %v23565_v59 }
0x156d   :  { %v44964_v54 = vsub.f32 %v23576_v1, %v44855_v2 }
0x156e   :  { %v44967_v36 = vsub.f32 %v23575_v23, %v44860_v4 }
0x156f   :  { %v23583_v27 = vsel %vm14464_vm3, %v44964_v54, 0  ;;  %v24093_v63 = vand.u32 4294901760, %v44964_v54 }
0x1570   :  { %v44972_v28 = vand.u32 4294901760, %v23583_v27  ;;  %v24090_v61 = vand.u32 4294901760, %v44967_v36  ;;  %v23580_v26 = vsel %vm14464_vm3, %v44967_v36, 0 }
0x1571   :  { %v24185_v19 = vsub.f32 %v44964_v54, %v24093_v63  ;;  %v23652_v47 = vand.u32 4294901760, %v23580_v26 }
0x1572   :  { %v23663_v2 = vsub.f32 %v23583_v27, %v44972_v28  ;;  %v41157_v22 = vpack.c.bf16 %v24093_v63, %v24090_v61  ;;  %v24178_v4 = vsub.f32 %v44967_v36, %v24090_v61 }
0x1573   :  { %v23653_v41 = vsub.f32 %v23580_v26, %v23652_v47  ;;  %v24186_v21 = vand.u32 4294901760, %v24185_v19 }
0x1574   :  { %41158 = vmatprep.subr.bf16.mxu1 %v41157_v22  ;;  %v23664_v39 = vand.u32 4294901760, %v23663_v2  ;;  %v24179_v49 = vand.u32 4294901760, %v24178_v4  ;;  %v41165_v15 = vpack.c.bf16 %v24185_v19, %v24178_v4 }
0x1575   :  { %41160 = vmatpush3.bf16.msra.mxu1 %v41157_v22  ;;  %v23654_v44 = vand.u32 4294901760, %v23653_v41  ;;  %v24187_v3 = vsub.f32 %v24185_v19, %v24186_v21 }
0x1576   :  { %v23665_v62 = vsub.f32 %v23663_v2, %v23664_v39  ;;  %v24180_v13 = vsub.f32 %v24178_v4, %v24179_v49  ;;  %v41173_v35 = vpack.c.bf16 %v24186_v21, %v24179_v49 }
0x1577   :  { %v23655_v30 = vsub.f32 %v23653_v41, %v23654_v44  ;;  %v24188_v31 = vand.u32 4294901760, %v24187_v3 }
0x1578   :  { %38870 = vmatmul.mubr.f32.vlgmr.msra.gmra.mrb[46].mxu1 %v44456_v46  ;;  %v24181_v29 = vand.u32 4294901760, %v24180_v13  ;;  %v23666_v48 = vand.u32 4294901760, %v23665_v62 }
0x1579   :  { %v23656_v12 = vand.u32 4294901760, %v23655_v30  ;;  %38876 = vmatprep.mubr.f32.mxu1 %v44422_v51 }
0x157a   :  { %v41161_v33 = vpack.c.bf16 %v24188_v31, %v24181_v29 }
0x157b   :  { %38827 = vmatprep.mubr.f32.mxu0 %v23656_v12 }
0x157c   :  { %38828 = vmatmul.mubr.f32.vlgmr.msra.gmra.mrb[28].mxu0 %v23666_v48  ;;  %41162 = vmatprep.subr.bf16.mxu1 %v41161_v33 }
0x157d   :  { %38834 = vmatprep.mubr.f32.mxu0 %v23652_v47  ;;  %41164 = vmatpush3.bf16.msra.mxu1 %v41161_v33 }
0x157e   :  { %41166 = vmatprep.subr.bf16.mxu1 %v41165_v15  ;;  %41140 = vmatpush3.bf16.msra.mxu0 %v44657_v7 }
0x157f   :  { %41142 = vmatprep.subr.bf16.mxu0 %v44660_v8 }
0x1580   :  { %38877 = vmatmul.mubr.f32.vlgmr.msra.gmra.mrb[46].mxu1 %v44428_v55 }
0x1581   :  { %41168 = vmatpush3.bf16.msra.mxu1 %v41165_v15  ;;  %38883 = vmatprep.mubr.f32.mxu1 %v44432_v6 }
0x1582   :  { %41170 = vmatprep.subr.bf16.mxu1 %v41157_v22 }
0x1584   :  { %38835 = vmatmul.mubr.f32.vlgmr.msra.gmra.mrb[28].mxu0 %v44972_v28 }
0x1585   :  { %38841 = vmatprep.mubr.f32.mxu0 %v23653_v41  ;;  %41144 = vmatpush3.bf16.msra.mxu0 %v44660_v8 }
0x1586   :  { %41146 = vmatprep.subr.bf16.mxu0 %v44653_v24 }
0x1588   :  { %38884 = vmatmul.mubr.f32.vlgmr.msra.gmra.mrb[46].mxu1 %v44435_v50 }
0x1589   :  { %41172 = vmatpush3.bf16.msra.mxu1 %v41157_v22  ;;  %38890 = vmatprep.mubr.f32.mxu1 %v44438_v5 }
0x158a   :  { %41174 = vmatprep.subr.bf16.mxu1 %v41173_v35 }
0x158c   :  { %38842 = vmatmul.mubr.f32.vlgmr.msra.gmra.mrb[28].mxu0 %v23663_v2 }
0x158d   :  { %38848 = vmatprep.mubr.f32.mxu0 %v23654_v44  ;;  %41148 = vmatpush3.bf16.msra.mxu0 %v44653_v24 }
0x158e   :  { %41150 = vmatprep.subr.bf16.mxu0 %v44662_v40 }
0x1590   :  { %38891 = vmatmul.mubr.f32.vlgmr.msra.gmra.mrb[46].mxu1 %v44443_v18 }
0x1591   :  { %41176 = vmatpush3.bf16.msra.mxu1 %v41173_v35  ;;  %38897 = vmatprep.mubr.f32.mxu1 %v44422_v51 }
0x1592   :  { %41178 = vmatprep.subr.bf16.mxu1 %v41157_v22 }
0x1594   :  { %38849 = vmatmul.mubr.f32.vlgmr.msra.gmra.mrb[28].mxu0 %v23664_v39 }
0x1595   :  { %38855 = vmatprep.mubr.f32.mxu0 %v23652_v47  ;;  %41152 = vmatpush3.bf16.msra.mxu0 %v44662_v40 }
0x1596   :  { %41154 = vmatprep.subr.bf16.mxu0 %v44653_v24 }
0x1598   :  { %38898 = vmatmul.mubr.f32.vlgmr.msra.gmra.mrb[46].mxu1 %v44428_v55 }
0x1599   :  { %41180 = vmatpush3.bf16.msra.mxu1 %v41157_v22  ;;  %38904 = vmatprep.mubr.f32.mxu1 %v44422_v51 }
0x159c   :  { %38856 = vmatmul.mubr.f32.vlgmr.msra.gmra.mrb[28].mxu0 %v44972_v28 }
0x159d   :  { %38862 = vmatprep.mubr.f32.mxu0 %v23652_v47  ;;  %41156 = vmatpush3.bf16.msra.mxu0 %v44653_v24 }
0x159e   :  { %41182 = vmatprep.subr.bf16.mxu0 %v44711_v32 }
0x15a0   :  { %38905 = vmatmul.mubr.f32.vlgmr.msra.gmra.mrb[46].mxu1 %v44428_v55 }
0x15a1   :  { %38953 = vmatprep.mubr.f32.mxu1 %v44453_v20 }
0x15a4   :  { %38863 = vmatmul.mubr.f32.vlgmr.msra.gmra.mrb[28].mxu0 %v44972_v28 }
0x15a5   :  { %41184 = vmatpush3.bf16.msra.mxu0 %v44711_v32 }
0x15a6   :  { %41186 = vmatprep.subr.bf16.mxu0 %v44715_v16 }
0x1673   :  { %v38906_v7 = vpop.f32.mrb[46].mxu1 }
0x1674   :  { %v24592_v8 = vmul.f32 2.0, %v38906_v7  ;;  %v24581_v40 = vpop.f32.mrb[47].mxu1  ;;  %v34509_v7 = vld [vmem:[%s46980_s9 + $0x38] sm:$0xff] }
0x1675   :  { %v24591_v9 = vmul.f32 2.0, %v24581_v40 }
0x1676   :  { %v24594_v60 = vsub.f32 %v24592_v8, %v44920_v56 }
0x1677   :  { %v24593_v24 = vsub.f32 %v24591_v9, %v44923_v53 }
0x1678   :  { %v24599_v34 = vsel %vm14464_vm3, %v24594_v60, 0  ;;  %v25109_v58 = vand.u32 4294901760, %v24594_v60 }
0x1679   :  { %v45010_v42 = vand.u32 4294901760, %v24599_v34  ;;  %v24596_v20 = vsel %vm14464_vm3, %v24593_v24, 0  ;;  %v25106_v1 = vand.u32 4294901760, %v24593_v24 }
0x167a   :  { %v25201_v59 = vsub.f32 %v24594_v60, %v25109_v58  ;;  %v24668_v23 = vand.u32 4294901760, %v24596_v20  ;;  %v26607_v60 = vand.u32 4294901760, %v34509_v7 }
0x167b   :  { %v24679_v27 = vsub.f32 %v24599_v34, %v45010_v42  ;;  %v41205_v63 = vpack.c.bf16 %v25109_v58, %v25106_v1  ;;  %v25194_v28 = vsub.f32 %v24593_v24, %v25106_v1 }
0x167c   :  { %v24669_v61 = vsub.f32 %v24596_v20, %v24668_v23  ;;  %v25202_v26 = vand.u32 4294901760, %v25201_v59 }
0x167d   :  { %41206 = vmatprep.subr.bf16.mxu1 %v41205_v63  ;;  %v24680_v56 = vand.u32 4294901760, %v24679_v27  ;;  %v25195_v19 = vand.u32 4294901760, %v25194_v28  ;;  %v41213_v53 = vpack.c.bf16 %v25201_v59, %v25194_v28 }
0x167e   :  { %41208 = vmatpush3.bf16.msra.mxu1 %v41205_v63  ;;  %v24670_v47 = vand.u32 4294901760, %v24669_v61  ;;  %v25203_v2 = vsub.f32 %v25201_v59, %v25202_v26 }
0x167f   :  { %v24681_v22 = vsub.f32 %v24679_v27, %v24680_v56  ;;  %v25196_v4 = vsub.f32 %v25194_v28, %v25195_v19  ;;  %v41221_v41 = vpack.c.bf16 %v25202_v26, %v25195_v19 }
0x1680   :  { %v24671_v21 = vsub.f32 %v24669_v61, %v24670_v47  ;;  %v25204_v39 = vand.u32 4294901760, %v25203_v2 }
0x1681   :  { %38954 = vmatmul.mubr.f32.vlgmr.msra.gmra.mrb[48].mxu1 %v44456_v46  ;;  %v25197_v49 = vand.u32 4294901760, %v25196_v4  ;;  %v24682_v3 = vand.u32 4294901760, %v24681_v22  ;;  %v45115_v4 = vld [vmem:[%s46980_s9 + $0x10] sm:$0xff] }
0x1682   :  { %v24672_v44 = vand.u32 4294901760, %v24671_v21  ;;  %38960 = vmatprep.mubr.f32.mxu1 %v44422_v51 }
0x1683   :  { %v41209_v62 = vpack.c.bf16 %v25204_v39, %v25197_v49 }
0x1684   :  { %38911 = vmatprep.mubr.f32.mxu0 %v24672_v44 }
0x1685   :  { %38912 = vmatmul.mubr.f32.vlgmr.msra.gmra.mrb[28].mxu0 %v24682_v3  ;;  %41210 = vmatprep.subr.bf16.mxu1 %v41209_v62  ;;  %v27091_v3 = vand.u32 4294901760, %v45115_v4 }
0x1686   :  { %38918 = vmatprep.mubr.f32.mxu0 %v24668_v23  ;;  %41212 = vmatpush3.bf16.msra.mxu1 %v41209_v62 }
0x1687   :  { %41214 = vmatprep.subr.bf16.mxu1 %v41213_v53  ;;  %41188 = vmatpush3.bf16.msra.mxu0 %v44715_v16 }
0x1688   :  { %41190 = vmatprep.subr.bf16.mxu0 %v44718_v57 }
0x1689   :  { %38961 = vmatmul.mubr.f32.vlgmr.msra.gmra.mrb[48].mxu1 %v44428_v55 }
0x168a   :  { %41216 = vmatpush3.bf16.msra.mxu1 %v41213_v53  ;;  %38967 = vmatprep.mubr.f32.mxu1 %v44432_v6  ;;  %v47212_v6 = vmov 0.0   ;;  %v45104_v53 = vld [vmem:[%s46980_s9 + $0x8] sm:$0xff] }
0x168b   :  { %41218 = vmatprep.subr.bf16.mxu1 %v41205_v63  ;;  %v27088_v22 = vand.u32 4294901760, %v45104_v53 }
0x168d   :  { %38919 = vmatmul.mubr.f32.vlgmr.msra.gmra.mrb[28].mxu0 %v45010_v42  ;;  %v45127_v44 = vsub.f32 %v45104_v53, %v27088_v22 }
0x168e   :  { %38925 = vmatprep.mubr.f32.mxu0 %v24669_v61  ;;  %41192 = vmatpush3.bf16.msra.mxu0 %v44718_v57  ;;  %v45094_v61 = vmax.f32 %v44853_v43, 0.0 }
0x168f   :  { %41194 = vmatprep.subr.bf16.mxu0 %v44711_v32 }
0x1691   :  { %38968 = vmatmul.mubr.f32.vlgmr.msra.gmra.mrb[48].mxu1 %v44435_v50 }
0x1692   :  { %41220 = vmatpush3.bf16.msra.mxu1 %v41205_v63  ;;  %38974 = vmatprep.mubr.f32.mxu1 %v44438_v5 }
0x1693   :  { %41222 = vmatprep.subr.bf16.mxu1 %v41221_v41 }
0x1695   :  { %38926 = vmatmul.mubr.f32.vlgmr.msra.gmra.mrb[28].mxu0 %v24679_v27 }
0x1696   :  { %38932 = vmatprep.mubr.f32.mxu0 %v24670_v47  ;;  %41196 = vmatpush3.bf16.msra.mxu0 %v44711_v32  ;;  %v26594_v47 = vrot.slane %v45094_v61, 1 }
0x1697   :  { %41198 = vmatprep.subr.bf16.mxu0 %v44720_v25 }
0x1698   :  { %v26595_v21 = vsel %vm55_vm0, %v26594_v47, 0 }
0x1699   :  { %38975 = vmatmul.mubr.f32.vlgmr.msra.gmra.mrb[48].mxu1 %v44443_v18 }
0x169a   :  { %41224 = vmatpush3.bf16.msra.mxu1 %v41221_v41  ;;  %38981 = vmatprep.mubr.f32.mxu1 %v44422_v51  ;;  %v26587_v41 = vld [vmem:[%s46980_s9 + $0x18] sm:$0xff] }
0x169b   :  { %41226 = vmatprep.subr.bf16.mxu1 %v41205_v63  ;;  %v27094_v62 = vand.u32 4294901760, %v26587_v41 }
0x169d   :  { %38933 = vmatmul.mubr.f32.vlgmr.msra.gmra.mrb[28].mxu0 %v24680_v56 }
0x169e   :  { %38939 = vmatprep.mubr.f32.mxu0 %v24668_v23  ;;  %41200 = vmatpush3.bf16.msra.mxu0 %v44720_v25 }
0x169f   :  { %41202 = vmatprep.subr.bf16.mxu0 %v44711_v32 }
0x16a1   :  { %38982 = vmatmul.mubr.f32.vlgmr.msra.gmra.mrb[48].mxu1 %v44428_v55 }
0x16a2   :  { %41228 = vmatpush3.bf16.msra.mxu1 %v41205_v63  ;;  %38988 = vmatprep.mubr.f32.mxu1 %v44422_v51 }
0x16a3   :  { %41253 = vmatprep.subr.bf16.mxu1 %v47086_v0 }
0x16a5   :  { %38940 = vmatmul.mubr.f32.vlgmr.msra.gmra.mrb[28].mxu0 %v45010_v42 }
0x16a6   :  { %38946 = vmatprep.mubr.f32.mxu0 %v24668_v23  ;;  %41204 = vmatpush3.bf16.msra.mxu0 %v44711_v32 }
0x16a7   :  { %41230 = vmatprep.subr.bf16.mxu0 %v44758_v17 }
0x16a9   :  { %38989 = vmatmul.mubr.f32.vlgmr.msra.gmra.mrb[48].mxu1 %v44428_v55 }
0x16aa   :  { %39037 = vmatprep.mubr.msk.f32.mxu1 %vm42613_vm4, %v47212_v6 }
0x16ad   :  { %38947 = vmatmul.mubr.f32.vlgmr.msra.gmra.mrb[28].mxu0 %v45010_v42  ;;  %v45074_v42 = vsub.f32 %v34509_v7, %v26607_v60 }
0x16ae   :  { %41232 = vmatpush3.bf16.msra.mxu0 %v44758_v17 }
0x16af   :  { %41234 = vmatprep.subr.bf16.mxu0 %v44762_v11  ;;  %v47072_v59 = vand.u32 4294901760, %v45074_v42 }
0x16b1   :  { %v26701_v28 = vsub.f32 %v45074_v42, %v47072_v59 }
0x16b3   :  { %v26702_v19 = vand.u32 4294901760, %v26701_v28 }
0x177c   :  { %v38990_v51 = vpop.f32.mrb[48].mxu1 }
0x177d   :  { %v25608_v50 = vmul.f32 2.0, %v38990_v51  ;;  %v25597_v5 = vpop.f32.mrb[49].mxu1  ;;  %v45130_v51 = vand.u32 4294901760, %v26595_v21 }
0x177e   :  { %v25607_v18 = vmul.f32 2.0, %v25597_v5 }
0x177f   :  { %v25610_v46 = vsub.f32 %v25608_v50, %v44964_v54  ;;  %v34506_v54 = vld [vmem:[%s46980_s9 + $0x20] sm:$0xff] }
0x1780   :  { %v25609_v32 = vsub.f32 %v25607_v18, %v44967_v36  ;;  %v34507_v36 = vld [vmem:[%s46980_s9 + $0x28] sm:$0xff]  ;;  %v47067_v18 = vand.u32 4294901760, %v45127_v44 }
0x1781   :  { %v25615_v16 = vsel %vm14464_vm3, %v25610_v46, 0  ;;  %v26601_v35 = vand.u32 4294901760, %v34507_v36  ;;  %v45142_v46 = vsub.f32 %v45115_v4, %v27091_v3 }
0x1782   :  { %v25694_v55 = vand.u32 4294901760, %v25615_v16  ;;  %v25612_v57 = vsel %vm14464_vm3, %v25609_v32, 0  ;;  %v45144_v32 = vsub.f32 %v26587_v41, %v27094_v62 }
0x1783   :  { %v25684_v25 = vand.u32 4294901760, %v25612_v57  ;;  %v45067_v40 = vsub.f32 %v34507_v36, %v26601_v35  ;;  %v45178_v36 = vld [vmem:[%s46980_s9 + $0x40] sm:$0xff] }
0x1784   :  { %v25695_v13 = vsub.f32 %v25615_v16, %v25694_v55  ;;  %v45147_v16 = vsub.f32 %v26595_v21, %v45130_v51 }
0x1785   :  { %v25685_v30 = vsub.f32 %v25612_v57, %v25684_v25  ;;  %v47074_v34 = vand.u32 4294901760, %v45067_v40  ;;  %v27174_v57 = vsub.f32 %v45127_v44, %v47067_v18 }
0x1786   :  { %v25696_v31 = vand.u32 4294901760, %v25695_v13 }
0x1787   :  { %v25686_v29 = vand.u32 4294901760, %v25685_v30  ;;  %v26687_v1 = vsub.f32 %v45067_v40, %v47074_v34 }
0x1788   :  { %v25697_v12 = vsub.f32 %v25695_v13, %v25696_v31 }
0x1789   :  { %v25687_v48 = vsub.f32 %v25685_v30, %v25686_v29  ;;  %v26688_v27 = vand.u32 4294901760, %v26687_v1 }
0x178a   :  { %v25698_v15 = vand.u32 4294901760, %v25697_v12 }
0x178b   :  { %v25688_v33 = vand.u32 4294901760, %v25687_v48 }
0x178d   :  { %38995 = vmatprep.mubr.f32.mxu0 %v25688_v33 }
0x178e   :  { %38996 = vmatmul.mubr.f32.vlgmr.msra.gmra.mrb[28].mxu0 %v25698_v15 }
0x178f   :  { %39002 = vmatprep.mubr.f32.mxu0 %v25684_v25  ;;  %41236 = vmatpush3.bf16.msra.mxu0 %v44762_v11  ;;  %v26598_v11 = vand.u32 4294901760, %v34506_v54 }
0x1790   :  { %41238 = vmatprep.subr.bf16.mxu0 %v44765_v45 }
0x1791   :  { %v45065_v8 = vsub.f32 %v34506_v54, %v26598_v11  ;;  %v45121_v39 = vpack.c.bf16 %v26601_v35, %v26598_v11  ;;  %v45183_v11 = vld [vmem:[%s46980_s9 + $0x48] sm:$0xff] }
0x1792   :  { %v27581_v7 = vand.u32 4294901760, %v45183_v11 }
0x1793   :  { %v47075_v24 = vand.u32 4294901760, %v45065_v8 }
0x1795   :  { %v26680_v20 = vsub.f32 %v45065_v8, %v47075_v24 }
0x1796   :  { %39003 = vmatmul.mubr.f32.vlgmr.msra.gmra.mrb[28].mxu0 %v25694_v55 }
0x1797   :  { %39009 = vmatprep.mubr.f32.mxu0 %v25685_v30  ;;  %41240 = vmatpush3.bf16.msra.mxu0 %v44765_v45  ;;  %v34508_v45 = vld [vmem:[%s46980_s9 + $0x30] sm:$0xff]  ;;  %v26681_v23 = vand.u32 4294901760, %v26680_v20  ;;  %v47078_v30 = vand.u32 4294901760, %v45147_v16  ;;  %v27082_v20 = vsel %vm55_vm0, %v45094_v61, 0 }
0x1798   :  { %41242 = vmatprep.subr.bf16.mxu0 %v44758_v17  ;;  %v26604_v9 = vand.u32 4294901760, %v34508_v45 }
0x1799   :  { %v41278_v26 = vpack.c.bf16 %v26688_v27, %v26681_v23  ;;  %v45209_v27 = vsub.f32 %v45183_v11, %v27581_v7 }
0x179a   :  { %v45072_v58 = vsub.f32 %v34508_v45, %v26604_v9  ;;  %v45134_v50 = vpack.c.bf16 %v26607_v60, %v26604_v9  ;;  %v27578_v45 = vand.u32 4294901760, %v45178_v36  ;;  %v45194_v9 = vld [vmem:[%s46980_s9 + $0x50] sm:$0xff]  ;;  %v45199_v60 = vld [vmem:[%s46980_s9 + $0x58] sm:$0xff] }
0x179b   :  { %v27587_v28 = vand.u32 4294901760, %v45199_v60 }
0x179c   :  { %v45206_v23 = vsub.f32 %v45178_v36, %v27578_v45 }
0x179d   :  { %v45228_v47 = vsub.f32 %v45199_v60, %v27587_v28 }
0x179e   :  { %39010 = vmatmul.mubr.f32.vlgmr.msra.gmra.mrb[28].mxu0 %v25695_v13  ;;  %v47062_v13 = vand.u32 4294901760, %v45144_v32 }
0x179f   :  { %39016 = vmatprep.mubr.f32.mxu0 %v25686_v29  ;;  %41244 = vmatpush3.bf16.msra.mxu0 %v44758_v17  ;;  %v27175_v29 = vand.u32 4294901760, %v27174_v57  ;;  %v47055_v41 = vand.u32 4294901760, %v45228_v47 }
0x17a0   :  { %41246 = vmatprep.subr.bf16.mxu0 %v44767_v10  ;;  %v27188_v48 = vsub.f32 %v45144_v32, %v47062_v13 }
0x17a1   :  { %v27681_v57 = vsub.f32 %v45228_v47, %v47055_v41 }
0x17a2   :  { %v27189_v54 = vand.u32 4294901760, %v27188_v48  ;;  %v45262_v48 = vld [vmem:[%s46980_s9 + $0x60] sm:$0xff] }
0x17a3   :  { %v28072_v36 = vand.u32 4294901760, %v45262_v48 }
0x17a6   :  { %39017 = vmatmul.mubr.f32.vlgmr.msra.gmra.mrb[28].mxu0 %v25696_v31 }
0x17a7   :  { %39023 = vmatprep.mubr.f32.mxu0 %v25684_v25  ;;  %41248 = vmatpush3.bf16.msra.mxu0 %v44767_v10  ;;  %v47073_v10 = vand.u32 4294901760, %v45072_v58 }
0x17a8   :  { %41250 = vmatprep.subr.bf16.mxu0 %v44758_v17 }
0x17a9   :  { %v26694_v63 = vsub.f32 %v45072_v58, %v47073_v10 }
0x17ab   :  { %v26695_v56 = vand.u32 4294901760, %v26694_v63  ;;  %v27584_v63 = vand.u32 4294901760, %v45194_v9 }
0x17ad   :  { %v41281_v2 = vpack.c.bf16 %v26702_v19, %v26695_v56  ;;  %v45217_v56 = vpack.c.bf16 %v27094_v62, %v27091_v3  ;;  %v47060_v19 = vand.u32 4294901760, %v45206_v23  ;;  %v45225_v53 = vsub.f32 %v45194_v9, %v27584_v63  ;;  %v45284_v9 = vld [vmem:[%s46980_s9 + $0x78] sm:$0xff] }
0x17ae   :  { %39024 = vmatmul.mubr.f32.vlgmr.msra.gmra.mrb[28].mxu0 %v25694_v55 }
0x17af   :  { %39030 = vmatprep.mubr.f32.mxu0 %v25684_v25  ;;  %41252 = vmatpush3.bf16.msra.mxu0 %v44758_v17  ;;  %v45099_v17 = vld [vmem:[%s46980_s9] sm:$0xff]  ;;  %v47065_v25 = vand.u32 4294901760, %v45142_v46  ;;  %v47058_v4 = vand.u32 4294901760, %v45225_v53 }
0x17b0   :  { %41277 = vmatprep.subr.bf16.mxu0 %v47086_v0  ;;  %v27085_v43 = vand.u32 4294901760, %v45099_v17 }
0x17b1   :  { %v27181_v12 = vsub.f32 %v45142_v46, %v47065_v25 }
0x17b2   :  { %v45124_v49 = vsub.f32 %v45099_v17, %v27085_v43  ;;  %v45203_v1 = vpack.c.bf16 %v27088_v22, %v27085_v43  ;;  %v47059_v17 = vand.u32 4294901760, %v45209_v27  ;;  %v27660_v43 = vsub.f32 %v45206_v23, %v47060_v19 }
0x17b3   :  { %v27182_v15 = vand.u32 4294901760, %v27181_v12  ;;  %v27682_v12 = vand.u32 4294901760, %v27681_v57  ;;  %v45301_v57 = vpack.c.bf16 %v27587_v28, %v27584_v63 }
0x17b4   :  { %v47068_v5 = vand.u32 4294901760, %v45124_v49  ;;  %v27667_v22 = vsub.f32 %v45209_v27, %v47059_v17  ;;  %v27661_v3 = vand.u32 4294901760, %v27660_v43  ;;  %v45290_v43 = vsub.f32 %v45262_v48, %v28072_v36 }
0x17b5   :  { %v41317_v35 = vpack.c.bf16 %v27189_v54, %v27182_v15  ;;  %v27574_v15 = vrot.slane %v45094_v61, 2 }
0x17b6   :  { %39031 = vmatmul.mubr.f32.vlgmr.msra.gmra.mrb[28].mxu0 %v25694_v55  ;;  %v27167_v55 = vsub.f32 %v45124_v49, %v47068_v5  ;;  %v27668_v62 = vand.u32 4294901760, %v27667_v22 }
0x17b7   :  { %41279 = vmatpush3.bf16.msra.mxu0 %v41278_v26  ;;  %39094 = vmatprep.mubr.msk.f32.mxu0 %vm42613_vm4, %v47212_v6  ;;  %v45213_v26 = vand.u32 4294901760, %v27082_v20  ;;  %v27575_v60 = vsel %vm55_vm0, %v27574_v15, 0 }
0x17b8   :  { %41280 = vmatprep.subr.bf16.mxu0 %v47086_v0  ;;  %v27168_v31 = vand.u32 4294901760, %v27167_v55  ;;  %v27674_v55 = vsub.f32 %v45225_v53, %v47058_v4 }
0x17ba   :  { %v41314_v33 = vpack.c.bf16 %v27175_v29, %v27168_v31  ;;  %v41350_v31 = vpack.c.bf16 %v27668_v62, %v27661_v3  ;;  %v27675_v29 = vand.u32 4294901760, %v27674_v55  ;;  %v28081_v62 = vand.u32 4294901760, %v45284_v9 }
0x17bb   :  { %41282 = vmatpush3.bf16.msra.mxu0 %v41281_v2  ;;  %v45231_v2 = vsub.f32 %v27082_v20, %v45213_v26  ;;  %v45287_v20 = vpack.c.bf16 %v27581_v7, %v27578_v45  ;;  %v45297_v55 = vand.u32 4294901760, %v27575_v60  ;;  %v47054_v45 = vand.u32 4294901760, %v45290_v43 }
0x17bc   :  { %41289 = vmatprep.subr.bf16.mxu0 %v47086_v0  ;;  %v41353_v54 = vpack.c.bf16 %v27682_v12, %v27675_v29  ;;  %v45312_v29 = vsub.f32 %v45284_v9, %v28081_v62 }
0x17bd   :  { %v47071_v21 = vand.u32 4294901760, %v45231_v2  ;;  %v45315_v12 = vsub.f32 %v27575_v60, %v45297_v55  ;;  %v28154_v63 = vsub.f32 %v45290_v43, %v47054_v45 }
0x17be   :  { %39095 = vmatmul.mubr.f32.vlgmr.msra.gmra.mrb[30].mxu0 %v45130_v51 }
0x17bf   :  { %41291 = vmatpush3.bf16.msra.mxu0 %v45121_v39  ;;  %39116 = vmatprep.mubr.msk.f32.mxu0 %vm42613_vm4, %v47212_v6  ;;  %v47061_v15 = vand.u32 4294901760, %v45315_v12 }
0x17c0   :  { %41292 = vmatprep.subr.bf16.mxu0 %v47086_v0 }
0x17c3   :  { %41294 = vmatpush3.bf16.msra.mxu0 %v45134_v50 }
0x17c4   :  { %41301 = vmatprep.subr.bf16.mxu0 %v47086_v0 }
0x17c6   :  { %39117 = vmatmul.mubr.f32.vlgmr.msra.gmra.mrb[32].mxu0 %v47078_v30 }
0x17c7   :  { %41303 = vmatpush3.bf16.msra.mxu0 %v45121_v39  ;;  %39138 = vmatprep.mubr.msk.f32.mxu0 %vm42613_vm4, %v47212_v6 }
0x17c8   :  { %41304 = vmatprep.subr.bf16.mxu0 %v47086_v0 }
0x17cb   :  { %41306 = vmatpush3.bf16.msra.mxu0 %v45134_v50 }
0x17cc   :  { %41313 = vmatprep.subr.bf16.mxu0 %v47086_v0 }
0x17ce   :  { %39139 = vmatmul.mubr.f32.vlgmr.msra.gmra.mrb[34].mxu0 %v45130_v51 }
0x17cf   :  { %41315 = vmatpush3.bf16.msra.mxu0 %v41314_v33  ;;  %39160 = vmatprep.mubr.msk.f32.mxu0 %vm42613_vm4, %v47212_v6  ;;  %v45267_v33 = vld [vmem:[%s46980_s9 + $0x68] sm:$0xff] }
0x17d0   :  { %41316 = vmatprep.subr.bf16.mxu0 %v47086_v0  ;;  %v28075_v11 = vand.u32 4294901760, %v45267_v33 }
0x17d2   :  { %v45293_v22 = vsub.f32 %v45267_v33, %v28075_v11  ;;  %v47056_v33 = vand.u32 4294901760, %v45312_v29 }
0x17d3   :  { %41318 = vmatpush3.bf16.msra.mxu0 %v41317_v35  ;;  %v45279_v35 = vld [vmem:[%s46980_s9 + $0x70] sm:$0xff] }
0x17d4   :  { %41325 = vmatprep.subr.bf16.mxu0 %v47086_v0  ;;  %v28078_v3 = vand.u32 4294901760, %v45279_v35  ;;  %v47053_v7 = vand.u32 4294901760, %v45293_v22  ;;  %v28175_v60 = vsub.f32 %v45312_v29, %v47056_v33  ;;  %v28068_v33 = vrot.slane %v45094_v61, 3 }
0x17d6   :  { %39161 = vmatmul.mubr.f32.vlgmr.msra.gmra.mrb[36].mxu0 %v45213_v26  ;;  %v28161_v28 = vsub.f32 %v45293_v22, %v47053_v7  ;;  %v28176_v41 = vand.u32 4294901760, %v28175_v60  ;;  %v45363_v60 = vld [vmem:[%s46980_s9 + $0x90] sm:$0xff] }
0x17d7   :  { %41327 = vmatpush3.bf16.msra.mxu0 %v45203_v1  ;;  %39182 = vmatprep.mubr.msk.f32.mxu0 %vm42613_vm4, %v47212_v6  ;;  %v28572_v17 = vand.u32 4294901760, %v45363_v60 }
0x17d8   :  { %41328 = vmatprep.subr.bf16.mxu0 %v47086_v0 }
0x17db   :  { %41330 = vmatpush3.bf16.msra.mxu0 %v45217_v56 }
0x17dc   :  { %41337 = vmatprep.subr.bf16.mxu0 %v47086_v0 }
0x17de   :  { %39183 = vmatmul.mubr.f32.vlgmr.msra.gmra.mrb[38].mxu0 %v47071_v21 }
0x17df   :  { %41339 = vmatpush3.bf16.msra.mxu0 %v45203_v1  ;;  %39204 = vmatprep.mubr.msk.f32.mxu0 %vm42613_vm4, %v47212_v6 }
0x17e0   :  { %41340 = vmatprep.subr.bf16.mxu0 %v47086_v0 }
0x17e3   :  { %41342 = vmatpush3.bf16.msra.mxu0 %v45217_v56 }
0x17e4   :  { %41349 = vmatprep.subr.bf16.mxu0 %v47086_v0 }
0x17e6   :  { %39205 = vmatmul.mubr.f32.vlgmr.msra.gmra.mrb[40].mxu0 %v45213_v26 }
0x17e7   :  { %41351 = vmatpush3.bf16.msra.mxu0 %v41350_v31  ;;  %39226 = vmatprep.mubr.msk.f32.mxu0 %vm42613_vm4, %v47212_v6  ;;  %v45309_v31 = vsub.f32 %v45279_v35, %v28078_v3  ;;  %v28162_v35 = vand.u32 4294901760, %v28161_v28  ;;  %v45351_v28 = vld [vmem:[%s46980_s9 + $0x88] sm:$0xff] }
0x17e8   :  { %41352 = vmatprep.subr.bf16.mxu0 %v47086_v0 }
0x17e9   :  { %v47057_v48 = vand.u32 4294901760, %v45309_v31 }
0x17eb   :  { %41354 = vmatpush3.bf16.msra.mxu0 %v41353_v54  ;;  %v28155_v54 = vand.u32 4294901760, %v28154_v63  ;;  %v28168_v9 = vsub.f32 %v45309_v31, %v47057_v48  ;;  %v45346_v63 = vld [vmem:[%s46980_s9 + $0x80] sm:$0xff]  ;;  %v45368_v48 = vld [vmem:[%s46980_s9 + $0x98] sm:$0xff] }
0x17ec   :  { %41361 = vmatprep.subr.bf16.mxu0 %v47086_v0  ;;  %v28575_v19 = vand.u32 4294901760, %v45368_v48 }
0x17ed   :  { %v41386_v7 = vpack.c.bf16 %v28162_v35, %v28155_v54  ;;  %v28169_v45 = vand.u32 4294901760, %v28168_v9  ;;  %v28566_v35 = vand.u32 4294901760, %v45346_v63  ;;  %v28569_v9 = vand.u32 4294901760, %v45351_v28 }
0x17ee   :  { %39227 = vmatmul.mubr.f32.vlgmr.msra.gmra.mrb[42].mxu0 %v45297_v55 }
0x17ef   :  { %41363 = vmatpush3.bf16.msra.mxu0 %v45287_v20  ;;  %39248 = vmatprep.mubr.msk.f32.mxu0 %vm42613_vm4, %v47212_v6  ;;  %v41389_v54 = vpack.c.bf16 %v28176_v41, %v28169_v45  ;;  %v28069_v41 = vsel %vm55_vm0, %v28068_v33, 0  ;;  %v45371_v45 = vpack.c.bf16 %v28075_v11, %v28072_v36  ;;  %v45377_v4 = vsub.f32 %v45351_v28, %v28569_v9 }
0x17f0   :  { %41364 = vmatprep.subr.bf16.mxu0 %v47086_v0  ;;  %v45385_v33 = vpack.c.bf16 %v28081_v62, %v28078_v3  ;;  %v45396_v28 = vsub.f32 %v45368_v48, %v28575_v19 }
0x17f1   :  { %v47064_v11 = vand.u32 4294901760, %v45377_v4 }
0x17f2   :  { %47214 = vst [vmem:[#allocation3_spill] sm:$0xff] %v45396_v28  ;;  %v47069_v48 = vand.u32 4294901760, %v45396_v28 }
0x17f3   :  { %41366 = vmatpush3.bf16.msra.mxu0 %v45301_v57  ;;  %v28655_v62 = vsub.f32 %v45377_v4, %v47064_v11 }
0x17f4   :  { %41373 = vmatprep.subr.bf16.mxu0 %v47086_v0  ;;  %v28669_v25 = vsub.f32 %v45396_v28, %v47069_v48  ;;  %v28562_v48 = vrot.slane %v45094_v61, 4  ;;  %v47224_v28 = vmov 0.0|0.0  }
0x17f6   :  { %39249 = vmatmul.mubr.f32.vlgmr.msra.gmra.mrb[44].mxu0 %v47061_v15  ;;  %v45381_v15 = vand.u32 4294901760, %v28069_v41  ;;  %v28670_v5 = vand.u32 4294901760, %v28669_v25 }
0x17f7   :  { %41375 = vmatpush3.bf16.msra.mxu0 %v45287_v20  ;;  %39270 = vmatprep.mubr.msk.f32.mxu0 %vm42613_vm4, %v47212_v6 }
0x17f8   :  { %41376 = vmatprep.subr.bf16.mxu0 %v47086_v0 }
0x17fb   :  { %41378 = vmatpush3.bf16.msra.mxu0 %v45301_v57 }
0x17fc   :  { %41385 = vmatprep.subr.bf16.mxu0 %v47086_v0 }
0x17fe   :  { %39271 = vmatmul.mubr.f32.vlgmr.msra.gmra.mrb[46].mxu0 %v45297_v55 }
0x17ff   :  { %41387 = vmatpush3.bf16.msra.mxu0 %v41386_v7  ;;  %39292 = vmatprep.mubr.msk.f32.mxu0 %vm42613_vm4, %v47212_v6  ;;  %v45374_v7 = vsub.f32 %v45346_v63, %v28566_v35  ;;  %v45393_v63 = vsub.f32 %v45363_v60, %v28572_v17 }
0x1800   :  { %41388 = vmatprep.subr.bf16.mxu0 %v47086_v0 }
0x1801   :  { %v47063_v36 = vand.u32 4294901760, %v45374_v7  ;;  %47213 = vst [vmem:[#allocation2_spill] sm:$0xff] %v45393_v63  ;;  %v47070_v60 = vand.u32 4294901760, %v45393_v63 }
0x1803   :  { %41390 = vmatpush3.bf16.msra.mxu0 %v41389_v54  ;;  %v45399_v54 = vsub.f32 %v28069_v41, %v45381_v15  ;;  %v28648_v3 = vsub.f32 %v45374_v7, %v47063_v36  ;;  %v28656_v36 = vand.u32 4294901760, %v28655_v62  ;;  %v28662_v11 = vsub.f32 %v45393_v63, %v47070_v60  ;;  %v45435_v62 = vld [vmem:[%s46980_s9 + $0xa8] sm:$0xff]  ;;  %v45452_v60 = vld [vmem:[%s46980_s9 + $0xb8] sm:$0xff] }
0x1804   :  { %41397 = vmatprep.subr.bf16.mxu0 %v47086_v0  ;;  %v29069_v10 = vand.u32 4294901760, %v45452_v60 }
0x1805   :  { %v47066_v13 = vand.u32 4294901760, %v45399_v54  ;;  %v28649_v41 = vand.u32 4294901760, %v28648_v3  ;;  %v28663_v18 = vand.u32 4294901760, %v28662_v11  ;;  %v45430_v3 = vld [vmem:[%s46980_s9 + $0xa0] sm:$0xff]  ;;  %v29063_v11 = vand.u32 4294901760, %v45435_v62 }
0x1806   :  { %39293 = vmatmul.mubr.f32.vlgmr.msra.gmra.mrb[48].mxu0 %v45381_v15  ;;  %v29060_v25 = vand.u32 4294901760, %v45430_v3 }
0x1807   :  { %41399 = vmatpush3.bf16.msra.mxu0 %v45371_v45  ;;  %39314 = vmatprep.mubr.msk.f32.mxu0 %vm42613_vm4, %v47212_v6  ;;  %v45461_v21 = vsub.f32 %v45435_v62, %v29063_v11  ;;  %v45480_v62 = vsub.f32 %v45452_v60, %v29069_v10 }
0x1808   :  { %41400 = vmatprep.subr.bf16.mxu0 %v47086_v0 }
0x1809   :  { %47216 = vst [vmem:[#allocation4_spill] sm:$0xff] %v45461_v21  ;;  %47219 = vst [vmem:[#allocation10_spill] sm:$0xff] %v45480_v62  ;;  %v47084_v60 = vand.u32 4294901760, %v45480_v62 }
0x180b   :  { %41402 = vmatpush3.bf16.msra.mxu0 %v45385_v33  ;;  %v29163_v30 = vsub.f32 %v45480_v62, %v47084_v60  ;;  %v29056_v60 = vrot.slane %v45094_v61, 5 }
0x180c   :  { %41409 = vmatprep.subr.bf16.mxu0 %v47086_v0 }
0x180e   :  { %39315 = vmatmul.mubr.f32.vlgmr.msra.gmra.mrb[50].mxu0 %v47066_v13  ;;  %v41422_v13 = vpack.c.bf16 %v28656_v36, %v28649_v41  ;;  %v41425_v36 = vpack.c.bf16 %v28670_v5, %v28663_v18  ;;  %v45447_v41 = vld [vmem:[%s46980_s9 + $0xb0] sm:$0xff]  ;;  %v28563_v5 = vsel %vm55_vm0, %v28562_v48, 0  ;;  %v45455_v18 = vpack.c.bf16 %v28569_v9, %v28566_v35 }
0x180f   :  { %41411 = vmatpush3.bf16.msra.mxu0 %v45371_v45  ;;  %39336 = vmatprep.mubr.msk.f32.mxu0 %vm42613_vm4, %v47212_v6  ;;  %v29066_v59 = vand.u32 4294901760, %v45447_v41  ;;  %v45465_v34 = vand.u32 4294901760, %v28563_v5  ;;  %v45469_v48 = vpack.c.bf16 %v28575_v19, %v28572_v17  ;;  %v47077_v9 = vand.u32 4294901760, %v45461_v21 }
0x1810   :  { %41412 = vmatprep.subr.bf16.mxu0 %v47086_v0 }
0x1811   :  { %47217 = vst [vmem:[#allocation5_spill] sm:$0xff] %v45465_v34  ;;  %v29149_v17 = vsub.f32 %v45461_v21, %v47077_v9 }
0x1813   :  { %41414 = vmatpush3.bf16.msra.mxu0 %v45385_v33 }
0x1814   :  { %41421 = vmatprep.subr.bf16.mxu0 %v47086_v0 }
0x1816   :  { %39337 = vmatmul.mubr.f32.vlgmr.msra.gmra.mrb[52].mxu0 %v45381_v15 }
0x1817   :  { %41423 = vmatpush3.bf16.msra.mxu0 %v41422_v13  ;;  %39358 = vmatprep.mubr.msk.f32.mxu0 %vm42613_vm4, %v47212_v6  ;;  %v45458_v13 = vsub.f32 %v45430_v3, %v29060_v25  ;;  %v45477_v3 = vsub.f32 %v45447_v41, %v29066_v59 }
0x1818   :  { %41424 = vmatprep.subr.bf16.mxu0 %v47086_v0 }
0x1819   :  { %47215 = vst [vmem:[#allocation6_spill] sm:$0xff] %v45458_v13  ;;  %v47076_v35 = vand.u32 4294901760, %v45458_v13  ;;  %47218 = vst [vmem:[#allocation7_spill] sm:$0xff] %v45477_v3  ;;  %v47085_v41 = vand.u32 4294901760, %v45477_v3 }
0x181b   :  { %41426 = vmatpush3.bf16.msra.mxu0 %v41425_v36  ;;  %v45483_v36 = vsub.f32 %v28563_v5, %v45465_v34  ;;  %v29142_v19 = vsub.f32 %v45458_v13, %v47076_v35  ;;  %v29150_v35 = vand.u32 4294901760, %v29149_v17  ;;  %v29156_v9 = vsub.f32 %v45477_v3, %v47085_v41  ;;  %v45519_v17 = vld [vmem:[%s46980_s9 + $0xc8] sm:$0xff]  ;;  %v45536_v41 = vld [vmem:[%s46980_s9 + $0xd8] sm:$0xff] }
0x181c   :  { %41433 = vmatprep.subr.bf16.mxu0 %v47086_v0  ;;  %v29164_v13 = vand.u32 4294901760, %v29163_v30  ;;  %v29563_v3 = vand.u32 4294901760, %v45536_v41 }
0x181d   :  { %v47079_v24 = vand.u32 4294901760, %v45483_v36  ;;  %v29143_v5 = vand.u32 4294901760, %v29142_v19  ;;  %v29157_v21 = vand.u32 4294901760, %v29156_v9  ;;  %v45514_v19 = vld [vmem:[%s46980_s9 + $0xc0] sm:$0xff]  ;;  %v29557_v9 = vand.u32 4294901760, %v45519_v17 }
0x181e   :  { %39359 = vmatmul.mubr.f32.vlgmr.msra.gmra.mrb[54].mxu0 %v45465_v34  ;;  %v29554_v30 = vand.u32 4294901760, %v45514_v19 }
0x181f   :  { %41435 = vmatpush3.bf16.msra.mxu0 %v45455_v18  ;;  %39380 = vmatprep.mubr.msk.f32.mxu0 %vm42613_vm4, %v47212_v6 }
0x1820   :  { %41436 = vmatprep.subr.bf16.mxu0 %v47086_v0 }
0x1823   :  { %41438 = vmatpush3.bf16.msra.mxu0 %v45469_v48 }
0x1824   :  { %41445 = vmatprep.subr.bf16.mxu0 %v47086_v0 }
0x1826   :  { %39381 = vmatmul.mubr.f32.vlgmr.msra.gmra.mrb[56].mxu0 %v47079_v24  ;;  %v41458_v24 = vpack.c.bf16 %v29150_v35, %v29143_v5  ;;  %v41461_v35 = vpack.c.bf16 %v29164_v13, %v29157_v21  ;;  %v45531_v5 = vld [vmem:[%s46980_s9 + $0xd0] sm:$0xff]  ;;  %v45539_v21 = vpack.c.bf16 %v29063_v11, %v29060_v25  ;;  %v45542_v13 = vsub.f32 %v45514_v19, %v29554_v30 }
0x1827   :  { %41447 = vmatpush3.bf16.msra.mxu0 %v45455_v18  ;;  %39402 = vmatprep.mubr.msk.f32.mxu0 %vm42613_vm4, %v47212_v6  ;;  %v29560_v62 = vand.u32 4294901760, %v45531_v5 }
0x1828   :  { %41448 = vmatprep.subr.bf16.mxu0 %v47086_v0  ;;  %47220 = vst [vmem:[#allocation8_spill] sm:$0xff] %v45539_v21  ;;  %47221 = vst [vmem:[#allocation9_spill] sm:$0xff] %v45542_v13  ;;  %v47097_v25 = vand.u32 4294901760, %v45542_v13 }
0x1829   :  { %v45561_v19 = vsub.f32 %v45531_v5, %v29560_v62 }
0x182b   :  { %41450 = vmatpush3.bf16.msra.mxu0 %v45469_v48  ;;  %47226 = vst [vmem:[#allocation13_spill] sm:$0xff] %v45561_v19  ;;  %v47106_v5 = vand.u32 4294901760, %v45561_v19 }
0x182c   :  { %41457 = vmatprep.subr.bf16.mxu0 %v47086_v0 }
0x182e   :  { %39403 = vmatmul.mubr.f32.vlgmr.msra.gmra.mrb[58].mxu0 %v45465_v34 }
0x182f   :  { %41459 = vmatpush3.bf16.msra.mxu0 %v41458_v24  ;;  %39424 = vmatprep.mubr.msk.f32.mxu0 %vm42613_vm4, %v47212_v6  ;;  %v29057_v24 = vsel %vm55_vm0, %v29056_v60, 0  ;;  %v45553_v60 = vpack.c.bf16 %v29069_v10, %v29066_v59  ;;  %v29636_v10 = vsub.f32 %v45542_v13, %v47097_v25 }
0x1830   :  { %41460 = vmatprep.subr.bf16.mxu0 %v47086_v0  ;;  %v45545_v0 = vsub.f32 %v45519_v17, %v29557_v9  ;;  %v45549_v34 = vand.u32 4294901760, %v29057_v24  ;;  %v45564_v17 = vsub.f32 %v45536_v41, %v29563_v3 }
0x1831   :  { %47225 = vst [vmem:[#allocation12_spill] sm:$0xff] %v45553_v60 }
0x1832   :  { %47222 = vst [vmem:[#allocation11_spill] sm:$0xff] %v45545_v0  ;;  %47223 = vst [vmem:[#allocation14_spill] sm:$0xff] %v45549_v34  ;;  %v47098_v11 = vand.u32 4294901760, %v45545_v0  ;;  %v47107_v41 = vand.u32 4294901760, %v45564_v17 }
0x1833   :  { %41462 = vmatpush3.bf16.msra.mxu0 %v41461_v35  ;;  %47227 = vst [vmem:[#allocation17_spill] sm:$0xff] %v45564_v17  ;;  %v45567_v35 = vsub.f32 %v29057_v24, %v45549_v34  ;;  %v29637_v24 = vand.u32 4294901760, %v29636_v10  ;;  %v34530_v10 = vld [vmem:[%s46980_s9 + $0xe0] sm:$0xff] }
0x1834   :  { %41469 = vmatprep.subr.bf16.mxu0 %v47224_v28  ;;  %v29643_v59 = vsub.f32 %v45545_v0, %v47098_v11  ;;  %v29650_v11 = vsub.f32 %v45561_v19, %v47106_v5  ;;  %v29657_v0 = vsub.f32 %v45564_v17, %v47107_v41  ;;  %v29550_v5 = vrot.slane %v45094_v61, 6 }
0x1835   :  { %47228 = vst [vmem:[#allocation15_spill] sm:$0xff] %v45567_v35  ;;  %v47101_v63 = vand.u32 4294901760, %v45567_v35  ;;  %v45613_v19 = vpack.c.bf16 %v29557_v9, %v29554_v30 }
0x1836   :  { %39425 = vmatmul.mubr.f32.vlgmr.msra.gmra.mrb[60].mxu0 %v45549_v34  ;;  %v29644_v25 = vand.u32 4294901760, %v29643_v59  ;;  %v29651_v13 = vand.u32 4294901760, %v29650_v11  ;;  %v29658_v35 = vand.u32 4294901760, %v29657_v0  ;;  %v34531_v59 = vld [vmem:[%s46980_s9 + $0xe8] sm:$0xff]  ;;  %v30048_v0 = vand.u32 4294901760, %v34530_v10  ;;  %v34532_v11 = vld [vmem:[%s46980_s9 + $0xf0] sm:$0xff] }
0x1837   :  { %41471 = vmatpush3.bf16.msra.mxu0 %v45539_v21  ;;  %39446 = vmatprep.mubr.msk.f32.mxu0 %vm42613_vm4, %v47212_v6  ;;  %v29551_v17 = vsel %vm55_vm0, %v29550_v5, 0 }
0x1838   :  { %41472 = vmatprep.subr.bf16.mxu0 %v47224_v28  ;;  %v41497_v41 = vpack.c.bf16 %v29658_v35, %v29651_v13  ;;  %v30054_v35 = vand.u32 4294901760, %v34532_v11 }
0x183a   :  { %v45630_v5 = vsub.f32 %v34532_v11, %v30054_v35 }
0x183b   :  { %41474 = vmatpush3.bf16.msra.mxu0 %v45553_v60 }
0x183c   :  { %41481 = vmatprep.subr.bf16.mxu0 %v47224_v28  ;;  %47231 = vst [vmem:[#allocation21_spill] sm:$0xff] %v45630_v5 }
0x183e   :  { %39447 = vmatmul.mubr.f32.vlgmr.msra.gmra.mrb[62].mxu0 %v47101_v63  ;;  %v41494_v63 = vpack.c.bf16 %v29644_v25, %v29637_v24  ;;  %v30051_v25 = vand.u32 4294901760, %v34531_v59  ;;  %v34533_v24 = vld [vmem:[%s46980_s9 + $0xf8] sm:$0xff] }
0x183f   :  { %41483 = vmatpush3.bf16.msra.mxu0 %v45539_v21  ;;  %39468 = vmatprep.mubr.msk.f32.mxu0 %vm42613_vm4, %v47212_v6  ;;  %v45623_v21 = vpack.c.bf16 %v29563_v3, %v29560_v62 }
0x1840   :  { %41484 = vmatprep.subr.bf16.mxu0 %v47224_v28  ;;  %v45617_v13 = vsub.f32 %v34531_v59, %v30051_v25  ;;  %v47125_v59 = vand.u32 4294901760, %v45630_v5 }
0x1842   :  { %47230 = vst [vmem:[#allocation18_spill] sm:$0xff] %v45617_v13  ;;  %v47116_v9 = vand.u32 4294901760, %v45617_v13 }
0x1843   :  { %41486 = vmatpush3.bf16.msra.mxu0 %v45553_v60  ;;  %v45619_v60 = vand.u32 4294901760, %v29551_v17 }
0x1844   :  { %41493 = vmatprep.subr.bf16.mxu0 %v47224_v28  ;;  %v30137_v62 = vsub.f32 %v45617_v13, %v47116_v9  ;;  %v30144_v9 = vsub.f32 %v45630_v5, %v47125_v59  ;;  %v45669_v59 = vpack.c.bf16 %v30051_v25, %v30048_v0  ;;  %v42611_v25 = vld [vmem:[%s46979_s8] ss:$0 sm:$0xff] }
0x1846   :  { %39469 = vmatmul.mubr.f32.vlgmr.msra.gmra.mrb[64].mxu0 %v45549_v34  ;;  %v30057_v34 = vand.u32 4294901760, %v34533_v24  ;;  %47234 = vst [vmem:[#allocation20_spill] sm:$0xff] %v45669_v59 }
0x1847   :  { %41495 = vmatpush3.bf16.msra.mxu0 %v41494_v63  ;;  %39490 = vmatprep.mubr.msk.f32.mxu0 %vm42613_vm4, %v47212_v6  ;;  %v45615_v63 = vsub.f32 %v34530_v10, %v30048_v0  ;;  %v45635_v10 = vsub.f32 %v29551_v17, %v45619_v60 }
0x1848   :  { %41496 = vmatprep.subr.bf16.mxu0 %v47224_v28 }
0x1849   :  { %47229 = vst [vmem:[#allocation16_spill] sm:$0xff] %v45615_v63  ;;  %v47115_v30 = vand.u32 4294901760, %v45615_v63  ;;  %47233 = vst [vmem:[#allocation19_spill] sm:$0xff] %v45635_v10 }
0x184b   :  { %41498 = vmatpush3.bf16.msra.mxu0 %v41497_v41  ;;  %v45632_v41 = vsub.f32 %v34533_v24, %v30057_v34  ;;  %v30130_v3 = vsub.f32 %v45615_v63, %v47115_v30  ;;  %v47119_v24 = vand.u32 4294901760, %v45635_v10  ;;  %v30138_v30 = vand.u32 4294901760, %v30137_v62 }
0x184c   :  { %41505 = vmatprep.subr.bf16.mxu0 %v47224_v28  ;;  %v30145_v63 = vand.u32 4294901760, %v30144_v9 }
0x184d   :  { %47232 = vst [vmem:[#allocation25_spill] sm:$0xff] %v45632_v41  ;;  %v47124_v11 = vand.u32 4294901760, %v45632_v41  ;;  %v30131_v17 = vand.u32 4294901760, %v30130_v3  ;;  %v30044_v3 = vrot.slane %v45094_v61, 7  ;;  %v45676_v61 = vpack.c.bf16 %v30057_v34, %v30054_v35 }
0x184e   :  { %39491 = vmatmul.mubr.f32.vlgmr.msra.gmra.mrb[66].mxu0 %v45619_v60 }
0x184f   :  { %41507 = vmatpush3.bf16.msra.mxu0 %v45613_v19  ;;  %39512 = vmatprep.mubr.msk.f32.mxu0 %vm42613_vm4, %v47212_v6  ;;  %v30151_v13 = vsub.f32 %v45632_v41, %v47124_v11  ;;  %v30045_v11 = vsel %vm55_vm0, %v30044_v3, 0  ;;  %47236 = vst [vmem:[#allocation22_spill] sm:$0xff] %v45676_v61 }
0x1850   :  { %41508 = vmatprep.subr.bf16.mxu0 %v47224_v28 }
0x1851   :  { %v30152_v10 = vand.u32 4294901760, %v30151_v13 }
0x1853   :  { %41510 = vmatpush3.bf16.msra.mxu0 %v45623_v21  ;;  %v41533_v62 = vpack.c.bf16 %v30152_v10, %v30145_v63 }
0x1854   :  { %41517 = vmatprep.subr.bf16.mxu0 %v47224_v28 }
0x1856   :  { %39513 = vmatmul.mubr.f32.vlgmr.msra.gmra.mrb[68].mxu0 %v47119_v24  ;;  %v41530_v24 = vpack.c.bf16 %v30138_v30, %v30131_v17  ;;  %v45671_v30 = vand.u32 4294901760, %v30045_v11 }
0x1857   :  { %41519 = vmatpush3.bf16.msra.mxu0 %v45613_v19  ;;  %39534 = vmatprep.mubr.msk.f32.mxu0 %vm42613_vm4, %v47212_v6 }
0x1858   :  { %41520 = vmatprep.subr.bf16.mxu0 %v47224_v28  ;;  %47235 = vst [vmem:[#allocation29_spill] sm:$0xff] %v45671_v30  ;;  %v45681_v63 = vsub.f32 %v30045_v11, %v45671_v30 }
0x185a   :  { %47237 = vst [vmem:[#allocation26_spill] sm:$0xff] %v45681_v63  ;;  %v47126_v0 = vand.u32 4294901760, %v45681_v63 }
0x185b   :  { %41522 = vmatpush3.bf16.msra.mxu0 %v45623_v21 }
0x185c   :  { %41529 = vmatprep.subr.bf16.mxu0 %v47224_v28 }
0x185e   :  { %39535 = vmatmul.mubr.f32.vlgmr.msra.gmra.mrb[70].mxu0 %v45619_v60 }
0x185f   :  { %41531 = vmatpush3.bf16.msra.mxu0 %v41530_v24  ;;  %39556 = vmatprep.mubr.msk.f32.mxu0 %vm42613_vm4, %v47212_v6 }
0x1860   :  { %41532 = vmatprep.subr.bf16.mxu0 %v47224_v28 }
0x1863   :  { %41534 = vmatpush3.bf16.msra.mxu0 %v41533_v62 }
0x1864   :  { %41541 = vmatprep.subr.bf16.mxu0 %v47224_v28 }
0x1866   :  { %39557 = vmatmul.mubr.f32.vlgmr.msra.gmra.mrb[72].mxu0 %v45671_v30 }
0x1867   :  { %41543 = vmatpush3.bf16.msra.mxu0 %v45669_v59  ;;  %39578 = vmatprep.mubr.msk.f32.mxu0 %vm42613_vm4, %v47212_v6 }
0x1868   :  { %41544 = vmatprep.subr.bf16.mxu0 %v47224_v28 }
0x186b   :  { %41546 = vmatpush3.bf16.msra.mxu0 %v45676_v61 }
0x186c   :  { %41553 = vmatprep.subr.bf16.mxu0 %v47224_v28 }
0x186e   :  { %39579 = vmatmul.mubr.f32.vlgmr.msra.gmra.mrb[74].mxu0 %v47126_v0 }
0x186f   :  { %41555 = vmatpush3.bf16.msra.mxu0 %v45669_v59  ;;  %39600 = vmatprep.mubr.msk.f32.mxu0 %vm42613_vm4, %v47212_v6 }
0x1870   :  { %41556 = vmatprep.subr.bf16.mxu0 %v47224_v28 }
0x1873   :  { %41558 = vmatpush3.bf16.msra.mxu0 %v45676_v61 }
0x1874   :  { %41565 = vmatprep.subr.bf16.mxu0 %v47224_v28 }
0x1876   :  { %39601 = vmatmul.mubr.f32.vlgmr.msra.gmra.mrb[76].mxu0 %v45671_v30 }
0x1877   :  { %39622 = vmatprep.mubr.msk.f32.mxu0 %vm42613_vm4, %v47212_v6 }
0x1889   :  { %v39032_v34 = vpop.f32.mrb[28].mxu0 }
0x188a   :  { %v26122_v13 = vadd.f32 %v42611_v25, %v39032_v34  ;;  %v26109_v35 = vpop.f32.mrb[29].mxu0 }
0x188b   :  { %v26121_v9 = vadd.f32 %v42611_v25, %v26109_v35 }
0x188c   :  { %v26127_v10 = vand.u32 4294901760, %v26122_v13 }
0x188d   :  { %v26124_v11 = vand.u32 4294901760, %v26121_v9 }
0x188e   :  { %v26209_v24 = vsub.f32 %v26122_v13, %v26127_v10 }
0x188f   :  { %v41254_v17 = vpack.c.bf16 %v26127_v10, %v26124_v11  ;;  %v26202_v3 = vsub.f32 %v26121_v9, %v26124_v11 }
0x1890   :  { %v26210_v62 = vand.u32 4294901760, %v26209_v24 }
0x1891   :  { %v26203_v0 = vand.u32 4294901760, %v26202_v3  ;;  %v41260_v41 = vpack.c.bf16 %v26209_v24, %v26202_v3  ;;  %v45701_v30 = vpop.f32.mrb[30].mxu0  ;;  %41255 = vmatpush3.bf16.msra.mxu1 %v41254_v17 }
0x1892   :  { %v26211_v5 = vsub.f32 %v26209_v24, %v26210_v62  ;;  %v39096_v61 = vpop.f32.mrb[31].mxu0  ;;  %41256 = vmatprep.subr.bf16.mxu1 %v47224_v28  ;;  %v41284_v24 = vpack.c.bf16 %v45067_v40, %v45065_v8 }
0x1893   :  { %v26204_v63 = vsub.f32 %v26202_v3, %v26203_v0  ;;  %v41266_v59 = vpack.c.bf16 %v26210_v62, %v26203_v0  ;;  %v47239_v3 = vand.u32 4294901760, %v45065_v8  ;;  %v47240_v62 = vand.u32 4294901760, %v45067_v40 }
0x1894   :  { %v26212_v34 = vand.u32 4294901760, %v26211_v5  ;;  %39038 = vmatmul.mubr.f32.vlgmr.msra.gmra.mrb[50].mxu1 %v44807_v37 }
0x1895   :  { %v26205_v25 = vand.u32 4294901760, %v26204_v63  ;;  %39044 = vmatprep.mubr.msk.f32.mxu1 %vm42613_vm4, %v47212_v6 }
0x1897   :  { %v41257_v13 = vpack.c.bf16 %v26212_v34, %v26205_v25  ;;  %v41296_v34 = vpack.c.bf16 %v47240_v62, %v47239_v3  ;;  %v41356_v3 = vpack.c.bf16 %v45209_v27, %v45206_v23 }
0x1899   :  { %v45707_v35 = vpop.f32.mrb[32].mxu0  ;;  %41258 = vmatpush3.bf16.msra.mxu1 %v41257_v13  ;;  %v47241_v13 = vand.u32 4294901760, %v45072_v58 }
0x189a   :  { %v39118_v9 = vpop.f32.mrb[33].mxu0  ;;  %41259 = vmatprep.subr.bf16.mxu1 %v47224_v28 }
0x189b   :  { %v47242_v9 = vand.u32 4294901760, %v45074_v42 }
0x189c   :  { %39045 = vmatmul.mubr.f32.vlgmr.msra.gmra.mrb[50].mxu1 %v44792_v14 }
0x189d   :  { %41261 = vmatpush3.bf16.msra.mxu1 %v41260_v41  ;;  %39051 = vmatprep.mubr.msk.f32.mxu1 %vm42613_vm4, %v47212_v6 }
0x189e   :  { %41262 = vmatprep.subr.bf16.mxu1 %v47224_v28 }
0x18a1   :  { %v45714_v37 = vpop.f32.mrb[34].mxu0 }
0x18a2   :  { %v39140_v5 = vpop.f32.mrb[35].mxu0 }
0x18a3   :  { %v41299_v5 = vpack.c.bf16 %v47242_v9, %v47241_v13 }
0x18a4   :  { %39052 = vmatmul.mubr.f32.vlgmr.msra.gmra.mrb[50].mxu1 %v44795_v52 }
0x18a5   :  { %41264 = vmatpush3.bf16.msra.mxu1 %v41254_v17  ;;  %39058 = vmatprep.mubr.msk.f32.mxu1 %vm42613_vm4, %v47212_v6 }
0x18a6   :  { %41265 = vmatprep.subr.bf16.mxu1 %v47224_v28 }
0x18a9   :  { %v45720_v61 = vpop.f32.mrb[36].mxu0 }
0x18aa   :  { %v39162_v63 = vpop.f32.mrb[37].mxu0 }
0x18ab   :  { %v41320_v63 = vpack.c.bf16 %v45127_v44, %v45124_v49 }
0x18ac   :  { %39059 = vmatmul.mubr.f32.vlgmr.msra.gmra.mrb[50].mxu1 %v44802_v38 }
0x18ad   :  { %41267 = vmatpush3.bf16.msra.mxu1 %v41266_v59  ;;  %39065 = vmatprep.mubr.msk.f32.mxu1 %vm42613_vm4, %v47212_v6  ;;  %v47238_v59 = vand.u32 4294901760, %v45147_v16 }
0x18ae   :  { %41268 = vmatprep.subr.bf16.mxu1 %v47224_v28 }
0x18af   :  { %v26669_v10 = vsub.f32 %v45147_v16, %v47238_v59  ;;  %v47245_v59 = vand.u32 4294901760, %v45127_v44 }
0x18b1   :  { %v45726_v41 = vpop.f32.mrb[38].mxu0 }
0x18b2   :  { %v39184_v52 = vpop.f32.mrb[39].mxu0 }
0x18b4   :  { %39066 = vmatmul.mubr.f32.vlgmr.msra.gmra.mrb[50].mxu1 %v44792_v14 }
0x18b5   :  { %41270 = vmatpush3.bf16.msra.mxu1 %v41254_v17  ;;  %39072 = vmatprep.mubr.msk.f32.mxu1 %vm42613_vm4, %v47212_v6 }
0x18b6   :  { %41271 = vmatprep.subr.bf16.mxu1 %v47224_v28 }
0x18b9   :  { %v45732_v0 = vpop.f32.mrb[40].mxu0 }
0x18ba   :  { %v39206_v38 = vpop.f32.mrb[41].mxu0 }
0x18bb   :  { %v47244_v38 = vand.u32 4294901760, %v45124_v49 }
0x18bc   :  { %39073 = vmatmul.mubr.f32.vlgmr.msra.gmra.mrb[50].mxu1 %v44792_v14  ;;  %v26670_v14 = vand.u32 4294901760, %v26669_v10 }
0x18bd   :  { %41273 = vmatpush3.bf16.msra.mxu1 %v45121_v39  ;;  %39083 = vmatprep.mubr.msk.f32.mxu1 %vm42613_vm4, %v47212_v6  ;;  %v41287_v39 = vpack.c.bf16 %v45074_v42, %v45072_v58  ;;  %v47243_v58 = vand.u32 4294901760, %v45231_v2  ;;  %v41332_v10 = vpack.c.bf16 %v47245_v59, %v47244_v38 }
0x18be   :  { %41274 = vmatprep.subr.bf16.mxu1 %v47224_v28 }
0x18bf   :  { %v27156_v42 = vsub.f32 %v45231_v2, %v47243_v58 }
0x18c1   :  { %41276 = vmatpush3.bf16.msra.mxu1 %v45134_v50  ;;  %v45743_v11 = vpop.f32.mrb[42].mxu0 }
0x18c2   :  { %v39228_v17 = vpop.f32.mrb[43].mxu0  ;;  %41283 = vmatprep.subr.bf16.mxu1 %v47224_v28 }
0x18c3   :  { %v47246_v17 = vand.u32 4294901760, %v45142_v46 }
0x18c4   :  { %39084 = vmatmul.mubr.f32.vlgmr.msra.gmra.mrb[52].mxu1 %v26670_v14  ;;  %v47247_v14 = vand.u32 4294901760, %v45144_v32 }
0x18c5   :  { %41285 = vmatpush3.bf16.msra.mxu1 %v41284_v24  ;;  %39105 = vmatprep.mubr.msk.f32.mxu1 %vm42613_vm4, %v47212_v6 }
0x18c6   :  { %41286 = vmatprep.subr.bf16.mxu1 %v47224_v28 }
0x18c9   :  { %41288 = vmatpush3.bf16.msra.mxu1 %v41287_v39  ;;  %v45753_v50 = vpop.f32.mrb[44].mxu0  ;;  %v41335_v39 = vpack.c.bf16 %v47247_v14, %v47246_v17 }
0x18ca   :  { %v39250_v25 = vpop.f32.mrb[45].mxu0  ;;  %41295 = vmatprep.subr.bf16.mxu1 %v47224_v28 }
0x18cb   :  { %v47250_v25 = vand.u32 4294901760, %v45209_v27 }
0x18cc   :  { %39106 = vmatmul.mubr.f32.vlgmr.msra.gmra.mrb[54].mxu1 %v45147_v16 }
0x18cd   :  { %41297 = vmatpush3.bf16.msra.mxu1 %v41296_v34  ;;  %39127 = vmatprep.mubr.msk.f32.mxu1 %vm42613_vm4, %v47212_v6  ;;  %v47249_v34 = vand.u32 4294901760, %v45206_v23 }
0x18ce   :  { %41298 = vmatprep.subr.bf16.mxu1 %v47224_v28 }
0x18cf   :  { %v41368_v13 = vpack.c.bf16 %v47250_v25, %v47249_v34 }
0x18d1   :  { %41300 = vmatpush3.bf16.msra.mxu1 %v41299_v5  ;;  %v45768_v8 = vpop.f32.mrb[46].mxu0  ;;  %v47251_v5 = vand.u32 4294901760, %v45225_v53 }
0x18d2   :  { %v39272_v40 = vpop.f32.mrb[47].mxu0  ;;  %41307 = vmatprep.subr.bf16.mxu1 %v47224_v28 }
0x18d3   :  { %v47252_v40 = vand.u32 4294901760, %v45228_v47 }
0x18d4   :  { %39128 = vmatmul.mubr.f32.vlgmr.msra.gmra.mrb[56].mxu1 %v45130_v51  ;;  %v27157_v51 = vand.u32 4294901760, %v27156_v42  ;;  %v34535_v42 = vld [vmem:[%s46980_s9 + $0x28] sm:$0xff] }
0x18d5   :  { %41309 = vmatpush3.bf16.msra.mxu1 %v45203_v1  ;;  %39149 = vmatprep.mubr.msk.f32.mxu1 %vm42613_vm4, %v47212_v6  ;;  %v41323_v1 = vpack.c.bf16 %v45144_v32, %v45142_v46  ;;  %v47248_v46 = vand.u32 4294901760, %v45315_v12  ;;  %v41371_v58 = vpack.c.bf16 %v47252_v40, %v47251_v5  ;;  %v47255_v5 = vand.u32 4294901760, %v45293_v22 }
0x18d6   :  { %41310 = vmatprep.subr.bf16.mxu1 %v47224_v28 }
0x18d7   :  { %v27649_v32 = vsub.f32 %v45315_v12, %v47248_v46 }
0x18d9   :  { %41312 = vmatpush3.bf16.msra.mxu1 %v45217_v56  ;;  %v45780_v16 = vpop.f32.mrb[48].mxu0 }
0x18da   :  { %v39294_v52 = vpop.f32.mrb[49].mxu0  ;;  %41319 = vmatprep.subr.bf16.mxu1 %v47224_v28 }
0x18db   :  { %v41392_v52 = vpack.c.bf16 %v45293_v22, %v45290_v43 }
0x18dc   :  { %39150 = vmatmul.mubr.f32.vlgmr.msra.gmra.mrb[58].mxu1 %v27157_v51 }
0x18dd   :  { %41321 = vmatpush3.bf16.msra.mxu1 %v41320_v63  ;;  %39171 = vmatprep.mubr.msk.f32.mxu1 %vm42613_vm4, %v47212_v6  ;;  %v30552_v63 = vand.u32 4294901760, %v34535_v42 }
0x18de   :  { %41322 = vmatprep.subr.bf16.mxu1 %v47224_v28 }
0x18df   :  { %v45867_v59 = vsub.f32 %v34535_v42, %v30552_v63 }
0x18e1   :  { %41324 = vmatpush3.bf16.msra.mxu1 %v41323_v1  ;;  %v45790_v56 = vpop.f32.mrb[50].mxu0  ;;  %v30637_v17 = vand.u32 4294901760, %v45867_v59 }
0x18e2   :  { %v39316_v24 = vpop.f32.mrb[51].mxu0  ;;  %41331 = vmatprep.subr.bf16.mxu1 %v47224_v28 }
0x18e4   :  { %39172 = vmatmul.mubr.f32.vlgmr.msra.gmra.mrb[60].mxu1 %v45231_v2 }
0x18e5   :  { %41333 = vmatpush3.bf16.msra.mxu1 %v41332_v10  ;;  %39193 = vmatprep.mubr.msk.f32.mxu1 %vm42613_vm4, %v47212_v6  ;;  %v34536_v10 = vld [vmem:[%s46980_s9 + $0x30] sm:$0xff] }
0x18e6   :  { %41334 = vmatprep.subr.bf16.mxu1 %v47224_v28  ;;  %v30555_v14 = vand.u32 4294901760, %v34536_v10 }
0x18e9   :  { %41336 = vmatpush3.bf16.msra.mxu1 %v41335_v39  ;;  %v45805_v49 = vpop.f32.mrb[52].mxu0 }
0x18ea   :  { %v39338_v44 = vpop.f32.mrb[53].mxu0  ;;  %41343 = vmatprep.subr.bf16.mxu1 %v47224_v28 }
0x18eb   :  { %v41395_v44 = vpack.c.bf16 %v45312_v29, %v45309_v31 }
0x18ec   :  { %39194 = vmatmul.mubr.f32.vlgmr.msra.gmra.mrb[62].mxu1 %v45213_v26  ;;  %v27650_v26 = vand.u32 4294901760, %v27649_v32  ;;  %v30638_v32 = vsub.f32 %v45867_v59, %v30637_v17 }
0x18ed   :  { %41345 = vmatpush3.bf16.msra.mxu1 %v45287_v20  ;;  %39215 = vmatprep.mubr.msk.f32.mxu1 %vm42613_vm4, %v47212_v6  ;;  %v41359_v20 = vpack.c.bf16 %v45228_v47, %v45225_v53  ;;  %v47253_v53 = vand.u32 4294901760, %v45399_v54 }
0x18ee   :  { %41346 = vmatprep.subr.bf16.mxu1 %v47224_v28 }
0x18ef   :  { %v28143_v47 = vsub.f32 %v45399_v54, %v47253_v53 }
0x18f1   :  { %41348 = vmatpush3.bf16.msra.mxu1 %v45301_v57  ;;  %v45817_v2 = vpop.f32.mrb[54].mxu0  ;;  %v28144_v1 = vand.u32 4294901760, %v28143_v47 }
0x18f2   :  { %v39360_v62 = vpop.f32.mrb[55].mxu0  ;;  %41355 = vmatprep.subr.bf16.mxu1 %v47224_v28 }
0x18f4   :  { %39216 = vmatmul.mubr.f32.vlgmr.msra.gmra.mrb[64].mxu1 %v27650_v26 }
0x18f5   :  { %41357 = vmatpush3.bf16.msra.mxu1 %v41356_v3  ;;  %39237 = vmatprep.mubr.msk.f32.mxu1 %vm42613_vm4, %v47212_v6  ;;  %v45884_v3 = vsub.f32 %v34536_v10, %v30555_v14 }
0x18f6   :  { %41358 = vmatprep.subr.bf16.mxu1 %v47224_v28 }
0x18f7   :  { %v30644_v34 = vand.u32 4294901760, %v45884_v3 }
0x18f9   :  { %41360 = vmatpush3.bf16.msra.mxu1 %v41359_v20  ;;  %v45827_v57 = vpop.f32.mrb[56].mxu0  ;;  %v30639_v20 = vand.u32 4294901760, %v30638_v32  ;;  %v30645_v53 = vsub.f32 %v45884_v3, %v30644_v34 }
0x18fa   :  { %v39382_v9 = vpop.f32.mrb[57].mxu0  ;;  %41367 = vmatprep.subr.bf16.mxu1 %v47224_v28 }
0x18fb   :  { %v47254_v9 = vand.u32 4294901760, %v45290_v43  ;;  %v47257_v43 = vand.u32 4294901760, %v45312_v29 }
0x18fc   :  { %39238 = vmatmul.mubr.f32.vlgmr.msra.gmra.mrb[66].mxu1 %v45315_v12  ;;  %v34534_v12 = vld [vmem:[%s46980_s9 + $0x20] sm:$0xff] }
0x18fd   :  { %41369 = vmatpush3.bf16.msra.mxu1 %v41368_v13  ;;  %39259 = vmatprep.mubr.msk.f32.mxu1 %vm42613_vm4, %v47212_v6  ;;  %v41404_v40 = vpack.c.bf16 %v47255_v5, %v47254_v9  ;;  %v47262_v9 = vand.u32 4294901760, %v45377_v4 }
0x18fe   :  { %41370 = vmatprep.subr.bf16.mxu1 %v47224_v28 }
0x1901   :  { %41372 = vmatpush3.bf16.msra.mxu1 %v41371_v58  ;;  %v45842_v23 = vpop.f32.mrb[58].mxu0 }
0x1902   :  { %v39404_v27 = vpop.f32.mrb[59].mxu0  ;;  %41379 = vmatprep.subr.bf16.mxu1 %v47224_v28 }
0x1904   :  { %39260 = vmatmul.mubr.f32.vlgmr.msra.gmra.mrb[68].mxu1 %v45297_v55  ;;  %v30549_v55 = vand.u32 4294901760, %v34534_v12 }
0x1905   :  { %41381 = vmatpush3.bf16.msra.mxu1 %v45371_v45  ;;  %39281 = vmatprep.mubr.msk.f32.mxu1 %vm42613_vm4, %v47212_v6 }
0x1906   :  { %41382 = vmatprep.subr.bf16.mxu1 %v47224_v28  ;;  %v45865_v38 = vsub.f32 %v34534_v12, %v30549_v55  ;;  %v30646_v12 = vand.u32 4294901760, %v30645_v53 }
0x1908   :  { %v30630_v24 = vand.u32 4294901760, %v45865_v38  ;;  %v41572_v10 = vpack.c.bf16 %v45867_v59, %v45865_v38 }
0x1909   :  { %41384 = vmatpush3.bf16.msra.mxu1 %v45385_v33  ;;  %v45860_v45 = vpop.f32.mrb[60].mxu0  ;;  %v34537_v33 = vld [vmem:[%s46980_s9 + $0x38] sm:$0xff] }
0x190a   :  { %v39426_v51 = vpop.f32.mrb[61].mxu0  ;;  %41391 = vmatprep.subr.bf16.mxu1 %v47224_v28  ;;  %v30558_v39 = vand.u32 4294901760, %v34537_v33  ;;  %v30631_v46 = vsub.f32 %v45865_v38, %v30630_v24 }
0x190c   :  { %39282 = vmatmul.mubr.f32.vlgmr.msra.gmra.mrb[70].mxu1 %v28144_v1  ;;  %v45886_v62 = vsub.f32 %v34537_v33, %v30558_v39  ;;  %v30632_v26 = vand.u32 4294901760, %v30631_v46  ;;  %v45908_v1 = vpack.c.bf16 %v30552_v63, %v30549_v55  ;;  %v47258_v55 = vand.u32 4294901760, %v45483_v36  ;;  %v47260_v46 = vld [vmem:[#allocation3_spill] sm:$0xff] }
0x190d   :  { %41393 = vmatpush3.bf16.msra.mxu1 %v41392_v52  ;;  %39303 = vmatprep.mubr.msk.f32.mxu1 %vm42613_vm4, %v47212_v6  ;;  %v47256_v52 = vand.u32 4294901760, %v45309_v31  ;;  %v45913_v31 = vpack.c.bf16 %v30558_v39, %v30555_v14 }
0x190e   :  { %41394 = vmatprep.subr.bf16.mxu1 %v47224_v28  ;;  %v30651_v25 = vand.u32 4294901760, %v45886_v62  ;;  %v41566_v27 = vpack.c.bf16 %v30639_v20, %v30632_v26  ;;  %v28637_v63 = vsub.f32 %v45483_v36, %v47258_v55  ;;  %v47261_v20 = vand.u32 4294901760, %v45374_v7  ;;  %v47272_v55 = vld [vmem:[#allocation7_spill] sm:$0xff] }
0x190f   :  { %v41407_v22 = vpack.c.bf16 %v47257_v43, %v47256_v52  ;;  %v47270_v52 = vld [vmem:[#allocation6_spill] sm:$0xff]  ;;  %v47271_v43 = vld [vmem:[#allocation4_spill] sm:$0xff] }
0x1910   :  { %v30652_v47 = vsub.f32 %v45886_v62, %v30651_v25  ;;  %41567 = vmatpush3.bf16.msra.mxu0 %v41566_v27  ;;  %v28638_v39 = vand.u32 4294901760, %v28637_v63  ;;  %v41440_v5 = vpack.c.bf16 %v47262_v9, %v47261_v20  ;;  %v47273_v63 = vld [vmem:[#allocation10_spill] sm:$0xff]  ;;  %v47276_v20 = vand.u32 4294901760, %v47272_v55 }
0x1911   :  { %41396 = vmatpush3.bf16.msra.mxu1 %v41395_v44  ;;  %v45890_v13 = vpop.f32.mrb[62].mxu0  ;;  %41568 = vmatprep.subr.bf16.mxu0 %v47224_v28  ;;  %v47259_v44 = vld [vmem:[#allocation2_spill] sm:$0xff]  ;;  %v47277_v9 = vand.u32 4294901760, %v47273_v63 }
0x1912   :  { %v39448_v58 = vpop.f32.mrb[63].mxu0  ;;  %41403 = vmatprep.subr.bf16.mxu1 %v47224_v28  ;;  %v30653_v42 = vand.u32 4294901760, %v30652_v47  ;;  %v41431_v32 = vpack.c.bf16 %v47260_v46, %v47259_v44  ;;  %v47263_v27 = vand.u32 4294901760, %v47259_v44  ;;  %v47275_v44 = vand.u32 4294901760, %v47271_v43 }
0x1914   :  { %39304 = vmatmul.mubr.f32.vlgmr.msra.gmra.mrb[72].mxu1 %v45399_v54  ;;  %v41569_v51 = vpack.c.bf16 %v30653_v42, %v30646_v12  ;;  %v47269_v12 = vld [vmem:[#allocation12_spill] sm:$0xff] }
0x1915   :  { %41405 = vmatpush3.bf16.msra.mxu1 %v41404_v40  ;;  %39325 = vmatprep.mubr.msk.f32.mxu1 %vm42613_vm4, %v47212_v6  ;;  %v45947_v40 = vpack.c.bf16 %v30651_v25, %v30644_v34  ;;  %v47265_v34 = vld [vmem:[#allocation5_spill] sm:$0xff]  ;;  %v47267_v25 = vld [vmem:[#allocation15_spill] sm:$0xff] }
0x1916   :  { %41406 = vmatprep.subr.bf16.mxu1 %v47224_v28  ;;  %41570 = vmatpush3.bf16.msra.mxu0 %v41569_v51  ;;  %v47268_v53 = vand.u32 4294901760, %v47267_v25 }
0x1917   :  { %41577 = vmatprep.subr.bf16.mxu0 %v47224_v28 }
0x1918   :  { %v29131_v47 = vsub.f32 %v47267_v25, %v47268_v53 }
0x1919   :  { %41408 = vmatpush3.bf16.msra.mxu1 %v41407_v22  ;;  %v45910_v54 = vpop.f32.mrb[64].mxu0  ;;  %v41464_v22 = vpack.c.bf16 %v47271_v43, %v47270_v52 }
0x191a   :  { %v39470_v29 = vpop.f32.mrb[65].mxu0  ;;  %41415 = vmatprep.subr.bf16.mxu1 %v47224_v28 }
0x191b   :  { %v29132_v29 = vand.u32 4294901760, %v29131_v47 }
0x191c   :  { %39326 = vmatmul.mubr.f32.vlgmr.msra.gmra.mrb[74].mxu1 %v45381_v15  ;;  %v41428_v15 = vpack.c.bf16 %v45377_v4, %v45374_v7 }
0x191d   :  { %41417 = vmatpush3.bf16.msra.mxu1 %v45455_v18  ;;  %39347 = vmatprep.mubr.msk.f32.mxu1 %vm42613_vm4, %v47212_v6  ;;  %v41575_v18 = vpack.c.bf16 %v45886_v62, %v45884_v3  ;;  %v46171_v3 = vld [vmem:[%s46980_s9 + $0x48] sm:$0xff] }
0x191e   :  { %41418 = vmatprep.subr.bf16.mxu1 %v47224_v28 }
0x1921   :  { %41420 = vmatpush3.bf16.msra.mxu1 %v45469_v48  ;;  %v45927_v33 = vpop.f32.mrb[66].mxu0  ;;  %v45939_v48 = vpack.c.bf16 %v30637_v17, %v30630_v24  ;;  %v47264_v24 = vand.u32 4294901760, %v47260_v46 }
0x1922   :  { %v39492_v14 = vpop.f32.mrb[67].mxu0  ;;  %41427 = vmatprep.subr.bf16.mxu1 %v47224_v28 }
0x1923   :  { %v41443_v17 = vpack.c.bf16 %v47264_v24, %v47263_v27  ;;  %v47278_v24 = vld [vmem:[#allocation14_spill] sm:$0xff] }
0x1924   :  { %39348 = vmatmul.mubr.f32.vlgmr.msra.gmra.mrb[76].mxu1 %v28638_v39  ;;  %v47274_v39 = vand.u32 4294901760, %v47270_v52 }
0x1925   :  { %41429 = vmatpush3.bf16.msra.mxu1 %v41428_v15  ;;  %39369 = vmatprep.mubr.msk.f32.mxu1 %vm42613_vm4, %v47212_v6  ;;  %v41467_v15 = vpack.c.bf16 %v47273_v63, %v47272_v55  ;;  %v47289_v63 = vld [vmem:[#allocation20_spill] sm:$0xff] }
0x1926   :  { %41430 = vmatprep.subr.bf16.mxu1 %v47224_v28  ;;  %v41476_v46 = vpack.c.bf16 %v47275_v44, %v47274_v39 }
0x1929   :  { %41432 = vmatpush3.bf16.msra.mxu1 %v41431_v32  ;;  %v45941_v26 = vpop.f32.mrb[68].mxu0 }
0x192a   :  { %v39514_v58 = vpop.f32.mrb[69].mxu0  ;;  %41439 = vmatprep.subr.bf16.mxu1 %v47224_v28 }
0x192c   :  { %39370 = vmatmul.mubr.f32.vlgmr.msra.gmra.mrb[78].mxu1 %v45483_v36  ;;  %v47266_v36 = vld [vmem:[#allocation8_spill] sm:$0xff] }
0x192d   :  { %41441 = vmatpush3.bf16.msra.mxu1 %v41440_v5  ;;  %39391 = vmatprep.mubr.msk.f32.mxu1 %vm42613_vm4, %v47212_v6  ;;  %v41479_v5 = vpack.c.bf16 %v47277_v9, %v47276_v20  ;;  %v47294_v20 = vld [vmem:[#allocation18_spill] sm:$0xff] }
0x192e   :  { %41442 = vmatprep.subr.bf16.mxu1 %v47224_v28 }
0x1931   :  { %41444 = vmatpush3.bf16.msra.mxu1 %v41443_v17  ;;  %v45958_v4 = vpop.f32.mrb[70].mxu0  ;;  %v47279_v17 = vld [vmem:[#allocation19_spill] sm:$0xff] }
0x1932   :  { %v39536_v7 = vpop.f32.mrb[71].mxu0  ;;  %41451 = vmatprep.subr.bf16.mxu1 %v47224_v28 }
0x1933   :  { %v47280_v7 = vand.u32 4294901760, %v47279_v17 }
0x1934   :  { %39392 = vmatmul.mubr.f32.vlgmr.msra.gmra.mrb[80].mxu1 %v47265_v34 }
0x1935   :  { %41453 = vmatpush3.bf16.msra.mxu1 %v47266_v36  ;;  %39413 = vmatprep.mubr.msk.f32.mxu1 %vm42613_vm4, %v47212_v6  ;;  %v29625_v34 = vsub.f32 %v47279_v17, %v47280_v7  ;;  %v47281_v36 = vld [vmem:[#allocation9_spill] sm:$0xff]  ;;  %v47298_v7 = vand.u32 4294901760, %v47294_v20 }
0x1936   :  { %41454 = vmatprep.subr.bf16.mxu1 %v47224_v28  ;;  %v47285_v43 = vand.u32 4294901760, %v47281_v36 }
0x1937   :  { %v29626_v47 = vand.u32 4294901760, %v29625_v34 }
0x1939   :  { %41456 = vmatpush3.bf16.msra.mxu1 %v47269_v12  ;;  %v45970_v42 = vpop.f32.mrb[72].mxu0  ;;  %v47284_v12 = vld [vmem:[#allocation17_spill] sm:$0xff] }
0x193a   :  { %v39558_v51 = vpop.f32.mrb[73].mxu0  ;;  %41463 = vmatprep.subr.bf16.mxu1 %v47224_v28 }
0x193c   :  { %39414 = vmatmul.mubr.f32.vlgmr.msra.gmra.mrb[82].mxu1 %v29132_v29  ;;  %v47288_v29 = vand.u32 4294901760, %v47284_v12 }
0x193d   :  { %41465 = vmatpush3.bf16.msra.mxu1 %v41464_v22  ;;  %39435 = vmatprep.mubr.msk.f32.mxu1 %vm42613_vm4, %v47212_v6 }
0x193e   :  { %41466 = vmatprep.subr.bf16.mxu1 %v47224_v28 }
0x1941   :  { %41468 = vmatpush3.bf16.msra.mxu1 %v41467_v15  ;;  %v45980_v14 = vpop.f32.mrb[74].mxu0  ;;  %v47290_v15 = vld [vmem:[#allocation26_spill] sm:$0xff] }
0x1942   :  { %v39580_v32 = vpop.f32.mrb[75].mxu0  ;;  %41475 = vmatprep.subr.bf16.mxu1 %v47224_v28  ;;  %v47291_v39 = vand.u32 4294901760, %v47290_v15 }
0x1943   :  { %v47293_v32 = vld [vmem:[#allocation16_spill] sm:$0xff] }
0x1944   :  { %39436 = vmatmul.mubr.f32.vlgmr.msra.gmra.mrb[84].mxu1 %v47267_v25  ;;  %v47282_v25 = vld [vmem:[#allocation11_spill] sm:$0xff]  ;;  %v30119_v44 = vsub.f32 %v47290_v15, %v47291_v39  ;;  %v41536_v9 = vpack.c.bf16 %v47294_v20, %v47293_v32 }
0x1945   :  { %41477 = vmatpush3.bf16.msra.mxu1 %v41476_v46  ;;  %39457 = vmatprep.mubr.msk.f32.mxu1 %vm42613_vm4, %v47212_v6  ;;  %v41500_v53 = vpack.c.bf16 %v47282_v25, %v47281_v36  ;;  %v47292_v46 = vld [vmem:[#allocation22_spill] sm:$0xff] }
0x1946   :  { %41478 = vmatprep.subr.bf16.mxu1 %v47224_v28 }
0x1949   :  { %41480 = vmatpush3.bf16.msra.mxu1 %v41479_v5  ;;  %v45995_v58 = vpop.f32.mrb[76].mxu0  ;;  %v30120_v5 = vand.u32 4294901760, %v30119_v44 }
0x194a   :  { %v39602_v27 = vpop.f32.mrb[77].mxu0  ;;  %41487 = vmatprep.subr.bf16.mxu1 %v47224_v28 }
0x194b   :  { %v47296_v27 = vld [vmem:[#allocation25_spill] sm:$0xff] }
0x194c   :  { %39458 = vmatmul.mubr.f32.vlgmr.msra.gmra.mrb[86].mxu1 %v47278_v24 }
0x194d   :  { %41489 = vmatpush3.bf16.msra.mxu1 %v45613_v19  ;;  %39479 = vmatprep.mubr.msk.f32.mxu1 %vm42613_vm4, %v47212_v6  ;;  %v47283_v19 = vld [vmem:[#allocation13_spill] sm:$0xff] }
0x194e   :  { %41490 = vmatprep.subr.bf16.mxu1 %v47224_v28  ;;  %v41503_v52 = vpack.c.bf16 %v47284_v12, %v47283_v19  ;;  %v47287_v51 = vand.u32 4294901760, %v47283_v19  ;;  %v46070_v19 = vld [vmem:[%s46980_s9] sm:$0xff]  ;;  %v46075_v12 = vld [vmem:[%s46980_s9 + $0x8] sm:$0xff] }
0x1950   :  { %v41515_v55 = vpack.c.bf16 %v47288_v29, %v47287_v51  ;;  %v31039_v51 = vand.u32 4294901760, %v46075_v12  ;;  %v46084_v29 = vld [vmem:[%s46980_s9 + $0x10] sm:$0xff] }
0x1951   :  { %41492 = vmatpush3.bf16.msra.mxu1 %v45623_v21  ;;  %v47286_v21 = vand.u32 4294901760, %v47282_v25  ;;  %v47300_v25 = vand.u32 4294901760, %v47296_v27 }
0x1952   :  { %41499 = vmatprep.subr.bf16.mxu1 %v47224_v28  ;;  %v46101_v44 = vsub.f32 %v46075_v12, %v31039_v51 }
0x1953   :  { %v41512_v22 = vpack.c.bf16 %v47286_v21, %v47285_v43  ;;  %v31036_v43 = vand.u32 4294901760, %v46070_v19 }
0x1954   :  { %39480 = vmatmul.mubr.f32.vlgmr.msra.gmra.mrb[88].mxu1 %v29626_v47  ;;  %v47301_v47 = vld [vmem:[#allocation29_spill] sm:$0xff] }
0x1955   :  { %41501 = vmatpush3.bf16.msra.mxu1 %v41500_v53  ;;  %39501 = vmatprep.mubr.msk.f32.mxu1 %vm42613_vm4, %v47212_v6 }
0x1956   :  { %41502 = vmatprep.subr.bf16.mxu1 %v47224_v28 }
0x1959   :  { %41504 = vmatpush3.bf16.msra.mxu1 %v41503_v52 }
0x195a   :  { %41511 = vmatprep.subr.bf16.mxu1 %v47224_v28 }
0x195c   :  { %39502 = vmatmul.mubr.f32.vlgmr.msra.gmra.mrb[90].mxu1 %v47279_v17  ;;  %v47297_v17 = vand.u32 4294901760, %v47293_v32 }
0x195d   :  { %41513 = vmatpush3.bf16.msra.mxu1 %v41512_v22  ;;  %39523 = vmatprep.mubr.msk.f32.mxu1 %vm42613_vm4, %v47212_v6 }
0x195e   :  { %41514 = vmatprep.subr.bf16.mxu1 %v47224_v28  ;;  %v41548_v34 = vpack.c.bf16 %v47298_v7, %v47297_v17  ;;  %v47136_v17 = vand.u32 4294901760, %v46101_v44 }
0x1961   :  { %41516 = vmatpush3.bf16.msra.mxu1 %v41515_v55  ;;  %v46089_v55 = vld [vmem:[%s46980_s9 + $0x18] sm:$0xff] }
0x1962   :  { %41523 = vmatprep.subr.bf16.mxu1 %v47224_v28  ;;  %v31045_v32 = vand.u32 4294901760, %v46089_v55 }
0x1964   :  { %39524 = vmatmul.mubr.f32.vlgmr.msra.gmra.mrb[92].mxu1 %v45619_v60  ;;  %v47295_v60 = vld [vmem:[#allocation21_spill] sm:$0xff] }
0x1965   :  { %41525 = vmatpush3.bf16.msra.mxu1 %v47289_v63  ;;  %39545 = vmatprep.mubr.msk.f32.mxu1 %vm42613_vm4, %v47212_v6  ;;  %v41539_v24 = vpack.c.bf16 %v47296_v27, %v47295_v60  ;;  %v47299_v36 = vand.u32 4294901760, %v47295_v60 }
0x1966   :  { %41526 = vmatprep.subr.bf16.mxu1 %v47224_v28 }
0x1967   :  { %v41551_v53 = vpack.c.bf16 %v47300_v25, %v47299_v36 }
0x1969   :  { %41528 = vmatpush3.bf16.msra.mxu1 %v47292_v46  ;;  %v31042_v46 = vand.u32 4294901760, %v46084_v29 }
0x196a   :  { %41535 = vmatprep.subr.bf16.mxu1 %v47224_v28 }
0x196b   :  { %v46118_v7 = vsub.f32 %v46084_v29, %v31042_v46 }
0x196c   :  { %39546 = vmatmul.mubr.f32.vlgmr.msra.gmra.mrb[94].mxu1 %v30120_v5 }
0x196d   :  { %41537 = vmatpush3.bf16.msra.mxu1 %v41536_v9  ;;  %39567 = vmatprep.mubr.msk.f32.mxu1 %vm42613_vm4, %v47212_v6 }
0x196e   :  { %41538 = vmatprep.subr.bf16.mxu1 %v47224_v28 }
0x1971   :  { %41540 = vmatpush3.bf16.msra.mxu1 %v41539_v24 }
0x1972   :  { %41547 = vmatprep.subr.bf16.mxu1 %v47224_v28 }
0x1974   :  { %39568 = vmatmul.mubr.f32.vlgmr.msra.gmra.mrb[96].mxu1 %v47290_v15  ;;  %v46095_v15 = vsub.f32 %v46070_v19, %v31036_v43  ;;  %v41599_v19 = vpack.c.bf16 %v31045_v32, %v31042_v46 }
0x1975   :  { %41549 = vmatpush3.bf16.msra.mxu1 %v41548_v34  ;;  %39589 = vmatprep.mubr.msk.f32.mxu1 %vm42613_vm4, %v47212_v6  ;;  %v46123_v34 = vsub.f32 %v46089_v55, %v31045_v32 }
0x1976   :  { %41550 = vmatprep.subr.bf16.mxu1 %v47224_v28  ;;  %v47137_v60 = vand.u32 4294901760, %v46095_v15 }
0x1978   :  { %v31118_v25 = vsub.f32 %v46095_v15, %v47137_v60 }
0x1979   :  { %41552 = vmatpush3.bf16.msra.mxu1 %v41551_v53  ;;  %v31125_v53 = vsub.f32 %v46101_v44, %v47136_v17 }
0x197a   :  { %41559 = vmatprep.subr.bf16.mxu1 %v47224_v28 }
0x197b   :  { %v31126_v17 = vand.u32 4294901760, %v31125_v53 }
0x197c   :  { %39590 = vmatmul.mubr.f32.vlgmr.msra.gmra.mrb[98].mxu1 %v47301_v47  ;;  %v31131_v47 = vand.u32 4294901760, %v46118_v7 }
0x197d   :  { %41561 = vmatpush3.bf16.msra.mxu1 %v45908_v1  ;;  %39611 = vmatprep.mubr.msk.f32.mxu1 %vm42613_vm4, %v47212_v6 }
0x197e   :  { %41562 = vmatprep.subr.bf16.mxu1 %v47224_v28  ;;  %v31132_v60 = vsub.f32 %v46118_v7, %v31131_v47 }
0x1981   :  { %41564 = vmatpush3.bf16.msra.mxu1 %v45913_v31 }
0x1982   :  { %41571 = vmatprep.subr.bf16.mxu1 %v47224_v28 }
0x198f   :  { %v26578_v52 = vpop.f32.mrb[50].mxu1 }
0x1990   :  { %v46078_v21 = vmax.f32 %v26578_v52, 0.0  ;;  %v39074_v22 = vpop.f32.mrb[51].mxu1  ;;  %v31138_v52 = vand.u32 4294901760, %v46123_v34 }
0x1992   :  { %v30545_v63 = vrot.slane %v46078_v21, 1  ;;  %v31033_v59 = vsel %vm55_vm0, %v46078_v21, 0 }
0x1994   :  { %v30546_v39 = vsel %vm55_vm0, %v30545_v63, 0 }
0x1995   :  { %v46105_v20 = vand.u32 4294901760, %v30546_v39 }
0x1997   :  { %v26672_v9 = vpop.f32.mrb[52].mxu1  ;;  %v30618_v5 = vsub.f32 %v30546_v39, %v46105_v20  ;;  %39623 = vmatmul.mubr.f32.vlgmr.msra.gmra.mrb[78].mxu0 %v46105_v20  ;;  %v31119_v39 = vand.u32 4294901760, %v31118_v25  ;;  %v31531_v25 = vand.u32 4294901760, %v46171_v3 }
0x1998   :  { %v26764_v27 = vadd.f32 %v45701_v30, %v26672_v9  ;;  %v39085_v24 = vpop.f32.mrb[53].mxu1  ;;  %41579 = vmatpush3.bf16.msra.mxu0 %v45908_v1  ;;  %39644 = vmatprep.mubr.msk.f32.mxu0 %vm42613_vm4, %v47212_v6 }
0x1999   :  { %41580 = vmatprep.subr.bf16.mxu0 %v47224_v28  ;;  %v30619_v30 = vand.u32 4294901760, %v30618_v5 }
0x199b   :  { %v30620_v36 = vsub.f32 %v30618_v5, %v30619_v30 }
0x199c   :  { %41582 = vmatpush3.bf16.msra.mxu0 %v45913_v31 }
0x199d   :  { %41589 = vmatprep.subr.bf16.mxu0 %v47224_v28  ;;  %v30621_v22 = vand.u32 4294901760, %v30620_v36  ;;  %v31139_v36 = vsub.f32 %v46123_v34, %v31138_v52 }
0x199f   :  { %v26843_v63 = vpop.f32.mrb[54].mxu1  ;;  %39645 = vmatmul.mubr.f32.vlgmr.msra.gmra.mrb[80].mxu0 %v30619_v30  ;;  %39612 = vmatmul.mubr.f32.vlgmr.msra.gmra.mrb[100].mxu1 %v30621_v22  ;;  %v46162_v30 = vld [vmem:[%s46980_s9 + $0x40] sm:$0xff] }
0x19a0   :  { %v26844_v9 = vadd.f32 %v26843_v63, %v26764_v27  ;;  %v39107_v24 = vpop.f32.mrb[55].mxu1  ;;  %41573 = vmatpush3.bf16.msra.mxu1 %v41572_v10  ;;  %41591 = vmatpush3.bf16.msra.mxu0 %v45908_v1  ;;  %v41602_v1 = vpack.c.bf16 %v31126_v17, %v31119_v39  ;;  %v31133_v10 = vand.u32 4294901760, %v31132_v60  ;;  %v31140_v27 = vand.u32 4294901760, %v31139_v36 }
0x19a1   :  { %41574 = vmatprep.subr.bf16.mxu1 %v47224_v28  ;;  %41592 = vmatprep.subr.bf16.mxu0 %v47224_v28  ;;  %v41596_v39 = vpack.c.bf16 %v31039_v51, %v31036_v43 }
0x19a2   :  { %39633 = vmatprep.mubr.msk.f32.mxu1 %vm42613_vm4, %v47212_v6  ;;  %39666 = vmatprep.mubr.msk.f32.mxu0 %vm42613_vm4, %v47212_v6  ;;  %v26921_v38 = vadd.f32 %v45707_v35, %v26844_v9  ;;  %v46166_v35 = vand.u32 4294901760, %v31033_v59  ;;  %v41605_v17 = vpack.c.bf16 %v31140_v27, %v31133_v10  ;;  %v46210_v9 = vsub.f32 %v46171_v3, %v31531_v25 }
0x19a4   :  { %41576 = vmatpush3.bf16.msra.mxu1 %v41575_v18  ;;  %41594 = vmatpush3.bf16.msra.mxu0 %v45913_v31  ;;  %v31528_v31 = vand.u32 4294901760, %v46162_v30  ;;  %v46180_v53 = vsub.f32 %v31033_v59, %v46166_v35 }
0x19a5   :  { %41583 = vmatprep.subr.bf16.mxu1 %v47224_v28  ;;  %41601 = vmatprep.subr.bf16.mxu0 %v47224_v28 }
0x19a6   :  { %v46200_v63 = vsub.f32 %v46162_v30, %v31528_v31 }
0x19a7   :  { %v27003_v62 = vpop.f32.mrb[56].mxu1  ;;  %39634 = vmatmul.mubr.f32.vlgmr.msra.gmra.mrb[102].mxu1 %v30618_v5  ;;  %39667 = vmatmul.mubr.f32.vlgmr.msra.gmra.mrb[82].mxu0 %v46105_v20  ;;  %v46185_v5 = vld [vmem:[%s46980_s9 + $0x50] sm:$0xff] }
0x19a8   :  { %v27004_v18 = vadd.f32 %v27003_v62, %v26921_v38  ;;  %v39129_v60 = vpop.f32.mrb[57].mxu1  ;;  %41585 = vmatpush3.bf16.msra.mxu1 %v45939_v48  ;;  %41603 = vmatpush3.bf16.msra.mxu0 %v41602_v1  ;;  %v46190_v48 = vld [vmem:[%s46980_s9 + $0x58] sm:$0xff]  ;;  %v31609_v12 = vand.u32 4294901760, %v46200_v63  ;;  %v31616_v38 = vand.u32 4294901760, %v46210_v9 }
0x19a9   :  { %41586 = vmatprep.subr.bf16.mxu1 %v47224_v28  ;;  %41604 = vmatprep.subr.bf16.mxu0 %v47224_v28  ;;  %v31537_v24 = vand.u32 4294901760, %v46190_v48  ;;  %v41611_v60 = vpack.c.bf16 %v46123_v34, %v46118_v7  ;;  %v46311_v7 = vld [vmem:[%s46980_s9 + $0x78] sm:$0xff] }
0x19aa   :  { %39655 = vmatprep.mubr.msk.f32.mxu1 %vm42613_vm4, %v47212_v6  ;;  %39688 = vmatprep.mubr.msk.f32.mxu0 %vm42613_vm4, %v47212_v6  ;;  %v27079_v22 = vadd.f32 %v45714_v37, %v27004_v18  ;;  %v31534_v37 = vand.u32 4294901760, %v46185_v5  ;;  %v31610_v32 = vsub.f32 %v46200_v63, %v31609_v12  ;;  %v31617_v1 = vsub.f32 %v46210_v9, %v31616_v38 }
0x19ab   :  { %v46233_v29 = vsub.f32 %v46190_v48, %v31537_v24 }
0x19ac   :  { %41588 = vmatpush3.bf16.msra.mxu1 %v45947_v40  ;;  %41606 = vmatpush3.bf16.msra.mxu0 %v41605_v17  ;;  %v31106_v40 = vand.u32 4294901760, %v46180_v53  ;;  %v46228_v59 = vsub.f32 %v46185_v5, %v31534_v37  ;;  %v31611_v17 = vand.u32 4294901760, %v31610_v32  ;;  %v47303_v32 = vand.u32 4294901760, %v46101_v44 }
0x19ad   :  { %41595 = vmatprep.subr.bf16.mxu1 %v47224_v28  ;;  %41613 = vmatprep.subr.bf16.mxu0 %v47224_v28  ;;  %v31630_v27 = vand.u32 4294901760, %v46233_v29  ;;  %v41635_v30 = vpack.c.bf16 %v31537_v24, %v31534_v37  ;;  %v41644_v37 = vpack.c.bf16 %v46210_v9, %v46200_v63  ;;  %v46410_v63 = vld [vmem:[%s46980_s9 + $0x88] sm:$0xff] }
0x19ae   :  { %v31107_v55 = vsub.f32 %v46180_v53, %v31106_v40  ;;  %v31623_v10 = vand.u32 4294901760, %v46228_v59 }
0x19af   :  { %v27159_v36 = vpop.f32.mrb[58].mxu1  ;;  %39656 = vmatmul.mubr.f32.vlgmr.msra.gmra.mrb[104].mxu1 %v46105_v20  ;;  %39689 = vmatmul.mubr.f32.vlgmr.msra.gmra.mrb[84].mxu0 %v46166_v35  ;;  %v41608_v20 = vpack.c.bf16 %v46101_v44, %v46095_v15 }
0x19b0   :  { %v27160_v43 = vadd.f32 %v27159_v36, %v27079_v22  ;;  %v39151_v51 = vpop.f32.mrb[59].mxu1  ;;  %41597 = vmatpush3.bf16.msra.mxu1 %v41596_v39  ;;  %41615 = vmatpush3.bf16.msra.mxu0 %v41596_v39  ;;  %v31108_v62 = vand.u32 4294901760, %v31107_v55  ;;  %v31631_v55 = vsub.f32 %v46233_v29, %v31630_v27 }
0x19b1   :  { %41598 = vmatprep.subr.bf16.mxu1 %v47224_v28  ;;  %41616 = vmatprep.subr.bf16.mxu0 %v47224_v28  ;;  %v31624_v51 = vsub.f32 %v46228_v59, %v31623_v10 }
0x19b2   :  { %39677 = vmatprep.mubr.msk.f32.mxu1 %vm42613_vm4, %v47212_v6  ;;  %39710 = vmatprep.mubr.msk.f32.mxu0 %vm42613_vm4, %v47212_v6  ;;  %v27251_v46 = vadd.f32 %v45720_v61, %v27160_v43  ;;  %v31524_v61 = vrot.slane %v46078_v21, 2  ;;  %v31618_v43 = vand.u32 4294901760, %v31617_v1 }
0x19b4   :  { %41600 = vmatpush3.bf16.msra.mxu1 %v41599_v19  ;;  %41618 = vmatpush3.bf16.msra.mxu0 %v41599_v19  ;;  %v41638_v1 = vpack.c.bf16 %v31618_v43, %v31611_v17  ;;  %v41623_v17 = vpack.c.bf16 %v31138_v52, %v31131_v47  ;;  %v41632_v52 = vpack.c.bf16 %v31531_v25, %v31528_v31 }
0x19b5   :  { %41607 = vmatprep.subr.bf16.mxu1 %v47224_v28  ;;  %41625 = vmatprep.subr.bf16.mxu0 %v47224_v28 }
0x19b7   :  { %v27330_v18 = vpop.f32.mrb[60].mxu1  ;;  %39678 = vmatmul.mubr.f32.vlgmr.msra.gmra.mrb[106].mxu1 %v31108_v62  ;;  %39711 = vmatmul.mubr.f32.vlgmr.msra.gmra.mrb[86].mxu0 %v31106_v40  ;;  %v31525_v40 = vsel %vm55_vm0, %v31524_v61, 0  ;;  %v31625_v62 = vand.u32 4294901760, %v31624_v51  ;;  %v46306_v51 = vld [vmem:[%s46980_s9 + $0x70] sm:$0xff] }
0x19b8   :  { %v27331_v22 = vadd.f32 %v27330_v18, %v27251_v46  ;;  %v39173_v36 = vpop.f32.mrb[61].mxu1  ;;  %41609 = vmatpush3.bf16.msra.mxu1 %v41608_v20  ;;  %41627 = vmatpush3.bf16.msra.mxu0 %v41596_v39  ;;  %v47302_v46 = vand.u32 4294901760, %v46095_v15  ;;  %v31632_v18 = vand.u32 4294901760, %v31631_v55  ;;  %v46288_v15 = vld [vmem:[%s46980_s9 + $0x68] sm:$0xff]  ;;  %v32027_v55 = vand.u32 4294901760, %v46306_v51 }
0x19b9   :  { %41610 = vmatprep.subr.bf16.mxu1 %v47224_v28  ;;  %41628 = vmatprep.subr.bf16.mxu0 %v47224_v28  ;;  %v46279_v36 = vld [vmem:[%s46980_s9 + $0x60] sm:$0xff]  ;;  %v32024_v43 = vand.u32 4294901760, %v46288_v15 }
0x19ba   :  { %39699 = vmatprep.mubr.msk.f32.mxu1 %vm42613_vm4, %v47212_v6  ;;  %39732 = vmatprep.mubr.msk.f32.mxu0 %vm42613_vm4, %v47212_v6  ;;  %v27408_v39 = vadd.f32 %v45726_v41, %v27331_v22  ;;  %v41620_v20 = vpack.c.bf16 %v47303_v32, %v47302_v46  ;;  %v46283_v41 = vand.u32 4294901760, %v31525_v40  ;;  %v41641_v22 = vpack.c.bf16 %v31632_v18, %v31625_v62 }
0x19bb   :  { %v32017_v18 = vrot.slane %v46078_v21, 3 }
0x19bc   :  { %41612 = vmatpush3.bf16.msra.mxu1 %v41611_v60  ;;  %41630 = vmatpush3.bf16.msra.mxu0 %v41599_v19  ;;  %v32021_v19 = vand.u32 4294901760, %v46279_v36 }
0x19bd   :  { %41619 = vmatprep.subr.bf16.mxu1 %v47224_v28  ;;  %41637 = vmatprep.subr.bf16.mxu0 %v47224_v28 }
0x19be   :  { %v46323_v47 = vsub.f32 %v46279_v36, %v32021_v19 }
0x19bf   :  { %v27490_v44 = vpop.f32.mrb[62].mxu1  ;;  %39700 = vmatmul.mubr.f32.vlgmr.msra.gmra.mrb[108].mxu1 %v46180_v53  ;;  %39733 = vmatmul.mubr.f32.vlgmr.msra.gmra.mrb[88].mxu0 %v46166_v35  ;;  %v46301_v53 = vsub.f32 %v31525_v40, %v46283_v41 }
0x19c0   :  { %v27491_v61 = vadd.f32 %v27490_v44, %v27408_v39  ;;  %v39195_v60 = vpop.f32.mrb[63].mxu1  ;;  %41621 = vmatpush3.bf16.msra.mxu1 %v41620_v20  ;;  %41639 = vmatpush3.bf16.msra.mxu0 %v41638_v1  ;;  %v32030_v39 = vand.u32 4294901760, %v46311_v7  ;;  %v32102_v3 = vand.u32 4294901760, %v46323_v47 }
0x19c1   :  { %41622 = vmatprep.subr.bf16.mxu1 %v47224_v28  ;;  %41640 = vmatprep.subr.bf16.mxu0 %v47224_v28  ;;  %v31598_v40 = vand.u32 4294901760, %v46301_v53 }
0x19c2   :  { %v46314_v34 = vadd.f32 %v45732_v0, %v27491_v61  ;;  %39721 = vmatprep.mubr.msk.f32.mxu1 %vm42613_vm4, %v47212_v6  ;;  %39754 = vmatprep.mubr.msk.f32.mxu0 %vm42613_vm4, %v47212_v6  ;;  %v46332_v0 = vsub.f32 %v46288_v15, %v32024_v43  ;;  %v46356_v5 = vsub.f32 %v46311_v7, %v32030_v39 }
0x19c3   :  { %v32103_v48 = vsub.f32 %v46323_v47, %v32102_v3  ;;  %v41647_v61 = vpack.c.bf16 %v46233_v29, %v46228_v59  ;;  %v46433_v59 = vld [vmem:[%s46980_s9 + $0x98] sm:$0xff] }
0x19c4   :  { %41624 = vmatpush3.bf16.msra.mxu1 %v41623_v17  ;;  %41642 = vmatpush3.bf16.msra.mxu0 %v41641_v22  ;;  %v32109_v32 = vand.u32 4294901760, %v46332_v0  ;;  %v32123_v1 = vand.u32 4294901760, %v46356_v5  ;;  %v32523_v15 = vand.u32 4294901760, %v46433_v59 }
0x19c5   :  { %41631 = vmatprep.subr.bf16.mxu1 %v47224_v28  ;;  %41649 = vmatprep.subr.bf16.mxu0 %v47224_v28  ;;  %v32104_v60 = vand.u32 4294901760, %v32103_v48 }
0x19c6   :  { %v32110_v24 = vsub.f32 %v46332_v0, %v32109_v32 }
0x19c7   :  { %v27652_v46 = vpop.f32.mrb[64].mxu1  ;;  %39722 = vmatmul.mubr.f32.vlgmr.msra.gmra.mrb[110].mxu1 %v46166_v35  ;;  %39755 = vmatmul.mubr.f32.vlgmr.msra.gmra.mrb[90].mxu0 %v46283_v41  ;;  %v46351_v35 = vsub.f32 %v46306_v51, %v32027_v55  ;;  %v46479_v51 = vsub.f32 %v46433_v59, %v32523_v15 }
0x19c8   :  { %v27744_v31 = vadd.f32 %v45743_v11, %v27652_v46  ;;  %v39217_v25 = vpop.f32.mrb[65].mxu1  ;;  %41633 = vmatpush3.bf16.msra.mxu1 %v41632_v52  ;;  %41651 = vmatpush3.bf16.msra.mxu0 %v41632_v52  ;;  %v31599_v11 = vsub.f32 %v46301_v53, %v31598_v40  ;;  %v32111_v46 = vand.u32 4294901760, %v32110_v24 }
0x19c9   :  { %41634 = vmatprep.subr.bf16.mxu1 %v47224_v28  ;;  %41652 = vmatprep.subr.bf16.mxu0 %v47224_v28  ;;  %v32116_v20 = vand.u32 4294901760, %v46351_v35 }
0x19ca   :  { %39743 = vmatprep.mubr.msk.f32.mxu1 %vm42613_vm4, %v47212_v6  ;;  %39776 = vmatprep.mubr.msk.f32.mxu0 %vm42613_vm4, %v47212_v6  ;;  %v31600_v62 = vand.u32 4294901760, %v31599_v11  ;;  %v32124_v11 = vsub.f32 %v46356_v5, %v32123_v1  ;;  %v41674_v48 = vpack.c.bf16 %v32111_v46, %v32104_v60  ;;  %v46428_v60 = vld [vmem:[%s46980_s9 + $0x90] sm:$0xff] }
0x19cb   :  { %v32117_v25 = vsub.f32 %v46351_v35, %v32116_v20  ;;  %v32520_v36 = vand.u32 4294901760, %v46428_v60 }
0x19cc   :  { %41636 = vmatpush3.bf16.msra.mxu1 %v41635_v30  ;;  %41654 = vmatpush3.bf16.msra.mxu0 %v41635_v30  ;;  %v32125_v24 = vand.u32 4294901760, %v32124_v11 }
0x19cd   :  { %41643 = vmatprep.subr.bf16.mxu1 %v47224_v28  ;;  %41661 = vmatprep.subr.bf16.mxu0 %v47224_v28 }
0x19cf   :  { %v27823_v44 = vpop.f32.mrb[66].mxu1  ;;  %39744 = vmatmul.mubr.f32.vlgmr.msra.gmra.mrb[112].mxu1 %v31600_v62  ;;  %39777 = vmatmul.mubr.f32.vlgmr.msra.gmra.mrb[92].mxu0 %v31598_v40  ;;  %v32018_v40 = vsel %vm55_vm0, %v32017_v18, 0  ;;  %v46401_v62 = vld [vmem:[%s46980_s9 + $0x80] sm:$0xff]  ;;  %v41659_v18 = vpack.c.bf16 %v31630_v27, %v31623_v10  ;;  %v41668_v10 = vpack.c.bf16 %v32024_v43, %v32021_v19 }
0x19d0   :  { %v27824_v17 = vadd.f32 %v27823_v44, %v27744_v31  ;;  %v39239_v22 = vpop.f32.mrb[67].mxu1  ;;  %41645 = vmatpush3.bf16.msra.mxu1 %v41644_v37  ;;  %41663 = vmatpush3.bf16.msra.mxu0 %v41632_v52  ;;  %v41656_v31 = vpack.c.bf16 %v31616_v38, %v31609_v12  ;;  %v32118_v37 = vand.u32 4294901760, %v32117_v25  ;;  %v32514_v12 = vand.u32 4294901760, %v46401_v62 }
0x19d1   :  { %41646 = vmatprep.subr.bf16.mxu1 %v47224_v28  ;;  %41664 = vmatprep.subr.bf16.mxu0 %v47224_v28 }
0x19d2   :  { %39765 = vmatprep.mubr.msk.f32.mxu1 %vm42613_vm4, %v47212_v6  ;;  %39798 = vmatprep.mubr.msk.f32.mxu0 %vm42613_vm4, %v47212_v6  ;;  %v27901_v52 = vadd.f32 %v45753_v50, %v27824_v17  ;;  %v46405_v50 = vand.u32 4294901760, %v32018_v40  ;;  %v41677_v44 = vpack.c.bf16 %v32125_v24, %v32118_v37  ;;  %v46447_v27 = vsub.f32 %v46401_v62, %v32514_v12 }
0x19d3   :  { %v41683_v24 = vpack.c.bf16 %v46356_v5, %v46351_v35  ;;  %v46556_v35 = vld [vmem:[%s46980_s9 + $0xb8] sm:$0xff] }
0x19d4   :  { %41648 = vmatpush3.bf16.msra.mxu1 %v41647_v61  ;;  %41666 = vmatpush3.bf16.msra.mxu0 %v41635_v30  ;;  %v32517_v61 = vand.u32 4294901760, %v46410_v63  ;;  %v32595_v22 = vand.u32 4294901760, %v46447_v27 }
0x19d5   :  { %41655 = vmatprep.subr.bf16.mxu1 %v47224_v28  ;;  %41673 = vmatprep.subr.bf16.mxu0 %v47224_v28 }
0x19d6   :  { %v32596_v7 = vsub.f32 %v46447_v27, %v32595_v22 }
0x19d7   :  { %v27983_v9 = vpop.f32.mrb[68].mxu1  ;;  %39766 = vmatmul.mubr.f32.vlgmr.msra.gmra.mrb[114].mxu1 %v46301_v53  ;;  %39799 = vmatmul.mubr.f32.vlgmr.msra.gmra.mrb[94].mxu0 %v46283_v41  ;;  %v46423_v53 = vsub.f32 %v32018_v40, %v46405_v50  ;;  %v32616_v40 = vand.u32 4294901760, %v46479_v51 }
0x19d8   :  { %v27984_v38 = vadd.f32 %v27983_v9, %v27901_v52  ;;  %v39261_v30 = vpop.f32.mrb[69].mxu1  ;;  %41657 = vmatpush3.bf16.msra.mxu1 %v41656_v31  ;;  %41675 = vmatpush3.bf16.msra.mxu0 %v41674_v48  ;;  %v32510_v48 = vrot.slane %v46078_v21, 4  ;;  %v32597_v9 = vand.u32 4294901760, %v32596_v7  ;;  %v46524_v7 = vld [vmem:[%s46980_s9 + $0xa0] sm:$0xff] }
0x19d9   :  { %41658 = vmatprep.subr.bf16.mxu1 %v47224_v28  ;;  %41676 = vmatprep.subr.bf16.mxu0 %v47224_v28  ;;  %v32091_v19 = vand.u32 4294901760, %v46423_v53 }
0x19da   :  { %v28059_v29 = vadd.f32 %v45768_v8, %v27984_v38  ;;  %39787 = vmatprep.mubr.msk.f32.mxu1 %vm42613_vm4, %v47212_v6  ;;  %39820 = vmatprep.mubr.msk.f32.mxu0 %vm42613_vm4, %v47212_v6  ;;  %v46455_v8 = vsub.f32 %v46410_v63, %v32517_v61  ;;  %v33016_v63 = vand.u32 4294901760, %v46556_v35 }
0x19dc   :  { %v46450_v17 = vadd.f32 %v28059_v29, %v46314_v34  ;;  %41660 = vmatpush3.bf16.msra.mxu1 %v41659_v18  ;;  %41678 = vmatpush3.bf16.msra.mxu0 %v41677_v44  ;;  %v41671_v34 = vpack.c.bf16 %v32030_v39, %v32027_v55  ;;  %v32602_v11 = vand.u32 4294901760, %v46455_v8  ;;  %v41680_v55 = vpack.c.bf16 %v46332_v0, %v46323_v47  ;;  %v46533_v47 = vld [vmem:[%s46980_s9 + $0xa8] sm:$0xff] }
0x19dd   :  { %41667 = vmatprep.subr.bf16.mxu1 %v47224_v28  ;;  %41685 = vmatprep.subr.bf16.mxu0 %v47224_v28  ;;  %v32617_v29 = vsub.f32 %v46479_v51, %v32616_v40 }
0x19de   :  { %v32603_v39 = vsub.f32 %v46455_v8, %v32602_v11 }
0x19df   :  { %v28146_v43 = vpop.f32.mrb[70].mxu1  ;;  %39788 = vmatmul.mubr.f32.vlgmr.msra.gmra.mrb[116].mxu1 %v46283_v41  ;;  %39821 = vmatmul.mubr.f32.vlgmr.msra.gmra.mrb[96].mxu0 %v46405_v50  ;;  %v46474_v41 = vsub.f32 %v46428_v60, %v32520_v36  ;;  %v46602_v60 = vsub.f32 %v46556_v35, %v33016_v63 }
0x19e0   :  { %v28238_v46 = vadd.f32 %v45780_v16, %v28146_v43  ;;  %v39283_v25 = vpop.f32.mrb[71].mxu1  ;;  %41669 = vmatpush3.bf16.msra.mxu1 %v41668_v10  ;;  %41687 = vmatpush3.bf16.msra.mxu0 %v41668_v10  ;;  %v32092_v16 = vsub.f32 %v46423_v53, %v32091_v19  ;;  %v32604_v18 = vand.u32 4294901760, %v32603_v39  ;;  %v41692_v43 = vpack.c.bf16 %v32109_v32, %v32102_v3 }
0x19e1   :  { %41670 = vmatprep.subr.bf16.mxu1 %v47224_v28  ;;  %41688 = vmatprep.subr.bf16.mxu0 %v47224_v28  ;;  %v32609_v52 = vand.u32 4294901760, %v46474_v41  ;;  %v33007_v3 = vand.u32 4294901760, %v46524_v7 }
0x19e2   :  { %39809 = vmatprep.mubr.msk.f32.mxu1 %vm42613_vm4, %v47212_v6  ;;  %39842 = vmatprep.mubr.msk.f32.mxu0 %vm42613_vm4, %v47212_v6  ;;  %v32093_v31 = vand.u32 4294901760, %v32092_v16  ;;  %v32618_v16 = vand.u32 4294901760, %v32617_v29 }
0x19e3   :  { %v32610_v44 = vsub.f32 %v46474_v41, %v32609_v52 }
0x19e4   :  { %41672 = vmatpush3.bf16.msra.mxu1 %v41671_v34  ;;  %41690 = vmatpush3.bf16.msra.mxu0 %v41671_v34 }
0x19e5   :  { %41679 = vmatprep.subr.bf16.mxu1 %v47224_v28  ;;  %41697 = vmatprep.subr.bf16.mxu0 %v47224_v28  ;;  %v32611_v25 = vand.u32 4294901760, %v32610_v44  ;;  %v33109_v44 = vand.u32 4294901760, %v46602_v60 }
0x19e7   :  { %v28317_v37 = vpop.f32.mrb[72].mxu1  ;;  %39810 = vmatmul.mubr.f32.vlgmr.msra.gmra.mrb[118].mxu1 %v32093_v31  ;;  %39843 = vmatmul.mubr.f32.vlgmr.msra.gmra.mrb[98].mxu0 %v32091_v19  ;;  %v32511_v19 = vsel %vm55_vm0, %v32510_v48, 0  ;;  %v41713_v39 = vpack.c.bf16 %v32618_v16, %v32611_v25  ;;  %v33010_v31 = vand.u32 4294901760, %v46533_v47  ;;  %v46551_v48 = vld [vmem:[%s46980_s9 + $0xb0] sm:$0xff] }
0x19e8   :  { %v28318_v38 = vadd.f32 %v28317_v37, %v28238_v46  ;;  %v39305_v30 = vpop.f32.mrb[73].mxu1  ;;  %41681 = vmatpush3.bf16.msra.mxu1 %v41680_v55  ;;  %41699 = vmatpush3.bf16.msra.mxu0 %v41668_v10  ;;  %v41710_v46 = vpack.c.bf16 %v32604_v18, %v32597_v9  ;;  %v41695_v55 = vpack.c.bf16 %v32123_v1, %v32116_v20  ;;  %v33013_v62 = vand.u32 4294901760, %v46551_v48 }
0x19e9   :  { %41682 = vmatprep.subr.bf16.mxu1 %v47224_v28  ;;  %41700 = vmatprep.subr.bf16.mxu0 %v47224_v28  ;;  %v41704_v20 = vpack.c.bf16 %v32517_v61, %v32514_v12  ;;  %v46570_v1 = vsub.f32 %v46524_v7, %v33007_v3 }
0x19ea   :  { %39831 = vmatprep.mubr.msk.f32.mxu1 %vm42613_vm4, %v47212_v6  ;;  %39864 = vmatprep.mubr.msk.f32.mxu0 %vm42613_vm4, %v47212_v6  ;;  %v28395_v10 = vadd.f32 %v45790_v56, %v28318_v38  ;;  %v46528_v56 = vand.u32 4294901760, %v32511_v19 }
0x19ec   :  { %41684 = vmatpush3.bf16.msra.mxu1 %v41683_v24  ;;  %41702 = vmatpush3.bf16.msra.mxu0 %v41671_v34  ;;  %v33088_v24 = vand.u32 4294901760, %v46570_v1 }
0x19ed   :  { %41691 = vmatprep.subr.bf16.mxu1 %v47224_v28  ;;  %41709 = vmatprep.subr.bf16.mxu0 %v47224_v28 }
0x19ee   :  { %v33089_v59 = vsub.f32 %v46570_v1, %v33088_v24 }
0x19ef   :  { %v28477_v0 = vpop.f32.mrb[74].mxu1  ;;  %39832 = vmatmul.mubr.f32.vlgmr.msra.gmra.mrb[120].mxu1 %v46423_v53  ;;  %39865 = vmatmul.mubr.f32.vlgmr.msra.gmra.mrb[100].mxu0 %v46405_v50  ;;  %v46546_v53 = vsub.f32 %v32511_v19, %v46528_v56 }
0x19f0   :  { %v28478_v32 = vadd.f32 %v28477_v0, %v28395_v10  ;;  %v39327_v34 = vpop.f32.mrb[75].mxu1  ;;  %41693 = vmatpush3.bf16.msra.mxu1 %v41692_v43  ;;  %41711 = vmatpush3.bf16.msra.mxu0 %v41710_v46  ;;  %v33003_v10 = vrot.slane %v46078_v21, 5  ;;  %v41719_v43 = vpack.c.bf16 %v46479_v51, %v46474_v41  ;;  %v33090_v46 = vand.u32 4294901760, %v33089_v59  ;;  %v46679_v41 = vld [vmem:[%s46980_s9 + $0xd8] sm:$0xff] }
0x19f1   :  { %41694 = vmatprep.subr.bf16.mxu1 %v47224_v28  ;;  %41712 = vmatprep.subr.bf16.mxu0 %v47224_v28  ;;  %v32584_v12 = vand.u32 4294901760, %v46546_v53  ;;  %v33110_v34 = vsub.f32 %v46602_v60, %v33109_v44 }
0x19f2   :  { %v28553_v5 = vadd.f32 %v45805_v49, %v28478_v32  ;;  %39853 = vmatprep.mubr.msk.f32.mxu1 %vm42613_vm4, %v47212_v6  ;;  %39886 = vmatprep.mubr.msk.f32.mxu0 %vm42613_vm4, %v47212_v6  ;;  %v46578_v49 = vsub.f32 %v46533_v47, %v33010_v31  ;;  %v33509_v47 = vand.u32 4294901760, %v46679_v41 }
0x19f4   :  { %v46573_v37 = vadd.f32 %v28553_v5, %v46450_v17  ;;  %41696 = vmatpush3.bf16.msra.mxu1 %v41695_v55  ;;  %41714 = vmatpush3.bf16.msra.mxu0 %v41713_v39  ;;  %v41707_v17 = vpack.c.bf16 %v32523_v15, %v32520_v36  ;;  %v33095_v30 = vand.u32 4294901760, %v46578_v49  ;;  %v41716_v36 = vpack.c.bf16 %v46455_v8, %v46447_v27  ;;  %v46656_v27 = vld [vmem:[%s46980_s9 + $0xc8] sm:$0xff] }
0x19f5   :  { %41703 = vmatprep.subr.bf16.mxu1 %v47224_v28  ;;  %41721 = vmatprep.subr.bf16.mxu0 %v47224_v28  ;;  %v33004_v39 = vsel %vm55_vm0, %v33003_v10, 0  ;;  %v41728_v5 = vpack.c.bf16 %v32602_v11, %v32595_v22  ;;  %v33503_v59 = vand.u32 4294901760, %v46656_v27 }
0x19f6   :  { %v33096_v15 = vsub.f32 %v46578_v49, %v33095_v30 }
0x19f7   :  { %v28640_v61 = vpop.f32.mrb[76].mxu1  ;;  %39854 = vmatmul.mubr.f32.vlgmr.msra.gmra.mrb[122].mxu1 %v46405_v50  ;;  %39887 = vmatmul.mubr.f32.vlgmr.msra.gmra.mrb[102].mxu0 %v46528_v56  ;;  %v46597_v50 = vsub.f32 %v46551_v48, %v33013_v62  ;;  %v46725_v48 = vsub.f32 %v46679_v41, %v33509_v47 }
0x19f8   :  { %v28732_v9 = vadd.f32 %v45817_v2, %v28640_v61  ;;  %v39349_v38 = vpop.f32.mrb[77].mxu1  ;;  %41705 = vmatpush3.bf16.msra.mxu1 %v41704_v20  ;;  %41723 = vmatpush3.bf16.msra.mxu0 %v41704_v20  ;;  %v32585_v2 = vsub.f32 %v46546_v53, %v32584_v12  ;;  %v33097_v0 = vand.u32 4294901760, %v33096_v15  ;;  %v33111_v61 = vand.u32 4294901760, %v33110_v34 }
0x19f9   :  { %41706 = vmatprep.subr.bf16.mxu1 %v47224_v28  ;;  %41724 = vmatprep.subr.bf16.mxu0 %v47224_v28  ;;  %v33102_v18 = vand.u32 4294901760, %v46597_v50  ;;  %v41731_v38 = vpack.c.bf16 %v32616_v40, %v32609_v52  ;;  %v41740_v52 = vpack.c.bf16 %v33010_v31, %v33007_v3  ;;  %v41755_v34 = vpack.c.bf16 %v46602_v60, %v46597_v50 }
0x19fa   :  { %39875 = vmatprep.mubr.msk.f32.mxu1 %vm42613_vm4, %v47212_v6  ;;  %39908 = vmatprep.mubr.msk.f32.mxu0 %vm42613_vm4, %v47212_v6  ;;  %v32586_v29 = vand.u32 4294901760, %v32585_v2 }
0x19fb   :  { %v33103_v32 = vsub.f32 %v46597_v50, %v33102_v18  ;;  %v46802_v50 = vld [vmem:[%s46980_s9 + $0xf8] sm:$0xff] }
0x19fc   :  { %41708 = vmatpush3.bf16.msra.mxu1 %v41707_v17  ;;  %41726 = vmatpush3.bf16.msra.mxu0 %v41707_v17 }
0x19fd   :  { %41715 = vmatprep.subr.bf16.mxu1 %v47224_v28  ;;  %41733 = vmatprep.subr.bf16.mxu0 %v47224_v28 }
0x19ff   :  { %v28811_v19 = vpop.f32.mrb[78].mxu1  ;;  %39876 = vmatmul.mubr.f32.vlgmr.msra.gmra.mrb[124].mxu1 %v32586_v29  ;;  %39909 = vmatmul.mubr.f32.vlgmr.msra.gmra.mrb[104].mxu0 %v32584_v12  ;;  %v33104_v12 = vand.u32 4294901760, %v33103_v32 }
0x1a00   :  { %v28812_v25 = vadd.f32 %v28811_v19, %v28732_v9  ;;  %v39371_v16 = vpop.f32.mrb[79].mxu1  ;;  %41717 = vmatpush3.bf16.msra.mxu1 %v41716_v36  ;;  %41735 = vmatpush3.bf16.msra.mxu0 %v41704_v20  ;;  %v41746_v20 = vpack.c.bf16 %v33097_v0, %v33090_v46  ;;  %v46647_v9 = vld [vmem:[%s46980_s9 + $0xc0] sm:$0xff]  ;;  %v46674_v36 = vld [vmem:[%s46980_s9 + $0xd0] sm:$0xff]  ;;  %v33496_v0 = vrot.slane %v46078_v21, 6 }
0x1a01   :  { %41718 = vmatprep.subr.bf16.mxu1 %v47224_v28  ;;  %41736 = vmatprep.subr.bf16.mxu0 %v47224_v28  ;;  %v33500_v22 = vand.u32 4294901760, %v46647_v9  ;;  %v41749_v2 = vpack.c.bf16 %v33111_v61, %v33104_v12  ;;  %v33506_v7 = vand.u32 4294901760, %v46674_v36 }
0x1a02   :  { %39897 = vmatprep.mubr.msk.f32.mxu1 %vm42613_vm4, %v47212_v6  ;;  %39930 = vmatprep.mubr.msk.f32.mxu0 %vm42613_vm4, %v47212_v6  ;;  %v28889_v55 = vadd.f32 %v45827_v57, %v28812_v25  ;;  %v46651_v57 = vand.u32 4294901760, %v33004_v39  ;;  %v33602_v25 = vand.u32 4294901760, %v46725_v48 }
0x1a03   :  { %v46693_v40 = vsub.f32 %v46647_v9, %v33500_v22 }
0x1a04   :  { %41720 = vmatpush3.bf16.msra.mxu1 %v41719_v43  ;;  %41738 = vmatpush3.bf16.msra.mxu0 %v41707_v17  ;;  %v33603_v61 = vsub.f32 %v46725_v48, %v33602_v25 }
0x1a05   :  { %41727 = vmatprep.subr.bf16.mxu1 %v47224_v28  ;;  %41745 = vmatprep.subr.bf16.mxu0 %v47224_v28  ;;  %v33581_v29 = vand.u32 4294901760, %v46693_v40 }
0x1a07   :  { %v28971_v8 = vpop.f32.mrb[80].mxu1  ;;  %39898 = vmatmul.mubr.f32.vlgmr.msra.gmra.mrb[126].mxu1 %v46546_v53  ;;  %39931 = vmatmul.mubr.f32.vlgmr.msra.gmra.mrb[106].mxu0 %v46528_v56  ;;  %v46669_v53 = vsub.f32 %v33004_v39, %v46651_v57  ;;  %v33582_v35 = vsub.f32 %v46693_v40, %v33581_v29 }
0x1a08   :  { %v28972_v11 = vadd.f32 %v28971_v8, %v28889_v55  ;;  %v39393_v17 = vpop.f32.mrb[81].mxu1  ;;  %41729 = vmatpush3.bf16.msra.mxu1 %v41728_v5  ;;  %41747 = vmatpush3.bf16.msra.mxu0 %v41746_v20 }
0x1a09   :  { %41730 = vmatprep.subr.bf16.mxu1 %v47224_v28  ;;  %41748 = vmatprep.subr.bf16.mxu0 %v47224_v28  ;;  %v33077_v3 = vand.u32 4294901760, %v46669_v53  ;;  %v33583_v55 = vand.u32 4294901760, %v33582_v35  ;;  %v41764_v17 = vpack.c.bf16 %v33095_v30, %v33088_v24 }
0x1a0a   :  { %v29047_v51 = vadd.f32 %v45842_v23, %v28972_v11  ;;  %39919 = vmatprep.mubr.msk.f32.mxu1 %vm42613_vm4, %v47212_v6  ;;  %39952 = vmatprep.mubr.msk.f32.mxu0 %vm42613_vm4, %v47212_v6  ;;  %v46701_v23 = vsub.f32 %v46656_v27, %v33503_v59  ;;  %v33497_v11 = vsel %vm55_vm0, %v33496_v0, 0  ;;  %v34002_v27 = vand.u32 4294901760, %v46802_v50 }
0x1a0c   :  { %v46696_v15 = vadd.f32 %v29047_v51, %v46573_v37  ;;  %41732 = vmatpush3.bf16.msra.mxu1 %v41731_v38  ;;  %41750 = vmatpush3.bf16.msra.mxu0 %v41749_v2  ;;  %v41743_v37 = vpack.c.bf16 %v33016_v63, %v33013_v62  ;;  %v33588_v43 = vand.u32 4294901760, %v46701_v23  ;;  %v41752_v62 = vpack.c.bf16 %v46578_v49, %v46570_v1  ;;  %v46779_v1 = vld [vmem:[%s46980_s9 + $0xe8] sm:$0xff] }
0x1a0d   :  { %41739 = vmatprep.subr.bf16.mxu1 %v47224_v28  ;;  %41757 = vmatprep.subr.bf16.mxu0 %v47224_v28  ;;  %v33604_v51 = vand.u32 4294901760, %v33603_v61 }
0x1a0e   :  { %v33589_v63 = vsub.f32 %v46701_v23, %v33588_v43 }
0x1a0f   :  { %v29134_v31 = vpop.f32.mrb[82].mxu1  ;;  %39920 = vmatmul.mubr.f32.vlgmr.msra.gmra.mrb[128].mxu1 %v46528_v56  ;;  %39953 = vmatmul.mubr.f32.vlgmr.msra.gmra.mrb[108].mxu0 %v46651_v57  ;;  %v46720_v56 = vsub.f32 %v46674_v36, %v33506_v7  ;;  %v46848_v36 = vsub.f32 %v46802_v50, %v34002_v27 }
0x1a10   :  { %v29226_v10 = vadd.f32 %v45860_v45, %v29134_v31  ;;  %v39415_v19 = vpop.f32.mrb[83].mxu1  ;;  %41741 = vmatpush3.bf16.msra.mxu1 %v41740_v52  ;;  %41759 = vmatpush3.bf16.msra.mxu0 %v41740_v52  ;;  %v33078_v45 = vsub.f32 %v46669_v53, %v33077_v3  ;;  %v33590_v20 = vand.u32 4294901760, %v33589_v63  ;;  %v41767_v31 = vpack.c.bf16 %v33109_v44, %v33102_v18 }
0x1a11   :  { %41742 = vmatprep.subr.bf16.mxu1 %v47224_v28  ;;  %41760 = vmatprep.subr.bf16.mxu0 %v47224_v28  ;;  %v33595_v46 = vand.u32 4294901760, %v46720_v56  ;;  %v46797_v19 = vld [vmem:[%s46980_s9 + $0xf0] sm:$0xff]  ;;  %v41776_v18 = vpack.c.bf16 %v33503_v59, %v33500_v22 }
0x1a12   :  { %39941 = vmatprep.mubr.msk.f32.mxu1 %vm42613_vm4, %v47212_v6  ;;  %39974 = vmatprep.mubr.msk.f32.mxu0 %vm42613_vm4, %v47212_v6  ;;  %v33079_v16 = vand.u32 4294901760, %v33078_v45  ;;  %v41782_v38 = vpack.c.bf16 %v33590_v20, %v33583_v55  ;;  %v33999_v9 = vand.u32 4294901760, %v46797_v19  ;;  %v33989_v55 = vrot.slane %v46078_v21, 7 }
0x1a13   :  { %v33596_v12 = vsub.f32 %v46720_v56, %v33595_v46 }
0x1a14   :  { %41744 = vmatpush3.bf16.msra.mxu1 %v41743_v37  ;;  %41762 = vmatpush3.bf16.msra.mxu0 %v41743_v37 }
0x1a15   :  { %41751 = vmatprep.subr.bf16.mxu1 %v47224_v28  ;;  %41769 = vmatprep.subr.bf16.mxu0 %v47224_v28  ;;  %v33597_v2 = vand.u32 4294901760, %v33596_v12 }
0x1a17   :  { %v29305_v32 = vpop.f32.mrb[84].mxu1  ;;  %39942 = vmatmul.mubr.f32.vlgmr.msra.gmra.mrb[130].mxu1 %v33079_v16  ;;  %39975 = vmatmul.mubr.f32.vlgmr.msra.gmra.mrb[110].mxu0 %v33077_v3 }
0x1a18   :  { %v29306_v39 = vadd.f32 %v29305_v32, %v29226_v10  ;;  %v39437_v5 = vpop.f32.mrb[85].mxu1  ;;  %41753 = vmatpush3.bf16.msra.mxu1 %v41752_v62  ;;  %41771 = vmatpush3.bf16.msra.mxu0 %v41740_v52  ;;  %v46770_v52 = vld [vmem:[%s46980_s9 + $0xe0] sm:$0xff]  ;;  %v33996_v10 = vand.u32 4294901760, %v46779_v1  ;;  %v34095_v32 = vand.u32 4294901760, %v46848_v36 }
0x1a19   :  { %41754 = vmatprep.subr.bf16.mxu1 %v47224_v28  ;;  %41772 = vmatprep.subr.bf16.mxu0 %v47224_v28  ;;  %v33993_v24 = vand.u32 4294901760, %v46770_v52  ;;  %v41791_v5 = vpack.c.bf16 %v46725_v48, %v46720_v56 }
0x1a1a   :  { %39963 = vmatprep.mubr.msk.f32.mxu1 %vm42613_vm4, %v47212_v6  ;;  %39996 = vmatprep.mubr.msk.f32.mxu0 %vm42613_vm4, %v47212_v6  ;;  %v29383_v8 = vadd.f32 %v45890_v13, %v29306_v39  ;;  %v46774_v13 = vand.u32 4294901760, %v33497_v11  ;;  %v34096_v21 = vsub.f32 %v46848_v36, %v34095_v32 }
0x1a1b   :  { %v46816_v44 = vsub.f32 %v46770_v52, %v33993_v24  ;;  %v41812_v48 = vpack.c.bf16 %v33996_v10, %v33993_v24  ;;  %v41815_v52 = vpack.c.bf16 %v34002_v27, %v33999_v9 }
0x1a1c   :  { %41756 = vmatpush3.bf16.msra.mxu1 %v41755_v34  ;;  %41774 = vmatpush3.bf16.msra.mxu0 %v41743_v37  ;;  %v41785_v37 = vpack.c.bf16 %v33604_v51, %v33597_v2  ;;  %v41800_v2 = vpack.c.bf16 %v33588_v43, %v33581_v29 }
0x1a1d   :  { %41763 = vmatprep.subr.bf16.mxu1 %v47224_v28  ;;  %41781 = vmatprep.subr.bf16.mxu0 %v47224_v28  ;;  %v34074_v35 = vand.u32 4294901760, %v46816_v44 }
0x1a1f   :  { %v29465_v49 = vpop.f32.mrb[86].mxu1  ;;  %39964 = vmatmul.mubr.f32.vlgmr.msra.gmra.mrb[132].mxu1 %v46669_v53  ;;  %39997 = vmatmul.mubr.f32.vlgmr.msra.gmra.mrb[112].mxu0 %v46651_v57  ;;  %v46792_v53 = vsub.f32 %v33497_v11, %v46774_v13  ;;  %v34075_v41 = vsub.f32 %v46816_v44, %v34074_v35 }
0x1a20   :  { %v29466_v30 = vadd.f32 %v29465_v49, %v29383_v8  ;;  %v39459_v3 = vpop.f32.mrb[87].mxu1  ;;  %41765 = vmatpush3.bf16.msra.mxu1 %v41764_v17  ;;  %41783 = vmatpush3.bf16.msra.mxu0 %v41782_v38  ;;  %v33990_v38 = vsel %vm55_vm0, %v33989_v55, 0 }
0x1a21   :  { %41766 = vmatprep.subr.bf16.mxu1 %v47224_v28  ;;  %41784 = vmatprep.subr.bf16.mxu0 %v47224_v28  ;;  %v33570_v22 = vand.u32 4294901760, %v46792_v53  ;;  %v34076_v20 = vand.u32 4294901760, %v34075_v41  ;;  %v46892_v3 = vand.u32 4294901760, %v33990_v38 }
0x1a22   :  { %v29541_v60 = vadd.f32 %v45910_v54, %v29466_v30  ;;  %39985 = vmatprep.mubr.msk.f32.mxu1 %vm42613_vm4, %v47212_v6  ;;  %40018 = vmatprep.mubr.msk.f32.mxu0 %vm42613_vm4, %v47212_v6  ;;  %v46824_v54 = vsub.f32 %v46779_v1, %v33996_v10  ;;  %v34097_v30 = vand.u32 4294901760, %v34096_v21 }
0x1a23   :  { %v34062_v29 = vsub.f32 %v33990_v38, %v46892_v3 }
0x1a24   :  { %v46819_v45 = vadd.f32 %v29541_v60, %v46696_v15  ;;  %41768 = vmatpush3.bf16.msra.mxu1 %v41767_v31  ;;  %41786 = vmatpush3.bf16.msra.mxu0 %v41785_v37  ;;  %v41779_v15 = vpack.c.bf16 %v33509_v47, %v33506_v7  ;;  %v34081_v16 = vand.u32 4294901760, %v46824_v54  ;;  %v41788_v7 = vpack.c.bf16 %v46701_v23, %v46693_v40 }
0x1a25   :  { %41775 = vmatprep.subr.bf16.mxu1 %v47224_v28  ;;  %41793 = vmatprep.subr.bf16.mxu0 %v47224_v28  ;;  %v41803_v40 = vpack.c.bf16 %v33602_v25, %v33595_v46 }
0x1a26   :  { %v34082_v47 = vsub.f32 %v46824_v54, %v34081_v16 }
0x1a27   :  { %v29628_v59 = vpop.f32.mrb[88].mxu1  ;;  %39986 = vmatmul.mubr.f32.vlgmr.msra.gmra.mrb[134].mxu1 %v46651_v57  ;;  %40019 = vmatmul.mubr.f32.vlgmr.msra.gmra.mrb[114].mxu0 %v46774_v13  ;;  %v46843_v57 = vsub.f32 %v46797_v19, %v33999_v9 }
0x1a28   :  { %v29720_v62 = vadd.f32 %v45927_v33, %v29628_v59  ;;  %v39481_v63 = vpop.f32.mrb[89].mxu1  ;;  %41777 = vmatpush3.bf16.msra.mxu1 %v41776_v18  ;;  %41795 = vmatpush3.bf16.msra.mxu0 %v41776_v18  ;;  %v33571_v33 = vsub.f32 %v46792_v53, %v33570_v22  ;;  %v34083_v8 = vand.u32 4294901760, %v34082_v47 }
0x1a29   :  { %41778 = vmatprep.subr.bf16.mxu1 %v47224_v28  ;;  %41796 = vmatprep.subr.bf16.mxu0 %v47224_v28  ;;  %v34088_v0 = vand.u32 4294901760, %v46843_v57  ;;  %v41827_v50 = vpack.c.bf16 %v46848_v36, %v46843_v57 }
0x1a2a   :  { %40007 = vmatprep.mubr.msk.f32.mxu1 %vm42613_vm4, %v47212_v6  ;;  %40040 = vmatprep.mubr.msk.f32.mxu0 %vm42613_vm4, %v47212_v6  ;;  %v33572_v34 = vand.u32 4294901760, %v33571_v33  ;;  %v41818_v51 = vpack.c.bf16 %v34083_v8, %v34076_v20 }
0x1a2b   :  { %v34089_v11 = vsub.f32 %v46843_v57, %v34088_v0 }
0x1a2c   :  { %41780 = vmatpush3.bf16.msra.mxu1 %v41779_v15  ;;  %41798 = vmatpush3.bf16.msra.mxu0 %v41779_v15 }
0x1a2d   :  { %41787 = vmatprep.subr.bf16.mxu1 %v47224_v28  ;;  %41805 = vmatprep.subr.bf16.mxu0 %v47224_v28  ;;  %v34090_v49 = vand.u32 4294901760, %v34089_v11 }
0x1a2f   :  { %v29799_v39 = vpop.f32.mrb[90].mxu1  ;;  %40008 = vmatmul.mubr.f32.vlgmr.msra.gmra.mrb[136].mxu1 %v33572_v34  ;;  %40041 = vmatmul.mubr.f32.vlgmr.msra.gmra.mrb[116].mxu0 %v33570_v22  ;;  %v41821_v23 = vpack.c.bf16 %v34097_v30, %v34090_v49 }
0x1a30   :  { %v29800_v12 = vadd.f32 %v29799_v39, %v29720_v62  ;;  %v39503_v61 = vpop.f32.mrb[91].mxu1  ;;  %41789 = vmatpush3.bf16.msra.mxu1 %v41788_v7  ;;  %41807 = vmatpush3.bf16.msra.mxu0 %v41776_v18  ;;  %v41836_v18 = vpack.c.bf16 %v34081_v16, %v34074_v35 }
0x1a31   :  { %41790 = vmatprep.subr.bf16.mxu1 %v47224_v28  ;;  %41808 = vmatprep.subr.bf16.mxu0 %v47224_v28 }
0x1a32   :  { %40029 = vmatprep.mubr.msk.f32.mxu1 %vm42613_vm4, %v47212_v6  ;;  %40062 = vmatprep.mubr.msk.f32.mxu0 %vm42613_vm4, %v47212_v6  ;;  %v29877_v17 = vadd.f32 %v45941_v26, %v29800_v12 }
0x1a34   :  { %41792 = vmatpush3.bf16.msra.mxu1 %v41791_v5  ;;  %41810 = vmatpush3.bf16.msra.mxu0 %v41779_v15 }
0x1a35   :  { %41799 = vmatprep.subr.bf16.mxu1 %v47224_v28  ;;  %41817 = vmatprep.subr.bf16.mxu0 %v47224_v28 }
0x1a37   :  { %v29959_v31 = vpop.f32.mrb[92].mxu1  ;;  %40030 = vmatmul.mubr.f32.vlgmr.msra.gmra.mrb[138].mxu1 %v46792_v53  ;;  %40063 = vmatmul.mubr.f32.vlgmr.msra.gmra.mrb[118].mxu0 %v46774_v13 }
0x1a38   :  { %v29960_v26 = vadd.f32 %v29959_v31, %v29877_v17  ;;  %v39525_v37 = vpop.f32.mrb[93].mxu1  ;;  %41801 = vmatpush3.bf16.msra.mxu1 %v41800_v2  ;;  %41819 = vmatpush3.bf16.msra.mxu0 %v41818_v51 }
0x1a39   :  { %41802 = vmatprep.subr.bf16.mxu1 %v47224_v28  ;;  %41820 = vmatprep.subr.bf16.mxu0 %v47224_v28 }
0x1a3a   :  { %v30035_v43 = vadd.f32 %v45958_v4, %v29960_v26  ;;  %40051 = vmatprep.mubr.msk.f32.mxu1 %vm42613_vm4, %v47212_v6  ;;  %40084 = vmatprep.mubr.msk.f32.mxu0 %vm42613_vm4, %v47212_v6  ;;  %v34063_v4 = vand.u32 4294901760, %v34062_v29 }
0x1a3c   :  { %v30038_v56 = vadd.f32 %v30035_v43, %v46819_v45  ;;  %41804 = vmatpush3.bf16.msra.mxu1 %v41803_v40  ;;  %41822 = vmatpush3.bf16.msra.mxu0 %v41821_v23  ;;  %v34064_v1 = vsub.f32 %v34062_v29, %v34063_v4 }
0x1a3d   :  { %41811 = vmatprep.subr.bf16.mxu1 %v47224_v28  ;;  %41829 = vmatprep.subr.bf16.mxu0 %v47224_v28 }
0x1a3f   :  { %v30122_v46 = vpop.f32.mrb[94].mxu1  ;;  %40052 = vmatmul.mubr.f32.vlgmr.msra.gmra.mrb[140].mxu1 %v46774_v13  ;;  %40085 = vmatmul.mubr.f32.vlgmr.msra.gmra.mrb[120].mxu0 %v46892_v3  ;;  %v34065_v13 = vand.u32 4294901760, %v34064_v1 }
0x1a40   :  { %v30214_v25 = vadd.f32 %v45970_v42, %v30122_v46  ;;  %v39547_v53 = vpop.f32.mrb[95].mxu1  ;;  %41813 = vmatpush3.bf16.msra.mxu1 %v41812_v48  ;;  %41831 = vmatpush3.bf16.msra.mxu0 %v41812_v48  ;;  %v41824_v42 = vpack.c.bf16 %v46824_v54, %v46816_v44  ;;  %v46958_v54 = vld [vmem:[%s46981_s10] sm:$0x1] }
0x1a41   :  { %41814 = vmatprep.subr.bf16.mxu1 %v47224_v28  ;;  %41832 = vmatprep.subr.bf16.mxu0 %v47224_v28 }
0x1a42   :  { %40073 = vmatprep.mubr.msk.f32.mxu1 %vm42613_vm4, %v47212_v6  ;;  %40106 = vmatprep.mubr.msk.f32.mxu0 %vm42613_vm4, %v47212_v6 }
0x1a44   :  { %41816 = vmatpush3.bf16.msra.mxu1 %v41815_v52  ;;  %41834 = vmatpush3.bf16.msra.mxu0 %v41815_v52 }
0x1a45   :  { %41823 = vmatprep.subr.bf16.mxu1 %v47224_v28  ;;  %41841 = vmatprep.subr.bf16.mxu0 %v47224_v28 }
0x1a47   :  { %v30293_v24 = vpop.f32.mrb[96].mxu1  ;;  %40074 = vmatmul.mubr.f32.vlgmr.msra.gmra.mrb[142].mxu1 %v34065_v13  ;;  %40107 = vmatmul.mubr.f32.vlgmr.msra.gmra.mrb[122].mxu0 %v34063_v4 }
0x1a48   :  { %v30294_v10 = vadd.f32 %v30293_v24, %v30214_v25  ;;  %v39569_v19 = vpop.f32.mrb[97].mxu1  ;;  %41825 = vmatpush3.bf16.msra.mxu1 %v41824_v42  ;;  %41843 = vmatpush3.bf16.msra.mxu0 %v41812_v48 }
0x1a49   :  { %41826 = vmatprep.subr.bf16.mxu1 %v47224_v28  ;;  %41844 = vmatprep.subr.bf16.mxu0 %v47224_v28 }
0x1a4a   :  { %40095 = vmatprep.mubr.msk.f32.mxu1 %vm42613_vm4, %v47212_v6  ;;  %40128 = vmatprep.mubr.msk.f32.mxu0 %vm42613_vm4, %v47212_v6  ;;  %v30371_v60 = vadd.f32 %v45980_v14, %v30294_v10  ;;  %v41839_v14 = vpack.c.bf16 %v34095_v32, %v34088_v0 }
0x1a4c   :  { %41828 = vmatpush3.bf16.msra.mxu1 %v41827_v50  ;;  %41846 = vmatpush3.bf16.msra.mxu0 %v41815_v52 }
0x1a4d   :  { %41835 = vmatprep.subr.bf16.mxu1 %v47224_v28 }
0x1a4f   :  { %v30453_v45 = vpop.f32.mrb[98].mxu1  ;;  %40096 = vmatmul.mubr.f32.vlgmr.msra.gmra.mrb[144].mxu1 %v34062_v29  ;;  %40129 = vmatmul.mubr.f32.vlgmr.msra.gmra.mrb[124].mxu0 %v46892_v3 }
0x1a50   :  { %v30454_v9 = vadd.f32 %v30453_v45, %v30371_v60  ;;  %v39591_v27 = vpop.f32.mrb[99].mxu1  ;;  %41837 = vmatpush3.bf16.msra.mxu1 %v41836_v18  ;;  %40117 = vmatprep.mubr.msk.f32.mxu1 %vm42613_vm4, %v47212_v6 }
0x1a51   :  { %41838 = vmatprep.subr.bf16.mxu1 %v47224_v28 }
0x1a52   :  { %v30529_v44 = vadd.f32 %v45995_v58, %v30454_v9 }
0x1a54   :  { %v30532_v22 = vadd.f32 %v30529_v44, %v30038_v56  ;;  %41840 = vmatpush3.bf16.msra.mxu1 %v41839_v14 }
0x1a56   :  { %v30533_v59 = vadd.f32 %v30532_v22, %v46958_v54 }
0x1a57   :  { %40118 = vmatmul.mubr.f32.vlgmr.msra.gmra.mrb[146].mxu1 %v46892_v3 }
0x1a58   :  { %30535 = vst.msk [vmem:[%s46982_s11] sm:$0x1] %vm30534_vm5, %v30533_v59 }
0x1a6a   :  { %v30714_v6 = vpop.f32.mrb[78].mxu0 }
0x1a6b   :  { %v39624_v28 = vpop.f32.mrb[79].mxu0 }
0x1a72   :  { %v30871_v58 = vpop.f32.mrb[80].mxu0  ;;  %v30623_v15 = vpop.f32.mrb[100].mxu1 }
0x1a73   :  { %v30715_v35 = vadd.f32 %v30714_v6, %v30623_v15  ;;  %v39646_v62 = vpop.f32.mrb[81].mxu0  ;;  %v39613_v63 = vpop.f32.mrb[101].mxu1 }
0x1a7a   :  { %v30794_v16 = vpop.f32.mrb[102].mxu1  ;;  %v31029_v57 = vpop.f32.mrb[82].mxu0 }
0x1a7b   :  { %v30795_v36 = vadd.f32 %v30794_v16, %v30715_v35  ;;  %v39635_v33 = vpop.f32.mrb[103].mxu1  ;;  %v39668_v41 = vpop.f32.mrb[83].mxu0 }
0x1a7d   :  { %v30872_v7 = vadd.f32 %v30871_v58, %v30795_v36 }
0x1a82   :  { %v30954_v47 = vpop.f32.mrb[104].mxu1  ;;  %v31201_v0 = vpop.f32.mrb[84].mxu0 }
0x1a83   :  { %v30955_v32 = vadd.f32 %v30954_v47, %v30872_v7  ;;  %v39657_v34 = vpop.f32.mrb[105].mxu1  ;;  %v39690_v55 = vpop.f32.mrb[85].mxu0 }
0x1a85   :  { %v31030_v39 = vadd.f32 %v31029_v57, %v30955_v32 }
0x1a8a   :  { %v31110_v5 = vpop.f32.mrb[106].mxu1  ;;  %v31358_v20 = vpop.f32.mrb[86].mxu0 }
0x1a8b   :  { %v31111_v12 = vadd.f32 %v31110_v5, %v31030_v39  ;;  %v39679_v61 = vpop.f32.mrb[107].mxu1  ;;  %v39712_v8 = vpop.f32.mrb[87].mxu0 }
0x1a8d   :  { %v31202_v11 = vadd.f32 %v31201_v0, %v31111_v12 }
0x1a92   :  { %v31281_v21 = vpop.f32.mrb[108].mxu1  ;;  %v31516_v17 = vpop.f32.mrb[88].mxu0 }
0x1a93   :  { %v31282_v38 = vadd.f32 %v31281_v21, %v31202_v11  ;;  %v39701_v2 = vpop.f32.mrb[109].mxu1  ;;  %v39734_v51 = vpop.f32.mrb[89].mxu0 }
0x1a95   :  { %v31359_v49 = vadd.f32 %v31358_v20, %v31282_v38 }
0x1a9a   :  { %v31441_v30 = vpop.f32.mrb[110].mxu1  ;;  %v31693_v3 = vpop.f32.mrb[90].mxu0 }
0x1a9b   :  { %v31442_v31 = vadd.f32 %v31441_v30, %v31359_v49  ;;  %v39723_v26 = vpop.f32.mrb[111].mxu1  ;;  %v39756_v37 = vpop.f32.mrb[91].mxu0 }
0x1a9d   :  { %v31517_v40 = vadd.f32 %v31516_v17, %v31442_v31 }
0x1aa2   :  { %v31602_v23 = vpop.f32.mrb[112].mxu1  ;;  %v31850_v29 = vpop.f32.mrb[92].mxu0 }
0x1aa3   :  { %v31694_v43 = vadd.f32 %v31693_v3, %v31602_v23  ;;  %v39745_v56 = vpop.f32.mrb[113].mxu1  ;;  %v39778_v48 = vpop.f32.mrb[93].mxu0 }
0x1aaa   :  { %v31773_v4 = vpop.f32.mrb[114].mxu1  ;;  %v32008_v46 = vpop.f32.mrb[94].mxu0 }
0x1aab   :  { %v31774_v25 = vadd.f32 %v31773_v4, %v31694_v43  ;;  %v39767_v53 = vpop.f32.mrb[115].mxu1  ;;  %v39800_v52 = vpop.f32.mrb[95].mxu0 }
0x1aad   :  { %v31851_v1 = vadd.f32 %v31850_v29, %v31774_v25 }
0x1ab2   :  { %v31933_v42 = vpop.f32.mrb[116].mxu1  ;;  %v32186_v13 = vpop.f32.mrb[96].mxu0 }
0x1ab3   :  { %v31934_v24 = vadd.f32 %v31933_v42, %v31851_v1  ;;  %v39789_v10 = vpop.f32.mrb[117].mxu1  ;;  %v39822_v19 = vpop.f32.mrb[97].mxu0 }
0x1ab5   :  { %v32009_v50 = vadd.f32 %v32008_v46, %v31934_v24 }
0x1ab7   :  { %v32012_v60 = vadd.f32 %v32009_v50, %v31517_v40 }
0x1aba   :  { %v32095_v18 = vpop.f32.mrb[118].mxu1  ;;  %v32343_v45 = vpop.f32.mrb[98].mxu0 }
0x1abb   :  { %v32187_v9 = vadd.f32 %v32186_v13, %v32095_v18  ;;  %v39811_v27 = vpop.f32.mrb[119].mxu1  ;;  %v39844_v14 = vpop.f32.mrb[99].mxu0 }
0x1ac2   :  { %v32266_v44 = vpop.f32.mrb[120].mxu1  ;;  %v32501_v22 = vpop.f32.mrb[100].mxu0 }
0x1ac3   :  { %v32267_v59 = vadd.f32 %v32266_v44, %v32187_v9  ;;  %v39833_v6 = vpop.f32.mrb[121].mxu1  ;;  %v39866_v28 = vpop.f32.mrb[101].mxu0 }
0x1ac5   :  { %v32344_v58 = vadd.f32 %v32343_v45, %v32267_v59 }
0x1aca   :  { %v32426_v15 = vpop.f32.mrb[122].mxu1  ;;  %v32679_v35 = vpop.f32.mrb[102].mxu0 }
0x1acb   :  { %v32427_v62 = vadd.f32 %v32426_v15, %v32344_v58  ;;  %v39855_v63 = vpop.f32.mrb[123].mxu1  ;;  %v39888_v16 = vpop.f32.mrb[103].mxu0 }
0x1acd   :  { %v32502_v57 = vadd.f32 %v32501_v22, %v32427_v62 }
0x1acf   :  { %v32505_v36 = vadd.f32 %v32502_v57, %v32012_v60 }
0x1ad2   :  { %v32588_v33 = vpop.f32.mrb[124].mxu1  ;;  %v32836_v41 = vpop.f32.mrb[104].mxu0 }
0x1ad3   :  { %v32680_v7 = vadd.f32 %v32679_v35, %v32588_v33  ;;  %v39877_v47 = vpop.f32.mrb[125].mxu1  ;;  %v39910_v0 = vpop.f32.mrb[105].mxu0 }
0x1ada   :  { %v32759_v32 = vpop.f32.mrb[126].mxu1  ;;  %v32994_v34 = vpop.f32.mrb[106].mxu0 }
0x1adb   :  { %v32760_v55 = vadd.f32 %v32759_v32, %v32680_v7  ;;  %v39899_v39 = vpop.f32.mrb[127].mxu1  ;;  %v39932_v5 = vpop.f32.mrb[107].mxu0 }
0x1add   :  { %v32837_v20 = vadd.f32 %v32836_v41, %v32760_v55 }
0x1ae2   :  { %v32919_v12 = vpop.f32.mrb[128].mxu1  ;;  %v33172_v61 = vpop.f32.mrb[108].mxu0 }
0x1ae3   :  { %v32920_v8 = vadd.f32 %v32919_v12, %v32837_v20  ;;  %v39921_v11 = vpop.f32.mrb[129].mxu1  ;;  %v39954_v21 = vpop.f32.mrb[109].mxu0 }
0x1ae5   :  { %v32995_v17 = vadd.f32 %v32994_v34, %v32920_v8 }
0x1ae7   :  { %v32998_v38 = vadd.f32 %v32995_v17, %v32505_v36 }
0x1aea   :  { %v33081_v2 = vpop.f32.mrb[130].mxu1  ;;  %v33329_v51 = vpop.f32.mrb[110].mxu0 }
0x1aeb   :  { %v33173_v49 = vadd.f32 %v33172_v61, %v33081_v2  ;;  %v39943_v30 = vpop.f32.mrb[131].mxu1  ;;  %v39976_v3 = vpop.f32.mrb[111].mxu0 }
0x1af2   :  { %v33252_v31 = vpop.f32.mrb[132].mxu1  ;;  %v33487_v26 = vpop.f32.mrb[112].mxu0 }
0x1af3   :  { %v33253_v37 = vadd.f32 %v33252_v31, %v33173_v49  ;;  %v39965_v40 = vpop.f32.mrb[133].mxu1  ;;  %v39998_v23 = vpop.f32.mrb[113].mxu0 }
0x1af5   :  { %v33330_v29 = vadd.f32 %v33329_v51, %v33253_v37 }
0x1afa   :  { %v33412_v43 = vpop.f32.mrb[134].mxu1  ;;  %v33665_v56 = vpop.f32.mrb[114].mxu0 }
0x1afb   :  { %v33413_v48 = vadd.f32 %v33412_v43, %v33330_v29  ;;  %v39987_v4 = vpop.f32.mrb[135].mxu1  ;;  %v40020_v46 = vpop.f32.mrb[115].mxu0 }
0x1afd   :  { %v33488_v25 = vadd.f32 %v33487_v26, %v33413_v48 }
0x1aff   :  { %v33491_v53 = vadd.f32 %v33488_v25, %v32998_v38 }
0x1b02   :  { %v33574_v52 = vpop.f32.mrb[136].mxu1  ;;  %v33822_v1 = vpop.f32.mrb[116].mxu0 }
0x1b03   :  { %v33666_v42 = vadd.f32 %v33665_v56, %v33574_v52  ;;  %v40009_v13 = vpop.f32.mrb[137].mxu1  ;;  %v40042_v24 = vpop.f32.mrb[117].mxu0 }
0x1b0a   :  { %v33745_v10 = vpop.f32.mrb[138].mxu1  ;;  %v33980_v19 = vpop.f32.mrb[118].mxu0 }
0x1b0b   :  { %v33746_v50 = vadd.f32 %v33745_v10, %v33666_v42  ;;  %v40031_v60 = vpop.f32.mrb[139].mxu1  ;;  %v40064_v18 = vpop.f32.mrb[119].mxu0 }
0x1b0d   :  { %v33823_v45 = vadd.f32 %v33822_v1, %v33746_v50 }
0x1b12   :  { %v33905_v9 = vpop.f32.mrb[140].mxu1  ;;  %v34158_v27 = vpop.f32.mrb[120].mxu0 }
0x1b13   :  { %v33906_v14 = vadd.f32 %v33905_v9, %v33823_v45  ;;  %v40053_v44 = vpop.f32.mrb[141].mxu1  ;;  %v40086_v22 = vpop.f32.mrb[121].mxu0 }
0x1b15   :  { %v33981_v59 = vadd.f32 %v33980_v19, %v33906_v14 }
0x1b17   :  { %v33984_v6 = vadd.f32 %v33981_v59, %v33491_v53 }
0x1b1a   :  { %v34067_v28 = vpop.f32.mrb[142].mxu1  ;;  %v34315_v58 = vpop.f32.mrb[122].mxu0 }
0x1b1b   :  { %v34159_v15 = vadd.f32 %v34158_v27, %v34067_v28  ;;  %v40075_v35 = vpop.f32.mrb[143].mxu1  ;;  %v40108_v62 = vpop.f32.mrb[123].mxu0 }
0x1b22   :  { %v34238_v63 = vpop.f32.mrb[144].mxu1  ;;  %v34473_v16 = vpop.f32.mrb[124].mxu0 }
0x1b23   :  { %v34239_v57 = vadd.f32 %v34238_v63, %v34159_v15  ;;  %v40097_v36 = vpop.f32.mrb[145].mxu1  ;;  %v40130_v33 = vpop.f32.mrb[125].mxu0 }
0x1b25   :  { %v34316_v41 = vadd.f32 %v34315_v58, %v34239_v57 }
0x1b2a   :  { %v34398_v7 = vpop.f32.mrb[146].mxu1 }
0x1b2b   :  { %v34399_v47 = vadd.f32 %v34398_v7, %v34316_v41  ;;  %v40119_v0 = vpop.f32.mrb[147].mxu1 }
0x1b2d   :  { %v34474_v32 = vadd.f32 %v34473_v16, %v34399_v47 }
0x1b2f   :  { %v34477_v34 = vadd.f32 %v34474_v32, %v33984_v6 }
0x1b31   :  { %v34478_v55 = vadd.f32 %v34477_v34, %v46958_v54 }
0x1b33   :  { %34562 = vst.msk [vmem:[%s46982_s11 + $0x1] sm:$0x1] %vm30534_vm5, %v34478_v55 }

</bundles_post_ra>
